<compile_context>
chip_gen: v7x
topology: tpu7x:2x2x1
jax: 0.10.0
libtpu: 0.0.40
codegen_flags: <defaults>
</compile_context>

<pallas_src>
import functools

import jax
import jax.numpy as jnp
from jax import lax
from jax.experimental import pallas as pl
from jax.experimental.pallas import tpu as pltpu


# (name, kind, ksize, cin, cout, has_relu_bn)
LAYER_DEFS = (
    ("convblock1", "conv", 3, 1, 16, True),
    ("convblock2", "conv", 3, 16, 24, True),
    ("convblock3", "conv", 3, 24, 32, True),
    ("pool1", "pool", 2, None, None, False),
    ("transition1", "conv", 1, 32, 16, False),
    ("convblock4", "conv", 3, 16, 8, True),
    ("convblock5", "conv", 3, 8, 16, True),
    ("convblock6", "conv", 3, 16, 20, True),
    ("transition2", "conv", 1, 20, 24, False),
    ("convblock7", "conv", 3, 24, 18, True),
    ("convblock8", "conv", 3, 18, 10, True),
    # gap = AvgPool2d(kernel_size=(1,1)) -> identity, skipped.
    ("convblock9", "conv", 1, 10, 10, False),
)


# ------------------------------------------------------------ static planner --

def build_plan(h, w):
    """Static schedule for the flat-canvas layout.

    An activation is a (C, L) array whose lane p encodes spatial position
    (i, j) as p = i*rs + j*cs.  A VALID KxK conv tap (kh, kw) is a read at
    p + kh*rs + kw*cs; the 2x2 maxpool doubles (rs, cs) (stride-2 folded into
    downstream offsets).  L shrinks by the max tap shift per layer; invalid
    lanes carry garbage that valid lanes never read.
    """
    plan = []
    rs, cs = w, 1          # canvas row / col stride (in lanes)
    length = h * w         # lanes carried into the first layer
    vh, vw = h, w          # valid spatial extent (for sanity checks only)
    for name, kind, k, cin, cout, has_bn in LAYER_DEFS:
        if kind == "pool":
            shifts = (0, cs, rs, rs + cs)
            length = length - (rs + cs)
            plan.append(dict(name=name, kind=kind, shifts=shifts, l_out=length))
            rs, cs = 2 * rs, 2 * cs
            vh, vw = vh // 2, vw // 2
        else:
            shifts = tuple(kh * rs + kw * cs for kh in range(k) for kw in range(k))
            length = length - shifts[-1]
            plan.append(dict(name=name, kind=kind, k=k, cin=cin, cout=cout,
                             has_bn=has_bn, shifts=shifts, l_out=length))
            vh, vw = vh - (k - 1), vw - (k - 1)
        assert length >= 1 and vh >= 1 and vw >= 1, (name, length, vh, vw)
    # The PyTorch head does x.view(N, -1) -> (N, 10): spatial must end at 1x1.
    assert (vh, vw) == (1, 1), "Net expects 28x28 single-channel inputs."
    return plan


# ------------------------------------------------------------- fused kernel --

def _make_fused_kernel(plan):
    """Whole-network kernel: refs = (x, *per-layer params, out)."""

    def kernel(*refs):
        x_ref, out_ref = refs[0], refs[-1]
        prm = refs[1:-1]
        pi = 0

        x = x_ref[0]                                   # (Cin=1, H*W) bf16 canvas
        for lay in plan:
            L = lay["l_out"]
            if lay["kind"] == "pool":
                s0, s1, s2, s3 = lay["shifts"]
                x = jnp.maximum(
                    jnp.maximum(x[:, s0:s0 + L], x[:, s1:s1 + L]),
                    jnp.maximum(x[:, s2:s2 + L], x[:, s3:s3 + L]))
                continue

            cin, cout = lay["cin"], lay["cout"]
            w_ref, b_ref = prm[pi], prm[pi + 1]
            pi += 2
            if lay["has_bn"]:
                sc_ref, sh_ref = prm[pi], prm[pi + 1]
                pi += 2

            # Direct conv = sum over taps of (Cout,Cin) @ (Cin,L) matmuls on the
            # MXU (in-kernel im2col via shifted lane slices; f32 accumulation).
            acc = None
            for t, s in enumerate(lay["shifts"]):
                wt = w_ref[:, t * cin:(t + 1) * cin]   # (Cout, Cin)  bf16
                xs = x[:, s:s + L]                     # (Cin,  L)    bf16
                if cin == 1:
                    # Degenerate K=1 contraction -> cheap VPU broadcast multiply.
                    d = wt.astype(jnp.float32) * xs.astype(jnp.float32)
                else:
                    d = jnp.dot(wt, xs, preferred_element_type=jnp.float32)
                acc = d if acc is None else acc + d

            z = acc + b_ref[...]                       # bias (Cout, 1) f32
            if lay["has_bn"]:
                # Conv -> ReLU -> BatchNorm(eval) == scale*relu(z) + shift.
                z = jnp.maximum(z, 0.0) * sc_ref[...] + sh_ref[...]
            # Dropout: identity at inference.
            x = z.astype(jnp.bfloat16)

        # Final activation is (10, 1): the 10 logits.  Fused log_softmax.
        y = x.astype(jnp.float32)
        m = jnp.max(y, axis=0, keepdims=True)
        e = jnp.exp(y - m)
        out_ref[0] = (y - m) - jnp.log(jnp.sum(e, axis=0, keepdims=True))

    return kernel


# ------------------------------------------------------------------ wrapper --

def _const_spec(shape):
    nd = len(shape)
    return pl.BlockSpec(shape, lambda n, _nd=nd: (0,) * _nd)


def net_forward(params, x_nchw):
    """Replicates Net_1.forward (eval mode). Input NCHW f32, output (N, 10)."""
    n, c, h, w = x_nchw.shape
    assert c == 1, "Net_1 expects a single input channel."
    plan = build_plan(h, w)
    l0 = h * w

    inputs = [x_nchw.reshape(n, 1, l0).astype(jnp.bfloat16)]
    in_specs = [pl.BlockSpec((1, 1, l0), lambda i: (i, 0, 0))]
    for lay in plan:
        if lay["kind"] == "pool":
            continue
        p = params[lay["name"]]
        k, cin, cout = lay["k"], lay["cin"], lay["cout"]
        # HWIO -> (Cout, KH*KW*Cin); column order (kh, kw, cin) matches the
        # kernel's tap-major weight slicing.
        wmat = jnp.transpose(p["w"], (3, 0, 1, 2)).reshape(cout, k * k * cin)
        arrs = [wmat.astype(jnp.bfloat16),
                p["b"].reshape(cout, 1).astype(jnp.float32)]
        if lay["has_bn"]:
            arrs += [p["scale"].reshape(cout, 1).astype(jnp.float32),
                     p["shift"].reshape(cout, 1).astype(jnp.float32)]
        for a in arrs:
            inputs.append(a)
            in_specs.append(_const_spec(a.shape))

    out = pl.pallas_call(
        _make_fused_kernel(plan),
        out_shape=jax.ShapeDtypeStruct((n, 10, 1), jnp.float32),
        grid=(n,),
        in_specs=in_specs,
        out_specs=pl.BlockSpec((1, 10, 1), lambda i: (i, 0, 0)),
        compiler_params=pltpu.CompilerParams(
            dimension_semantics=("parallel",)),   # v7x: 2 TCs split the batch
    )(*inputs)
    return out[:, :, 0]                                # (N, 10)


# ----------------------------------------------------- params & pure-JAX ref --

def init_params(key):
    """Deterministic synthetic parameters; eval-mode BN folded to scale/shift
    applied AFTER ReLU (Conv -> ReLU -> BN ordering of the PyTorch blocks)."""
    params = {}
    eps = 1e-5
    for name, kind, k, cin, cout, has_bn in LAYER_DEFS:
        if kind == "pool":
            continue
        key, *ks = jax.random.split(key, 7)
        fan_in = k * k * cin
        w = jax.random.normal(ks[0], (k, k, cin, cout), jnp.float32) / jnp.sqrt(fan_in)
        b = 0.05 * jax.random.normal(ks[1], (cout,), jnp.float32)
        layer = dict(w=w, b=b)
        if has_bn:
            gamma = 1.0 + 0.1 * jax.random.normal(ks[2], (cout,), jnp.float32)
            beta = 0.1 * jax.random.normal(ks[3], (cout,), jnp.float32)
            r_mean = 0.1 * jax.random.normal(ks[4], (cout,), jnp.float32)
            r_var = 0.9 + 0.1 * jnp.abs(jax.random.normal(ks[5], (cout,), jnp.float32))
            scale = gamma / jnp.sqrt(r_var + eps)
            layer["scale"] = scale
            layer["shift"] = beta - r_mean * scale
        params[name] = layer
    return params


def reference_forward(params, x_nchw):
    """Plain-JAX (XLA) reference of the same forward, for validation."""
    x = jnp.transpose(x_nchw, (0, 2, 3, 1)).astype(jnp.float32)   # NCHW -> NHWC
    for name, kind, k, cin, cout, has_bn in LAYER_DEFS:
        if kind == "pool":
            x = jnp.maximum(
                jnp.maximum(x[:, 0::2, 0::2, :], x[:, 0::2, 1::2, :]),
                jnp.maximum(x[:, 1::2, 0::2, :], x[:, 1::2, 1::2, :]))
            continue
        p = params[name]
        x = lax.conv_general_dilated(x, p["w"], (1, 1), "VALID",
                                     dimension_numbers=("NHWC", "HWIO", "NHWC"))
        x = x + p["b"]
        if has_bn:
            x = jnp.maximum(x, 0.0) * p["scale"] + p["shift"]
    logits = x.reshape(x.shape[0], -1)
    return jax.nn.log_softmax(logits, axis=-1)


# --------------------------------------------------------------------- main --

if __name__ == "__main__":
    key = jax.random.PRNGKey(0)
    pkey, xkey = jax.random.split(key)
    params = init_params(pkey)
    # MNIST-like input implied by the module: 1 channel, 28x28 (convblock8
    # reaches 1x1 spatial so the final view gives (N, 10)). Small batch = 2.
    x = jax.random.normal(xkey, (2, 1, 28, 28), jnp.float32)

    fwd = jax.jit(functools.partial(net_forward, params))
    out = jax.block_until_ready(fwd(x))

    assert out.shape == (2, 10), out.shape
    # log_softmax rows must exponentiate-and-sum to ~1.
    assert bool(jnp.allclose(jnp.sum(jnp.exp(out), axis=-1), 1.0, atol=1e-3))

    # Validate against the pure-JAX reference (bf16 MXU inputs -> loose tol).
    ref = jax.block_until_ready(
        jax.jit(functools.partial(reference_forward, params))(x))
    max_err = float(jnp.max(jnp.abs(out - ref)))
    assert max_err < 0.25, f"mismatch vs reference: {max_err}"

    print("KERNEL_OK")
</pallas_src>

<mosaic_0001>
module attributes {stable_mosaic.version = 11 : i64} {
  func.func @kernel(%arg0: i32, %arg1: memref<1x1x784xbf16, #tpu.memory_space<vmem>>, %arg2: memref<16x9xbf16, #tpu.memory_space<vmem>>, %arg3: memref<16x1xf32, #tpu.memory_space<vmem>>, %arg4: memref<16x1xf32, #tpu.memory_space<vmem>>, %arg5: memref<16x1xf32, #tpu.memory_space<vmem>>, %arg6: memref<24x144xbf16, #tpu.memory_space<vmem>>, %arg7: memref<24x1xf32, #tpu.memory_space<vmem>>, %arg8: memref<24x1xf32, #tpu.memory_space<vmem>>, %arg9: memref<24x1xf32, #tpu.memory_space<vmem>>, %arg10: memref<32x216xbf16, #tpu.memory_space<vmem>>, %arg11: memref<32x1xf32, #tpu.memory_space<vmem>>, %arg12: memref<32x1xf32, #tpu.memory_space<vmem>>, %arg13: memref<32x1xf32, #tpu.memory_space<vmem>>, %arg14: memref<16x32xbf16, #tpu.memory_space<vmem>>, %arg15: memref<16x1xf32, #tpu.memory_space<vmem>>, %arg16: memref<8x144xbf16, #tpu.memory_space<vmem>>, %arg17: memref<8x1xf32, #tpu.memory_space<vmem>>, %arg18: memref<8x1xf32, #tpu.memory_space<vmem>>, %arg19: memref<8x1xf32, #tpu.memory_space<vmem>>, %arg20: memref<16x72xbf16, #tpu.memory_space<vmem>>, %arg21: memref<16x1xf32, #tpu.memory_space<vmem>>, %arg22: memref<16x1xf32, #tpu.memory_space<vmem>>, %arg23: memref<16x1xf32, #tpu.memory_space<vmem>>, %arg24: memref<20x144xbf16, #tpu.memory_space<vmem>>, %arg25: memref<20x1xf32, #tpu.memory_space<vmem>>, %arg26: memref<20x1xf32, #tpu.memory_space<vmem>>, %arg27: memref<20x1xf32, #tpu.memory_space<vmem>>, %arg28: memref<24x20xbf16, #tpu.memory_space<vmem>>, %arg29: memref<24x1xf32, #tpu.memory_space<vmem>>, %arg30: memref<18x216xbf16, #tpu.memory_space<vmem>>, %arg31: memref<18x1xf32, #tpu.memory_space<vmem>>, %arg32: memref<18x1xf32, #tpu.memory_space<vmem>>, %arg33: memref<18x1xf32, #tpu.memory_space<vmem>>, %arg34: memref<10x162xbf16, #tpu.memory_space<vmem>>, %arg35: memref<10x1xf32, #tpu.memory_space<vmem>>, %arg36: memref<10x1xf32, #tpu.memory_space<vmem>>, %arg37: memref<10x1xf32, #tpu.memory_space<vmem>>, %arg38: memref<10x10xbf16, #tpu.memory_space<vmem>>, %arg39: memref<10x1xf32, #tpu.memory_space<vmem>>, %arg40: memref<1x10x1xf32, #tpu.memory_space<vmem>>) attributes {dimension_semantics = [#tpu.dimension_semantics<parallel>], iteration_bounds = array<i64: 2>, scalar_prefetch = 0 : i64, scratch_operands = 0 : i64, tpu.core_type = #tpu.core_type<tc>, window_params = [{transform_indices = @transform_0, window_bounds = array<i64: 1, 1, 784>}, {pipeline_mode = #tpu.pipeline_mode<synchronous>, transform_indices = @transform_1, window_bounds = array<i64: 16, 9>}, {pipeline_mode = #tpu.pipeline_mode<synchronous>, transform_indices = @transform_2, window_bounds = array<i64: 16, 1>}, {pipeline_mode = #tpu.pipeline_mode<synchronous>, transform_indices = @transform_3, window_bounds = array<i64: 16, 1>}, {pipeline_mode = #tpu.pipeline_mode<synchronous>, transform_indices = @transform_4, window_bounds = array<i64: 16, 1>}, {pipeline_mode = #tpu.pipeline_mode<synchronous>, transform_indices = @transform_5, window_bounds = array<i64: 24, 144>}, {pipeline_mode = #tpu.pipeline_mode<synchronous>, transform_indices = @transform_6, window_bounds = array<i64: 24, 1>}, {pipeline_mode = #tpu.pipeline_mode<synchronous>, transform_indices = @transform_7, window_bounds = array<i64: 24, 1>}, {pipeline_mode = #tpu.pipeline_mode<synchronous>, transform_indices = @transform_8, window_bounds = array<i64: 24, 1>}, {pipeline_mode = #tpu.pipeline_mode<synchronous>, transform_indices = @transform_9, window_bounds = array<i64: 32, 216>}, {pipeline_mode = #tpu.pipeline_mode<synchronous>, transform_indices = @transform_10, window_bounds = array<i64: 32, 1>}, {pipeline_mode = #tpu.pipeline_mode<synchronous>, transform_indices = @transform_11, window_bounds = array<i64: 32, 1>}, {pipeline_mode = #tpu.pipeline_mode<synchronous>, transform_indices = @transform_12, window_bounds = array<i64: 32, 1>}, {pipeline_mode = #tpu.pipeline_mode<synchronous>, transform_indices = @transform_13, window_bounds = array<i64: 16, 32>}, {pipeline_mode = #tpu.pipeline_mode<synchronous>, transform_indices = @transform_14, window_bounds = array<i64: 16, 1>}, {pipeline_mode = #tpu.pipeline_mode<synchronous>, transform_indices = @transform_15, window_bounds = array<i64: 8, 144>}, {pipeline_mode = #tpu.pipeline_mode<synchronous>, transform_indices = @transform_16, window_bounds = array<i64: 8, 1>}, {pipeline_mode = #tpu.pipeline_mode<synchronous>, transform_indices = @transform_17, window_bounds = array<i64: 8, 1>}, {pipeline_mode = #tpu.pipeline_mode<synchronous>, transform_indices = @transform_18, window_bounds = array<i64: 8, 1>}, {pipeline_mode = #tpu.pipeline_mode<synchronous>, transform_indices = @transform_19, window_bounds = array<i64: 16, 72>}, {pipeline_mode = #tpu.pipeline_mode<synchronous>, transform_indices = @transform_20, window_bounds = array<i64: 16, 1>}, {pipeline_mode = #tpu.pipeline_mode<synchronous>, transform_indices = @transform_21, window_bounds = array<i64: 16, 1>}, {pipeline_mode = #tpu.pipeline_mode<synchronous>, transform_indices = @transform_22, window_bounds = array<i64: 16, 1>}, {pipeline_mode = #tpu.pipeline_mode<synchronous>, transform_indices = @transform_23, window_bounds = array<i64: 20, 144>}, {pipeline_mode = #tpu.pipeline_mode<synchronous>, transform_indices = @transform_24, window_bounds = array<i64: 20, 1>}, {pipeline_mode = #tpu.pipeline_mode<synchronous>, transform_indices = @transform_25, window_bounds = array<i64: 20, 1>}, {pipeline_mode = #tpu.pipeline_mode<synchronous>, transform_indices = @transform_26, window_bounds = array<i64: 20, 1>}, {pipeline_mode = #tpu.pipeline_mode<synchronous>, transform_indices = @transform_27, window_bounds = array<i64: 24, 20>}, {pipeline_mode = #tpu.pipeline_mode<synchronous>, transform_indices = @transform_28, window_bounds = array<i64: 24, 1>}, {pipeline_mode = #tpu.pipeline_mode<synchronous>, transform_indices = @transform_29, window_bounds = array<i64: 18, 216>}, {pipeline_mode = #tpu.pipeline_mode<synchronous>, transform_indices = @transform_30, window_bounds = array<i64: 18, 1>}, {pipeline_mode = #tpu.pipeline_mode<synchronous>, transform_indices = @transform_31, window_bounds = array<i64: 18, 1>}, {pipeline_mode = #tpu.pipeline_mode<synchronous>, transform_indices = @transform_32, window_bounds = array<i64: 18, 1>}, {pipeline_mode = #tpu.pipeline_mode<synchronous>, transform_indices = @transform_33, window_bounds = array<i64: 10, 162>}, {pipeline_mode = #tpu.pipeline_mode<synchronous>, transform_indices = @transform_34, window_bounds = array<i64: 10, 1>}, {pipeline_mode = #tpu.pipeline_mode<synchronous>, transform_indices = @transform_35, window_bounds = array<i64: 10, 1>}, {pipeline_mode = #tpu.pipeline_mode<synchronous>, transform_indices = @transform_36, window_bounds = array<i64: 10, 1>}, {pipeline_mode = #tpu.pipeline_mode<synchronous>, transform_indices = @transform_37, window_bounds = array<i64: 10, 10>}, {pipeline_mode = #tpu.pipeline_mode<synchronous>, transform_indices = @transform_38, window_bounds = array<i64: 10, 1>}, {transform_indices = @transform_39, window_bounds = array<i64: 1, 10, 1>}]} {
    %c0 = arith.constant 0 : index
    %c0_0 = arith.constant 0 : index
    %c0_1 = arith.constant 0 : index
    %0 = vector.load %arg1[%c0, %c0_0, %c0_1] : memref<1x1x784xbf16, #tpu.memory_space<vmem>>, vector<1x1x784xbf16>
    %1 = vector.shape_cast %0 : vector<1x1x784xbf16> to vector<1x784xbf16>
    %c0_2 = arith.constant 0 : index
    %c0_3 = arith.constant 0 : index
    %2 = vector.load %arg2[%c0_2, %c0_3] : memref<16x9xbf16, #tpu.memory_space<vmem>>, vector<16x1xbf16>
    %3 = vector.extract_strided_slice %1 {offsets = [0, 0], sizes = [1, 726], strides = [1, 1]} : vector<1x784xbf16> to vector<1x726xbf16>
    %4 = arith.extf %2 : vector<16x1xbf16> to vector<16x1xf32>
    %5 = arith.extf %3 : vector<1x726xbf16> to vector<1x726xf32>
    %6 = vector.broadcast %4 : vector<16x1xf32> to vector<16x726xf32>
    %7 = vector.broadcast %5 : vector<1x726xf32> to vector<16x726xf32>
    %8 = arith.mulf %6, %7 : vector<16x726xf32>
    %c0_4 = arith.constant 0 : index
    %c1 = arith.constant 1 : index
    %9 = vector.load %arg2[%c0_4, %c1] : memref<16x9xbf16, #tpu.memory_space<vmem>>, vector<16x1xbf16>
    %10 = vector.extract_strided_slice %1 {offsets = [0, 1], sizes = [1, 726], strides = [1, 1]} : vector<1x784xbf16> to vector<1x726xbf16>
    %11 = arith.extf %9 : vector<16x1xbf16> to vector<16x1xf32>
    %12 = arith.extf %10 : vector<1x726xbf16> to vector<1x726xf32>
    %13 = vector.broadcast %11 : vector<16x1xf32> to vector<16x726xf32>
    %14 = vector.broadcast %12 : vector<1x726xf32> to vector<16x726xf32>
    %15 = arith.mulf %13, %14 : vector<16x726xf32>
    %16 = arith.addf %8, %15 : vector<16x726xf32>
    %c0_5 = arith.constant 0 : index
    %c2 = arith.constant 2 : index
    %17 = vector.load %arg2[%c0_5, %c2] : memref<16x9xbf16, #tpu.memory_space<vmem>>, vector<16x1xbf16>
    %18 = vector.extract_strided_slice %1 {offsets = [0, 2], sizes = [1, 726], strides = [1, 1]} : vector<1x784xbf16> to vector<1x726xbf16>
    %19 = arith.extf %17 : vector<16x1xbf16> to vector<16x1xf32>
    %20 = arith.extf %18 : vector<1x726xbf16> to vector<1x726xf32>
    %21 = vector.broadcast %19 : vector<16x1xf32> to vector<16x726xf32>
    %22 = vector.broadcast %20 : vector<1x726xf32> to vector<16x726xf32>
    %23 = arith.mulf %21, %22 : vector<16x726xf32>
    %24 = arith.addf %16, %23 : vector<16x726xf32>
    %c0_6 = arith.constant 0 : index
    %c3 = arith.constant 3 : index
    %25 = vector.load %arg2[%c0_6, %c3] : memref<16x9xbf16, #tpu.memory_space<vmem>>, vector<16x1xbf16>
    %26 = vector.extract_strided_slice %1 {offsets = [0, 28], sizes = [1, 726], strides = [1, 1]} : vector<1x784xbf16> to vector<1x726xbf16>
    %27 = arith.extf %25 : vector<16x1xbf16> to vector<16x1xf32>
    %28 = arith.extf %26 : vector<1x726xbf16> to vector<1x726xf32>
    %29 = vector.broadcast %27 : vector<16x1xf32> to vector<16x726xf32>
    %30 = vector.broadcast %28 : vector<1x726xf32> to vector<16x726xf32>
    %31 = arith.mulf %29, %30 : vector<16x726xf32>
    %32 = arith.addf %24, %31 : vector<16x726xf32>
    %c0_7 = arith.constant 0 : index
    %c4 = arith.constant 4 : index
    %33 = vector.load %arg2[%c0_7, %c4] : memref<16x9xbf16, #tpu.memory_space<vmem>>, vector<16x1xbf16>
    %34 = vector.extract_strided_slice %1 {offsets = [0, 29], sizes = [1, 726], strides = [1, 1]} : vector<1x784xbf16> to vector<1x726xbf16>
    %35 = arith.extf %33 : vector<16x1xbf16> to vector<16x1xf32>
    %36 = arith.extf %34 : vector<1x726xbf16> to vector<1x726xf32>
    %37 = vector.broadcast %35 : vector<16x1xf32> to vector<16x726xf32>
    %38 = vector.broadcast %36 : vector<1x726xf32> to vector<16x726xf32>
    %39 = arith.mulf %37, %38 : vector<16x726xf32>
    %40 = arith.addf %32, %39 : vector<16x726xf32>
    %c0_8 = arith.constant 0 : index
    %c5 = arith.constant 5 : index
    %41 = vector.load %arg2[%c0_8, %c5] : memref<16x9xbf16, #tpu.memory_space<vmem>>, vector<16x1xbf16>
    %42 = vector.extract_strided_slice %1 {offsets = [0, 30], sizes = [1, 726], strides = [1, 1]} : vector<1x784xbf16> to vector<1x726xbf16>
    %43 = arith.extf %41 : vector<16x1xbf16> to vector<16x1xf32>
    %44 = arith.extf %42 : vector<1x726xbf16> to vector<1x726xf32>
    %45 = vector.broadcast %43 : vector<16x1xf32> to vector<16x726xf32>
    %46 = vector.broadcast %44 : vector<1x726xf32> to vector<16x726xf32>
    %47 = arith.mulf %45, %46 : vector<16x726xf32>
    %48 = arith.addf %40, %47 : vector<16x726xf32>
    %c0_9 = arith.constant 0 : index
    %c6 = arith.constant 6 : index
    %49 = vector.load %arg2[%c0_9, %c6] : memref<16x9xbf16, #tpu.memory_space<vmem>>, vector<16x1xbf16>
    %50 = vector.extract_strided_slice %1 {offsets = [0, 56], sizes = [1, 726], strides = [1, 1]} : vector<1x784xbf16> to vector<1x726xbf16>
    %51 = arith.extf %49 : vector<16x1xbf16> to vector<16x1xf32>
    %52 = arith.extf %50 : vector<1x726xbf16> to vector<1x726xf32>
    %53 = vector.broadcast %51 : vector<16x1xf32> to vector<16x726xf32>
    %54 = vector.broadcast %52 : vector<1x726xf32> to vector<16x726xf32>
    %55 = arith.mulf %53, %54 : vector<16x726xf32>
    %56 = arith.addf %48, %55 : vector<16x726xf32>
    %c0_10 = arith.constant 0 : index
    %c7 = arith.constant 7 : index
    %57 = vector.load %arg2[%c0_10, %c7] : memref<16x9xbf16, #tpu.memory_space<vmem>>, vector<16x1xbf16>
    %58 = vector.extract_strided_slice %1 {offsets = [0, 57], sizes = [1, 726], strides = [1, 1]} : vector<1x784xbf16> to vector<1x726xbf16>
    %59 = arith.extf %57 : vector<16x1xbf16> to vector<16x1xf32>
    %60 = arith.extf %58 : vector<1x726xbf16> to vector<1x726xf32>
    %61 = vector.broadcast %59 : vector<16x1xf32> to vector<16x726xf32>
    %62 = vector.broadcast %60 : vector<1x726xf32> to vector<16x726xf32>
    %63 = arith.mulf %61, %62 : vector<16x726xf32>
    %64 = arith.addf %56, %63 : vector<16x726xf32>
    %c0_11 = arith.constant 0 : index
    %c8 = arith.constant 8 : index
    %65 = vector.load %arg2[%c0_11, %c8] : memref<16x9xbf16, #tpu.memory_space<vmem>>, vector<16x1xbf16>
    %66 = vector.extract_strided_slice %1 {offsets = [0, 58], sizes = [1, 726], strides = [1, 1]} : vector<1x784xbf16> to vector<1x726xbf16>
    %67 = arith.extf %65 : vector<16x1xbf16> to vector<16x1xf32>
    %68 = arith.extf %66 : vector<1x726xbf16> to vector<1x726xf32>
    %69 = vector.broadcast %67 : vector<16x1xf32> to vector<16x726xf32>
    %70 = vector.broadcast %68 : vector<1x726xf32> to vector<16x726xf32>
    %71 = arith.mulf %69, %70 : vector<16x726xf32>
    %72 = arith.addf %64, %71 : vector<16x726xf32>
    %c0_12 = arith.constant 0 : index
    %c0_13 = arith.constant 0 : index
    %73 = vector.load %arg3[%c0_12, %c0_13] : memref<16x1xf32, #tpu.memory_space<vmem>>, vector<16x1xf32>
    %74 = vector.broadcast %73 : vector<16x1xf32> to vector<16x726xf32>
    %75 = arith.addf %72, %74 : vector<16x726xf32>
    %cst = arith.constant 0.000000e+00 : f32
    %76 = vector.broadcast %cst : f32 to vector<16x726xf32>
    %77 = arith.maximumf %75, %76 : vector<16x726xf32>
    %c0_14 = arith.constant 0 : index
    %c0_15 = arith.constant 0 : index
    %78 = vector.load %arg4[%c0_14, %c0_15] : memref<16x1xf32, #tpu.memory_space<vmem>>, vector<16x1xf32>
    %79 = vector.broadcast %78 : vector<16x1xf32> to vector<16x726xf32>
    %80 = arith.mulf %77, %79 : vector<16x726xf32>
    %c0_16 = arith.constant 0 : index
    %c0_17 = arith.constant 0 : index
    %81 = vector.load %arg5[%c0_16, %c0_17] : memref<16x1xf32, #tpu.memory_space<vmem>>, vector<16x1xf32>
    %82 = vector.broadcast %81 : vector<16x1xf32> to vector<16x726xf32>
    %83 = arith.addf %80, %82 : vector<16x726xf32>
    %84 = arith.truncf %83 : vector<16x726xf32> to vector<16x726xbf16>
    %c0_18 = arith.constant 0 : index
    %c0_19 = arith.constant 0 : index
    %85 = vector.load %arg6[%c0_18, %c0_19] : memref<24x144xbf16, #tpu.memory_space<vmem>>, vector<24x16xbf16>
    %86 = vector.extract_strided_slice %84 {offsets = [0, 0], sizes = [16, 668], strides = [1, 1]} : vector<16x726xbf16> to vector<16x668xbf16>
    %cst_20 = arith.constant dense<0.000000e+00> : vector<24x668xf32>
    %87 = tpu.matmul %85, %86, %cst_20 {dimension_numbers = #tpu.dot_dimension_numbers<[1], [0], [0], [1], [0, 0, 1, 1], [], []>} : vector<24x16xbf16>, vector<16x668xbf16>, vector<24x668xf32> -> vector<24x668xf32>
    %c0_21 = arith.constant 0 : index
    %c16 = arith.constant 16 : index
    %88 = vector.load %arg6[%c0_21, %c16] : memref<24x144xbf16, #tpu.memory_space<vmem>>, vector<24x16xbf16>
    %89 = vector.extract_strided_slice %84 {offsets = [0, 1], sizes = [16, 668], strides = [1, 1]} : vector<16x726xbf16> to vector<16x668xbf16>
    %cst_22 = arith.constant dense<0.000000e+00> : vector<24x668xf32>
    %90 = tpu.matmul %88, %89, %cst_22 {dimension_numbers = #tpu.dot_dimension_numbers<[1], [0], [0], [1], [0, 0, 1, 1], [], []>} : vector<24x16xbf16>, vector<16x668xbf16>, vector<24x668xf32> -> vector<24x668xf32>
    %91 = arith.addf %87, %90 : vector<24x668xf32>
    %c0_23 = arith.constant 0 : index
    %c32 = arith.constant 32 : index
    %92 = vector.load %arg6[%c0_23, %c32] : memref<24x144xbf16, #tpu.memory_space<vmem>>, vector<24x16xbf16>
    %93 = vector.extract_strided_slice %84 {offsets = [0, 2], sizes = [16, 668], strides = [1, 1]} : vector<16x726xbf16> to vector<16x668xbf16>
    %cst_24 = arith.constant dense<0.000000e+00> : vector<24x668xf32>
    %94 = tpu.matmul %92, %93, %cst_24 {dimension_numbers = #tpu.dot_dimension_numbers<[1], [0], [0], [1], [0, 0, 1, 1], [], []>} : vector<24x16xbf16>, vector<16x668xbf16>, vector<24x668xf32> -> vector<24x668xf32>
    %95 = arith.addf %91, %94 : vector<24x668xf32>
    %c0_25 = arith.constant 0 : index
    %c48 = arith.constant 48 : index
    %96 = vector.load %arg6[%c0_25, %c48] : memref<24x144xbf16, #tpu.memory_space<vmem>>, vector<24x16xbf16>
    %97 = vector.extract_strided_slice %84 {offsets = [0, 28], sizes = [16, 668], strides = [1, 1]} : vector<16x726xbf16> to vector<16x668xbf16>
    %cst_26 = arith.constant dense<0.000000e+00> : vector<24x668xf32>
    %98 = tpu.matmul %96, %97, %cst_26 {dimension_numbers = #tpu.dot_dimension_numbers<[1], [0], [0], [1], [0, 0, 1, 1], [], []>} : vector<24x16xbf16>, vector<16x668xbf16>, vector<24x668xf32> -> vector<24x668xf32>
    %99 = arith.addf %95, %98 : vector<24x668xf32>
    %c0_27 = arith.constant 0 : index
    %c64 = arith.constant 64 : index
    %100 = vector.load %arg6[%c0_27, %c64] : memref<24x144xbf16, #tpu.memory_space<vmem>>, vector<24x16xbf16>
    %101 = vector.extract_strided_slice %84 {offsets = [0, 29], sizes = [16, 668], strides = [1, 1]} : vector<16x726xbf16> to vector<16x668xbf16>
    %cst_28 = arith.constant dense<0.000000e+00> : vector<24x668xf32>
    %102 = tpu.matmul %100, %101, %cst_28 {dimension_numbers = #tpu.dot_dimension_numbers<[1], [0], [0], [1], [0, 0, 1, 1], [], []>} : vector<24x16xbf16>, vector<16x668xbf16>, vector<24x668xf32> -> vector<24x668xf32>
    %103 = arith.addf %99, %102 : vector<24x668xf32>
    %c0_29 = arith.constant 0 : index
    %c80 = arith.constant 80 : index
    %104 = vector.load %arg6[%c0_29, %c80] : memref<24x144xbf16, #tpu.memory_space<vmem>>, vector<24x16xbf16>
    %105 = vector.extract_strided_slice %84 {offsets = [0, 30], sizes = [16, 668], strides = [1, 1]} : vector<16x726xbf16> to vector<16x668xbf16>
    %cst_30 = arith.constant dense<0.000000e+00> : vector<24x668xf32>
    %106 = tpu.matmul %104, %105, %cst_30 {dimension_numbers = #tpu.dot_dimension_numbers<[1], [0], [0], [1], [0, 0, 1, 1], [], []>} : vector<24x16xbf16>, vector<16x668xbf16>, vector<24x668xf32> -> vector<24x668xf32>
    %107 = arith.addf %103, %106 : vector<24x668xf32>
    %c0_31 = arith.constant 0 : index
    %c96 = arith.constant 96 : index
    %108 = vector.load %arg6[%c0_31, %c96] : memref<24x144xbf16, #tpu.memory_space<vmem>>, vector<24x16xbf16>
    %109 = vector.extract_strided_slice %84 {offsets = [0, 56], sizes = [16, 668], strides = [1, 1]} : vector<16x726xbf16> to vector<16x668xbf16>
    %cst_32 = arith.constant dense<0.000000e+00> : vector<24x668xf32>
    %110 = tpu.matmul %108, %109, %cst_32 {dimension_numbers = #tpu.dot_dimension_numbers<[1], [0], [0], [1], [0, 0, 1, 1], [], []>} : vector<24x16xbf16>, vector<16x668xbf16>, vector<24x668xf32> -> vector<24x668xf32>
    %111 = arith.addf %107, %110 : vector<24x668xf32>
    %c0_33 = arith.constant 0 : index
    %c112 = arith.constant 112 : index
    %112 = vector.load %arg6[%c0_33, %c112] : memref<24x144xbf16, #tpu.memory_space<vmem>>, vector<24x16xbf16>
    %113 = vector.extract_strided_slice %84 {offsets = [0, 57], sizes = [16, 668], strides = [1, 1]} : vector<16x726xbf16> to vector<16x668xbf16>
    %cst_34 = arith.constant dense<0.000000e+00> : vector<24x668xf32>
    %114 = tpu.matmul %112, %113, %cst_34 {dimension_numbers = #tpu.dot_dimension_numbers<[1], [0], [0], [1], [0, 0, 1, 1], [], []>} : vector<24x16xbf16>, vector<16x668xbf16>, vector<24x668xf32> -> vector<24x668xf32>
    %115 = arith.addf %111, %114 : vector<24x668xf32>
    %c0_35 = arith.constant 0 : index
    %c128 = arith.constant 128 : index
    %116 = vector.load %arg6[%c0_35, %c128] : memref<24x144xbf16, #tpu.memory_space<vmem>>, vector<24x16xbf16>
    %117 = vector.extract_strided_slice %84 {offsets = [0, 58], sizes = [16, 668], strides = [1, 1]} : vector<16x726xbf16> to vector<16x668xbf16>
    %cst_36 = arith.constant dense<0.000000e+00> : vector<24x668xf32>
    %118 = tpu.matmul %116, %117, %cst_36 {dimension_numbers = #tpu.dot_dimension_numbers<[1], [0], [0], [1], [0, 0, 1, 1], [], []>} : vector<24x16xbf16>, vector<16x668xbf16>, vector<24x668xf32> -> vector<24x668xf32>
    %119 = arith.addf %115, %118 : vector<24x668xf32>
    %c0_37 = arith.constant 0 : index
    %c0_38 = arith.constant 0 : index
    %120 = vector.load %arg7[%c0_37, %c0_38] : memref<24x1xf32, #tpu.memory_space<vmem>>, vector<24x1xf32>
    %121 = vector.broadcast %120 : vector<24x1xf32> to vector<24x668xf32>
    %122 = arith.addf %119, %121 : vector<24x668xf32>
    %cst_39 = arith.constant 0.000000e+00 : f32
    %123 = vector.broadcast %cst_39 : f32 to vector<24x668xf32>
    %124 = arith.maximumf %122, %123 : vector<24x668xf32>
    %c0_40 = arith.constant 0 : index
    %c0_41 = arith.constant 0 : index
    %125 = vector.load %arg8[%c0_40, %c0_41] : memref<24x1xf32, #tpu.memory_space<vmem>>, vector<24x1xf32>
    %126 = vector.broadcast %125 : vector<24x1xf32> to vector<24x668xf32>
    %127 = arith.mulf %124, %126 : vector<24x668xf32>
    %c0_42 = arith.constant 0 : index
    %c0_43 = arith.constant 0 : index
    %128 = vector.load %arg9[%c0_42, %c0_43] : memref<24x1xf32, #tpu.memory_space<vmem>>, vector<24x1xf32>
    %129 = vector.broadcast %128 : vector<24x1xf32> to vector<24x668xf32>
    %130 = arith.addf %127, %129 : vector<24x668xf32>
    %131 = arith.truncf %130 : vector<24x668xf32> to vector<24x668xbf16>
    %c0_44 = arith.constant 0 : index
    %c0_45 = arith.constant 0 : index
    %132 = vector.load %arg10[%c0_44, %c0_45] : memref<32x216xbf16, #tpu.memory_space<vmem>>, vector<32x24xbf16>
    %133 = vector.extract_strided_slice %131 {offsets = [0, 0], sizes = [24, 610], strides = [1, 1]} : vector<24x668xbf16> to vector<24x610xbf16>
    %cst_46 = arith.constant dense<0.000000e+00> : vector<32x610xf32>
    %134 = tpu.matmul %132, %133, %cst_46 {dimension_numbers = #tpu.dot_dimension_numbers<[1], [0], [0], [1], [0, 0, 1, 1], [], []>} : vector<32x24xbf16>, vector<24x610xbf16>, vector<32x610xf32> -> vector<32x610xf32>
    %c0_47 = arith.constant 0 : index
    %c24 = arith.constant 24 : index
    %135 = vector.load %arg10[%c0_47, %c24] : memref<32x216xbf16, #tpu.memory_space<vmem>>, vector<32x24xbf16>
    %136 = vector.extract_strided_slice %131 {offsets = [0, 1], sizes = [24, 610], strides = [1, 1]} : vector<24x668xbf16> to vector<24x610xbf16>
    %cst_48 = arith.constant dense<0.000000e+00> : vector<32x610xf32>
    %137 = tpu.matmul %135, %136, %cst_48 {dimension_numbers = #tpu.dot_dimension_numbers<[1], [0], [0], [1], [0, 0, 1, 1], [], []>} : vector<32x24xbf16>, vector<24x610xbf16>, vector<32x610xf32> -> vector<32x610xf32>
    %138 = arith.addf %134, %137 : vector<32x610xf32>
    %c0_49 = arith.constant 0 : index
    %c48_50 = arith.constant 48 : index
    %139 = vector.load %arg10[%c0_49, %c48_50] : memref<32x216xbf16, #tpu.memory_space<vmem>>, vector<32x24xbf16>
    %140 = vector.extract_strided_slice %131 {offsets = [0, 2], sizes = [24, 610], strides = [1, 1]} : vector<24x668xbf16> to vector<24x610xbf16>
    %cst_51 = arith.constant dense<0.000000e+00> : vector<32x610xf32>
    %141 = tpu.matmul %139, %140, %cst_51 {dimension_numbers = #tpu.dot_dimension_numbers<[1], [0], [0], [1], [0, 0, 1, 1], [], []>} : vector<32x24xbf16>, vector<24x610xbf16>, vector<32x610xf32> -> vector<32x610xf32>
    %142 = arith.addf %138, %141 : vector<32x610xf32>
    %c0_52 = arith.constant 0 : index
    %c72 = arith.constant 72 : index
    %143 = vector.load %arg10[%c0_52, %c72] : memref<32x216xbf16, #tpu.memory_space<vmem>>, vector<32x24xbf16>
    %144 = vector.extract_strided_slice %131 {offsets = [0, 28], sizes = [24, 610], strides = [1, 1]} : vector<24x668xbf16> to vector<24x610xbf16>
    %cst_53 = arith.constant dense<0.000000e+00> : vector<32x610xf32>
    %145 = tpu.matmul %143, %144, %cst_53 {dimension_numbers = #tpu.dot_dimension_numbers<[1], [0], [0], [1], [0, 0, 1, 1], [], []>} : vector<32x24xbf16>, vector<24x610xbf16>, vector<32x610xf32> -> vector<32x610xf32>
    %146 = arith.addf %142, %145 : vector<32x610xf32>
    %c0_54 = arith.constant 0 : index
    %c96_55 = arith.constant 96 : index
    %147 = vector.load %arg10[%c0_54, %c96_55] : memref<32x216xbf16, #tpu.memory_space<vmem>>, vector<32x24xbf16>
    %148 = vector.extract_strided_slice %131 {offsets = [0, 29], sizes = [24, 610], strides = [1, 1]} : vector<24x668xbf16> to vector<24x610xbf16>
    %cst_56 = arith.constant dense<0.000000e+00> : vector<32x610xf32>
    %149 = tpu.matmul %147, %148, %cst_56 {dimension_numbers = #tpu.dot_dimension_numbers<[1], [0], [0], [1], [0, 0, 1, 1], [], []>} : vector<32x24xbf16>, vector<24x610xbf16>, vector<32x610xf32> -> vector<32x610xf32>
    %150 = arith.addf %146, %149 : vector<32x610xf32>
    %c0_57 = arith.constant 0 : index
    %c120 = arith.constant 120 : index
    %151 = vector.load %arg10[%c0_57, %c120] : memref<32x216xbf16, #tpu.memory_space<vmem>>, vector<32x24xbf16>
    %152 = vector.extract_strided_slice %131 {offsets = [0, 30], sizes = [24, 610], strides = [1, 1]} : vector<24x668xbf16> to vector<24x610xbf16>
    %cst_58 = arith.constant dense<0.000000e+00> : vector<32x610xf32>
    %153 = tpu.matmul %151, %152, %cst_58 {dimension_numbers = #tpu.dot_dimension_numbers<[1], [0], [0], [1], [0, 0, 1, 1], [], []>} : vector<32x24xbf16>, vector<24x610xbf16>, vector<32x610xf32> -> vector<32x610xf32>
    %154 = arith.addf %150, %153 : vector<32x610xf32>
    %c0_59 = arith.constant 0 : index
    %c144 = arith.constant 144 : index
    %155 = vector.load %arg10[%c0_59, %c144] : memref<32x216xbf16, #tpu.memory_space<vmem>>, vector<32x24xbf16>
    %156 = vector.extract_strided_slice %131 {offsets = [0, 56], sizes = [24, 610], strides = [1, 1]} : vector<24x668xbf16> to vector<24x610xbf16>
    %cst_60 = arith.constant dense<0.000000e+00> : vector<32x610xf32>
    %157 = tpu.matmul %155, %156, %cst_60 {dimension_numbers = #tpu.dot_dimension_numbers<[1], [0], [0], [1], [0, 0, 1, 1], [], []>} : vector<32x24xbf16>, vector<24x610xbf16>, vector<32x610xf32> -> vector<32x610xf32>
    %158 = arith.addf %154, %157 : vector<32x610xf32>
    %c0_61 = arith.constant 0 : index
    %c168 = arith.constant 168 : index
    %159 = vector.load %arg10[%c0_61, %c168] : memref<32x216xbf16, #tpu.memory_space<vmem>>, vector<32x24xbf16>
    %160 = vector.extract_strided_slice %131 {offsets = [0, 57], sizes = [24, 610], strides = [1, 1]} : vector<24x668xbf16> to vector<24x610xbf16>
    %cst_62 = arith.constant dense<0.000000e+00> : vector<32x610xf32>
    %161 = tpu.matmul %159, %160, %cst_62 {dimension_numbers = #tpu.dot_dimension_numbers<[1], [0], [0], [1], [0, 0, 1, 1], [], []>} : vector<32x24xbf16>, vector<24x610xbf16>, vector<32x610xf32> -> vector<32x610xf32>
    %162 = arith.addf %158, %161 : vector<32x610xf32>
    %c0_63 = arith.constant 0 : index
    %c192 = arith.constant 192 : index
    %163 = vector.load %arg10[%c0_63, %c192] : memref<32x216xbf16, #tpu.memory_space<vmem>>, vector<32x24xbf16>
    %164 = vector.extract_strided_slice %131 {offsets = [0, 58], sizes = [24, 610], strides = [1, 1]} : vector<24x668xbf16> to vector<24x610xbf16>
    %cst_64 = arith.constant dense<0.000000e+00> : vector<32x610xf32>
    %165 = tpu.matmul %163, %164, %cst_64 {dimension_numbers = #tpu.dot_dimension_numbers<[1], [0], [0], [1], [0, 0, 1, 1], [], []>} : vector<32x24xbf16>, vector<24x610xbf16>, vector<32x610xf32> -> vector<32x610xf32>
    %166 = arith.addf %162, %165 : vector<32x610xf32>
    %c0_65 = arith.constant 0 : index
    %c0_66 = arith.constant 0 : index
    %167 = vector.load %arg11[%c0_65, %c0_66] : memref<32x1xf32, #tpu.memory_space<vmem>>, vector<32x1xf32>
    %168 = vector.broadcast %167 : vector<32x1xf32> to vector<32x610xf32>
    %169 = arith.addf %166, %168 : vector<32x610xf32>
    %cst_67 = arith.constant 0.000000e+00 : f32
    %170 = vector.broadcast %cst_67 : f32 to vector<32x610xf32>
    %171 = arith.maximumf %169, %170 : vector<32x610xf32>
    %c0_68 = arith.constant 0 : index
    %c0_69 = arith.constant 0 : index
    %172 = vector.load %arg12[%c0_68, %c0_69] : memref<32x1xf32, #tpu.memory_space<vmem>>, vector<32x1xf32>
    %173 = vector.broadcast %172 : vector<32x1xf32> to vector<32x610xf32>
    %174 = arith.mulf %171, %173 : vector<32x610xf32>
    %c0_70 = arith.constant 0 : index
    %c0_71 = arith.constant 0 : index
    %175 = vector.load %arg13[%c0_70, %c0_71] : memref<32x1xf32, #tpu.memory_space<vmem>>, vector<32x1xf32>
    %176 = vector.broadcast %175 : vector<32x1xf32> to vector<32x610xf32>
    %177 = arith.addf %174, %176 : vector<32x610xf32>
    %178 = arith.truncf %177 : vector<32x610xf32> to vector<32x610xbf16>
    %179 = vector.extract_strided_slice %178 {offsets = [0, 0], sizes = [32, 581], strides = [1, 1]} : vector<32x610xbf16> to vector<32x581xbf16>
    %180 = vector.extract_strided_slice %178 {offsets = [0, 1], sizes = [32, 581], strides = [1, 1]} : vector<32x610xbf16> to vector<32x581xbf16>
    %181 = arith.maximumf %179, %180 : vector<32x581xbf16>
    %182 = vector.extract_strided_slice %178 {offsets = [0, 28], sizes = [32, 581], strides = [1, 1]} : vector<32x610xbf16> to vector<32x581xbf16>
    %183 = vector.extract_strided_slice %178 {offsets = [0, 29], sizes = [32, 581], strides = [1, 1]} : vector<32x610xbf16> to vector<32x581xbf16>
    %184 = arith.maximumf %182, %183 : vector<32x581xbf16>
    %185 = arith.maximumf %181, %184 : vector<32x581xbf16>
    %c0_72 = arith.constant 0 : index
    %c0_73 = arith.constant 0 : index
    %186 = vector.load %arg14[%c0_72, %c0_73] : memref<16x32xbf16, #tpu.memory_space<vmem>>, vector<16x32xbf16>
    %cst_74 = arith.constant dense<0.000000e+00> : vector<16x581xf32>
    %187 = tpu.matmul %186, %185, %cst_74 {dimension_numbers = #tpu.dot_dimension_numbers<[1], [0], [0], [1], [0, 0, 1, 1], [], []>} : vector<16x32xbf16>, vector<32x581xbf16>, vector<16x581xf32> -> vector<16x581xf32>
    %c0_75 = arith.constant 0 : index
    %c0_76 = arith.constant 0 : index
    %188 = vector.load %arg15[%c0_75, %c0_76] : memref<16x1xf32, #tpu.memory_space<vmem>>, vector<16x1xf32>
    %189 = vector.broadcast %188 : vector<16x1xf32> to vector<16x581xf32>
    %190 = arith.addf %187, %189 : vector<16x581xf32>
    %191 = arith.truncf %190 : vector<16x581xf32> to vector<16x581xbf16>
    %c0_77 = arith.constant 0 : index
    %c0_78 = arith.constant 0 : index
    %192 = vector.load %arg16[%c0_77, %c0_78] : memref<8x144xbf16, #tpu.memory_space<vmem>>, vector<8x16xbf16>
    %193 = vector.extract_strided_slice %191 {offsets = [0, 0], sizes = [16, 465], strides = [1, 1]} : vector<16x581xbf16> to vector<16x465xbf16>
    %cst_79 = arith.constant dense<0.000000e+00> : vector<8x465xf32>
    %194 = tpu.matmul %192, %193, %cst_79 {dimension_numbers = #tpu.dot_dimension_numbers<[1], [0], [0], [1], [0, 0, 1, 1], [], []>} : vector<8x16xbf16>, vector<16x465xbf16>, vector<8x465xf32> -> vector<8x465xf32>
    %c0_80 = arith.constant 0 : index
    %c16_81 = arith.constant 16 : index
    %195 = vector.load %arg16[%c0_80, %c16_81] : memref<8x144xbf16, #tpu.memory_space<vmem>>, vector<8x16xbf16>
    %196 = vector.extract_strided_slice %191 {offsets = [0, 2], sizes = [16, 465], strides = [1, 1]} : vector<16x581xbf16> to vector<16x465xbf16>
    %cst_82 = arith.constant dense<0.000000e+00> : vector<8x465xf32>
    %197 = tpu.matmul %195, %196, %cst_82 {dimension_numbers = #tpu.dot_dimension_numbers<[1], [0], [0], [1], [0, 0, 1, 1], [], []>} : vector<8x16xbf16>, vector<16x465xbf16>, vector<8x465xf32> -> vector<8x465xf32>
    %198 = arith.addf %194, %197 : vector<8x465xf32>
    %c0_83 = arith.constant 0 : index
    %c32_84 = arith.constant 32 : index
    %199 = vector.load %arg16[%c0_83, %c32_84] : memref<8x144xbf16, #tpu.memory_space<vmem>>, vector<8x16xbf16>
    %200 = vector.extract_strided_slice %191 {offsets = [0, 4], sizes = [16, 465], strides = [1, 1]} : vector<16x581xbf16> to vector<16x465xbf16>
    %cst_85 = arith.constant dense<0.000000e+00> : vector<8x465xf32>
    %201 = tpu.matmul %199, %200, %cst_85 {dimension_numbers = #tpu.dot_dimension_numbers<[1], [0], [0], [1], [0, 0, 1, 1], [], []>} : vector<8x16xbf16>, vector<16x465xbf16>, vector<8x465xf32> -> vector<8x465xf32>
    %202 = arith.addf %198, %201 : vector<8x465xf32>
    %c0_86 = arith.constant 0 : index
    %c48_87 = arith.constant 48 : index
    %203 = vector.load %arg16[%c0_86, %c48_87] : memref<8x144xbf16, #tpu.memory_space<vmem>>, vector<8x16xbf16>
    %204 = vector.extract_strided_slice %191 {offsets = [0, 56], sizes = [16, 465], strides = [1, 1]} : vector<16x581xbf16> to vector<16x465xbf16>
    %cst_88 = arith.constant dense<0.000000e+00> : vector<8x465xf32>
    %205 = tpu.matmul %203, %204, %cst_88 {dimension_numbers = #tpu.dot_dimension_numbers<[1], [0], [0], [1], [0, 0, 1, 1], [], []>} : vector<8x16xbf16>, vector<16x465xbf16>, vector<8x465xf32> -> vector<8x465xf32>
    %206 = arith.addf %202, %205 : vector<8x465xf32>
    %c0_89 = arith.constant 0 : index
    %c64_90 = arith.constant 64 : index
    %207 = vector.load %arg16[%c0_89, %c64_90] : memref<8x144xbf16, #tpu.memory_space<vmem>>, vector<8x16xbf16>
    %208 = vector.extract_strided_slice %191 {offsets = [0, 58], sizes = [16, 465], strides = [1, 1]} : vector<16x581xbf16> to vector<16x465xbf16>
    %cst_91 = arith.constant dense<0.000000e+00> : vector<8x465xf32>
    %209 = tpu.matmul %207, %208, %cst_91 {dimension_numbers = #tpu.dot_dimension_numbers<[1], [0], [0], [1], [0, 0, 1, 1], [], []>} : vector<8x16xbf16>, vector<16x465xbf16>, vector<8x465xf32> -> vector<8x465xf32>
    %210 = arith.addf %206, %209 : vector<8x465xf32>
    %c0_92 = arith.constant 0 : index
    %c80_93 = arith.constant 80 : index
    %211 = vector.load %arg16[%c0_92, %c80_93] : memref<8x144xbf16, #tpu.memory_space<vmem>>, vector<8x16xbf16>
    %212 = vector.extract_strided_slice %191 {offsets = [0, 60], sizes = [16, 465], strides = [1, 1]} : vector<16x581xbf16> to vector<16x465xbf16>
    %cst_94 = arith.constant dense<0.000000e+00> : vector<8x465xf32>
    %213 = tpu.matmul %211, %212, %cst_94 {dimension_numbers = #tpu.dot_dimension_numbers<[1], [0], [0], [1], [0, 0, 1, 1], [], []>} : vector<8x16xbf16>, vector<16x465xbf16>, vector<8x465xf32> -> vector<8x465xf32>
    %214 = arith.addf %210, %213 : vector<8x465xf32>
    %c0_95 = arith.constant 0 : index
    %c96_96 = arith.constant 96 : index
    %215 = vector.load %arg16[%c0_95, %c96_96] : memref<8x144xbf16, #tpu.memory_space<vmem>>, vector<8x16xbf16>
    %216 = vector.extract_strided_slice %191 {offsets = [0, 112], sizes = [16, 465], strides = [1, 1]} : vector<16x581xbf16> to vector<16x465xbf16>
    %cst_97 = arith.constant dense<0.000000e+00> : vector<8x465xf32>
    %217 = tpu.matmul %215, %216, %cst_97 {dimension_numbers = #tpu.dot_dimension_numbers<[1], [0], [0], [1], [0, 0, 1, 1], [], []>} : vector<8x16xbf16>, vector<16x465xbf16>, vector<8x465xf32> -> vector<8x465xf32>
    %218 = arith.addf %214, %217 : vector<8x465xf32>
    %c0_98 = arith.constant 0 : index
    %c112_99 = arith.constant 112 : index
    %219 = vector.load %arg16[%c0_98, %c112_99] : memref<8x144xbf16, #tpu.memory_space<vmem>>, vector<8x16xbf16>
    %220 = vector.extract_strided_slice %191 {offsets = [0, 114], sizes = [16, 465], strides = [1, 1]} : vector<16x581xbf16> to vector<16x465xbf16>
    %cst_100 = arith.constant dense<0.000000e+00> : vector<8x465xf32>
    %221 = tpu.matmul %219, %220, %cst_100 {dimension_numbers = #tpu.dot_dimension_numbers<[1], [0], [0], [1], [0, 0, 1, 1], [], []>} : vector<8x16xbf16>, vector<16x465xbf16>, vector<8x465xf32> -> vector<8x465xf32>
    %222 = arith.addf %218, %221 : vector<8x465xf32>
    %c0_101 = arith.constant 0 : index
    %c128_102 = arith.constant 128 : index
    %223 = vector.load %arg16[%c0_101, %c128_102] : memref<8x144xbf16, #tpu.memory_space<vmem>>, vector<8x16xbf16>
    %224 = vector.extract_strided_slice %191 {offsets = [0, 116], sizes = [16, 465], strides = [1, 1]} : vector<16x581xbf16> to vector<16x465xbf16>
    %cst_103 = arith.constant dense<0.000000e+00> : vector<8x465xf32>
    %225 = tpu.matmul %223, %224, %cst_103 {dimension_numbers = #tpu.dot_dimension_numbers<[1], [0], [0], [1], [0, 0, 1, 1], [], []>} : vector<8x16xbf16>, vector<16x465xbf16>, vector<8x465xf32> -> vector<8x465xf32>
    %226 = arith.addf %222, %225 : vector<8x465xf32>
    %c0_104 = arith.constant 0 : index
    %c0_105 = arith.constant 0 : index
    %227 = vector.load %arg17[%c0_104, %c0_105] : memref<8x1xf32, #tpu.memory_space<vmem>>, vector<8x1xf32>
    %228 = vector.broadcast %227 : vector<8x1xf32> to vector<8x465xf32>
    %229 = arith.addf %226, %228 : vector<8x465xf32>
    %cst_106 = arith.constant 0.000000e+00 : f32
    %230 = vector.broadcast %cst_106 : f32 to vector<8x465xf32>
    %231 = arith.maximumf %229, %230 : vector<8x465xf32>
    %c0_107 = arith.constant 0 : index
    %c0_108 = arith.constant 0 : index
    %232 = vector.load %arg18[%c0_107, %c0_108] : memref<8x1xf32, #tpu.memory_space<vmem>>, vector<8x1xf32>
    %233 = vector.broadcast %232 : vector<8x1xf32> to vector<8x465xf32>
    %234 = arith.mulf %231, %233 : vector<8x465xf32>
    %c0_109 = arith.constant 0 : index
    %c0_110 = arith.constant 0 : index
    %235 = vector.load %arg19[%c0_109, %c0_110] : memref<8x1xf32, #tpu.memory_space<vmem>>, vector<8x1xf32>
    %236 = vector.broadcast %235 : vector<8x1xf32> to vector<8x465xf32>
    %237 = arith.addf %234, %236 : vector<8x465xf32>
    %238 = arith.truncf %237 : vector<8x465xf32> to vector<8x465xbf16>
    %c0_111 = arith.constant 0 : index
    %c0_112 = arith.constant 0 : index
    %239 = vector.load %arg20[%c0_111, %c0_112] : memref<16x72xbf16, #tpu.memory_space<vmem>>, vector<16x8xbf16>
    %240 = vector.extract_strided_slice %238 {offsets = [0, 0], sizes = [8, 349], strides = [1, 1]} : vector<8x465xbf16> to vector<8x349xbf16>
    %cst_113 = arith.constant dense<0.000000e+00> : vector<16x349xf32>
    %241 = tpu.matmul %239, %240, %cst_113 {dimension_numbers = #tpu.dot_dimension_numbers<[1], [0], [0], [1], [0, 0, 1, 1], [], []>} : vector<16x8xbf16>, vector<8x349xbf16>, vector<16x349xf32> -> vector<16x349xf32>
    %c0_114 = arith.constant 0 : index
    %c8_115 = arith.constant 8 : index
    %242 = vector.load %arg20[%c0_114, %c8_115] : memref<16x72xbf16, #tpu.memory_space<vmem>>, vector<16x8xbf16>
    %243 = vector.extract_strided_slice %238 {offsets = [0, 2], sizes = [8, 349], strides = [1, 1]} : vector<8x465xbf16> to vector<8x349xbf16>
    %cst_116 = arith.constant dense<0.000000e+00> : vector<16x349xf32>
    %244 = tpu.matmul %242, %243, %cst_116 {dimension_numbers = #tpu.dot_dimension_numbers<[1], [0], [0], [1], [0, 0, 1, 1], [], []>} : vector<16x8xbf16>, vector<8x349xbf16>, vector<16x349xf32> -> vector<16x349xf32>
    %245 = arith.addf %241, %244 : vector<16x349xf32>
    %c0_117 = arith.constant 0 : index
    %c16_118 = arith.constant 16 : index
    %246 = vector.load %arg20[%c0_117, %c16_118] : memref<16x72xbf16, #tpu.memory_space<vmem>>, vector<16x8xbf16>
    %247 = vector.extract_strided_slice %238 {offsets = [0, 4], sizes = [8, 349], strides = [1, 1]} : vector<8x465xbf16> to vector<8x349xbf16>
    %cst_119 = arith.constant dense<0.000000e+00> : vector<16x349xf32>
    %248 = tpu.matmul %246, %247, %cst_119 {dimension_numbers = #tpu.dot_dimension_numbers<[1], [0], [0], [1], [0, 0, 1, 1], [], []>} : vector<16x8xbf16>, vector<8x349xbf16>, vector<16x349xf32> -> vector<16x349xf32>
    %249 = arith.addf %245, %248 : vector<16x349xf32>
    %c0_120 = arith.constant 0 : index
    %c24_121 = arith.constant 24 : index
    %250 = vector.load %arg20[%c0_120, %c24_121] : memref<16x72xbf16, #tpu.memory_space<vmem>>, vector<16x8xbf16>
    %251 = vector.extract_strided_slice %238 {offsets = [0, 56], sizes = [8, 349], strides = [1, 1]} : vector<8x465xbf16> to vector<8x349xbf16>
    %cst_122 = arith.constant dense<0.000000e+00> : vector<16x349xf32>
    %252 = tpu.matmul %250, %251, %cst_122 {dimension_numbers = #tpu.dot_dimension_numbers<[1], [0], [0], [1], [0, 0, 1, 1], [], []>} : vector<16x8xbf16>, vector<8x349xbf16>, vector<16x349xf32> -> vector<16x349xf32>
    %253 = arith.addf %249, %252 : vector<16x349xf32>
    %c0_123 = arith.constant 0 : index
    %c32_124 = arith.constant 32 : index
    %254 = vector.load %arg20[%c0_123, %c32_124] : memref<16x72xbf16, #tpu.memory_space<vmem>>, vector<16x8xbf16>
    %255 = vector.extract_strided_slice %238 {offsets = [0, 58], sizes = [8, 349], strides = [1, 1]} : vector<8x465xbf16> to vector<8x349xbf16>
    %cst_125 = arith.constant dense<0.000000e+00> : vector<16x349xf32>
    %256 = tpu.matmul %254, %255, %cst_125 {dimension_numbers = #tpu.dot_dimension_numbers<[1], [0], [0], [1], [0, 0, 1, 1], [], []>} : vector<16x8xbf16>, vector<8x349xbf16>, vector<16x349xf32> -> vector<16x349xf32>
    %257 = arith.addf %253, %256 : vector<16x349xf32>
    %c0_126 = arith.constant 0 : index
    %c40 = arith.constant 40 : index
    %258 = vector.load %arg20[%c0_126, %c40] : memref<16x72xbf16, #tpu.memory_space<vmem>>, vector<16x8xbf16>
    %259 = vector.extract_strided_slice %238 {offsets = [0, 60], sizes = [8, 349], strides = [1, 1]} : vector<8x465xbf16> to vector<8x349xbf16>
    %cst_127 = arith.constant dense<0.000000e+00> : vector<16x349xf32>
    %260 = tpu.matmul %258, %259, %cst_127 {dimension_numbers = #tpu.dot_dimension_numbers<[1], [0], [0], [1], [0, 0, 1, 1], [], []>} : vector<16x8xbf16>, vector<8x349xbf16>, vector<16x349xf32> -> vector<16x349xf32>
    %261 = arith.addf %257, %260 : vector<16x349xf32>
    %c0_128 = arith.constant 0 : index
    %c48_129 = arith.constant 48 : index
    %262 = vector.load %arg20[%c0_128, %c48_129] : memref<16x72xbf16, #tpu.memory_space<vmem>>, vector<16x8xbf16>
    %263 = vector.extract_strided_slice %238 {offsets = [0, 112], sizes = [8, 349], strides = [1, 1]} : vector<8x465xbf16> to vector<8x349xbf16>
    %cst_130 = arith.constant dense<0.000000e+00> : vector<16x349xf32>
    %264 = tpu.matmul %262, %263, %cst_130 {dimension_numbers = #tpu.dot_dimension_numbers<[1], [0], [0], [1], [0, 0, 1, 1], [], []>} : vector<16x8xbf16>, vector<8x349xbf16>, vector<16x349xf32> -> vector<16x349xf32>
    %265 = arith.addf %261, %264 : vector<16x349xf32>
    %c0_131 = arith.constant 0 : index
    %c56 = arith.constant 56 : index
    %266 = vector.load %arg20[%c0_131, %c56] : memref<16x72xbf16, #tpu.memory_space<vmem>>, vector<16x8xbf16>
    %267 = vector.extract_strided_slice %238 {offsets = [0, 114], sizes = [8, 349], strides = [1, 1]} : vector<8x465xbf16> to vector<8x349xbf16>
    %cst_132 = arith.constant dense<0.000000e+00> : vector<16x349xf32>
    %268 = tpu.matmul %266, %267, %cst_132 {dimension_numbers = #tpu.dot_dimension_numbers<[1], [0], [0], [1], [0, 0, 1, 1], [], []>} : vector<16x8xbf16>, vector<8x349xbf16>, vector<16x349xf32> -> vector<16x349xf32>
    %269 = arith.addf %265, %268 : vector<16x349xf32>
    %c0_133 = arith.constant 0 : index
    %c64_134 = arith.constant 64 : index
    %270 = vector.load %arg20[%c0_133, %c64_134] : memref<16x72xbf16, #tpu.memory_space<vmem>>, vector<16x8xbf16>
    %271 = vector.extract_strided_slice %238 {offsets = [0, 116], sizes = [8, 349], strides = [1, 1]} : vector<8x465xbf16> to vector<8x349xbf16>
    %cst_135 = arith.constant dense<0.000000e+00> : vector<16x349xf32>
    %272 = tpu.matmul %270, %271, %cst_135 {dimension_numbers = #tpu.dot_dimension_numbers<[1], [0], [0], [1], [0, 0, 1, 1], [], []>} : vector<16x8xbf16>, vector<8x349xbf16>, vector<16x349xf32> -> vector<16x349xf32>
    %273 = arith.addf %269, %272 : vector<16x349xf32>
    %c0_136 = arith.constant 0 : index
    %c0_137 = arith.constant 0 : index
    %274 = vector.load %arg21[%c0_136, %c0_137] : memref<16x1xf32, #tpu.memory_space<vmem>>, vector<16x1xf32>
    %275 = vector.broadcast %274 : vector<16x1xf32> to vector<16x349xf32>
    %276 = arith.addf %273, %275 : vector<16x349xf32>
    %cst_138 = arith.constant 0.000000e+00 : f32
    %277 = vector.broadcast %cst_138 : f32 to vector<16x349xf32>
    %278 = arith.maximumf %276, %277 : vector<16x349xf32>
    %c0_139 = arith.constant 0 : index
    %c0_140 = arith.constant 0 : index
    %279 = vector.load %arg22[%c0_139, %c0_140] : memref<16x1xf32, #tpu.memory_space<vmem>>, vector<16x1xf32>
    %280 = vector.broadcast %279 : vector<16x1xf32> to vector<16x349xf32>
    %281 = arith.mulf %278, %280 : vector<16x349xf32>
    %c0_141 = arith.constant 0 : index
    %c0_142 = arith.constant 0 : index
    %282 = vector.load %arg23[%c0_141, %c0_142] : memref<16x1xf32, #tpu.memory_space<vmem>>, vector<16x1xf32>
    %283 = vector.broadcast %282 : vector<16x1xf32> to vector<16x349xf32>
    %284 = arith.addf %281, %283 : vector<16x349xf32>
    %285 = arith.truncf %284 : vector<16x349xf32> to vector<16x349xbf16>
    %c0_143 = arith.constant 0 : index
    %c0_144 = arith.constant 0 : index
    %286 = vector.load %arg24[%c0_143, %c0_144] : memref<20x144xbf16, #tpu.memory_space<vmem>>, vector<20x16xbf16>
    %287 = vector.extract_strided_slice %285 {offsets = [0, 0], sizes = [16, 233], strides = [1, 1]} : vector<16x349xbf16> to vector<16x233xbf16>
    %cst_145 = arith.constant dense<0.000000e+00> : vector<20x233xf32>
    %288 = tpu.matmul %286, %287, %cst_145 {dimension_numbers = #tpu.dot_dimension_numbers<[1], [0], [0], [1], [0, 0, 1, 1], [], []>} : vector<20x16xbf16>, vector<16x233xbf16>, vector<20x233xf32> -> vector<20x233xf32>
    %c0_146 = arith.constant 0 : index
    %c16_147 = arith.constant 16 : index
    %289 = vector.load %arg24[%c0_146, %c16_147] : memref<20x144xbf16, #tpu.memory_space<vmem>>, vector<20x16xbf16>
    %290 = vector.extract_strided_slice %285 {offsets = [0, 2], sizes = [16, 233], strides = [1, 1]} : vector<16x349xbf16> to vector<16x233xbf16>
    %cst_148 = arith.constant dense<0.000000e+00> : vector<20x233xf32>
    %291 = tpu.matmul %289, %290, %cst_148 {dimension_numbers = #tpu.dot_dimension_numbers<[1], [0], [0], [1], [0, 0, 1, 1], [], []>} : vector<20x16xbf16>, vector<16x233xbf16>, vector<20x233xf32> -> vector<20x233xf32>
    %292 = arith.addf %288, %291 : vector<20x233xf32>
    %c0_149 = arith.constant 0 : index
    %c32_150 = arith.constant 32 : index
    %293 = vector.load %arg24[%c0_149, %c32_150] : memref<20x144xbf16, #tpu.memory_space<vmem>>, vector<20x16xbf16>
    %294 = vector.extract_strided_slice %285 {offsets = [0, 4], sizes = [16, 233], strides = [1, 1]} : vector<16x349xbf16> to vector<16x233xbf16>
    %cst_151 = arith.constant dense<0.000000e+00> : vector<20x233xf32>
    %295 = tpu.matmul %293, %294, %cst_151 {dimension_numbers = #tpu.dot_dimension_numbers<[1], [0], [0], [1], [0, 0, 1, 1], [], []>} : vector<20x16xbf16>, vector<16x233xbf16>, vector<20x233xf32> -> vector<20x233xf32>
    %296 = arith.addf %292, %295 : vector<20x233xf32>
    %c0_152 = arith.constant 0 : index
    %c48_153 = arith.constant 48 : index
    %297 = vector.load %arg24[%c0_152, %c48_153] : memref<20x144xbf16, #tpu.memory_space<vmem>>, vector<20x16xbf16>
    %298 = vector.extract_strided_slice %285 {offsets = [0, 56], sizes = [16, 233], strides = [1, 1]} : vector<16x349xbf16> to vector<16x233xbf16>
    %cst_154 = arith.constant dense<0.000000e+00> : vector<20x233xf32>
    %299 = tpu.matmul %297, %298, %cst_154 {dimension_numbers = #tpu.dot_dimension_numbers<[1], [0], [0], [1], [0, 0, 1, 1], [], []>} : vector<20x16xbf16>, vector<16x233xbf16>, vector<20x233xf32> -> vector<20x233xf32>
    %300 = arith.addf %296, %299 : vector<20x233xf32>
    %c0_155 = arith.constant 0 : index
    %c64_156 = arith.constant 64 : index
    %301 = vector.load %arg24[%c0_155, %c64_156] : memref<20x144xbf16, #tpu.memory_space<vmem>>, vector<20x16xbf16>
    %302 = vector.extract_strided_slice %285 {offsets = [0, 58], sizes = [16, 233], strides = [1, 1]} : vector<16x349xbf16> to vector<16x233xbf16>
    %cst_157 = arith.constant dense<0.000000e+00> : vector<20x233xf32>
    %303 = tpu.matmul %301, %302, %cst_157 {dimension_numbers = #tpu.dot_dimension_numbers<[1], [0], [0], [1], [0, 0, 1, 1], [], []>} : vector<20x16xbf16>, vector<16x233xbf16>, vector<20x233xf32> -> vector<20x233xf32>
    %304 = arith.addf %300, %303 : vector<20x233xf32>
    %c0_158 = arith.constant 0 : index
    %c80_159 = arith.constant 80 : index
    %305 = vector.load %arg24[%c0_158, %c80_159] : memref<20x144xbf16, #tpu.memory_space<vmem>>, vector<20x16xbf16>
    %306 = vector.extract_strided_slice %285 {offsets = [0, 60], sizes = [16, 233], strides = [1, 1]} : vector<16x349xbf16> to vector<16x233xbf16>
    %cst_160 = arith.constant dense<0.000000e+00> : vector<20x233xf32>
    %307 = tpu.matmul %305, %306, %cst_160 {dimension_numbers = #tpu.dot_dimension_numbers<[1], [0], [0], [1], [0, 0, 1, 1], [], []>} : vector<20x16xbf16>, vector<16x233xbf16>, vector<20x233xf32> -> vector<20x233xf32>
    %308 = arith.addf %304, %307 : vector<20x233xf32>
    %c0_161 = arith.constant 0 : index
    %c96_162 = arith.constant 96 : index
    %309 = vector.load %arg24[%c0_161, %c96_162] : memref<20x144xbf16, #tpu.memory_space<vmem>>, vector<20x16xbf16>
    %310 = vector.extract_strided_slice %285 {offsets = [0, 112], sizes = [16, 233], strides = [1, 1]} : vector<16x349xbf16> to vector<16x233xbf16>
    %cst_163 = arith.constant dense<0.000000e+00> : vector<20x233xf32>
    %311 = tpu.matmul %309, %310, %cst_163 {dimension_numbers = #tpu.dot_dimension_numbers<[1], [0], [0], [1], [0, 0, 1, 1], [], []>} : vector<20x16xbf16>, vector<16x233xbf16>, vector<20x233xf32> -> vector<20x233xf32>
    %312 = arith.addf %308, %311 : vector<20x233xf32>
    %c0_164 = arith.constant 0 : index
    %c112_165 = arith.constant 112 : index
    %313 = vector.load %arg24[%c0_164, %c112_165] : memref<20x144xbf16, #tpu.memory_space<vmem>>, vector<20x16xbf16>
    %314 = vector.extract_strided_slice %285 {offsets = [0, 114], sizes = [16, 233], strides = [1, 1]} : vector<16x349xbf16> to vector<16x233xbf16>
    %cst_166 = arith.constant dense<0.000000e+00> : vector<20x233xf32>
    %315 = tpu.matmul %313, %314, %cst_166 {dimension_numbers = #tpu.dot_dimension_numbers<[1], [0], [0], [1], [0, 0, 1, 1], [], []>} : vector<20x16xbf16>, vector<16x233xbf16>, vector<20x233xf32> -> vector<20x233xf32>
    %316 = arith.addf %312, %315 : vector<20x233xf32>
    %c0_167 = arith.constant 0 : index
    %c128_168 = arith.constant 128 : index
    %317 = vector.load %arg24[%c0_167, %c128_168] : memref<20x144xbf16, #tpu.memory_space<vmem>>, vector<20x16xbf16>
    %318 = vector.extract_strided_slice %285 {offsets = [0, 116], sizes = [16, 233], strides = [1, 1]} : vector<16x349xbf16> to vector<16x233xbf16>
    %cst_169 = arith.constant dense<0.000000e+00> : vector<20x233xf32>
    %319 = tpu.matmul %317, %318, %cst_169 {dimension_numbers = #tpu.dot_dimension_numbers<[1], [0], [0], [1], [0, 0, 1, 1], [], []>} : vector<20x16xbf16>, vector<16x233xbf16>, vector<20x233xf32> -> vector<20x233xf32>
    %320 = arith.addf %316, %319 : vector<20x233xf32>
    %c0_170 = arith.constant 0 : index
    %c0_171 = arith.constant 0 : index
    %321 = vector.load %arg25[%c0_170, %c0_171] : memref<20x1xf32, #tpu.memory_space<vmem>>, vector<20x1xf32>
    %322 = vector.broadcast %321 : vector<20x1xf32> to vector<20x233xf32>
    %323 = arith.addf %320, %322 : vector<20x233xf32>
    %cst_172 = arith.constant 0.000000e+00 : f32
    %324 = vector.broadcast %cst_172 : f32 to vector<20x233xf32>
    %325 = arith.maximumf %323, %324 : vector<20x233xf32>
    %c0_173 = arith.constant 0 : index
    %c0_174 = arith.constant 0 : index
    %326 = vector.load %arg26[%c0_173, %c0_174] : memref<20x1xf32, #tpu.memory_space<vmem>>, vector<20x1xf32>
    %327 = vector.broadcast %326 : vector<20x1xf32> to vector<20x233xf32>
    %328 = arith.mulf %325, %327 : vector<20x233xf32>
    %c0_175 = arith.constant 0 : index
    %c0_176 = arith.constant 0 : index
    %329 = vector.load %arg27[%c0_175, %c0_176] : memref<20x1xf32, #tpu.memory_space<vmem>>, vector<20x1xf32>
    %330 = vector.broadcast %329 : vector<20x1xf32> to vector<20x233xf32>
    %331 = arith.addf %328, %330 : vector<20x233xf32>
    %332 = arith.truncf %331 : vector<20x233xf32> to vector<20x233xbf16>
    %c0_177 = arith.constant 0 : index
    %c0_178 = arith.constant 0 : index
    %333 = vector.load %arg28[%c0_177, %c0_178] : memref<24x20xbf16, #tpu.memory_space<vmem>>, vector<24x20xbf16>
    %cst_179 = arith.constant dense<0.000000e+00> : vector<24x233xf32>
    %334 = tpu.matmul %333, %332, %cst_179 {dimension_numbers = #tpu.dot_dimension_numbers<[1], [0], [0], [1], [0, 0, 1, 1], [], []>} : vector<24x20xbf16>, vector<20x233xbf16>, vector<24x233xf32> -> vector<24x233xf32>
    %c0_180 = arith.constant 0 : index
    %c0_181 = arith.constant 0 : index
    %335 = vector.load %arg29[%c0_180, %c0_181] : memref<24x1xf32, #tpu.memory_space<vmem>>, vector<24x1xf32>
    %336 = vector.broadcast %335 : vector<24x1xf32> to vector<24x233xf32>
    %337 = arith.addf %334, %336 : vector<24x233xf32>
    %338 = arith.truncf %337 : vector<24x233xf32> to vector<24x233xbf16>
    %c0_182 = arith.constant 0 : index
    %c0_183 = arith.constant 0 : index
    %339 = vector.load %arg30[%c0_182, %c0_183] : memref<18x216xbf16, #tpu.memory_space<vmem>>, vector<18x24xbf16>
    %340 = vector.extract_strided_slice %338 {offsets = [0, 0], sizes = [24, 117], strides = [1, 1]} : vector<24x233xbf16> to vector<24x117xbf16>
    %cst_184 = arith.constant dense<0.000000e+00> : vector<18x117xf32>
    %341 = tpu.matmul %339, %340, %cst_184 {dimension_numbers = #tpu.dot_dimension_numbers<[1], [0], [0], [1], [0, 0, 1, 1], [], []>} : vector<18x24xbf16>, vector<24x117xbf16>, vector<18x117xf32> -> vector<18x117xf32>
    %c0_185 = arith.constant 0 : index
    %c24_186 = arith.constant 24 : index
    %342 = vector.load %arg30[%c0_185, %c24_186] : memref<18x216xbf16, #tpu.memory_space<vmem>>, vector<18x24xbf16>
    %343 = vector.extract_strided_slice %338 {offsets = [0, 2], sizes = [24, 117], strides = [1, 1]} : vector<24x233xbf16> to vector<24x117xbf16>
    %cst_187 = arith.constant dense<0.000000e+00> : vector<18x117xf32>
    %344 = tpu.matmul %342, %343, %cst_187 {dimension_numbers = #tpu.dot_dimension_numbers<[1], [0], [0], [1], [0, 0, 1, 1], [], []>} : vector<18x24xbf16>, vector<24x117xbf16>, vector<18x117xf32> -> vector<18x117xf32>
    %345 = arith.addf %341, %344 : vector<18x117xf32>
    %c0_188 = arith.constant 0 : index
    %c48_189 = arith.constant 48 : index
    %346 = vector.load %arg30[%c0_188, %c48_189] : memref<18x216xbf16, #tpu.memory_space<vmem>>, vector<18x24xbf16>
    %347 = vector.extract_strided_slice %338 {offsets = [0, 4], sizes = [24, 117], strides = [1, 1]} : vector<24x233xbf16> to vector<24x117xbf16>
    %cst_190 = arith.constant dense<0.000000e+00> : vector<18x117xf32>
    %348 = tpu.matmul %346, %347, %cst_190 {dimension_numbers = #tpu.dot_dimension_numbers<[1], [0], [0], [1], [0, 0, 1, 1], [], []>} : vector<18x24xbf16>, vector<24x117xbf16>, vector<18x117xf32> -> vector<18x117xf32>
    %349 = arith.addf %345, %348 : vector<18x117xf32>
    %c0_191 = arith.constant 0 : index
    %c72_192 = arith.constant 72 : index
    %350 = vector.load %arg30[%c0_191, %c72_192] : memref<18x216xbf16, #tpu.memory_space<vmem>>, vector<18x24xbf16>
    %351 = vector.extract_strided_slice %338 {offsets = [0, 56], sizes = [24, 117], strides = [1, 1]} : vector<24x233xbf16> to vector<24x117xbf16>
    %cst_193 = arith.constant dense<0.000000e+00> : vector<18x117xf32>
    %352 = tpu.matmul %350, %351, %cst_193 {dimension_numbers = #tpu.dot_dimension_numbers<[1], [0], [0], [1], [0, 0, 1, 1], [], []>} : vector<18x24xbf16>, vector<24x117xbf16>, vector<18x117xf32> -> vector<18x117xf32>
    %353 = arith.addf %349, %352 : vector<18x117xf32>
    %c0_194 = arith.constant 0 : index
    %c96_195 = arith.constant 96 : index
    %354 = vector.load %arg30[%c0_194, %c96_195] : memref<18x216xbf16, #tpu.memory_space<vmem>>, vector<18x24xbf16>
    %355 = vector.extract_strided_slice %338 {offsets = [0, 58], sizes = [24, 117], strides = [1, 1]} : vector<24x233xbf16> to vector<24x117xbf16>
    %cst_196 = arith.constant dense<0.000000e+00> : vector<18x117xf32>
    %356 = tpu.matmul %354, %355, %cst_196 {dimension_numbers = #tpu.dot_dimension_numbers<[1], [0], [0], [1], [0, 0, 1, 1], [], []>} : vector<18x24xbf16>, vector<24x117xbf16>, vector<18x117xf32> -> vector<18x117xf32>
    %357 = arith.addf %353, %356 : vector<18x117xf32>
    %c0_197 = arith.constant 0 : index
    %c120_198 = arith.constant 120 : index
    %358 = vector.load %arg30[%c0_197, %c120_198] : memref<18x216xbf16, #tpu.memory_space<vmem>>, vector<18x24xbf16>
    %359 = vector.extract_strided_slice %338 {offsets = [0, 60], sizes = [24, 117], strides = [1, 1]} : vector<24x233xbf16> to vector<24x117xbf16>
    %cst_199 = arith.constant dense<0.000000e+00> : vector<18x117xf32>
    %360 = tpu.matmul %358, %359, %cst_199 {dimension_numbers = #tpu.dot_dimension_numbers<[1], [0], [0], [1], [0, 0, 1, 1], [], []>} : vector<18x24xbf16>, vector<24x117xbf16>, vector<18x117xf32> -> vector<18x117xf32>
    %361 = arith.addf %357, %360 : vector<18x117xf32>
    %c0_200 = arith.constant 0 : index
    %c144_201 = arith.constant 144 : index
    %362 = vector.load %arg30[%c0_200, %c144_201] : memref<18x216xbf16, #tpu.memory_space<vmem>>, vector<18x24xbf16>
    %363 = vector.extract_strided_slice %338 {offsets = [0, 112], sizes = [24, 117], strides = [1, 1]} : vector<24x233xbf16> to vector<24x117xbf16>
    %cst_202 = arith.constant dense<0.000000e+00> : vector<18x117xf32>
    %364 = tpu.matmul %362, %363, %cst_202 {dimension_numbers = #tpu.dot_dimension_numbers<[1], [0], [0], [1], [0, 0, 1, 1], [], []>} : vector<18x24xbf16>, vector<24x117xbf16>, vector<18x117xf32> -> vector<18x117xf32>
    %365 = arith.addf %361, %364 : vector<18x117xf32>
    %c0_203 = arith.constant 0 : index
    %c168_204 = arith.constant 168 : index
    %366 = vector.load %arg30[%c0_203, %c168_204] : memref<18x216xbf16, #tpu.memory_space<vmem>>, vector<18x24xbf16>
    %367 = vector.extract_strided_slice %338 {offsets = [0, 114], sizes = [24, 117], strides = [1, 1]} : vector<24x233xbf16> to vector<24x117xbf16>
    %cst_205 = arith.constant dense<0.000000e+00> : vector<18x117xf32>
    %368 = tpu.matmul %366, %367, %cst_205 {dimension_numbers = #tpu.dot_dimension_numbers<[1], [0], [0], [1], [0, 0, 1, 1], [], []>} : vector<18x24xbf16>, vector<24x117xbf16>, vector<18x117xf32> -> vector<18x117xf32>
    %369 = arith.addf %365, %368 : vector<18x117xf32>
    %c0_206 = arith.constant 0 : index
    %c192_207 = arith.constant 192 : index
    %370 = vector.load %arg30[%c0_206, %c192_207] : memref<18x216xbf16, #tpu.memory_space<vmem>>, vector<18x24xbf16>
    %371 = vector.extract_strided_slice %338 {offsets = [0, 116], sizes = [24, 117], strides = [1, 1]} : vector<24x233xbf16> to vector<24x117xbf16>
    %cst_208 = arith.constant dense<0.000000e+00> : vector<18x117xf32>
    %372 = tpu.matmul %370, %371, %cst_208 {dimension_numbers = #tpu.dot_dimension_numbers<[1], [0], [0], [1], [0, 0, 1, 1], [], []>} : vector<18x24xbf16>, vector<24x117xbf16>, vector<18x117xf32> -> vector<18x117xf32>
    %373 = arith.addf %369, %372 : vector<18x117xf32>
    %c0_209 = arith.constant 0 : index
    %c0_210 = arith.constant 0 : index
    %374 = vector.load %arg31[%c0_209, %c0_210] : memref<18x1xf32, #tpu.memory_space<vmem>>, vector<18x1xf32>
    %375 = vector.broadcast %374 : vector<18x1xf32> to vector<18x117xf32>
    %376 = arith.addf %373, %375 : vector<18x117xf32>
    %cst_211 = arith.constant 0.000000e+00 : f32
    %377 = vector.broadcast %cst_211 : f32 to vector<18x117xf32>
    %378 = arith.maximumf %376, %377 : vector<18x117xf32>
    %c0_212 = arith.constant 0 : index
    %c0_213 = arith.constant 0 : index
    %379 = vector.load %arg32[%c0_212, %c0_213] : memref<18x1xf32, #tpu.memory_space<vmem>>, vector<18x1xf32>
    %380 = vector.broadcast %379 : vector<18x1xf32> to vector<18x117xf32>
    %381 = arith.mulf %378, %380 : vector<18x117xf32>
    %c0_214 = arith.constant 0 : index
    %c0_215 = arith.constant 0 : index
    %382 = vector.load %arg33[%c0_214, %c0_215] : memref<18x1xf32, #tpu.memory_space<vmem>>, vector<18x1xf32>
    %383 = vector.broadcast %382 : vector<18x1xf32> to vector<18x117xf32>
    %384 = arith.addf %381, %383 : vector<18x117xf32>
    %385 = arith.truncf %384 : vector<18x117xf32> to vector<18x117xbf16>
    %c0_216 = arith.constant 0 : index
    %c0_217 = arith.constant 0 : index
    %386 = vector.load %arg34[%c0_216, %c0_217] : memref<10x162xbf16, #tpu.memory_space<vmem>>, vector<10x18xbf16>
    %387 = vector.extract_strided_slice %385 {offsets = [0, 0], sizes = [18, 1], strides = [1, 1]} : vector<18x117xbf16> to vector<18x1xbf16>
    %cst_218 = arith.constant dense<0.000000e+00> : vector<10x1xf32>
    %388 = tpu.matmul %386, %387, %cst_218 {dimension_numbers = #tpu.dot_dimension_numbers<[1], [0], [0], [1], [0, 0, 1, 1], [], []>} : vector<10x18xbf16>, vector<18x1xbf16>, vector<10x1xf32> -> vector<10x1xf32>
    %c0_219 = arith.constant 0 : index
    %c18 = arith.constant 18 : index
    %389 = vector.load %arg34[%c0_219, %c18] : memref<10x162xbf16, #tpu.memory_space<vmem>>, vector<10x18xbf16>
    %390 = vector.extract_strided_slice %385 {offsets = [0, 2], sizes = [18, 1], strides = [1, 1]} : vector<18x117xbf16> to vector<18x1xbf16>
    %cst_220 = arith.constant dense<0.000000e+00> : vector<10x1xf32>
    %391 = tpu.matmul %389, %390, %cst_220 {dimension_numbers = #tpu.dot_dimension_numbers<[1], [0], [0], [1], [0, 0, 1, 1], [], []>} : vector<10x18xbf16>, vector<18x1xbf16>, vector<10x1xf32> -> vector<10x1xf32>
    %392 = arith.addf %388, %391 : vector<10x1xf32>
    %c0_221 = arith.constant 0 : index
    %c36 = arith.constant 36 : index
    %393 = vector.load %arg34[%c0_221, %c36] : memref<10x162xbf16, #tpu.memory_space<vmem>>, vector<10x18xbf16>
    %394 = vector.extract_strided_slice %385 {offsets = [0, 4], sizes = [18, 1], strides = [1, 1]} : vector<18x117xbf16> to vector<18x1xbf16>
    %cst_222 = arith.constant dense<0.000000e+00> : vector<10x1xf32>
    %395 = tpu.matmul %393, %394, %cst_222 {dimension_numbers = #tpu.dot_dimension_numbers<[1], [0], [0], [1], [0, 0, 1, 1], [], []>} : vector<10x18xbf16>, vector<18x1xbf16>, vector<10x1xf32> -> vector<10x1xf32>
    %396 = arith.addf %392, %395 : vector<10x1xf32>
    %c0_223 = arith.constant 0 : index
    %c54 = arith.constant 54 : index
    %397 = vector.load %arg34[%c0_223, %c54] : memref<10x162xbf16, #tpu.memory_space<vmem>>, vector<10x18xbf16>
    %398 = vector.extract_strided_slice %385 {offsets = [0, 56], sizes = [18, 1], strides = [1, 1]} : vector<18x117xbf16> to vector<18x1xbf16>
    %cst_224 = arith.constant dense<0.000000e+00> : vector<10x1xf32>
    %399 = tpu.matmul %397, %398, %cst_224 {dimension_numbers = #tpu.dot_dimension_numbers<[1], [0], [0], [1], [0, 0, 1, 1], [], []>} : vector<10x18xbf16>, vector<18x1xbf16>, vector<10x1xf32> -> vector<10x1xf32>
    %400 = arith.addf %396, %399 : vector<10x1xf32>
    %c0_225 = arith.constant 0 : index
    %c72_226 = arith.constant 72 : index
    %401 = vector.load %arg34[%c0_225, %c72_226] : memref<10x162xbf16, #tpu.memory_space<vmem>>, vector<10x18xbf16>
    %402 = vector.extract_strided_slice %385 {offsets = [0, 58], sizes = [18, 1], strides = [1, 1]} : vector<18x117xbf16> to vector<18x1xbf16>
    %cst_227 = arith.constant dense<0.000000e+00> : vector<10x1xf32>
    %403 = tpu.matmul %401, %402, %cst_227 {dimension_numbers = #tpu.dot_dimension_numbers<[1], [0], [0], [1], [0, 0, 1, 1], [], []>} : vector<10x18xbf16>, vector<18x1xbf16>, vector<10x1xf32> -> vector<10x1xf32>
    %404 = arith.addf %400, %403 : vector<10x1xf32>
    %c0_228 = arith.constant 0 : index
    %c90 = arith.constant 90 : index
    %405 = vector.load %arg34[%c0_228, %c90] : memref<10x162xbf16, #tpu.memory_space<vmem>>, vector<10x18xbf16>
    %406 = vector.extract_strided_slice %385 {offsets = [0, 60], sizes = [18, 1], strides = [1, 1]} : vector<18x117xbf16> to vector<18x1xbf16>
    %cst_229 = arith.constant dense<0.000000e+00> : vector<10x1xf32>
    %407 = tpu.matmul %405, %406, %cst_229 {dimension_numbers = #tpu.dot_dimension_numbers<[1], [0], [0], [1], [0, 0, 1, 1], [], []>} : vector<10x18xbf16>, vector<18x1xbf16>, vector<10x1xf32> -> vector<10x1xf32>
    %408 = arith.addf %404, %407 : vector<10x1xf32>
    %c0_230 = arith.constant 0 : index
    %c108 = arith.constant 108 : index
    %409 = vector.load %arg34[%c0_230, %c108] : memref<10x162xbf16, #tpu.memory_space<vmem>>, vector<10x18xbf16>
    %410 = vector.extract_strided_slice %385 {offsets = [0, 112], sizes = [18, 1], strides = [1, 1]} : vector<18x117xbf16> to vector<18x1xbf16>
    %cst_231 = arith.constant dense<0.000000e+00> : vector<10x1xf32>
    %411 = tpu.matmul %409, %410, %cst_231 {dimension_numbers = #tpu.dot_dimension_numbers<[1], [0], [0], [1], [0, 0, 1, 1], [], []>} : vector<10x18xbf16>, vector<18x1xbf16>, vector<10x1xf32> -> vector<10x1xf32>
    %412 = arith.addf %408, %411 : vector<10x1xf32>
    %c0_232 = arith.constant 0 : index
    %c126 = arith.constant 126 : index
    %413 = vector.load %arg34[%c0_232, %c126] : memref<10x162xbf16, #tpu.memory_space<vmem>>, vector<10x18xbf16>
    %414 = vector.extract_strided_slice %385 {offsets = [0, 114], sizes = [18, 1], strides = [1, 1]} : vector<18x117xbf16> to vector<18x1xbf16>
    %cst_233 = arith.constant dense<0.000000e+00> : vector<10x1xf32>
    %415 = tpu.matmul %413, %414, %cst_233 {dimension_numbers = #tpu.dot_dimension_numbers<[1], [0], [0], [1], [0, 0, 1, 1], [], []>} : vector<10x18xbf16>, vector<18x1xbf16>, vector<10x1xf32> -> vector<10x1xf32>
    %416 = arith.addf %412, %415 : vector<10x1xf32>
    %c0_234 = arith.constant 0 : index
    %c144_235 = arith.constant 144 : index
    %417 = vector.load %arg34[%c0_234, %c144_235] : memref<10x162xbf16, #tpu.memory_space<vmem>>, vector<10x18xbf16>
    %418 = vector.extract_strided_slice %385 {offsets = [0, 116], sizes = [18, 1], strides = [1, 1]} : vector<18x117xbf16> to vector<18x1xbf16>
    %cst_236 = arith.constant dense<0.000000e+00> : vector<10x1xf32>
    %419 = tpu.matmul %417, %418, %cst_236 {dimension_numbers = #tpu.dot_dimension_numbers<[1], [0], [0], [1], [0, 0, 1, 1], [], []>} : vector<10x18xbf16>, vector<18x1xbf16>, vector<10x1xf32> -> vector<10x1xf32>
    %420 = arith.addf %416, %419 : vector<10x1xf32>
    %c0_237 = arith.constant 0 : index
    %c0_238 = arith.constant 0 : index
    %421 = vector.load %arg35[%c0_237, %c0_238] : memref<10x1xf32, #tpu.memory_space<vmem>>, vector<10x1xf32>
    %422 = arith.addf %420, %421 : vector<10x1xf32>
    %cst_239 = arith.constant 0.000000e+00 : f32
    %423 = vector.broadcast %cst_239 : f32 to vector<10x1xf32>
    %424 = arith.maximumf %422, %423 : vector<10x1xf32>
    %c0_240 = arith.constant 0 : index
    %c0_241 = arith.constant 0 : index
    %425 = vector.load %arg36[%c0_240, %c0_241] : memref<10x1xf32, #tpu.memory_space<vmem>>, vector<10x1xf32>
    %426 = arith.mulf %424, %425 : vector<10x1xf32>
    %c0_242 = arith.constant 0 : index
    %c0_243 = arith.constant 0 : index
    %427 = vector.load %arg37[%c0_242, %c0_243] : memref<10x1xf32, #tpu.memory_space<vmem>>, vector<10x1xf32>
    %428 = arith.addf %426, %427 : vector<10x1xf32>
    %429 = arith.truncf %428 : vector<10x1xf32> to vector<10x1xbf16>
    %c0_244 = arith.constant 0 : index
    %c0_245 = arith.constant 0 : index
    %430 = vector.load %arg38[%c0_244, %c0_245] : memref<10x10xbf16, #tpu.memory_space<vmem>>, vector<10x10xbf16>
    %cst_246 = arith.constant dense<0.000000e+00> : vector<10x1xf32>
    %431 = tpu.matmul %430, %429, %cst_246 {dimension_numbers = #tpu.dot_dimension_numbers<[1], [0], [0], [1], [0, 0, 1, 1], [], []>} : vector<10x10xbf16>, vector<10x1xbf16>, vector<10x1xf32> -> vector<10x1xf32>
    %c0_247 = arith.constant 0 : index
    %c0_248 = arith.constant 0 : index
    %432 = vector.load %arg39[%c0_247, %c0_248] : memref<10x1xf32, #tpu.memory_space<vmem>>, vector<10x1xf32>
    %433 = arith.addf %431, %432 : vector<10x1xf32>
    %434 = arith.truncf %433 : vector<10x1xf32> to vector<10x1xbf16>
    %435 = arith.extf %434 : vector<10x1xbf16> to vector<10x1xf32>
    %cst_249 = arith.constant dense<0xFF800000> : vector<1xf32>
    %436 = vector.multi_reduction <maximumf>, %435, %cst_249 [0] : vector<10x1xf32> to vector<1xf32>
    %437 = vector.shape_cast %436 : vector<1xf32> to vector<1x1xf32>
    %438 = vector.broadcast %437 : vector<1x1xf32> to vector<10x1xf32>
    %439 = arith.subf %435, %438 : vector<10x1xf32>
    %440 = math.exp %439 : vector<10x1xf32>
    %441 = vector.broadcast %437 : vector<1x1xf32> to vector<10x1xf32>
    %442 = arith.subf %435, %441 : vector<10x1xf32>
    %cst_250 = arith.constant dense<0.000000e+00> : vector<1xf32>
    %443 = vector.multi_reduction <add>, %440, %cst_250 [0] : vector<10x1xf32> to vector<1xf32>
    %444 = vector.shape_cast %443 : vector<1xf32> to vector<1x1xf32>
    %445 = math.log %444 : vector<1x1xf32>
    %446 = vector.broadcast %445 : vector<1x1xf32> to vector<10x1xf32>
    %447 = arith.subf %442, %446 : vector<10x1xf32>
    %c0_251 = arith.constant 0 : index
    %c0_252 = arith.constant 0 : index
    %c0_253 = arith.constant 0 : index
    %448 = vector.load %arg40[%c0_251, %c0_252, %c0_253] : memref<1x10x1xf32, #tpu.memory_space<vmem>>, vector<1x10x1xf32>
    %449 = vector.shape_cast %448 : vector<1x10x1xf32> to vector<10x1xf32>
    %450 = vector.shape_cast %447 : vector<10x1xf32> to vector<1x10x1xf32>
    tpu.vector_store %arg40[%c0_251, %c0_252, %c0_253], %450 {strides = array<i32>} : memref<1x10x1xf32, #tpu.memory_space<vmem>>, vector<1x10x1xf32>,
    return
  }
  func.func @transform_0(%arg0: i32) -> (i32, i32, i32) {
    %c0_i32 = arith.constant 0 : i32
    %c0_i32_0 = arith.constant 0 : i32
    %c0_i32_1 = arith.constant 0 : i32
    return %arg0, %c0_i32, %c0_i32_0 : i32, i32, i32
  }
  func.func @transform_1(%arg0: i32) -> (i32, i32) {
    %c0_i32 = arith.constant 0 : i32
    %c0_i32_0 = arith.constant 0 : i32
    %c0_i32_1 = arith.constant 0 : i32
    return %c0_i32, %c0_i32_0 : i32, i32
  }
  func.func @transform_2(%arg0: i32) -> (i32, i32) {
    %c0_i32 = arith.constant 0 : i32
    %c0_i32_0 = arith.constant 0 : i32
    %c0_i32_1 = arith.constant 0 : i32
    return %c0_i32, %c0_i32_0 : i32, i32
  }
  func.func @transform_3(%arg0: i32) -> (i32, i32) {
    %c0_i32 = arith.constant 0 : i32
    %c0_i32_0 = arith.constant 0 : i32
    %c0_i32_1 = arith.constant 0 : i32
    return %c0_i32, %c0_i32_0 : i32, i32
  }
  func.func @transform_4(%arg0: i32) -> (i32, i32) {
    %c0_i32 = arith.constant 0 : i32
    %c0_i32_0 = arith.constant 0 : i32
    %c0_i32_1 = arith.constant 0 : i32
    return %c0_i32, %c0_i32_0 : i32, i32
  }
  func.func @transform_5(%arg0: i32) -> (i32, i32) {
    %c0_i32 = arith.constant 0 : i32
    %c0_i32_0 = arith.constant 0 : i32
    %c0_i32_1 = arith.constant 0 : i32
    return %c0_i32, %c0_i32_0 : i32, i32
  }
  func.func @transform_6(%arg0: i32) -> (i32, i32) {
    %c0_i32 = arith.constant 0 : i32
    %c0_i32_0 = arith.constant 0 : i32
    %c0_i32_1 = arith.constant 0 : i32
    return %c0_i32, %c0_i32_0 : i32, i32
  }
  func.func @transform_7(%arg0: i32) -> (i32, i32) {
    %c0_i32 = arith.constant 0 : i32
    %c0_i32_0 = arith.constant 0 : i32
    %c0_i32_1 = arith.constant 0 : i32
    return %c0_i32, %c0_i32_0 : i32, i32
  }
  func.func @transform_8(%arg0: i32) -> (i32, i32) {
    %c0_i32 = arith.constant 0 : i32
    %c0_i32_0 = arith.constant 0 : i32
    %c0_i32_1 = arith.constant 0 : i32
    return %c0_i32, %c0_i32_0 : i32, i32
  }
  func.func @transform_9(%arg0: i32) -> (i32, i32) {
    %c0_i32 = arith.constant 0 : i32
    %c0_i32_0 = arith.constant 0 : i32
    %c0_i32_1 = arith.constant 0 : i32
    return %c0_i32, %c0_i32_0 : i32, i32
  }
  func.func @transform_10(%arg0: i32) -> (i32, i32) {
    %c0_i32 = arith.constant 0 : i32
    %c0_i32_0 = arith.constant 0 : i32
    %c0_i32_1 = arith.constant 0 : i32
    return %c0_i32, %c0_i32_0 : i32, i32
  }
  func.func @transform_11(%arg0: i32) -> (i32, i32) {
    %c0_i32 = arith.constant 0 : i32
    %c0_i32_0 = arith.constant 0 : i32
    %c0_i32_1 = arith.constant 0 : i32
    return %c0_i32, %c0_i32_0 : i32, i32
  }
  func.func @transform_12(%arg0: i32) -> (i32, i32) {
    %c0_i32 = arith.constant 0 : i32
    %c0_i32_0 = arith.constant 0 : i32
    %c0_i32_1 = arith.constant 0 : i32
    return %c0_i32, %c0_i32_0 : i32, i32
  }
  func.func @transform_13(%arg0: i32) -> (i32, i32) {
    %c0_i32 = arith.constant 0 : i32
    %c0_i32_0 = arith.constant 0 : i32
    %c0_i32_1 = arith.constant 0 : i32
    return %c0_i32, %c0_i32_0 : i32, i32
  }
  func.func @transform_14(%arg0: i32) -> (i32, i32) {
    %c0_i32 = arith.constant 0 : i32
    %c0_i32_0 = arith.constant 0 : i32
    %c0_i32_1 = arith.constant 0 : i32
    return %c0_i32, %c0_i32_0 : i32, i32
  }
  func.func @transform_15(%arg0: i32) -> (i32, i32) {
    %c0_i32 = arith.constant 0 : i32
    %c0_i32_0 = arith.constant 0 : i32
    %c0_i32_1 = arith.constant 0 : i32
    return %c0_i32, %c0_i32_0 : i32, i32
  }
  func.func @transform_16(%arg0: i32) -> (i32, i32) {
    %c0_i32 = arith.constant 0 : i32
    %c0_i32_0 = arith.constant 0 : i32
    %c0_i32_1 = arith.constant 0 : i32
    return %c0_i32, %c0_i32_0 : i32, i32
  }
  func.func @transform_17(%arg0: i32) -> (i32, i32) {
    %c0_i32 = arith.constant 0 : i32
    %c0_i32_0 = arith.constant 0 : i32
    %c0_i32_1 = arith.constant 0 : i32
    return %c0_i32, %c0_i32_0 : i32, i32
  }
  func.func @transform_18(%arg0: i32) -> (i32, i32) {
    %c0_i32 = arith.constant 0 : i32
    %c0_i32_0 = arith.constant 0 : i32
    %c0_i32_1 = arith.constant 0 : i32
    return %c0_i32, %c0_i32_0 : i32, i32
  }
  func.func @transform_19(%arg0: i32) -> (i32, i32) {
    %c0_i32 = arith.constant 0 : i32
    %c0_i32_0 = arith.constant 0 : i32
    %c0_i32_1 = arith.constant 0 : i32
    return %c0_i32, %c0_i32_0 : i32, i32
  }
  func.func @transform_20(%arg0: i32) -> (i32, i32) {
    %c0_i32 = arith.constant 0 : i32
    %c0_i32_0 = arith.constant 0 : i32
    %c0_i32_1 = arith.constant 0 : i32
    return %c0_i32, %c0_i32_0 : i32, i32
  }
  func.func @transform_21(%arg0: i32) -> (i32, i32) {
    %c0_i32 = arith.constant 0 : i32
    %c0_i32_0 = arith.constant 0 : i32
    %c0_i32_1 = arith.constant 0 : i32
    return %c0_i32, %c0_i32_0 : i32, i32
  }
  func.func @transform_22(%arg0: i32) -> (i32, i32) {
    %c0_i32 = arith.constant 0 : i32
    %c0_i32_0 = arith.constant 0 : i32
    %c0_i32_1 = arith.constant 0 : i32
    return %c0_i32, %c0_i32_0 : i32, i32
  }
  func.func @transform_23(%arg0: i32) -> (i32, i32) {
    %c0_i32 = arith.constant 0 : i32
    %c0_i32_0 = arith.constant 0 : i32
    %c0_i32_1 = arith.constant 0 : i32
    return %c0_i32, %c0_i32_0 : i32, i32
  }
  func.func @transform_24(%arg0: i32) -> (i32, i32) {
    %c0_i32 = arith.constant 0 : i32
    %c0_i32_0 = arith.constant 0 : i32
    %c0_i32_1 = arith.constant 0 : i32
    return %c0_i32, %c0_i32_0 : i32, i32
  }
  func.func @transform_25(%arg0: i32) -> (i32, i32) {
    %c0_i32 = arith.constant 0 : i32
    %c0_i32_0 = arith.constant 0 : i32
    %c0_i32_1 = arith.constant 0 : i32
    return %c0_i32, %c0_i32_0 : i32, i32
  }
  func.func @transform_26(%arg0: i32) -> (i32, i32) {
    %c0_i32 = arith.constant 0 : i32
    %c0_i32_0 = arith.constant 0 : i32
    %c0_i32_1 = arith.constant 0 : i32
    return %c0_i32, %c0_i32_0 : i32, i32
  }
  func.func @transform_27(%arg0: i32) -> (i32, i32) {
    %c0_i32 = arith.constant 0 : i32
    %c0_i32_0 = arith.constant 0 : i32
    %c0_i32_1 = arith.constant 0 : i32
    return %c0_i32, %c0_i32_0 : i32, i32
  }
  func.func @transform_28(%arg0: i32) -> (i32, i32) {
    %c0_i32 = arith.constant 0 : i32
    %c0_i32_0 = arith.constant 0 : i32
    %c0_i32_1 = arith.constant 0 : i32
    return %c0_i32, %c0_i32_0 : i32, i32
  }
  func.func @transform_29(%arg0: i32) -> (i32, i32) {
    %c0_i32 = arith.constant 0 : i32
    %c0_i32_0 = arith.constant 0 : i32
    %c0_i32_1 = arith.constant 0 : i32
    return %c0_i32, %c0_i32_0 : i32, i32
  }
  func.func @transform_30(%arg0: i32) -> (i32, i32) {
    %c0_i32 = arith.constant 0 : i32
    %c0_i32_0 = arith.constant 0 : i32
    %c0_i32_1 = arith.constant 0 : i32
    return %c0_i32, %c0_i32_0 : i32, i32
  }
  func.func @transform_31(%arg0: i32) -> (i32, i32) {
    %c0_i32 = arith.constant 0 : i32
    %c0_i32_0 = arith.constant 0 : i32
    %c0_i32_1 = arith.constant 0 : i32
    return %c0_i32, %c0_i32_0 : i32, i32
  }
  func.func @transform_32(%arg0: i32) -> (i32, i32) {
    %c0_i32 = arith.constant 0 : i32
    %c0_i32_0 = arith.constant 0 : i32
    %c0_i32_1 = arith.constant 0 : i32
    return %c0_i32, %c0_i32_0 : i32, i32
  }
  func.func @transform_33(%arg0: i32) -> (i32, i32) {
    %c0_i32 = arith.constant 0 : i32
    %c0_i32_0 = arith.constant 0 : i32
    %c0_i32_1 = arith.constant 0 : i32
    return %c0_i32, %c0_i32_0 : i32, i32
  }
  func.func @transform_34(%arg0: i32) -> (i32, i32) {
    %c0_i32 = arith.constant 0 : i32
    %c0_i32_0 = arith.constant 0 : i32
    %c0_i32_1 = arith.constant 0 : i32
    return %c0_i32, %c0_i32_0 : i32, i32
  }
  func.func @transform_35(%arg0: i32) -> (i32, i32) {
    %c0_i32 = arith.constant 0 : i32
    %c0_i32_0 = arith.constant 0 : i32
    %c0_i32_1 = arith.constant 0 : i32
    return %c0_i32, %c0_i32_0 : i32, i32
  }
  func.func @transform_36(%arg0: i32) -> (i32, i32) {
    %c0_i32 = arith.constant 0 : i32
    %c0_i32_0 = arith.constant 0 : i32
    %c0_i32_1 = arith.constant 0 : i32
    return %c0_i32, %c0_i32_0 : i32, i32
  }
  func.func @transform_37(%arg0: i32) -> (i32, i32) {
    %c0_i32 = arith.constant 0 : i32
    %c0_i32_0 = arith.constant 0 : i32
    %c0_i32_1 = arith.constant 0 : i32
    return %c0_i32, %c0_i32_0 : i32, i32
  }
  func.func @transform_38(%arg0: i32) -> (i32, i32) {
    %c0_i32 = arith.constant 0 : i32
    %c0_i32_0 = arith.constant 0 : i32
    %c0_i32_1 = arith.constant 0 : i32
    return %c0_i32, %c0_i32_0 : i32, i32
  }
  func.func @transform_39(%arg0: i32) -> (i32, i32, i32) {
    %c0_i32 = arith.constant 0 : i32
    %c0_i32_0 = arith.constant 0 : i32
    %c0_i32_1 = arith.constant 0 : i32
    return %arg0, %c0_i32, %c0_i32_0 : i32, i32, i32
  }
}

</mosaic_0001>

<bundles_post_ra>
// kernel: net_forward.1
= control target key start
LH: loop header
LB: loop body
LE: loop exit
PB: predicated region body
PF: predicated region fallthrough
CT: control target
= control target key end

     0   :  { %s13762_s6 = smov 1   ;;  %s13763_s10 = smov 2   ;;  %s17372_s0 = inlined_call_operand.smem [shape: u32[40], index: -1, kind: input, shape index: {}] }
   0x1   :  { %s13877_s5 = sld [smem:[%s17372_s0]]   ;;  %s13764_s14 = smov 3  }
   0x2   :  { %s13882_s9 = sld [smem:[%s17372_s0 + %s13762_s6]]   ;;  %s13765_s18 = smov 4  }
   0x3   :  { %s13887_s13 = sld [smem:[%s17372_s0 + %s13763_s10]]   ;;  %s13766_s22 = smov 5  }
   0x4   :  { %s13892_s17 = sld [smem:[%s17372_s0 + %s13764_s14]]   ;;  %s13767_s26 = smov 6  }
   0x5   :  { %s13897_s21 = sld [smem:[%s17372_s0 + %s13765_s18]]   ;;  %s13768_s30 = smov 7  }
   0x6   :  { %s13902_s25 = sld [smem:[%s17372_s0 + %s13766_s22]]   ;;  %s13769_s4 = smov 8  }
   0x7   :  { %17487 = sst [smem:[#allocation49_spill]] %s13877_s5  ;;  %s13770_s10 = smov 9  }
   0x8   :  { %17488 = sst [smem:[#allocation50_spill]] %s13882_s9  ;;  %s13771_s15 = smov 10  }
   0x9   :  { %17489 = sst [smem:[#allocation51_spill]] %s13887_s13  ;;  %s13772_s20 = smov 11  }
   0xa   :  { %17490 = sst [smem:[#allocation52_spill]] %s13892_s17  ;;  %s13774_s1 = smov 13  }
   0xb   :  { %17491 = sst [smem:[#allocation53_spill]] %s13897_s21  ;;  %s13775_s7 = smov 14  }
   0xc   :  { %17492 = sst [smem:[#allocation54_spill]] %s13902_s25  ;;  %s13777_s22 = smov 16  }
   0xd   :  { %s13907_s29 = sld [smem:[%s17372_s0 + %s13767_s26]]   ;;  %s13773_s26 = smov 12  }
   0xe   :  { %s13912_s3 = sld [smem:[%s17372_s0 + %s13768_s30]]   ;;  %s13778_s28 = smov 17  }
   0xf   :  { %s13917_s8 = sld [smem:[%s17372_s0 + %s13769_s4]]  }
  0x10   :  { %s13922_s14 = sld [smem:[%s17372_s0 + %s13770_s10]]  }
  0x11   :  { %s13927_s19 = sld [smem:[%s17372_s0 + %s13771_s15]]   ;;  %s13776_s15 = smov 15  }
  0x12   :  { %s13932_s24 = sld [smem:[%s17372_s0 + %s13772_s20]]  }
  0x13   :  { %17493 = sst [smem:[#allocation55_spill]] %s13907_s29 }
  0x14   :  { %17494 = sst [smem:[#allocation56_spill]] %s13912_s3 }
  0x15   :  { %17495 = sst [smem:[#allocation57_spill]] %s13917_s8 }
  0x16   :  { %17496 = sst [smem:[#allocation58_spill]] %s13922_s14 }
  0x17   :  { %17497 = sst [smem:[#allocation59_spill]] %s13927_s19 }
  0x18   :  { %17498 = sst [smem:[#allocation60_spill]] %s13932_s24 }
  0x19   :  { %s13937_s30 = sld [smem:[%s17372_s0 + %s13773_s26]]  }
  0x1a   :  { %s13942_s6 = sld [smem:[%s17372_s0 + %s13774_s1]]  }
  0x1b   :  { %s13947_s12 = sld [smem:[%s17372_s0 + %s13775_s7]]   ;;  %s13779_s7 = smov 18  }
  0x1c   :  { %s13952_s20 = sld [smem:[%s17372_s0 + %s13776_s15]]   ;;  %s13780_s15 = smov 19  }
  0x1d   :  { %s13957_s27 = sld [smem:[%s17372_s0 + %s13777_s22]]   ;;  %s13781_s22 = smov 20  }
  0x1e   :  { %s13962_s4 = sld [smem:[%s17372_s0 + %s13778_s28]]   ;;  %s13782_s28 = smov 21  }
  0x1f   :  { %17499 = sst [smem:[#allocation61_spill]] %s13937_s30 }
  0x20   :  { %17500 = sst [smem:[#allocation62_spill]] %s13942_s6 }
  0x21   :  { %17501 = sst [smem:[#allocation63_spill]] %s13947_s12 }
  0x22   :  { %s13967_s6 = sld [smem:[%s17372_s0 + %s13779_s7]]   ;;  %s13783_s7 = smov 22  }
  0x23   :  { %s13972_s30 = sld [smem:[%s17372_s0 + %s13780_s15]]   ;;  %s13784_s15 = smov 23  }
  0x24   :  { %17502 = sst [smem:[#allocation64_spill]] %s13962_s4 }
  0x25   :  { %s13977_s24 = sld [smem:[%s17372_s0 + %s13781_s22]]   ;;  %s13785_s22 = smov 24  }
  0x26   :  { %s13982_s19 = sld [smem:[%s17372_s0 + %s13782_s28]]   ;;  %s13786_s28 = smov 25  }
  0x27   :  { %s13987_s14 = sld [smem:[%s17372_s0 + %s13783_s7]]   ;;  %s13787_s7 = smov 26  }
  0x28   :  { %17503 = sst [smem:[#allocation65_spill]] %s13967_s6 }
  0x29   :  { %17504 = sst [smem:[#allocation66_spill]] %s13972_s30 }
  0x2a   :  { %s13992_s30 = sld [smem:[%s17372_s0 + %s13784_s15]]   ;;  %s13788_s15 = smov 27  }
  0x2b   :  { %s13997_s8 = sld [smem:[%s17372_s0 + %s13785_s22]]   ;;  %s13789_s22 = smov 28  }
  0x2c   :  { %s14002_s3 = sld [smem:[%s17372_s0 + %s13786_s28]]   ;;  %s13790_s28 = smov 29  }
  0x2d   :  { %17505 = sst [smem:[#allocation67_spill]] %s13987_s14 }
  0x2e   :  { %s14007_s29 = sld [smem:[%s17372_s0 + %s13787_s7]]   ;;  %s13791_s7 = smov 30  }
  0x2f   :  { %s14017_s25 = sld [smem:[%s17372_s0 + %s13789_s22]]   ;;  %s13793_s22 = smov 32  }
  0x30   :  { %17506 = sst [smem:[#allocation68_spill]] %s13992_s30 }
  0x31   :  { %17507 = sst [smem:[#allocation69_spill]] %s13997_s8 }
  0x32   :  { %17508 = sst [smem:[#allocation70_spill]] %s14002_s3 }
  0x33   :  { %s14012_s30 = sld [smem:[%s17372_s0 + %s13788_s15]]   ;;  %s13792_s15 = smov 31  }
  0x34   :  { %17509 = sst [smem:[#allocation71_spill]] %s14007_s29 }
  0x35   :  { %17510 = sst [smem:[#allocation72_spill]] %s14017_s25 }
  0x36   :  { %s14022_s21 = sld [smem:[%s17372_s0 + %s13790_s28]]   ;;  %s13794_s28 = smov 33  }
  0x37   :  { %s14027_s17 = sld [smem:[%s17372_s0 + %s13791_s7]]   ;;  %s13795_s7 = smov 34  }
  0x38   :  { %s14032_s13 = sld [smem:[%s17372_s0 + %s13792_s15]]   ;;  %s13796_s15 = smov 35  }
  0x39   :  { %s14037_s5 = sld [smem:[%s17372_s0 + %s13793_s22]]   ;;  %s13797_s22 = smov 36  }
  0x3a   :  { %s14042_s9 = sld [smem:[%s17372_s0 + %s13794_s28]]   ;;  %s13798_s28 = smov 37  }
  0x3b   :  { %s14052_s25 = sld [smem:[%s17372_s0 + %s13796_s15]]   ;;  %s13800_s15 = smov 39  }
  0x3c   :  { %s14062_s29 = sld [smem:[%s17372_s0 + %s13798_s28]]  }
  0x3d   :  { %17511 = sst [smem:[#allocation73_spill]] %s14027_s17 }
  0x3e   :  { %17512 = sst [smem:[#allocation74_spill]] %s14032_s13 }
  0x3f   :  { %17513 = sst [smem:[#allocation75_spill]] %s14037_s5 }
  0x40   :  { %17514 = sst [smem:[#allocation76_spill]] %s14042_s9 }
  0x41   :  { %s14047_s17 = sld [smem:[%s17372_s0 + %s13795_s7]]   ;;  %s13799_s7 = smov 38  }
  0x42   :  { %s14057_s5 = sld [smem:[%s17372_s0 + %s13797_s22]]  }
  0x43   :  { %s14072_s8 = sld [smem:[%s17372_s0 + %s13800_s15]]  }
  0x47   :  { %17515 = sst [smem:[#allocation77_spill]] %s14047_s17 }
  0x48   :  { %17516 = sst [smem:[#allocation78_spill]] %s14057_s5 }
  0x49   :  { %s14067_s17 = sld [smem:[%s17372_s0 + %s13799_s7]]  }
  0x4a   :  { %84 = vsyncpa [#allocation3], 0 }
  0x4b   :  { %85 = vsyncpa [#allocation5], 0 }
  0x4c   :  { %86 = vsyncpa [#allocation8], 0 }
  0x4d   :  { %87 = vsyncpa [#allocation11], 0 }
  0x4e   :  { %88 = vsyncpa [#allocation14], 0 }
  0x4f   :  { %89 = vsyncpa [#allocation17], 0 }
  0x50   :  { %90 = vsyncpa [#allocation20], 0 }
  0x51   :  { %91 = vsyncpa [#allocation23], 0 }
  0x52   :  { %92 = vsyncpa [#allocation26], 0 }
  0x53   :  { %93 = vsyncpa [#allocation29], 0 }
  0x54   :  { %94 = vsyncpa [#allocation32], 0 }
  0x55   :  { %95 = vsyncpa [#allocation35], 0  ;;  %s14074_s22 = smov 0  }
  0x56 LB: > { %s17517_s14 = sld [smem:[#allocation67_spill]]  ;;  %s17518_s13 = sld [smem:[#allocation74_spill]]  ;;  %s13760_s22 = sphi %s14074_s22, %s101_s22  }
  0x57   : > { %s17519_s5 = sld [smem:[#allocation78_spill]]  ;;  %s17520_s12 = sld [smem:[#allocation63_spill]] }
  0x58   : > { %s17521_s9 = sld [smem:[#allocation76_spill]]  ;;  %s17522_s6 = sld [smem:[#allocation65_spill]] }
  0x59   : > { %s17523_s3 = sld [smem:[#allocation70_spill]]  ;;  %s17524_s4 = sld [smem:[#allocation64_spill]] }
  0x5a   : > { %s13801_s0 = smov [#allocation4]   ;;  %s14080_s26 = sadd.s32 4294967295, %s13760_s22  }
  0x5b   : > { %s1021_s23 = sshll.u32 %s13801_s0, 4  ;;  %p11580_p0 = scmp.ge.s32.totalorder %s13760_s22, 1  ;;  %s14085_s23 = int_to_ptr.vmem [resolvable:$true] %s1021_s23 }
  0x5c   : > { %p956_p1 = scmp.lt.s32.totalorder %s13760_s22, 3  ;;  %p17391_p2 = scmp.eq.s32.totalorder %s14080_s26, 0 }
  0x5d   : > { %s13802_s1 = smov [#allocation7]   ;;  %s13803_s10 = smov [#allocation10]  }
  0x5e   : > { %p14087_p3 = pnand %p11580_p0, %p956_p1  ;;  %s1043_s2 = sshll.u32 %s13802_s1, 4  ;;  %s14093_s2 = int_to_ptr.vmem [resolvable:$true] %s1043_s2 }
  0x5f   : > { %s1067_s11 = sshll.u32 %s13803_s10, 4  ;;  %s13804_s15 = smov [#allocation13]   ;;  %s14101_s11 = int_to_ptr.vmem [resolvable:$true] %s1067_s11 }
  0x60   : > { %s17525_s28 = scalar_select %p14087_p3, 1, 0 }
  0x61   : > { %p12732_p4 = pneg %p14087_p3  ;;  %s14103_s16 = sshll.u32 %s13804_s15, 4  ;;  %s1094_s16 = int_to_ptr.vmem [resolvable:$true] %s14103_s16 }
  0x62   : > { %s13062_s18 = scalar_lea.hbm %s13952_s20, 128 }
  0x63   : > { %p14097_p5 = pnand %p17391_p2, %p12732_p4  ;;  %p13063_p6 = scmp.ne.s32.totalorder %s13952_s20, %s13062_s18 }
  0x64   : > { %p13069_p10 = scmp.lt.u32.totalorder %s13062_s18, %s13952_s20 }
  0x65   : > { %p14109_p7 = pneg %p14097_p5 }
  0x67   : > { %p13065_p8 = pnand %p14109_p7, %p13063_p6 }
  0x69   : > { %p13066_p9 = pneg %p13065_p8 }
  0x6b   : > { %p13071_p11 = pnand %p13069_p10, %p13066_p9 }
  0x6d   : > { %13074 = shalt.err (!%p13071_p11)
}
  0x6e   : > { %s13075_s1 = scalar_lea.vmem %s14085_s23, 128  ;;  %p13083_p1 = scmp.lt.s32.totalorder %s14085_s23, %s14085_s23 }
  0x6f   : > { %p13076_p12 = scmp.ne.s32.totalorder %s14085_s23, %s13075_s1  ;;  %p13084_p4 = scmp.lt.s32.totalorder %s13075_s1, %s13075_s1 }
  0x71   : > { %p13078_p13 = pnand %p13076_p12, %p14109_p7  ;;  %p13085_p2 = por %p13084_p4, %p13083_p1 }
  0x73   : > { %p13079_p0 = pneg %p13078_p13 }
  0x75   : > { %p13086_p3 = pnand %p13085_p2, %p13079_p0 }
  0x77   : > { %13089 = shalt.err (!%p13086_p3)
}
  0x78   : > { %12738 = dma.hbm_to_vmem [thread:$0]  (!%p14097_p5), %s13952_s20, 128, %s14085_s23, [#allocation5]  }
  0x79   : > { %s13090_s10 = scalar_lea.hbm %s17524_s4, 128 }
  0x7a   : > { %p13091_p6 = scmp.ne.s32.totalorder %s17524_s4, %s13090_s10  ;;  %p13097_p10 = scmp.lt.u32.totalorder %s13090_s10, %s17524_s4 }
  0x7c   : > { %p13093_p8 = pnand %p13091_p6, %p14109_p7 }
  0x7e   : > { %p13094_p9 = pneg %p13093_p8 }
  0x80   : > { %p13099_p11 = pnand %p13097_p10, %p13094_p9 }
  0x82   : > { %13102 = shalt.err (!%p13099_p11)
}
  0x83   : > { %s13103_s15 = scalar_lea.vmem %s14093_s2, 128  ;;  %p13111_p13 = scmp.lt.s32.totalorder %s14093_s2, %s14093_s2 }
  0x84   : > { %p13104_p2 = scmp.ne.s32.totalorder %s14093_s2, %s13103_s15  ;;  %p13112_p0 = scmp.lt.s32.totalorder %s13103_s15, %s13103_s15 }
  0x86   : > { %p13106_p3 = pnand %p13104_p2, %p14109_p7  ;;  %p13113_p1 = por %p13112_p0, %p13111_p13 }
  0x88   : > { %p13107_p12 = pneg %p13106_p3 }
  0x8a   : > { %p13114_p4 = pnand %p13113_p1, %p13107_p12 }
  0x8c   : > { %13117 = shalt.err (!%p13114_p4)
}
  0x8d   : > { %12744 = dma.hbm_to_vmem [thread:$0]  (!%p14097_p5), %s17524_s4, 128, %s14093_s2, [#allocation8]  }
  0x8e   : > { %s13118_s23 = scalar_lea.hbm %s13977_s24, 256 }
  0x8f   : > { %p13119_p6 = scmp.ne.s32.totalorder %s13977_s24, %s13118_s23  ;;  %p13125_p10 = scmp.lt.u32.totalorder %s13118_s23, %s13977_s24 }
  0x91   : > { %p13121_p8 = pnand %p13119_p6, %p14109_p7 }
  0x93   : > { %p13122_p9 = pneg %p13121_p8 }
  0x95   : > { %p13127_p11 = pnand %p13125_p10, %p13122_p9 }
  0x97   : > { %13130 = shalt.err (!%p13127_p11)
}
  0x98   : > { %s13131_s18 = scalar_lea.vmem %s14101_s11, 256  ;;  %p13139_p13 = scmp.lt.s32.totalorder %s14101_s11, %s14101_s11 }
  0x99   : > { %p13132_p2 = scmp.ne.s32.totalorder %s14101_s11, %s13131_s18  ;;  %p13140_p0 = scmp.lt.s32.totalorder %s13131_s18, %s13131_s18 }
  0x9b   : > { %p13134_p3 = pnand %p13132_p2, %p14109_p7  ;;  %p13141_p1 = por %p13140_p0, %p13139_p13 }
  0x9d   : > { %p13135_p12 = pneg %p13134_p3 }
  0x9f   : > { %p13142_p4 = pnand %p13141_p1, %p13135_p12 }
  0xa1   : > { %13145 = shalt.err (!%p13142_p4)
}
  0xa2   : > { %s17394_s2 = smov 128   ;;  %s17396_s1 = smov 8  }
  0xa3   : > { %12750 = dma.hbm_to_vmem [thread:$0]  (!%p14097_p5), %s13977_s24, 256, %s14101_s11, [#allocation11], %s17394_s2, %s17394_s2, %s17396_s1  }
  0xa4   : > { %s13146_s10 = scalar_lea.hbm %s17517_s14, 256 }
  0xa5   : > { %p13147_p6 = scmp.ne.s32.totalorder %s17517_s14, %s13146_s10  ;;  %p13153_p10 = scmp.lt.u32.totalorder %s13146_s10, %s17517_s14 }
  0xa7   : > { %p13149_p8 = pnand %p13147_p6, %p14109_p7 }
  0xa9   : > { %p13150_p9 = pneg %p13149_p8 }
  0xab   : > { %p13155_p11 = pnand %p13153_p10, %p13150_p9 }
  0xad   : > { %13158 = shalt.err (!%p13155_p11)
}
  0xae   : > { %s13159_s15 = scalar_lea.vmem %s1094_s16, 256  ;;  %p13167_p13 = scmp.lt.s32.totalorder %s1094_s16, %s1094_s16 }
  0xaf   : > { %p13160_p2 = scmp.ne.s32.totalorder %s1094_s16, %s13159_s15  ;;  %p13168_p0 = scmp.lt.s32.totalorder %s13159_s15, %s13159_s15 }
  0xb1   : > { %p13162_p3 = pnand %p13160_p2, %p14109_p7  ;;  %p13169_p1 = por %p13168_p0, %p13167_p13 }
  0xb3   : > { %p13163_p12 = pneg %p13162_p3 }
  0xb5   : > { %p13170_p4 = pnand %p13169_p1, %p13163_p12 }
  0xb7   : > { %13173 = shalt.err (!%p13170_p4)
}
  0xb8   : > { %12756 = dma.hbm_to_vmem [thread:$0]  (!%p14097_p5), %s17517_s14, 256, %s1094_s16, [#allocation14], %s17394_s2, %s17394_s2, %s17396_s1  }
  0xb9   : > { %s13807_s11 = smov [#allocation16]   ;;  %s13808_s18 = smov [#allocation19]  }
  0xba   : > { %s1122_s23 = sshll.u32 %s13807_s11, 4  ;;  %s1148_s10 = sshll.u32 %s13808_s18, 4  ;;  %s1123_s23 = int_to_ptr.vmem [resolvable:$true] %s1122_s23  ;;  %s1149_s10 = int_to_ptr.vmem [resolvable:$true] %s1148_s10 }
  0xbb   : > { %s13174_s15 = scalar_lea.hbm %s17523_s3, 384 }
  0xbc   : > { %p13175_p6 = scmp.ne.s32.totalorder %s17523_s3, %s13174_s15  ;;  %p13181_p10 = scmp.lt.u32.totalorder %s13174_s15, %s17523_s3 }
  0xbe   : > { %p13177_p8 = pnand %p13175_p6, %p14109_p7 }
  0xc0   : > { %p13178_p9 = pneg %p13177_p8 }
  0xc2   : > { %p13183_p11 = pnand %p13181_p10, %p13178_p9 }
  0xc4   : > { %13186 = shalt.err (!%p13183_p11)
}
  0xc5   : > { %s13187_s4 = scalar_lea.vmem %s1123_s23, 384  ;;  %p13195_p13 = scmp.lt.s32.totalorder %s1123_s23, %s1123_s23 }
  0xc6   : > { %p13188_p2 = scmp.ne.s32.totalorder %s1123_s23, %s13187_s4  ;;  %p13196_p0 = scmp.lt.s32.totalorder %s13187_s4, %s13187_s4 }
  0xc8   : > { %p13190_p3 = pnand %p13188_p2, %p14109_p7  ;;  %p13197_p1 = por %p13196_p0, %p13195_p13 }
  0xca   : > { %p13191_p12 = pneg %p13190_p3 }
  0xcc   : > { %p13198_p4 = pnand %p13197_p1, %p13191_p12 }
  0xce   : > { %13201 = shalt.err (!%p13198_p4)
}
  0xcf   : > { %12762 = dma.hbm_to_vmem [thread:$0]  (!%p14097_p5), %s17523_s3, 384, %s1123_s23, [#allocation17], %s17394_s2, %s17394_s2, %s17396_s1  }
  0xd0   : > { %s13202_s16 = scalar_lea.hbm %s14012_s30, 192 }
  0xd1   : > { %p13203_p6 = scmp.ne.s32.totalorder %s14012_s30, %s13202_s16  ;;  %p13209_p10 = scmp.lt.u32.totalorder %s13202_s16, %s14012_s30 }
  0xd3   : > { %p13205_p8 = pnand %p13203_p6, %p14109_p7 }
  0xd5   : > { %p13206_p9 = pneg %p13205_p8 }
  0xd7   : > { %p13211_p11 = pnand %p13209_p10, %p13206_p9 }
  0xd9   : > { %13214 = shalt.err (!%p13211_p11)
}
  0xda   : > { %s13215_s4 = scalar_lea.vmem %s1149_s10, 192  ;;  %p13223_p13 = scmp.lt.s32.totalorder %s1149_s10, %s1149_s10 }
  0xdb   : > { %p13216_p2 = scmp.ne.s32.totalorder %s1149_s10, %s13215_s4  ;;  %p13224_p0 = scmp.lt.s32.totalorder %s13215_s4, %s13215_s4 }
  0xdd   : > { %p13218_p3 = pnand %p13216_p2, %p14109_p7  ;;  %p13225_p1 = por %p13224_p0, %p13223_p13 }
  0xdf   : > { %p13219_p12 = pneg %p13218_p3 }
  0xe1   : > { %p13226_p4 = pnand %p13225_p1, %p13219_p12 }
  0xe3   : > { %13229 = shalt.err (!%p13226_p4)
}
  0xe4   : > { %s17398_s11 = smov 64   ;;  %s17399_s23 = smov 4  }
  0xe5   : > { %12768 = dma.hbm_to_vmem [thread:$0]  (!%p14097_p5), %s14012_s30, 192, %s1149_s10, [#allocation20], %s17398_s11, %s17398_s11, %s17399_s23  }
  0xe6   : > { %s13811_s18 = smov [#allocation22]   ;;  %s13812_s16 = smov [#allocation25]  }
  0xe7   : > { %s1174_s15 = sshll.u32 %s13811_s18, 4  ;;  %s1200_s4 = sshll.u32 %s13812_s16, 4  ;;  %s1175_s15 = int_to_ptr.vmem [resolvable:$true] %s1174_s15  ;;  %s1201_s4 = int_to_ptr.vmem [resolvable:$true] %s1200_s4 }
  0xe8   : > { %s13230_s2 = scalar_lea.hbm %s14022_s21, 384 }
  0xe9   : > { %p13231_p6 = scmp.ne.s32.totalorder %s14022_s21, %s13230_s2  ;;  %p13237_p10 = scmp.lt.u32.totalorder %s13230_s2, %s14022_s21 }
  0xeb   : > { %p13233_p8 = pnand %p13231_p6, %p14109_p7 }
  0xed   : > { %p13234_p9 = pneg %p13233_p8 }
  0xef   : > { %p13239_p11 = pnand %p13237_p10, %p13234_p9 }
  0xf1   : > { %13242 = shalt.err (!%p13239_p11)
}
  0xf2   : > { %s13243_s1 = scalar_lea.vmem %s1175_s15, 384  ;;  %p13251_p13 = scmp.lt.s32.totalorder %s1175_s15, %s1175_s15 }
  0xf3   : > { %p13244_p2 = scmp.ne.s32.totalorder %s1175_s15, %s13243_s1  ;;  %p13252_p0 = scmp.lt.s32.totalorder %s13243_s1, %s13243_s1 }
  0xf5   : > { %p13246_p3 = pnand %p13244_p2, %p14109_p7  ;;  %p13253_p1 = por %p13252_p0, %p13251_p13 }
  0xf7   : > { %p13247_p12 = pneg %p13246_p3 }
  0xf9   : > { %p13254_p4 = pnand %p13253_p1, %p13247_p12 }
  0xfb   : > { %13257 = shalt.err (!%p13254_p4)
}
  0xfc   : > { %s17528_s10 = smov 8   ;;  %s17529_s18 = smov 128  }
  0xfd   : > { %12774 = dma.hbm_to_vmem [thread:$0]  (!%p14097_p5), %s14022_s21, 384, %s1175_s15, [#allocation23], %s17529_s18, %s17529_s18, %s17528_s10  }
  0xfe   : > { %s13258_s2 = scalar_lea.hbm %s17518_s13, 384 }
  0xff   : > { %p13259_p6 = scmp.ne.s32.totalorder %s17518_s13, %s13258_s2  ;;  %p13265_p10 = scmp.lt.u32.totalorder %s13258_s2, %s17518_s13 }
 0x101   : > { %p13261_p8 = pnand %p13259_p6, %p14109_p7 }
 0x103   : > { %p13262_p9 = pneg %p13261_p8 }
 0x105   : > { %p13267_p11 = pnand %p13265_p10, %p13262_p9 }
 0x107   : > { %13270 = shalt.err (!%p13267_p11)
}
 0x108   : > { %s13271_s1 = scalar_lea.vmem %s1201_s4, 384  ;;  %p13279_p13 = scmp.lt.s32.totalorder %s1201_s4, %s1201_s4 }
 0x109   : > { %p13272_p2 = scmp.ne.s32.totalorder %s1201_s4, %s13271_s1  ;;  %p13280_p0 = scmp.lt.s32.totalorder %s13271_s1, %s13271_s1 }
 0x10b   : > { %p13274_p3 = pnand %p13272_p2, %p14109_p7  ;;  %p13281_p1 = por %p13280_p0, %p13279_p13 }
 0x10d   : > { %p13275_p12 = pneg %p13274_p3 }
 0x10f   : > { %p13282_p4 = pnand %p13281_p1, %p13275_p12 }
 0x111   : > { %13285 = shalt.err (!%p13282_p4)
}
 0x112   : > { %12780 = dma.hbm_to_vmem [thread:$0]  (!%p14097_p5), %s17518_s13, 384, %s1201_s4, [#allocation26], %s17529_s18, %s17529_s18, %s17528_s10  }
 0x113   : > { %s13813_s15 = smov [#allocation28]   ;;  %s13814_s2 = smov [#allocation31]  }
 0x114   : > { %s1226_s16 = sshll.u32 %s13813_s15, 4  ;;  %s1252_s11 = sshll.u32 %s13814_s2, 4  ;;  %s1227_s16 = int_to_ptr.vmem [resolvable:$true] %s1226_s16  ;;  %s1253_s11 = int_to_ptr.vmem [resolvable:$true] %s1252_s11 }
 0x115   : > { %s13286_s1 = scalar_lea.hbm %s17521_s9, 256 }
 0x116   : > { %p13287_p6 = scmp.ne.s32.totalorder %s17521_s9, %s13286_s1  ;;  %p13293_p10 = scmp.lt.u32.totalorder %s13286_s1, %s17521_s9 }
 0x118   : > { %p13289_p8 = pnand %p13287_p6, %p14109_p7 }
 0x11a   : > { %p13290_p9 = pneg %p13289_p8 }
 0x11c   : > { %p13295_p11 = pnand %p13293_p10, %p13290_p9 }
 0x11e   : > { %13298 = shalt.err (!%p13295_p11)
}
 0x11f   : > { %s13299_s23 = scalar_lea.vmem %s1227_s16, 256  ;;  %p13307_p13 = scmp.lt.s32.totalorder %s1227_s16, %s1227_s16 }
 0x120   : > { %p13300_p2 = scmp.ne.s32.totalorder %s1227_s16, %s13299_s23  ;;  %p13308_p0 = scmp.lt.s32.totalorder %s13299_s23, %s13299_s23 }
 0x122   : > { %p13302_p3 = pnand %p13300_p2, %p14109_p7  ;;  %p13309_p1 = por %p13308_p0, %p13307_p13 }
 0x124   : > { %p13303_p12 = pneg %p13302_p3 }
 0x126   : > { %p13310_p4 = pnand %p13309_p1, %p13303_p12 }
 0x128   : > { %13313 = shalt.err (!%p13310_p4)
}
 0x129   : > { %12786 = dma.hbm_to_vmem [thread:$0]  (!%p14097_p5), %s17521_s9, 256, %s1227_s16, [#allocation29], %s17529_s18, %s17529_s18, %s17528_s10  }
 0x12a   : > { %s13314_s4 = scalar_lea.hbm %s14052_s25, 256 }
 0x12b   : > { %p13315_p6 = scmp.ne.s32.totalorder %s14052_s25, %s13314_s4  ;;  %p13321_p10 = scmp.lt.u32.totalorder %s13314_s4, %s14052_s25 }
 0x12d   : > { %p13317_p8 = pnand %p13315_p6, %p14109_p7 }
 0x12f   : > { %p13318_p9 = pneg %p13317_p8 }
 0x131   : > { %p13323_p11 = pnand %p13321_p10, %p13318_p9 }
 0x133   : > { %13326 = shalt.err (!%p13323_p11)
}
 0x134   : > { %s13327_s23 = scalar_lea.vmem %s1253_s11, 256  ;;  %p13335_p13 = scmp.lt.s32.totalorder %s1253_s11, %s1253_s11 }
 0x135   : > { %p13328_p2 = scmp.ne.s32.totalorder %s1253_s11, %s13327_s23  ;;  %p13336_p0 = scmp.lt.s32.totalorder %s13327_s23, %s13327_s23 }
 0x137   : > { %p13330_p3 = pnand %p13328_p2, %p14109_p7  ;;  %p13337_p1 = por %p13336_p0, %p13335_p13 }
 0x139   : > { %p13331_p12 = pneg %p13330_p3 }
 0x13b   : > { %p13338_p4 = pnand %p13337_p1, %p13331_p12 }
 0x13d   : > { %13341 = shalt.err (!%p13338_p4)
}
 0x13e   : > { %12792 = dma.hbm_to_vmem [thread:$0]  (!%p14097_p5), %s14052_s25, 256, %s1253_s11, [#allocation32], %s17529_s18, %s17529_s18, %s17528_s10  }
 0x13f   : > { %s13815_s15 = smov [#allocation34]   ;;  %s13816_s2 = smov [#allocation2]  }
 0x140   : > { %s1278_s16 = sshll.u32 %s13815_s15, 4  ;;  %s1007_s1 = sshll.u32 %s13816_s2, 4  ;;  %s1279_s16 = int_to_ptr.vmem [resolvable:$true] %s1278_s16  ;;  %s1008_s1 = int_to_ptr.vmem [resolvable:$true] %s1007_s1 }
 0x141   : > { %s13342_s4 = scalar_lea.hbm %s14062_s29, 128 }
 0x142   : > { %p13343_p6 = scmp.ne.s32.totalorder %s14062_s29, %s13342_s4  ;;  %p13349_p10 = scmp.lt.u32.totalorder %s13342_s4, %s14062_s29 }
 0x144   : > { %p13345_p8 = pnand %p13343_p6, %p14109_p7 }
 0x146   : > { %p13346_p9 = pneg %p13345_p8 }
 0x148   : > { %p13351_p11 = pnand %p13349_p10, %p13346_p9 }
 0x14a   : > { %13354 = shalt.err (!%p13351_p11)
}
 0x14b   : > { %s13355_s23 = scalar_lea.vmem %s1279_s16, 128  ;;  %p13363_p13 = scmp.lt.s32.totalorder %s1279_s16, %s1279_s16 }
 0x14c   : > { %p13356_p2 = scmp.ne.s32.totalorder %s1279_s16, %s13355_s23  ;;  %p13364_p0 = scmp.lt.s32.totalorder %s13355_s23, %s13355_s23 }
 0x14e   : > { %p13358_p3 = pnand %p13356_p2, %p14109_p7  ;;  %p13365_p1 = por %p13364_p0, %p13363_p13 }
 0x150   : > { %p13359_p12 = pneg %p13358_p3 }
 0x152   : > { %p13366_p4 = pnand %p13365_p1, %p13359_p12 }
 0x154   : > { %13369 = shalt.err (!%p13366_p4)
}
 0x155   : > { %s17530_s11 = smov 4   ;;  %s17531_s15 = smov 64  }
 0x156   : > { %12798 = dma.hbm_to_vmem [thread:$0]  (!%p14097_p5), %s14062_s29, 128, %s1279_s16, [#allocation35], %s17531_s15, %s17531_s15, %s17530_s11  }
 0x157   : > { %s13370_s2 = scalar_lea.hbm %s17520_s12, 256 }
 0x158   : > { %p13371_p6 = scmp.ne.s32.totalorder %s17520_s12, %s13370_s2  ;;  %p13377_p10 = scmp.lt.u32.totalorder %s13370_s2, %s17520_s12 }
 0x15a   : > { %p13373_p8 = pnand %p13371_p6, %p14109_p7 }
 0x15c   : > { %p13374_p9 = pneg %p13373_p8 }
 0x15e   : > { %p13379_p11 = pnand %p13377_p10, %p13374_p9 }
 0x160   : > { %13382 = shalt.err (!%p13379_p11)
}
 0x161   : > { %s13383_s4 = scalar_lea.vmem %s1008_s1, 256  ;;  %p13391_p13 = scmp.lt.s32.totalorder %s1008_s1, %s1008_s1 }
 0x162   : > { %p13384_p2 = scmp.ne.s32.totalorder %s1008_s1, %s13383_s4  ;;  %p13392_p0 = scmp.lt.s32.totalorder %s13383_s4, %s13383_s4 }
 0x164   : > { %p13386_p3 = pnand %p13384_p2, %p14109_p7  ;;  %p13393_p1 = por %p13392_p0, %p13391_p13 }
 0x166   : > { %p13387_p12 = pneg %p13386_p3 }
 0x168   : > { %p13394_p4 = pnand %p13393_p1, %p13387_p12 }
 0x16a   : > { %13397 = shalt.err (!%p13394_p4)
}
 0x16b   : > { %12735 = dma.hbm_to_vmem [thread:$0]  (!%p14097_p5), %s17520_s12, 256, %s1008_s1, [#allocation3], %s17529_s18, %s17529_s18, %s17528_s10  }
 0x16c   : > { %s13817_s16 = smov [#allocation6]   ;;  %s13818_s11 = smov [#allocation9]  }
 0x16d   : > { %s1032_s23 = sshll.u32 %s13817_s16, 4  ;;  %s1054_s15 = sshll.u32 %s13818_s11, 4  ;;  %s1033_s23 = int_to_ptr.vmem [resolvable:$true] %s1032_s23  ;;  %s1055_s15 = int_to_ptr.vmem [resolvable:$true] %s1054_s15 }
 0x16e   : > { %s13398_s2 = scalar_lea.hbm %s13957_s27, 128 }
 0x16f   : > { %p13399_p6 = scmp.ne.s32.totalorder %s13957_s27, %s13398_s2  ;;  %p13405_p10 = scmp.lt.u32.totalorder %s13398_s2, %s13957_s27 }
 0x171   : > { %p13401_p8 = pnand %p13399_p6, %p14109_p7 }
 0x173   : > { %p13402_p9 = pneg %p13401_p8 }
 0x175   : > { %p13407_p11 = pnand %p13405_p10, %p13402_p9 }
 0x177   : > { %13410 = shalt.err (!%p13407_p11)
}
 0x178   : > { %s13411_s4 = scalar_lea.vmem %s1033_s23, 128  ;;  %p13419_p13 = scmp.lt.s32.totalorder %s1033_s23, %s1033_s23 }
 0x179   : > { %p13412_p2 = scmp.ne.s32.totalorder %s1033_s23, %s13411_s4  ;;  %p13420_p0 = scmp.lt.s32.totalorder %s13411_s4, %s13411_s4 }
 0x17b   : > { %p13414_p3 = pnand %p13412_p2, %p14109_p7  ;;  %p13421_p1 = por %p13420_p0, %p13419_p13 }
 0x17d   : > { %p13415_p12 = pneg %p13414_p3 }
 0x17f   : > { %p13422_p4 = pnand %p13421_p1, %p13415_p12 }
 0x181   : > { %13425 = shalt.err (!%p13422_p4)
}
 0x182   : > { %12741 = dma.hbm_to_vmem [thread:$0]  (!%p14097_p5), %s13957_s27, 128, %s1033_s23, [#allocation5]  }
 0x183   : > { %s13426_s1 = scalar_lea.hbm %s17522_s6, 128 }
 0x184   : > { %p13427_p6 = scmp.ne.s32.totalorder %s17522_s6, %s13426_s1  ;;  %p13433_p10 = scmp.lt.u32.totalorder %s13426_s1, %s17522_s6 }
 0x186   : > { %p13429_p8 = pnand %p13427_p6, %p14109_p7 }
 0x188   : > { %p13430_p9 = pneg %p13429_p8 }
 0x18a   : > { %p13435_p11 = pnand %p13433_p10, %p13430_p9 }
 0x18c   : > { %13438 = shalt.err (!%p13435_p11)
}
 0x18d   : > { %s13439_s16 = scalar_lea.vmem %s1055_s15, 128  ;;  %p13447_p13 = scmp.lt.s32.totalorder %s1055_s15, %s1055_s15 }
 0x18e   : > { %p13440_p2 = scmp.ne.s32.totalorder %s1055_s15, %s13439_s16  ;;  %p13448_p0 = scmp.lt.s32.totalorder %s13439_s16, %s13439_s16 }
 0x190   : > { %p13442_p3 = pnand %p13440_p2, %p14109_p7  ;;  %p13449_p1 = por %p13448_p0, %p13447_p13 }
 0x192   : > { %p13443_p12 = pneg %p13442_p3 }
 0x194   : > { %p13450_p4 = pnand %p13449_p1, %p13443_p12 }
 0x196   : > { %13453 = shalt.err (!%p13450_p4)
}
 0x197   : > { %12747 = dma.hbm_to_vmem [thread:$0]  (!%p14097_p5), %s17522_s6, 128, %s1055_s15, [#allocation8]  }
 0x198   : > { %s13819_s23 = smov [#allocation12]   ;;  %s13820_s2 = smov [#allocation15]  }
 0x199   : > { %s1080_s11 = sshll.u32 %s13819_s23, 4  ;;  %s1109_s4 = sshll.u32 %s13820_s2, 4  ;;  %s1081_s11 = int_to_ptr.vmem [resolvable:$true] %s1080_s11  ;;  %s1110_s4 = int_to_ptr.vmem [resolvable:$true] %s1109_s4 }
 0x19a   : > { %s13454_s1 = scalar_lea.hbm %s13982_s19, 256 }
 0x19b   : > { %p13455_p6 = scmp.ne.s32.totalorder %s13982_s19, %s13454_s1  ;;  %p13461_p10 = scmp.lt.u32.totalorder %s13454_s1, %s13982_s19 }
 0x19d   : > { %p13457_p8 = pnand %p13455_p6, %p14109_p7 }
 0x19f   : > { %p13458_p9 = pneg %p13457_p8 }
 0x1a1   : > { %p13463_p11 = pnand %p13461_p10, %p13458_p9 }
 0x1a3   : > { %13466 = shalt.err (!%p13463_p11)
}
 0x1a4   : > { %s13467_s16 = scalar_lea.vmem %s1081_s11, 256  ;;  %p13475_p13 = scmp.lt.s32.totalorder %s1081_s11, %s1081_s11 }
 0x1a5   : > { %p13468_p2 = scmp.ne.s32.totalorder %s1081_s11, %s13467_s16  ;;  %p13476_p0 = scmp.lt.s32.totalorder %s13467_s16, %s13467_s16 }
 0x1a7   : > { %p13470_p3 = pnand %p13468_p2, %p14109_p7  ;;  %p13477_p1 = por %p13476_p0, %p13475_p13 }
 0x1a9   : > { %p13471_p12 = pneg %p13470_p3 }
 0x1ab   : > { %p13478_p4 = pnand %p13477_p1, %p13471_p12 }
 0x1ad   : > { %13481 = shalt.err (!%p13478_p4)
}
 0x1ae   : > { %s17532_s15 = sld [smem:[#allocation69_spill]] }
 0x1af   : > { %12753 = dma.hbm_to_vmem [thread:$0]  (!%p14097_p5), %s13982_s19, 256, %s1081_s11, [#allocation11], %s17529_s18, %s17529_s18, %s17528_s10  }
 0x1b4   : > { %s13482_s23 = scalar_lea.hbm %s17532_s15, 384 }
 0x1b5   : > { %p13483_p6 = scmp.ne.s32.totalorder %s17532_s15, %s13482_s23  ;;  %p13489_p10 = scmp.lt.u32.totalorder %s13482_s23, %s17532_s15 }
 0x1b7   : > { %p13485_p8 = pnand %p13483_p6, %p14109_p7 }
 0x1b9   : > { %p13486_p9 = pneg %p13485_p8 }
 0x1bb   : > { %p13491_p11 = pnand %p13489_p10, %p13486_p9 }
 0x1bd   : > { %13494 = shalt.err (!%p13491_p11)
}
 0x1be   : > { %s13495_s2 = scalar_lea.vmem %s1110_s4, 384  ;;  %p13503_p13 = scmp.lt.s32.totalorder %s1110_s4, %s1110_s4 }
 0x1bf   : > { %p13496_p2 = scmp.ne.s32.totalorder %s1110_s4, %s13495_s2  ;;  %p13504_p0 = scmp.lt.s32.totalorder %s13495_s2, %s13495_s2 }
 0x1c1   : > { %p13498_p3 = pnand %p13496_p2, %p14109_p7  ;;  %p13505_p1 = por %p13504_p0, %p13503_p13 }
 0x1c3   : > { %p13499_p12 = pneg %p13498_p3 }
 0x1c5   : > { %p13506_p4 = pnand %p13505_p1, %p13499_p12 }
 0x1c7   : > { %13509 = shalt.err (!%p13506_p4)
}
 0x1c8   : > { %s17533_s11 = sld [smem:[#allocation71_spill]]  ;;  %s13821_s1 = smov [#allocation18]  }
 0x1c9   : > { %12759 = dma.hbm_to_vmem [thread:$0]  (!%p14097_p5), %s17532_s15, 384, %s1110_s4, [#allocation14], %s17529_s18, %s17529_s18, %s17528_s10  }
 0x1ca   : > { %s1135_s16 = sshll.u32 %s13821_s1, 4  ;;  %s13822_s23 = smov [#allocation21]   ;;  %s1136_s16 = int_to_ptr.vmem [resolvable:$true] %s1135_s16 }
 0x1cb   : > { %s1161_s3 = sshll.u32 %s13822_s23, 4  ;;  %s1162_s3 = int_to_ptr.vmem [resolvable:$true] %s1161_s3 }
 0x1ce   : > { %s13510_s2 = scalar_lea.hbm %s17533_s11, 384 }
 0x1cf   : > { %p13511_p6 = scmp.ne.s32.totalorder %s17533_s11, %s13510_s2  ;;  %p13517_p10 = scmp.lt.u32.totalorder %s13510_s2, %s17533_s11 }
 0x1d1   : > { %p13513_p8 = pnand %p13511_p6, %p14109_p7 }
 0x1d3   : > { %p13514_p9 = pneg %p13513_p8 }
 0x1d5   : > { %p13519_p11 = pnand %p13517_p10, %p13514_p9 }
 0x1d7   : > { %13522 = shalt.err (!%p13519_p11)
}
 0x1d8   : > { %s13523_s6 = scalar_lea.vmem %s1136_s16, 384  ;;  %p13531_p13 = scmp.lt.s32.totalorder %s1136_s16, %s1136_s16 }
 0x1d9   : > { %p13524_p2 = scmp.ne.s32.totalorder %s1136_s16, %s13523_s6  ;;  %p13532_p0 = scmp.lt.s32.totalorder %s13523_s6, %s13523_s6 }
 0x1db   : > { %p13526_p3 = pnand %p13524_p2, %p14109_p7  ;;  %p13533_p1 = por %p13532_p0, %p13531_p13 }
 0x1dd   : > { %p13527_p12 = pneg %p13526_p3 }
 0x1df   : > { %p13534_p4 = pnand %p13533_p1, %p13527_p12 }
 0x1e1   : > { %13537 = shalt.err (!%p13534_p4)
}
 0x1e2   : > { %s17534_s4 = sld [smem:[#allocation72_spill]] }
 0x1e3   : > { %12765 = dma.hbm_to_vmem [thread:$0]  (!%p14097_p5), %s17533_s11, 384, %s1136_s16, [#allocation17], %s17529_s18, %s17529_s18, %s17528_s10  }
 0x1e8   : > { %s13538_s1 = scalar_lea.hbm %s17534_s4, 384 }
 0x1e9   : > { %p13539_p6 = scmp.ne.s32.totalorder %s17534_s4, %s13538_s1  ;;  %p13545_p10 = scmp.lt.u32.totalorder %s13538_s1, %s17534_s4 }
 0x1eb   : > { %p13541_p8 = pnand %p13539_p6, %p14109_p7 }
 0x1ed   : > { %p13542_p9 = pneg %p13541_p8 }
 0x1ef   : > { %p13547_p11 = pnand %p13545_p10, %p13542_p9 }
 0x1f1   : > { %13550 = shalt.err (!%p13547_p11)
}
 0x1f2   : > { %s13551_s6 = scalar_lea.vmem %s1162_s3, 384  ;;  %p13559_p13 = scmp.lt.s32.totalorder %s1162_s3, %s1162_s3 }
 0x1f3   : > { %p13552_p2 = scmp.ne.s32.totalorder %s1162_s3, %s13551_s6  ;;  %p13560_p0 = scmp.lt.s32.totalorder %s13551_s6, %s13551_s6 }
 0x1f5   : > { %p13554_p3 = pnand %p13552_p2, %p14109_p7  ;;  %p13561_p1 = por %p13560_p0, %p13559_p13 }
 0x1f7   : > { %p13555_p12 = pneg %p13554_p3 }
 0x1f9   : > { %p13562_p4 = pnand %p13561_p1, %p13555_p12 }
 0x1fb   : > { %13565 = shalt.err (!%p13562_p4)
}
 0x1fc   : > { %s17535_s16 = sld [smem:[#allocation73_spill]]  ;;  %s13823_s23 = smov [#allocation24]  }
 0x1fd   : > { %12771 = dma.hbm_to_vmem [thread:$0]  (!%p14097_p5), %s17534_s4, 384, %s1162_s3, [#allocation20], %s17529_s18, %s17529_s18, %s17528_s10  }
 0x1fe   : > { %s1187_s2 = sshll.u32 %s13823_s23, 4  ;;  %s13824_s1 = smov [#allocation27]   ;;  %s1188_s2 = int_to_ptr.vmem [resolvable:$true] %s1187_s2 }
 0x1ff   : > { %s1213_s9 = sshll.u32 %s13824_s1, 4  ;;  %s1214_s9 = int_to_ptr.vmem [resolvable:$true] %s1213_s9 }
 0x202   : > { %s13566_s6 = scalar_lea.hbm %s17535_s16, 384 }
 0x203   : > { %p13567_p6 = scmp.ne.s32.totalorder %s17535_s16, %s13566_s6  ;;  %p13573_p10 = scmp.lt.u32.totalorder %s13566_s6, %s17535_s16 }
 0x205   : > { %p13569_p8 = pnand %p13567_p6, %p14109_p7 }
 0x207   : > { %p13570_p9 = pneg %p13569_p8 }
 0x209   : > { %p13575_p11 = pnand %p13573_p10, %p13570_p9 }
 0x20b   : > { %13578 = shalt.err (!%p13575_p11)
}
 0x20c   : > { %s13579_s11 = scalar_lea.vmem %s1188_s2, 384  ;;  %p13587_p13 = scmp.lt.s32.totalorder %s1188_s2, %s1188_s2 }
 0x20d   : > { %p13580_p2 = scmp.ne.s32.totalorder %s1188_s2, %s13579_s11  ;;  %p13588_p0 = scmp.lt.s32.totalorder %s13579_s11, %s13579_s11 }
 0x20f   : > { %p13582_p3 = pnand %p13580_p2, %p14109_p7  ;;  %p13589_p1 = por %p13588_p0, %p13587_p13 }
 0x211   : > { %p13583_p12 = pneg %p13582_p3 }
 0x213   : > { %p13590_p4 = pnand %p13589_p1, %p13583_p12 }
 0x215   : > { %13593 = shalt.err (!%p13590_p4)
}
 0x216   : > { %s17536_s3 = sld [smem:[#allocation75_spill]] }
 0x217   : > { %12777 = dma.hbm_to_vmem [thread:$0]  (!%p14097_p5), %s17535_s16, 384, %s1188_s2, [#allocation23], %s17529_s18, %s17529_s18, %s17528_s10  }
 0x21c   : > { %s13594_s23 = scalar_lea.hbm %s17536_s3, 384 }
 0x21d   : > { %p13595_p6 = scmp.ne.s32.totalorder %s17536_s3, %s13594_s23  ;;  %p13601_p10 = scmp.lt.u32.totalorder %s13594_s23, %s17536_s3 }
 0x21f   : > { %p13597_p8 = pnand %p13595_p6, %p14109_p7 }
 0x221   : > { %p13598_p9 = pneg %p13597_p8 }
 0x223   : > { %p13603_p11 = pnand %p13601_p10, %p13598_p9 }
 0x225   : > { %13606 = shalt.err (!%p13603_p11)
}
 0x226   : > { %s13607_s11 = scalar_lea.vmem %s1214_s9, 384  ;;  %p13615_p13 = scmp.lt.s32.totalorder %s1214_s9, %s1214_s9 }
 0x227   : > { %p13608_p2 = scmp.ne.s32.totalorder %s1214_s9, %s13607_s11  ;;  %p13616_p0 = scmp.lt.s32.totalorder %s13607_s11, %s13607_s11 }
 0x229   : > { %p13610_p3 = pnand %p13608_p2, %p14109_p7  ;;  %p13617_p1 = por %p13616_p0, %p13615_p13 }
 0x22b   : > { %p13611_p12 = pneg %p13610_p3 }
 0x22d   : > { %p13618_p4 = pnand %p13617_p1, %p13611_p12 }
 0x22f   : > { %13621 = shalt.err (!%p13618_p4)
}
 0x230   : > { %s17537_s2 = sld [smem:[#allocation77_spill]]  ;;  %s13825_s1 = smov [#allocation30]  }
 0x231   : > { %12783 = dma.hbm_to_vmem [thread:$0]  (!%p14097_p5), %s17536_s3, 384, %s1214_s9, [#allocation26], %s17529_s18, %s17529_s18, %s17528_s10  }
 0x232   : > { %s1239_s6 = sshll.u32 %s13825_s1, 4  ;;  %s13826_s23 = smov [#allocation33]   ;;  %s1240_s6 = int_to_ptr.vmem [resolvable:$true] %s1239_s6 }
 0x233   : > { %s1265_s4 = sshll.u32 %s13826_s23, 4  ;;  %s1266_s4 = int_to_ptr.vmem [resolvable:$true] %s1265_s4 }
 0x236   : > { %s13622_s11 = scalar_lea.hbm %s17537_s2, 256 }
 0x237   : > { %p13623_p6 = scmp.ne.s32.totalorder %s17537_s2, %s13622_s11  ;;  %p13629_p10 = scmp.lt.u32.totalorder %s13622_s11, %s17537_s2 }
 0x239   : > { %p13625_p8 = pnand %p13623_p6, %p14109_p7 }
 0x23b   : > { %p13626_p9 = pneg %p13625_p8 }
 0x23d   : > { %p13631_p11 = pnand %p13629_p10, %p13626_p9 }
 0x23f   : > { %13634 = shalt.err (!%p13631_p11)
}
 0x240   : > { %s13635_s12 = scalar_lea.vmem %s1240_s6, 256  ;;  %p13643_p13 = scmp.lt.s32.totalorder %s1240_s6, %s1240_s6 }
 0x241   : > { %p13636_p2 = scmp.ne.s32.totalorder %s1240_s6, %s13635_s12  ;;  %p13644_p0 = scmp.lt.s32.totalorder %s13635_s12, %s13635_s12 }
 0x243   : > { %p13638_p3 = pnand %p13636_p2, %p14109_p7  ;;  %p13645_p1 = por %p13644_p0, %p13643_p13 }
 0x245   : > { %p13639_p12 = pneg %p13638_p3 }
 0x247   : > { %p13646_p4 = pnand %p13645_p1, %p13639_p12 }
 0x249   : > { %13649 = shalt.err (!%p13646_p4)
}
 0x24a   : > { %12789 = dma.hbm_to_vmem [thread:$0]  (!%p14097_p5), %s17537_s2, 256, %s1240_s6, [#allocation29], %s17529_s18, %s17529_s18, %s17528_s10  }
 0x24b   : > { %s13650_s9 = scalar_lea.hbm %s17519_s5, 256 }
 0x24c   : > { %p13651_p6 = scmp.ne.s32.totalorder %s17519_s5, %s13650_s9  ;;  %p13657_p10 = scmp.lt.u32.totalorder %s13650_s9, %s17519_s5 }
 0x24e   : > { %p13653_p8 = pnand %p13651_p6, %p14109_p7 }
 0x250   : > { %p13654_p9 = pneg %p13653_p8 }
 0x252   : > { %p13659_p11 = pnand %p13657_p10, %p13654_p9 }
 0x254   : > { %13662 = shalt.err (!%p13659_p11)
}
 0x255   : > { %s13663_s12 = scalar_lea.vmem %s1266_s4, 256  ;;  %p13671_p13 = scmp.lt.s32.totalorder %s1266_s4, %s1266_s4 }
 0x256   : > { %p13664_p2 = scmp.ne.s32.totalorder %s1266_s4, %s13663_s12  ;;  %p13672_p0 = scmp.lt.s32.totalorder %s13663_s12, %s13663_s12 }
 0x258   : > { %p13666_p3 = pnand %p13664_p2, %p14109_p7  ;;  %p13673_p1 = por %p13672_p0, %p13671_p13 }
 0x25a   : > { %p13667_p12 = pneg %p13666_p3 }
 0x25c   : > { %p13674_p4 = pnand %p13673_p1, %p13667_p12 }
 0x25e   : > { %13677 = shalt.err (!%p13674_p4)
}
 0x25f   : > { %12795 = dma.hbm_to_vmem [thread:$0]  (!%p14097_p5), %s17519_s5, 256, %s1266_s4, [#allocation32], %s17529_s18, %s17529_s18, %s17528_s10  }
 0x260   : > { %s13827_s1 = smov [#allocation36]   ;;  %s13678_s23 = scalar_lea.hbm %s14067_s17, 256 }
 0x261   : > { %s1291_s6 = sshll.u32 %s13827_s1, 4  ;;  %p13679_p6 = scmp.ne.s32.totalorder %s14067_s17, %s13678_s23  ;;  %s1292_s6 = int_to_ptr.vmem [resolvable:$true] %s1291_s6 }
 0x262   : > { %p13685_p10 = scmp.lt.u32.totalorder %s13678_s23, %s14067_s17 }
 0x263   : > { %p13681_p8 = pnand %p13679_p6, %p14109_p7 }
 0x265   : > { %p13682_p9 = pneg %p13681_p8 }
 0x267   : > { %p13687_p11 = pnand %p13685_p10, %p13682_p9 }
 0x269   : > { %13690 = shalt.err (!%p13687_p11)
}
 0x26a   : > { %s13691_s11 = scalar_lea.vmem %s1292_s6, 256  ;;  %p13699_p13 = scmp.lt.s32.totalorder %s1292_s6, %s1292_s6 }
 0x26b   : > { %p13692_p2 = scmp.ne.s32.totalorder %s1292_s6, %s13691_s11  ;;  %p13700_p0 = scmp.lt.s32.totalorder %s13691_s11, %s13691_s11 }
 0x26d   : > { %p13694_p3 = pnand %p13692_p2, %p14109_p7  ;;  %p13701_p1 = por %p13700_p0, %p13699_p13 }
 0x26f   : > { %p13695_p12 = pneg %p13694_p3 }
 0x271   : > { %p13702_p4 = pnand %p13701_p1, %p13695_p12 }
 0x273   : > { %13705 = shalt.err (!%p13702_p4)
}
 0x274   : > { %12801 = dma.hbm_to_vmem [thread:$0]  (!%p14097_p5), %s14067_s17, 256, %s1292_s6, [#allocation35], %s17529_s18, %s17529_s18, %s17528_s10  }
 0x275   : > { %p17538_p6 = scmp.ne.s32.totalorder %s17525_s28, 0 }
 0x277   : > { %1314 = sbr.rel (%p17538_p6) target bundleno = 5677 (0x162d), region = 176 }
 0x27e   : > { %p17539_p8 = scmp.eq.s32.totalorder %s14080_s26, 0 }
 0x280   : > { %13711 = dma.done.wait (%p17539_p8), [#allocation3], 256   ;;  %p17540_p7 = pmov %p17539_p8 }
 0x282   : > { %13713 = vsyncadd (%p17540_p7), [#allocation3], 4294967040  ;;  %p17541_p9 = pmov %p17540_p7 }
 0x283   : > { %p17542_p10 = pmov %p17540_p7 }
 0x284   : > { %13715 = dma.done.wait (%p17541_p9), [#allocation5], 256  }
 0x285   : > { %13717 = vsyncadd (%p17542_p10), [#allocation5], 4294967040  ;;  %p17543_p11 = pmov %p17540_p7 }
 0x286   : > { %p17544_p5 = pmov %p17540_p7 }
 0x287   : > { %13719 = dma.done.wait (%p17543_p11), [#allocation8], 256  }
 0x288   : > { %13721 = vsyncadd (%p17544_p5), [#allocation8], 4294967040  ;;  %p17545_p2 = pmov %p17544_p5 }
 0x28a   : > { %13723 = dma.done.wait (%p17545_p2), [#allocation11], 512   ;;  %p17546_p3 = pmov %p17545_p2 }
 0x28b   : > { %p17547_p12 = pmov %p17545_p2 }
 0x28c   : > { %13725 = vsyncadd (%p17546_p3), [#allocation11], 4294966784 }
 0x28d   : > { %13727 = dma.done.wait (%p17547_p12), [#allocation14], 640   ;;  %p17548_p13 = pmov %p17545_p2 }
 0x28e   : > { %p17549_p0 = pmov %p17545_p2 }
 0x28f   : > { %13729 = vsyncadd (%p17548_p13), [#allocation14], 4294966656 }
 0x290   : > { %13731 = dma.done.wait (%p17549_p0), [#allocation17], 768   ;;  %p17550_p1 = pmov %p17549_p0 }
 0x291   : > { %p17551_p4 = pmov %p17549_p0 }
 0x292   : > { %13733 = vsyncadd (%p17550_p1), [#allocation17], 4294966528 }
 0x293   : > { %13735 = dma.done.wait (%p17551_p4), [#allocation20], 576   ;;  %p17552_p6 = pmov %p17549_p0 }
 0x294   : > { %p17553_p8 = pmov %p17549_p0 }
 0x295   : > { %13737 = vsyncadd (%p17552_p6), [#allocation20], 4294966720 }
 0x296   : > { %13739 = dma.done.wait (%p17553_p8), [#allocation23], 768   ;;  %p17554_p7 = pmov %p17549_p0 }
 0x297   : > { %p17555_p9 = pmov %p17549_p0 }
 0x298   : > { %13741 = vsyncadd (%p17554_p7), [#allocation23], 4294966528 }
 0x299   : > { %13743 = dma.done.wait (%p17555_p9), [#allocation26], 768   ;;  %p17556_p10 = pmov %p17549_p0 }
 0x29a   : > { %p17557_p11 = pmov %p17549_p0 }
 0x29b   : > { %13745 = vsyncadd (%p17556_p10), [#allocation26], 4294966528 }
 0x29c   : > { %13747 = dma.done.wait (%p17557_p11), [#allocation29], 512   ;;  %p17558_p5 = pmov %p17549_p0 }
 0x29d   : > { %p17559_p2 = pmov %p17549_p0 }
 0x29e   : > { %13749 = vsyncadd (%p17558_p5), [#allocation29], 4294966784 }
 0x29f   : > { %13751 = dma.done.wait (%p17559_p2), [#allocation32], 512   ;;  %p17560_p3 = pmov %p17549_p0 }
 0x2a0   : > { %p17561_p12 = pmov %p17549_p0 }
 0x2a1   : > { %13753 = vsyncadd (%p17560_p3), [#allocation32], 4294966784 }
 0x2a2   : > { %13755 = dma.done.wait (%p17561_p12), [#allocation35], 384   ;;  %p17562_p13 = pmov %p17549_p0 }
 0x2a3   : > { %s17563_s28 = sld [smem:[#allocation50_spill]]  ;;  %v13828_v0 = vmov 1   ;;  %v13829_v1 = vmov 3   ;;  %v17406_v2 = vmov 0   ;;  %p1497_p0 = scmp.lt.s32.totalorder %s14080_s26, 1  ;;  %v13831_v7 = vmov 2  }
 0x2a4   : > { %13757 = vsyncadd (%p17562_p13), [#allocation35], 4294966912  ;;  %12963 = vset.pattern.permute.xlu0 %v13828_v0  ;;  %12975 = vset.pattern.permute.xlu1 %v13829_v1  ;;  %s17564_s7 = sld [smem:[#allocation49_spill]]  ;;  %v13832_v8 = vmov 4   ;;  %v1526_v9 = vlaneseq  ;;  %s17565_s18 = sld [smem:[#allocation51_spill]]  ;;  %v13833_v12 = vmov 5  }
 0x2a5   : > { %2533 = vmatprep.mubr.bf16.mxu0 %v17406_v2  ;;  %2584 = vmatprep.mubr.bf16.mxu1 %v17406_v2  ;;  %s17652_s26 = smov (!%p1497_p0, %s14080_s26), 1  ;;  %v13834_v13 = vmov 6   ;;  %v13835_v16 = vmov 7   ;;  %v13836_v19 = vmov 8   ;;  %s17456_s4 = smov 127   ;;  %vm1648_vm0 = vcmask 1039360  }
 0x2a6   : > { %s12639_s0 = smul.u32 7, %s17652_s26  ;;  %v1527_v11 = vshrl.u32 %v1526_v9, 7  ;;  %s17451_s9 = smov 126   ;;  %vm1739_vm1 = vcmask 1031168   ;;  %vm1830_vm2 = vcmask 818176   ;;  %vm1921_vm3 = vcmask 809984  }
 0x2a7   : > { %s17435_s12 = smov 100   ;;  %s17439_s1 = smov 99   ;;  %vm2012_vm4 = vcmask 801792   ;;  %vm2120_vm5 = vcmask 588800   ;;  %vm2221_vm6 = vcmask 580608   ;;  %vm2322_vm7 = vcmask 572416  }
 0x2a8   : > { %v1532_v14 = vsub.s32 2, %v1527_v11  ;;  %v1540_v22 = vsub.s32 6, %v1527_v11  ;;  %v1536_v25 = vsub.s32 4, %v1527_v11  ;;  %v1528_v26 = vsub.s32 0, %v1527_v11  ;;  %s17443_s6 = smov 98   ;;  %s17445_s23 = smov 72  }
 0x2a9   : > { %v11892_v3 = vld [vmem:[%s17563_s28] sm:$0xff]   ;;  %s17429_s11 = smov 71   ;;  %s17574_s28 = sld [smem:[#allocation52_spill]]  ;;  %vm2494_vm8 = vcmask 130048   ;;  %vm4461_vm9 = vcmask 1043456   ;;  %vm4454_vm10 = vcmask 195584  }
 0x2aa   : > { %v11893_v4 = vunpack.c.l.bf16 %v11892_v3  ;;  %v11894_v5 = vunpack.c.h.bf16 %v11892_v3  ;;  %s1500_s10 = scalar_lea.vmem %s17564_s7, %s12639_s0  ;;  %v2359_v17 = vld [vmem:[%s17565_s18] sm:$0xff]  ;;  %v2360_v20 = vld [vmem:[%s17565_s18 + $0x8] sm:$0xff]  ;;  %s17413_s7 = smov 70   ;;  %vm5535_vm11 = vcmask 64512   ;;  %vm13857_vm12 = vmmov 0  }
 0x2ab   : > { %v1507_v10 = vld [vmem:[%s1500_s10] sm:$0x7f]  ;;  %s17578_s0 = sld [smem:[#allocation53_spill]]  ;;  %s17596_s10 = sld [smem:[#allocation54_spill]]  ;;  %vm6797_vm13 = vcmask 261120   ;;  %vm7138_vm14 = vcmask 1014784  }
 0x2ac   : > { %v12964_v6 = vpack.i.bf16 %v11894_v5, %v11893_v4  ;;  %v1513_v15 = vunpack.c.h.bf16 %v1507_v10  ;;  %v1512_v21 = vunpack.c.l.bf16 %v1507_v10  ;;  %s17627_s2 = smov 99   ;;  %s17629_s3 = smov 98   ;;  %vm7466_vm15 = vcmask 556032  }
 0x2ad   : > { %s17466_s5 = smov 88   ;;  %s17645_s13 = smov 88  }
 0x2ae   : > { %12965 = vperm.xlu0 %12963, %v12964_v6   ;;  %12977 = vperm.xlu1 %12975, %v12964_v6   ;;  %v1549_v18 = vrot.slane %v1513_v15, %v1532_v14  ;;  %v1541_v23 = vrot.slane %v1512_v21, %v1540_v22  ;;  %v1533_v24 = vrot.slane %v1512_v21, %v1532_v14  ;;  %s17646_s14 = smov 14   ;;  %s17647_s15 = smov 12  }
 0x2af   : > { %v1537_v29 = vrot.slane %v1512_v21, %v1536_v25  ;;  %v1529_v32 = vrot.slane %v1512_v21, %v1528_v26  ;;  %v1545_v47 = vrot.slane %v1513_v15, %v1528_v26  ;;  %v2058_v49 = vrot.slane %v1513_v15, %v1536_v25  ;;  %s17648_s16 = sld [smem:[#allocation68_spill]] }
 0x2b0   : > { %v14477_v27 = vrot.slane %v1541_v23, %v1528_v26  ;;  %v14479_v28 = vrot.slane %v1533_v24, %v1528_v26  ;;  %v14519_v57 = vrot.slane %v1549_v18, %v1528_v26 }
 0x2b1   : > { %v14489_v36 = vrot.slane %v1537_v29, %v1528_v26  ;;  %v14497_v40 = vrot.slane %v1529_v32, %v1528_v26  ;;  %v14515_v54 = vrot.slane %v1545_v47, %v1528_v26  ;;  %v14521_v58 = vrot.slane %v2058_v49, %v1528_v26 }
 0x2b2   : > { %12969 = vset.pattern.permute.xlu0 %v13831_v7  ;;  %12981 = vset.pattern.permute.xlu1 %v13832_v8 }
 0x2b3   : > { %12971 = vperm.xlu0 %12969, %v12964_v6   ;;  %12983 = vperm.xlu1 %12981, %v12964_v6  }
 0x2b7   : > { %12987 = vset.pattern.permute.xlu1 %v13833_v12  ;;  %12993 = vset.pattern.permute.xlu0 %v13834_v13 }
 0x2b8   : > { %12989 = vperm.xlu1 %12987, %v12964_v6   ;;  %12995 = vperm.xlu0 %12993, %v12964_v6  }
 0x2bc   : > { %12999 = vset.pattern.permute.xlu1 %v13835_v16  ;;  %13011 = vset.pattern.permute.xlu0 %v17406_v2 }
 0x2bd   : > { %13001 = vperm.xlu1 %12999, %v12964_v6   ;;  %13013 = vperm.xlu0 %13011, %v12964_v6  }
 0x2c1   : > { %13005 = vset.pattern.permute.xlu1 %v13836_v19  ;;  %2363 = vperm.xlu0 %13011, %v2359_v17  }
 0x2c2   : > { %13007 = vperm.xlu1 %13005, %v12964_v6  }
 0x2c6   : > { %13017 = vset.pattern.permute.xlu1 %v17406_v2 }
 0x2c7   : > { %2368 = vperm.xlu1 %13017, %v2360_v20  }
 0x32d   : > { %v12966_v30 = vpop.permute.xlu0 %12965  ;;  %v12978_v41 = vpop.permute.xlu1 %12977 }
 0x32e   : > { %v14481_v31 = vunpack.i.l.bf16 %v12966_v30  ;;  %v14483_v33 = vunpack.i.h.bf16 %v12966_v30  ;;  %v14510_v50 = vunpack.i.l.bf16 %v12978_v41  ;;  %v14523_v59 = vunpack.i.h.bf16 %v12978_v41 }
 0x330   : > { %v1603_v34 = vmul.f32 %v14481_v31, %v14477_v27  ;;  %v1601_v35 = vmul.f32 %v14481_v31, %v14479_v28  ;;  %v1608_v38 = vmul.f32 %v14483_v33, %v14489_v36  ;;  %v1602_v39 = vmul.f32 %v14481_v31, %v14489_v36 }
 0x331   : > { %v1607_v43 = vmul.f32 %v14483_v33, %v14479_v28  ;;  %v1600_v44 = vmul.f32 %v14481_v31, %v14497_v40  ;;  %v1609_v48 = vmul.f32 %v14483_v33, %v14477_v27  ;;  %v1606_v55 = vmul.f32 %v14483_v33, %v14497_v40 }
 0x332   : > { %1630 = vrot.lane.b32.xlu0 %v1603_v34, %s17456_s4  ;;  %1626 = vrot.lane.b32.xlu1 %v1601_v35, %s17456_s4  ;;  %v12972_v37 = vpop.permute.xlu0 %12971  ;;  %v12984_v45 = vpop.permute.xlu1 %12983  ;;  %v1783_v60 = vmul.f32 %v14510_v50, %v14479_v28  ;;  %v14529_v61 = vmul.f32 %v14510_v50, %v14477_v27  ;;  %v14544_v7 = vmul.f32 %v14481_v31, %v14515_v54 }
 0x333   : > { %v12973_v42 = vunpack.i.l.bf16 %v12972_v37  ;;  %v12974_v52 = vunpack.i.h.bf16 %v12972_v37  ;;  %v14531_v62 = vunpack.i.h.bf16 %v12984_v45  ;;  %v14538_v4 = vunpack.i.l.bf16 %v12984_v45 }
 0x334   : > { %v14548_v8 = vmul.f32 %v14483_v33, %v14515_v54  ;;  %v14571_v20 = vmul.f32 %v14481_v31, %v14519_v57  ;;  %v14578_v22 = vmul.f32 %v14483_v33, %v14519_v57  ;;  %v14588_v25 = vmul.f32 %v14510_v50, %v14515_v54 }
 0x335   : > { %v1692_v46 = vmul.f32 %v12973_v42, %v14479_v28  ;;  %v1694_v53 = vmul.f32 %v12973_v42, %v14477_v27  ;;  %v1693_v0 = vmul.f32 %v12973_v42, %v14489_v36  ;;  %v1699_v1 = vmul.f32 %v12974_v52, %v14489_v36 }
 0x336   : > { %1640 = vrot.lane.b32.xlu0 %v1608_v38, %s17456_s4  ;;  %1628 = vrot.lane.b32.xlu1 %v1602_v39, %s17456_s4  ;;  %v1698_v3 = vmul.f32 %v12974_v52, %v14479_v28  ;;  %v1691_v5 = vmul.f32 %v12973_v42, %v14497_v40  ;;  %v1700_v6 = vmul.f32 %v12974_v52, %v14477_v27 }
 0x337   : > { %v12990_v51 = vpop.permute.xlu1 %12989  ;;  %v12996_v56 = vpop.permute.xlu0 %12995  ;;  %v1697_v9 = vmul.f32 %v12974_v52, %v14497_v40  ;;  %v14574_v21 = vmul.f32 %v12973_v42, %v14515_v54  ;;  %v14581_v23 = vmul.f32 %v12974_v52, %v14515_v54  ;;  %v14584_v24 = vmul.f32 %v12973_v42, %v14519_v57 }
 0x338   : > { %v14551_v10 = vunpack.i.h.bf16 %v12990_v51  ;;  %v14553_v11 = vunpack.i.l.bf16 %v12990_v51  ;;  %v14555_v12 = vunpack.i.h.bf16 %v12996_v56  ;;  %v14557_v14 = vunpack.i.l.bf16 %v12996_v56 }
 0x339   : > { %v14591_v26 = vmul.f32 %v12974_v52, %v14519_v57  ;;  %v14595_v29 = vmul.f32 %v14523_v59, %v14515_v54  ;;  %v14599_v30 = vmul.f32 %v14510_v50, %v14519_v57  ;;  %v14603_v31 = vmul.f32 %v14538_v4, %v14515_v54 }
 0x33a   : > { %1638 = vrot.lane.b32.xlu1 %v1607_v43, %s17456_s4  ;;  %1624 = vrot.lane.b32.xlu0 %v1600_v44, %s17456_s4  ;;  %v14607_v32 = vmul.f32 %v14523_v59, %v14519_v57  ;;  %v14611_v33 = vmul.f32 %v14531_v62, %v14515_v54  ;;  %v14615_v34 = vmul.f32 %v14538_v4, %v14519_v57 }
 0x33b   : > { %v14619_v35 = vmul.f32 %v14553_v11, %v14515_v54  ;;  %v14623_v37 = vmul.f32 %v14531_v62, %v14519_v57  ;;  %v14631_v39 = vmul.f32 %v14551_v10, %v14515_v54  ;;  %v14635_v41 = vmul.f32 %v14553_v11, %v14519_v57 }
 0x33c   : > { %v13002_v63 = vpop.permute.xlu1 %13001  ;;  %v13014_v13 = vpop.permute.xlu0 %13013  ;;  %v14639_v42 = vmul.f32 %v14557_v14, %v14515_v54  ;;  %v14643_v43 = vmul.f32 %v14551_v10, %v14519_v57  ;;  %v14647_v44 = vmul.f32 %v14557_v14, %v14521_v58  ;;  %v14651_v45 = vmul.f32 %v14557_v14, %v14519_v57 }
 0x33d   : > { %v14559_v15 = vunpack.i.h.bf16 %v13002_v63  ;;  %v14561_v16 = vunpack.i.l.bf16 %v13002_v63  ;;  %v14563_v18 = vunpack.i.l.bf16 %v13014_v13  ;;  %v14659_v47 = vmul.f32 %v14555_v12, %v14515_v54 }
 0x33e   : > { %1642 = vrot.lane.b32.xlu1 %v1609_v48, %s17456_s4  ;;  %1717 = vrot.lane.b32.xlu0 %v1692_v46, %s17451_s9  ;;  %v14655_v46 = vmul.f32 %v14555_v12, %v14519_v57  ;;  %v14667_v49 = vmul.f32 %v14555_v12, %v14521_v58  ;;  %v14691_v63 = vunpack.i.h.bf16 %v13014_v13 }
 0x33f   : > { %v14663_v48 = vmul.f32 %v14561_v16, %v14515_v54  ;;  %v14671_v51 = vmul.f32 %v14561_v16, %v14521_v58  ;;  %v14675_v52 = vmul.f32 %v14561_v16, %v14519_v57  ;;  %v14719_v13 = vmul.f32 %v14563_v18, %v14477_v27 }
 0x340   : > { %v14727_v2 = vmul.f32 %v14563_v18, %v14515_v54 }
 0x341   : > { %v13008_v17 = vpop.permute.xlu1 %13007  ;;  %17568 = vst [vmem:[#allocation81_spill] sm:$0xff] %v14719_v13 }
 0x342   : > { %1636 = vrot.lane.b32.xlu1 %v1606_v55, %s17456_s4  ;;  %1721 = vrot.lane.b32.xlu0 %v1694_v53, %s17451_s9  ;;  %v14567_v19 = vunpack.i.h.bf16 %v13008_v17  ;;  %v14627_v38 = vunpack.i.l.bf16 %v13008_v17  ;;  %v14679_v53 = vmul.f32 %v14559_v15, %v14519_v57  ;;  %v14683_v55 = vmul.f32 %v14559_v15, %v14515_v54  ;;  %17570 = vst [vmem:[#allocation83_spill] sm:$0xff] %v14727_v2 }
 0x343   : > { %v14723_v17 = vmul.f32 %v14691_v63, %v14477_v27  ;;  %v1784_v2 = vmul.f32 %v14510_v50, %v14489_v36 }
 0x344   : > { %v14687_v56 = vmul.f32 %v14627_v38, %v14515_v54 }
 0x345   : > { %17569 = vst [vmem:[#allocation82_spill] sm:$0xff] %v14723_v17  ;;  %v1790_v17 = vmul.f32 %v14523_v59, %v14489_v36 }
 0x346   : > { %1719 = vrot.lane.b32.xlu1 %v1693_v0, %s17451_s9  ;;  %1731 = vrot.lane.b32.xlu0 %v1699_v1, %s17451_s9  ;;  %v14695_v0 = vmul.f32 %v14559_v15, %v14521_v58  ;;  %v14699_v1 = vmul.f32 %v14627_v38, %v14521_v58 }
 0x34a   : > { %1729 = vrot.lane.b32.xlu1 %v1698_v3, %s17451_s9  ;;  %1715 = vrot.lane.b32.xlu0 %v1691_v5, %s17451_s9  ;;  %v14703_v3 = vmul.f32 %v14627_v38, %v14519_v57  ;;  %v14707_v5 = vmul.f32 %v14567_v19, %v14519_v57 }
 0x34c   : > { %17566 = vst [vmem:[#allocation79_spill] sm:$0xff] %v14707_v5  ;;  %v14731_v5 = vmul.f32 %v14563_v18, %v14519_v57 }
 0x34e   : > { %1733 = vrot.lane.b32.xlu1 %v1700_v6, %s17451_s9  ;;  %1808 = vrot.lane.b32.xlu0 %v1783_v60, %s17435_s12  ;;  %v14711_v60 = vmul.f32 %v14567_v19, %v14515_v54  ;;  %v14715_v6 = vmul.f32 %v14567_v19, %v14521_v58  ;;  %17571 = vst [vmem:[#allocation84_spill] sm:$0xff] %v14731_v5 }
 0x34f   : > { %v14735_v58 = vmul.f32 %v14691_v63, %v14515_v54  ;;  %v1789_v54 = vmul.f32 %v14523_v59, %v14479_v28 }
 0x350   : > { %17567 = vst [vmem:[#allocation80_spill] sm:$0xff] %v14715_v6  ;;  %v14739_v6 = vmul.f32 %v14691_v63, %v14519_v57  ;;  %v1782_v57 = vmul.f32 %v14510_v50, %v14497_v40  ;;  %v1788_v50 = vmul.f32 %v14523_v59, %v14497_v40 }
 0x351   : > { %17572 = vst [vmem:[#allocation85_spill] sm:$0xff] %v14735_v58 }
 0x352   : > { %17573 = vst [vmem:[#allocation86_spill] sm:$0xff] %v14739_v6  ;;  %1727 = vrot.lane.b32.xlu1 %v1697_v9, %s17451_s9  ;;  %1812 = vrot.lane.b32.xlu0 %v14529_v61, %s17435_s12  ;;  %v1874_v61 = vmul.f32 %v14538_v4, %v14479_v28  ;;  %v1791_v9 = vmul.f32 %v14523_v59, %v14477_v27 }
 0x353   : > { %v1873_v59 = vmul.f32 %v14538_v4, %v14497_v40 }
 0x356   : > { %1810 = vrot.lane.b32.xlu1 %v1784_v2, %s17435_s12  ;;  %1822 = vrot.lane.b32.xlu0 %v1790_v17, %s17435_s12  ;;  %v1876_v2 = vmul.f32 %v14538_v4, %v14477_v27  ;;  %v1875_v17 = vmul.f32 %v14538_v4, %v14489_v36  ;;  %v1879_v4 = vmul.f32 %v14531_v62, %v14497_v40 }
 0x35a   : > { %1820 = vrot.lane.b32.xlu1 %v1789_v54, %s17435_s12  ;;  %1806 = vrot.lane.b32.xlu0 %v1782_v57, %s17435_s12  ;;  %v1881_v54 = vmul.f32 %v14531_v62, %v14489_v36  ;;  %v1880_v57 = vmul.f32 %v14531_v62, %v14479_v28 }
 0x35e   : > { %1824 = vrot.lane.b32.xlu1 %v1791_v9, %s17435_s12  ;;  %1899 = vrot.lane.b32.xlu0 %v1874_v61, %s17439_s1  ;;  %v1965_v61 = vmul.f32 %v14553_v11, %v14479_v28  ;;  %v1882_v9 = vmul.f32 %v14531_v62, %v14477_v27  ;;  %v1964_v62 = vmul.f32 %v14553_v11, %v14497_v40 }
 0x362   : > { %1818 = vrot.lane.b32.xlu1 %v1788_v50, %s17435_s12  ;;  %1903 = vrot.lane.b32.xlu0 %v1876_v2, %s17439_s1  ;;  %v1967_v2 = vmul.f32 %v14553_v11, %v14477_v27  ;;  %v1966_v50 = vmul.f32 %v14553_v11, %v14489_v36  ;;  %v1970_v11 = vmul.f32 %v14551_v10, %v14497_v40 }
 0x366   : > { %1901 = vrot.lane.b32.xlu1 %v1875_v17, %s17439_s1  ;;  %1913 = vrot.lane.b32.xlu0 %v1881_v54, %s17439_s1  ;;  %v1972_v17 = vmul.f32 %v14551_v10, %v14489_v36  ;;  %v1971_v54 = vmul.f32 %v14551_v10, %v14479_v28 }
 0x36a   : > { %1911 = vrot.lane.b32.xlu1 %v1880_v57, %s17439_s1  ;;  %1897 = vrot.lane.b32.xlu0 %v1873_v59, %s17439_s1  ;;  %v2065_v57 = vmul.f32 %v14557_v14, %v14479_v28  ;;  %v1973_v59 = vmul.f32 %v14551_v10, %v14477_v27  ;;  %v2064_v10 = vmul.f32 %v14557_v14, %v14497_v40 }
 0x36e   : > { %1915 = vrot.lane.b32.xlu1 %v1882_v9, %s17439_s1  ;;  %1990 = vrot.lane.b32.xlu0 %v1965_v61, %s17443_s6  ;;  %v2067_v61 = vmul.f32 %v14557_v14, %v14477_v27  ;;  %v2066_v9 = vmul.f32 %v14557_v14, %v14489_v36  ;;  %v2071_v14 = vmul.f32 %v14555_v12, %v14497_v40 }
 0x372   : > { %1909 = vrot.lane.b32.xlu1 %v1879_v4, %s17439_s1  ;;  %1994 = vrot.lane.b32.xlu0 %v1967_v2, %s17443_s6  ;;  %v2073_v2 = vmul.f32 %v14555_v12, %v14489_v36  ;;  %v2072_v4 = vmul.f32 %v14555_v12, %v14479_v28 }
 0x376   : > { %1992 = vrot.lane.b32.xlu1 %v1966_v50, %s17443_s6  ;;  %2004 = vrot.lane.b32.xlu0 %v1972_v17, %s17443_s6  ;;  %v2166_v50 = vmul.f32 %v14561_v16, %v14479_v28  ;;  %v2074_v17 = vmul.f32 %v14555_v12, %v14477_v27  ;;  %v2165_v12 = vmul.f32 %v14561_v16, %v14497_v40 }
 0x37a   : > { %2002 = vrot.lane.b32.xlu1 %v1971_v54, %s17443_s6  ;;  %1988 = vrot.lane.b32.xlu0 %v1964_v62, %s17443_s6  ;;  %v2168_v54 = vmul.f32 %v14561_v16, %v14477_v27  ;;  %v2167_v62 = vmul.f32 %v14561_v16, %v14489_v36  ;;  %v2269_v16 = vmul.f32 %v14627_v38, %v14477_v27 }
 0x37e   : > { %2006 = vrot.lane.b32.xlu1 %v1973_v59, %s17443_s6  ;;  %2094 = vrot.lane.b32.xlu0 %v2065_v57, %s17445_s23  ;;  %v2174_v57 = vmul.f32 %v14559_v15, %v14489_v36  ;;  %v2173_v59 = vmul.f32 %v14559_v15, %v14479_v28 }
 0x382   : > { %2000 = vrot.lane.b32.xlu1 %v1970_v11, %s17443_s6  ;;  %2098 = vrot.lane.b32.xlu0 %v2067_v61, %s17445_s23  ;;  %v2267_v61 = vmul.f32 %v14627_v38, %v14479_v28  ;;  %v2175_v11 = vmul.f32 %v14559_v15, %v14477_v27 }
 0x386   : > { %2096 = vrot.lane.b32.xlu1 %v2066_v9, %s17445_s23  ;;  %2110 = vrot.lane.b32.xlu0 %v2073_v2, %s17445_s23  ;;  %v14858_v9 = vpop.permute.xlu1 %2368  ;;  %v14860_v2 = vpop.permute.xlu0 %2363 }
 0x387   : > { %17575 = vst [vmem:[#allocation87_spill] sm:$0xff] %v14858_v9  ;;  %17576 = vst [vmem:[#allocation88_spill] sm:$0xff] %v14860_v2 }
 0x38a   : > { %2108 = vrot.lane.b32.xlu1 %v2072_v4, %s17445_s23  ;;  %2092 = vrot.lane.b32.xlu0 %v2064_v10, %s17445_s23  ;;  %v2172_v4 = vmul.f32 %v14559_v15, %v14497_v40  ;;  %v2268_v10 = vmul.f32 %v14627_v38, %v14489_v36  ;;  %v2395_v15 = vld [vmem:[%s17574_s28] sm:$0xff] }
 0x38e   : > { %2112 = vrot.lane.b32.xlu1 %v2074_v17, %s17445_s23  ;;  %2195 = vrot.lane.b32.xlu0 %v2166_v50, %s17429_s11  ;;  %v2275_v50 = vmul.f32 %v14567_v19, %v14489_v36 }
 0x392   : > { %2106 = vrot.lane.b32.xlu1 %v2071_v14, %s17445_s23  ;;  %2199 = vrot.lane.b32.xlu0 %v2168_v54, %s17429_s11 }
 0x396   : > { %2197 = vrot.lane.b32.xlu1 %v2167_v62, %s17429_s11  ;;  %2211 = vrot.lane.b32.xlu0 %v2174_v57, %s17429_s11  ;;  %v2274_v57 = vmul.f32 %v14567_v19, %v14479_v28 }
 0x39a   : > { %2209 = vrot.lane.b32.xlu1 %v2173_v59, %s17429_s11  ;;  %2193 = vrot.lane.b32.xlu0 %v2165_v12, %s17429_s11 }
 0x39e   : > { %2213 = vrot.lane.b32.xlu1 %v2175_v11, %s17429_s11  ;;  %2296 = vrot.lane.b32.xlu0 %v2267_v61, %s17413_s7  ;;  %v2276_v61 = vmul.f32 %v14567_v19, %v14477_v27  ;;  %v2266_v11 = vmul.f32 %v14627_v38, %v14497_v40  ;;  %v2273_v27 = vmul.f32 %v14567_v19, %v14497_v40  ;;  %v2420_v38 = vld [vmem:[%s17578_s0 + $0x8] sm:$0xff] }
 0x3a2   : > { %2207 = vrot.lane.b32.xlu1 %v2172_v4, %s17429_s11  ;;  %2300 = vrot.lane.b32.xlu0 %v2269_v16, %s17413_s7  ;;  %v2396_v16 = vld [vmem:[%s17574_s28 + $0x8] sm:$0xff]  ;;  %v2419_v4 = vld [vmem:[%s17578_s0] sm:$0xff]  ;;  %s17624_s0 = smov 126  }
 0x3a4   : > { %v14872_v17 = vpop.permute.xlu0 %1630  ;;  %v14874_v54 = vpop.permute.xlu1 %1626 }
 0x3a5   : > { %17577 = vst [vmem:[#allocation89_spill] sm:$0xff] %v14872_v17 }
 0x3a6   : > { %2298 = vrot.lane.b32.xlu1 %v2268_v10, %s17413_s7  ;;  %2312 = vrot.lane.b32.xlu0 %v2275_v50, %s17413_s7 }
 0x3a8   : > { %v14879_v14 = vpop.permute.xlu0 %1640  ;;  %v14881_v62 = vpop.permute.xlu1 %1628 }
 0x3a9   : > { %v1650_v2 = vsel %vm1648_vm0, %v14874_v54, %v14881_v62 }
 0x3aa   : > { %2310 = vrot.lane.b32.xlu1 %v2274_v57, %s17413_s7  ;;  %2399 = vperm.xlu0 %13011, %v2395_v15  }
 0x3ac   : > { %v14886_v59 = vpop.permute.xlu1 %1638  ;;  %v14888_v12 = vpop.permute.xlu0 %1624 }
 0x3ae   : > { %2314 = vrot.lane.b32.xlu1 %v2276_v61, %s17413_s7  ;;  %2294 = vrot.lane.b32.xlu0 %v2266_v11, %s17413_s7 }
 0x3b0   : > { %v14898_v10 = vpop.permute.xlu1 %1642  ;;  %v14900_v50 = vpop.permute.xlu0 %1717 }
 0x3b1   : > { %17579 = vst [vmem:[#allocation90_spill] sm:$0xff] %v14898_v10 }
 0x3b2   : > { %2404 = vperm.xlu1 %13017, %v2396_v16   ;;  %2423 = vperm.xlu0 %13011, %v2419_v4  }
 0x3b4   : > { %v14902_v15 = vpop.permute.xlu1 %1636  ;;  %v14904_v57 = vpop.permute.xlu0 %1721 }
 0x3b6   : > { %2308 = vrot.lane.b32.xlu1 %v2273_v27, %s17413_s7  ;;  %1632 = vrot.lane.b32.xlu0 %v14544_v7, %s17456_s4 }
 0x3b8   : > { %v14912_v61 = vpop.permute.xlu1 %1719  ;;  %v14914_v11 = vpop.permute.xlu0 %1731 }
 0x3ba   : > { %2428 = vperm.xlu1 %13017, %v2420_v38   ;;  %1644 = vrot.lane.b32.xlu0 %v14548_v8, %s17456_s4 }
 0x3bc   : > { %v14918_v16 = vpop.permute.xlu1 %1729  ;;  %v14920_v4 = vpop.permute.xlu0 %1715 }
 0x3be   : > { %1634 = vrot.lane.b32.xlu1 %v14571_v20, %s17456_s4  ;;  %1723 = vrot.lane.b32.xlu0 %v14574_v21, %s17451_s9 }
 0x3c0   : > { %v14926_v7 = vpop.permute.xlu1 %1733  ;;  %v14928_v19 = vpop.permute.xlu0 %1808 }
 0x3c2   : > { %1646 = vrot.lane.b32.xlu1 %v14578_v22, %s17456_s4  ;;  %1735 = vrot.lane.b32.xlu0 %v14581_v23, %s17451_s9 }
 0x3c4   : > { %v14934_v8 = vpop.permute.xlu1 %1727  ;;  %v14936_v27 = vpop.permute.xlu0 %1812 }
 0x3c6   : > { %1725 = vrot.lane.b32.xlu1 %v14584_v24, %s17451_s9  ;;  %1814 = vrot.lane.b32.xlu0 %v14588_v25, %s17435_s12 }
 0x3c8   : > { %v14942_v20 = vpop.permute.xlu1 %1810  ;;  %v14944_v21 = vpop.permute.xlu0 %1822 }
 0x3ca   : > { %1737 = vrot.lane.b32.xlu1 %v14591_v26, %s17451_s9  ;;  %1826 = vrot.lane.b32.xlu0 %v14595_v29, %s17435_s12 }
 0x3cc   : > { %v14950_v22 = vpop.permute.xlu1 %1820  ;;  %v14952_v23 = vpop.permute.xlu0 %1806 }
 0x3ce   : > { %1816 = vrot.lane.b32.xlu1 %v14599_v30, %s17435_s12  ;;  %1905 = vrot.lane.b32.xlu0 %v14603_v31, %s17439_s1 }
 0x3d0   : > { %v14958_v24 = vpop.permute.xlu1 %1824  ;;  %v14960_v25 = vpop.permute.xlu0 %1899 }
 0x3d2   : > { %1828 = vrot.lane.b32.xlu1 %v14607_v32, %s17435_s12  ;;  %1917 = vrot.lane.b32.xlu0 %v14611_v33, %s17439_s1 }
 0x3d4   : > { %v14966_v26 = vpop.permute.xlu1 %1818  ;;  %v14968_v29 = vpop.permute.xlu0 %1903 }
 0x3d6   : > { %1907 = vrot.lane.b32.xlu1 %v14615_v34, %s17439_s1  ;;  %1996 = vrot.lane.b32.xlu0 %v14619_v35, %s17443_s6 }
 0x3d8   : > { %v14974_v30 = vpop.permute.xlu1 %1901  ;;  %v14976_v31 = vpop.permute.xlu0 %1913 }
 0x3da   : > { %1919 = vrot.lane.b32.xlu1 %v14623_v37, %s17439_s1  ;;  %2008 = vrot.lane.b32.xlu0 %v14631_v39, %s17443_s6 }
 0x3dc   : > { %v14982_v32 = vpop.permute.xlu1 %1911  ;;  %v14984_v33 = vpop.permute.xlu0 %1897 }
 0x3de   : > { %1998 = vrot.lane.b32.xlu1 %v14635_v41, %s17443_s6  ;;  %2100 = vrot.lane.b32.xlu0 %v14639_v42, %s17445_s23 }
 0x3e0   : > { %v14990_v34 = vpop.permute.xlu1 %1915  ;;  %v14992_v35 = vpop.permute.xlu0 %1990 }
 0x3e2   : > { %2010 = vrot.lane.b32.xlu1 %v14643_v43, %s17443_s6  ;;  %2104 = vrot.lane.b32.xlu0 %v14647_v44, %s17445_s23 }
 0x3e4   : > { %v14998_v37 = vpop.permute.xlu1 %1909  ;;  %v15000_v39 = vpop.permute.xlu0 %1994 }
 0x3e5   : > { %17580 = vst [vmem:[#allocation91_spill] sm:$0xff] %v14998_v37  ;;  %v1651_v37 = vsel %vm1648_vm0, %v14881_v62, %v14872_v17 }
 0x3e6   : > { %2102 = vrot.lane.b32.xlu1 %v14651_v45, %s17445_s23  ;;  %2116 = vrot.lane.b32.xlu0 %v14655_v46, %s17445_s23 }
 0x3e8   : > { %v15006_v41 = vpop.permute.xlu1 %1992  ;;  %v15008_v42 = vpop.permute.xlu0 %2004 }
 0x3ea   : > { %2114 = vrot.lane.b32.xlu1 %v14659_v47, %s17445_s23  ;;  %2201 = vrot.lane.b32.xlu0 %v14663_v48, %s17429_s11 }
 0x3ec   : > { %v15014_v43 = vpop.permute.xlu1 %2002  ;;  %v15016_v44 = vpop.permute.xlu0 %1988 }
 0x3ee   : > { %2118 = vrot.lane.b32.xlu1 %v14667_v49, %s17445_s23  ;;  %2205 = vrot.lane.b32.xlu0 %v14671_v51, %s17429_s11 }
 0x3f0   : > { %v15022_v45 = vpop.permute.xlu1 %2006  ;;  %v15024_v46 = vpop.permute.xlu0 %2094 }
 0x3f2   : > { %2203 = vrot.lane.b32.xlu1 %v14675_v52, %s17429_s11  ;;  %2217 = vrot.lane.b32.xlu0 %v14679_v53, %s17429_s11 }
 0x3f4   : > { %v15030_v47 = vpop.permute.xlu1 %2000  ;;  %v15032_v48 = vpop.permute.xlu0 %2098 }
 0x3f5   : > { %17581 = vst [vmem:[#allocation92_spill] sm:$0xff] %v15030_v47  ;;  %v1580_v47 = vmul.f32 %v14563_v18, %v14497_v40 }
 0x3f6   : > { %2215 = vrot.lane.b32.xlu1 %v14683_v55, %s17429_s11  ;;  %2302 = vrot.lane.b32.xlu0 %v14687_v56, %s17413_s7  ;;  %v17582_v55 = vld [vmem:[#allocation79_spill] sm:$0xff] }
 0x3f8   : > { %v15038_v49 = vpop.permute.xlu1 %2096  ;;  %v15040_v51 = vpop.permute.xlu0 %2110 }
 0x3fa   : > { %2219 = vrot.lane.b32.xlu1 %v14695_v0, %s17429_s11  ;;  %2306 = vrot.lane.b32.xlu0 %v14699_v1, %s17413_s7  ;;  %v17584_v1 = vld [vmem:[#allocation80_spill] sm:$0xff]  ;;  %s17449_s11 = smov 80  }
 0x3fc   : > { %v15046_v52 = vpop.permute.xlu1 %2108  ;;  %v15048_v53 = vpop.permute.xlu0 %2092 }
 0x3fe   : > { %2304 = vrot.lane.b32.xlu1 %v14703_v3, %s17413_s7  ;;  %2318 = vrot.lane.b32.xlu0 %v17582_v55, %s17413_s7 }
 0x400   : > { %v15054_v56 = vpop.permute.xlu1 %2112  ;;  %v15056_v38 = vpop.permute.xlu0 %2195 }
 0x402   : > { %2316 = vrot.lane.b32.xlu1 %v14711_v60, %s17413_s7  ;;  %v1581_v60 = vmul.f32 %v14563_v18, %v14479_v28 }
 0x404   : > { %v15060_v0 = vpop.permute.xlu1 %2106  ;;  %v15064_v6 = vpop.permute.xlu0 %2199  ;;  %v1672_v17 = vadd.f32 %v1650_v2, %v1581_v60  ;;  %v1746_v2 = vsel %vm1739_vm1, %v14918_v16, %v14914_v11 }
 0x405   : > { %17583 = vst [vmem:[#allocation79_spill] sm:$0xff] %v15060_v0  ;;  %v1587_v0 = vmul.f32 %v14691_v63, %v14479_v28  ;;  %v1649_v28 = vsel %vm1648_vm0, %v14888_v12, %v14874_v54  ;;  %v1741_v54 = vsel %vm1739_vm1, %v14900_v50, %v14912_v61 }
 0x406   : > { %2320 = vrot.lane.b32.xlu1 %v17584_v1, %s17413_s7  ;;  %v1582_v1 = vmul.f32 %v14563_v18, %v14489_v36  ;;  %v1656_v18 = vsel %vm1648_vm0, %v14879_v14, %v14898_v10  ;;  %v1671_v12 = vadd.f32 %v1649_v28, %v1580_v47  ;;  %v1763_v47 = vadd.f32 %v1741_v54, %v1672_v17  ;;  %s17427_s7 = smov 112  }
 0x407   : > { %v1923_v28 = vsel %vm1921_vm3, %v14960_v25, %v14974_v30 }
 0x408   : > { %v15066_v58 = vpop.permute.xlu1 %2197  ;;  %v15070_v5 = vpop.permute.xlu0 %2211 }
 0x40c   : > { %v15068_v3 = vpop.permute.xlu1 %2209  ;;  %v15074_v13 = vpop.permute.xlu0 %2193 }
 0x40d   : > { %17586 = vst [vmem:[#allocation93_spill] sm:$0xff] %v15074_v13  ;;  %v1588_v13 = vmul.f32 %v14691_v63, %v14489_v36  ;;  %v1654_v36 = vsel %vm1648_vm0, %v14902_v15, %v14886_v59 }
 0x40f   : > { %v1679_v10 = vadd.f32 %v1656_v18, %v1588_v13  ;;  %v1832_v13 = vsel %vm1830_vm2, %v14928_v19, %v14942_v20 }
 0x410   : > { %v15072_v55 = vpop.permute.xlu1 %2213  ;;  %v15105_v62 = vpop.permute.xlu0 %2296 }
 0x411   : > { %17585 = vst [vmem:[#allocation80_spill] sm:$0xff] %v15072_v55  ;;  %v1586_v55 = vmul.f32 %v14691_v63, %v14497_v40  ;;  %v1673_v40 = vadd.f32 %v1651_v37, %v1582_v1  ;;  %v1747_v37 = vsel %vm1739_vm1, %v14914_v11, %v14926_v7 }
 0x412   : > { %v1770_v60 = vadd.f32 %v1747_v37, %v1679_v10  ;;  %v1836_v10 = vsel %vm1830_vm2, %v14966_v26, %v14950_v22 }
 0x414   : > { %v15078_v9 = vpop.permute.xlu1 %2207  ;;  %v15145_v17 = vpop.permute.xlu0 %2300 }
 0x415   : > { %17587 = vst [vmem:[#allocation94_spill] sm:$0xff] %v15078_v9  ;;  %v1655_v9 = vsel %vm1648_vm0, %v14886_v59, %v14879_v14  ;;  %v1742_v14 = vsel %vm1739_vm1, %v14912_v61, %v14904_v57  ;;  %v1740_v59 = vsel %vm1739_vm1, %v14920_v4, %v14900_v50  ;;  %v1745_v61 = vsel %vm1739_vm1, %v14934_v8, %v14918_v16 }
 0x416   : > { %v1678_v63 = vadd.f32 %v1655_v9, %v1587_v0  ;;  %v1677_v9 = vadd.f32 %v1654_v36, %v1586_v55  ;;  %v1764_v0 = vadd.f32 %v1742_v14, %v1673_v40  ;;  %v1833_v50 = vsel %vm1830_vm2, %v14942_v20, %v14936_v27 }
 0x417   : > { %v1837_v4 = vsel %vm1830_vm2, %v14950_v22, %v14944_v21  ;;  %v1762_v55 = vadd.f32 %v1740_v59, %v1671_v12  ;;  %v1831_v16 = vsel %vm1830_vm2, %v14952_v23, %v14928_v19  ;;  %v1838_v8 = vsel %vm1830_vm2, %v14944_v21, %v14958_v24 }
 0x418   : > { %v15122_v15 = vpop.permute.xlu1 %2298  ;;  %v1769_v11 = vadd.f32 %v1746_v2, %v1678_v63  ;;  %v1768_v1 = vadd.f32 %v1745_v61, %v1677_v9  ;;  %v1854_v20 = vadd.f32 %v1832_v13, %v1763_v47  ;;  %v1855_v18 = vadd.f32 %v1833_v50, %v1764_v0  ;;  %v2313_v37 = vpop.permute.xlu0 %2312 }
 0x419   : > { %v1924_v19 = vsel %vm1921_vm3, %v14974_v30, %v14968_v29  ;;  %v1928_v21 = vsel %vm1921_vm3, %v14982_v32, %v14976_v31  ;;  %v1853_v23 = vadd.f32 %v1831_v16, %v1762_v55  ;;  %v1861_v40 = vadd.f32 %v1838_v8, %v1770_v60 }
 0x41a   : > { %v1860_v36 = vadd.f32 %v1837_v4, %v1769_v11  ;;  %v1922_v63 = vsel %vm1921_vm3, %v14984_v33, %v14960_v25  ;;  %v1945_v14 = vadd.f32 %v1923_v28, %v1854_v20  ;;  %v1929_v30 = vsel %vm1921_vm3, %v14976_v31, %v14990_v34 }
 0x41b   : > { %v2014_v12 = vsel %vm2012_vm4, %v14992_v35, %v15006_v41  ;;  %v2015_v2 = vsel %vm2012_vm4, %v15006_v41, %v15000_v39  ;;  %v1946_v22 = vadd.f32 %v1924_v19, %v1855_v18  ;;  %v2019_v25 = vsel %vm2012_vm4, %v15014_v43, %v15008_v42 }
 0x41c   : > { %v15162_v54 = vpop.permute.xlu1 %2310  ;;  %v1951_v26 = vadd.f32 %v1928_v21, %v1860_v36  ;;  %v2013_v33 = vsel %vm2012_vm4, %v15016_v44, %v14992_v35  ;;  %v1944_v59 = vadd.f32 %v1922_v63, %v1853_v23  ;;  %v2020_v31 = vsel %vm2012_vm4, %v15008_v42, %v15022_v45  ;;  %v17589_v36 = vld [vmem:[#allocation93_spill] sm:$0xff]  ;;  %v17590_v63 = vld [vmem:[#allocation91_spill] sm:$0xff] }
 0x41d   : > { %v2122_v9 = vsel %vm2120_vm5, %v15024_v46, %v15038_v49  ;;  %v2123_v41 = vsel %vm2120_vm5, %v15038_v49, %v15032_v48  ;;  %v1952_v61 = vadd.f32 %v1929_v30, %v1861_v40  ;;  %v2036_v13 = vadd.f32 %v2014_v12, %v1945_v14 }
 0x41e   : > { %v2037_v47 = vadd.f32 %v2015_v2, %v1946_v22  ;;  %v2128_v35 = vsel %vm2120_vm5, %v15046_v52, %v15040_v51  ;;  %v2042_v44 = vadd.f32 %v2019_v25, %v1951_v26  ;;  %v2035_v0 = vadd.f32 %v2013_v33, %v1944_v59  ;;  %v17591_v22 = vld [vmem:[#allocation92_spill] sm:$0xff] }
 0x41f   : > { %v2121_v42 = vsel %vm2120_vm5, %v15048_v53, %v15024_v46  ;;  %v2129_v50 = vsel %vm2120_vm5, %v15040_v51, %v15054_v56  ;;  %v2043_v4 = vadd.f32 %v2020_v31, %v1952_v61  ;;  %v2146_v49 = vadd.f32 %v2122_v9, %v2036_v13  ;;  %v17588_v53 = vld [vmem:[#allocation80_spill] sm:$0xff] }
 0x420   : > { %v2147_v11 = vadd.f32 %v2123_v41, %v2037_v47  ;;  %v2223_v55 = vsel %vm2221_vm6, %v15056_v38, %v15066_v58  ;;  %v15200_v16 = vpop.permute.xlu1 %2314  ;;  %v2152_v8 = vadd.f32 %v2128_v35, %v2042_v44  ;;  %v2224_v60 = vsel %vm2221_vm6, %v15066_v58, %v15064_v6  ;;  %v17594_v44 = vld [vmem:[#allocation94_spill] sm:$0xff] }
 0x421   : > { %v2229_v46 = vsel %vm2221_vm6, %v15068_v3, %v15070_v5  ;;  %v2230_v51 = vsel %vm2221_vm6, %v15070_v5, %v17588_v53  ;;  %v2145_v28 = vadd.f32 %v2121_v42, %v2035_v0  ;;  %v2153_v18 = vadd.f32 %v2129_v50, %v2043_v4 }
 0x422   : > { %v2222_v19 = vsel %vm2221_vm6, %v17589_v36, %v15056_v38  ;;  %v2324_v58 = vsel %vm2322_vm7, %v15105_v62, %v15122_v15  ;;  %v2247_v21 = vadd.f32 %v2223_v55, %v2146_v49  ;;  %v2325_v23 = vsel %vm2322_vm7, %v15122_v15, %v15145_v17 }
 0x423   : > { %v2330_v5 = vsel %vm2322_vm7, %v15162_v54, %v2313_v37  ;;  %v2331_v40 = vsel %vm2322_vm7, %v2313_v37, %v15200_v16  ;;  %v1927_v14 = vsel %vm1921_vm3, %v17590_v63, %v14982_v32  ;;  %v2248_v38 = vadd.f32 %v2224_v60, %v2147_v11  ;;  %v17592_v32 = vld [vmem:[#allocation79_spill] sm:$0xff] }
 0x424   : > { %v2253_v30 = vadd.f32 %v2229_v46, %v2152_v8  ;;  %v2254_v12 = vadd.f32 %v2230_v51, %v2153_v18  ;;  %v1859_v2 = vadd.f32 %v1836_v10, %v1768_v1  ;;  %v2018_v26 = vsel %vm2012_vm4, %v17591_v22, %v15014_v43  ;;  %v17593_v10 = vld [vmem:[#allocation88_spill] sm:$0xff] }
 0x425   : > { %v2246_v25 = vadd.f32 %v2222_v19, %v2145_v28  ;;  %v2348_v15 = vadd.f32 %v2324_v58, %v2247_v21  ;;  %v2349_v59 = vadd.f32 %v2325_v23, %v2248_v38  ;;  %v2127_v13 = vsel %vm2120_vm5, %v17592_v32, %v15046_v52  ;;  %v15286_v32 = vld [vmem:[%s17596_s10 + $0x10] ss:$0 sps:$4 sm:$0xff]  }
 0x426   : > { %v2354_v31 = vadd.f32 %v2330_v5, %v2253_v30  ;;  %v2355_v9 = vadd.f32 %v2331_v40, %v2254_v12  ;;  %v1950_v37 = vadd.f32 %v1927_v14, %v1859_v2  ;;  %v2228_v0 = vsel %vm2221_vm6, %v17594_v44, %v15068_v3  ;;  %17602 = vst [vmem:[#allocation88_spill] sm:$0xff] %v15286_v32 }
 0x427   : > { %v2372_v47 = vadd.f32 %v17593_v10, %v2348_v15  ;;  %v2373_v42 = vadd.f32 %v17593_v10, %v2349_v59  ;;  %v15275_v59 = vld [vmem:[%s17596_s10] ss:$8 sps:$4 sm:$0xff]  }
 0x428   : > { %v2041_v1 = vadd.f32 %v2018_v26, %v1950_v37  ;;  %17600 = vst [vmem:[#allocation92_spill] sm:$0xff] %v15275_v59 }
 0x429   : > { %v15211_v20 = vpop.permute.xlu0 %2399  ;;  %v2384_v55 = vmax.f32 %v2372_v47, 0.0  ;;  %v2385_v46 = vmax.f32 %v2373_v42, 0.0 }
 0x42a   : > { %v2151_v49 = vadd.f32 %v2127_v13, %v2041_v1 }
 0x42b   : > { %v2408_v19 = vmul.f32 %v15211_v20, %v2384_v55  ;;  %v2409_v58 = vmul.f32 %v15211_v20, %v2385_v46 }
 0x42c   : > { %v2252_v11 = vadd.f32 %v2228_v0, %v2151_v49 }
 0x42d   : > { %v2295_v33 = vpop.permute.xlu0 %2294 }
 0x42e   : > { %v2323_v41 = vsel %vm2322_vm7, %v2295_v33, %v15105_v62  ;;  %v17595_v62 = vld [vmem:[#allocation87_spill] sm:$0xff] }
 0x42f   : > { %v2347_v61 = vadd.f32 %v2323_v41, %v2246_v25  ;;  %v2378_v50 = vadd.f32 %v17595_v62, %v2354_v31  ;;  %v2379_v4 = vadd.f32 %v17595_v62, %v2355_v9 }
 0x431   : > { %v15238_v35 = vpop.permute.xlu1 %2404  ;;  %v15240_v43 = vpop.permute.xlu0 %2423  ;;  %v2371_v52 = vadd.f32 %v17593_v10, %v2347_v61  ;;  %v2390_v51 = vmax.f32 %v2378_v50, 0.0  ;;  %v2391_v28 = vmax.f32 %v2379_v4, 0.0 }
 0x432   : > { %v2432_v14 = vadd.f32 %v15240_v43, %v2408_v19 }
 0x433   : > { %v2383_v18 = vmax.f32 %v2371_v52, 0.0  ;;  %v2414_v21 = vmul.f32 %v15238_v35, %v2390_v51  ;;  %v2415_v23 = vmul.f32 %v15238_v35, %v2391_v28 }
 0x435   : > { %v2309_v8 = vpop.permute.xlu1 %2308  ;;  %v15249_v60 = vpop.permute.xlu0 %1632  ;;  %v2407_v12 = vmul.f32 %v15211_v20, %v2383_v18 }
 0x436   : > { %v2329_v3 = vsel %vm2322_vm7, %v2309_v8, %v15162_v54  ;;  %v2433_v54 = vadd.f32 %v15240_v43, %v2409_v58  ;;  %v17603_v58 = vld [vmem:[#allocation89_spill] sm:$0xff] }
 0x437   : > { %v2353_v36 = vadd.f32 %v2329_v3, %v2252_v11  ;;  %v2431_v31 = vadd.f32 %v15240_v43, %v2407_v12 }
 0x439   : > { %v2377_v5 = vadd.f32 %v17595_v62, %v2353_v36  ;;  %v15258_v40 = vpop.permute.xlu1 %2428  ;;  %v1645_v63 = vpop.permute.xlu0 %1644 }
 0x43a   : > { %17597 = vst [vmem:[#allocation80_spill] sm:$0xff] %v15258_v40  ;;  %v2438_v38 = vadd.f32 %v15258_v40, %v2414_v21  ;;  %v2439_v30 = vadd.f32 %v15258_v40, %v2415_v23  ;;  %v1652_v21 = vsel %vm1648_vm0, %v17603_v58, %v15249_v60  ;;  %v17606_v58 = vld [vmem:[#allocation82_spill] sm:$0xff] }
 0x43b   : > { %v2389_v2 = vmax.f32 %v2377_v5, 0.0  ;;  %v17604_v5 = vld [vmem:[#allocation81_spill] sm:$0xff] }
 0x43c   : > { %v15265_v22 = vpack.c.bf16 %v2438_v38, %v2432_v14  ;;  %v15267_v26 = vpack.c.bf16 %v2439_v30, %v2433_v54  ;;  %v1674_v14 = vadd.f32 %v1652_v21, %v17604_v5  ;;  %v17605_v54 = vld [vmem:[#allocation90_spill] sm:$0xff]  ;;  %v17607_v5 = vld [vmem:[#allocation84_spill] sm:$0xff] }
 0x43d   : > { %v2413_v25 = vmul.f32 %v15238_v35, %v2389_v2  ;;  %v1635_v15 = vpop.permute.xlu1 %1634  ;;  %v1724_v33 = vpop.permute.xlu0 %1723  ;;  %v1657_v38 = vsel %vm1648_vm0, %v17605_v54, %v1645_v63 }
 0x43e   : > { %17598 = vst [vmem:[#allocation93_spill] sm:$0xff] %v15265_v22  ;;  %17599 = vst [vmem:[#allocation91_spill] sm:$0xff] %v15267_v26  ;;  %2474 = vrot.lane.b32.xlu1 %v15267_v26, %s17456_s4  ;;  %2472 = vrot.lane.b32.xlu0 %v15265_v22, %s17456_s4  ;;  %v1743_v23 = vsel %vm1739_vm1, %v14904_v57, %v1724_v33  ;;  %v1653_v2 = vsel %vm1648_vm0, %v15249_v60, %v1635_v15  ;;  %v17608_v26 = vld [vmem:[#allocation83_spill] sm:$0xff]  ;;  %v17610_v22 = vld [vmem:[#allocation86_spill] sm:$0xff] }
 0x43f   : > { %v2437_v9 = vadd.f32 %v15258_v40, %v2413_v25  ;;  %v1680_v21 = vadd.f32 %v1657_v38, %v17606_v58  ;;  %v1675_v60 = vadd.f32 %v1653_v2, %v17608_v26 }
 0x441   : > { %v15279_v41 = vpack.c.bf16 %v2437_v9, %v2431_v31  ;;  %v1647_v37 = vpop.permute.xlu1 %1646  ;;  %v1736_v61 = vpop.permute.xlu0 %1735  ;;  %v1765_v9 = vadd.f32 %v1743_v23, %v1674_v14 }
 0x442   : > { %2460 = vrot.lane.b32.xlu1 %v15275_v59, %s17427_s7  ;;  %v1658_v25 = vsel %vm1648_vm0, %v1645_v63, %v1647_v37  ;;  %v1748_v57 = vsel %vm1739_vm1, %v14926_v7, %v1736_v61  ;;  %v1676_v59 = vadd.f32 %v1635_v15, %v17607_v5  ;;  %v1682_v40 = vadd.f32 %v1647_v37, %v17610_v22 }
 0x443   : > { %17601 = vst [vmem:[#allocation79_spill] sm:$0xff] %v15279_v41  ;;  %2470 = vrot.lane.b32.xlu0 %v15279_v41, %s17456_s4  ;;  %v17609_v41 = vld [vmem:[#allocation85_spill] sm:$0xff]  ;;  %v1771_v7 = vadd.f32 %v1748_v57, %v1680_v21 }
 0x444   : > { %v1681_v63 = vadd.f32 %v1658_v25, %v17609_v41 }
 0x445   : > { %v1726_v13 = vpop.permute.xlu1 %1725  ;;  %v1815_v1 = vpop.permute.xlu0 %1814 }
 0x446   : > { %v1834_v31 = vsel %vm1830_vm2, %v14936_v27, %v1815_v1  ;;  %v1744_v54 = vsel %vm1739_vm1, %v1724_v33, %v1726_v13 }
 0x447   : > { %2462 = vrot.lane.b32.xlu0 %v15286_v32, %s17427_s7  ;;  %v1856_v27 = vadd.f32 %v1834_v31, %v1765_v9  ;;  %v1766_v58 = vadd.f32 %v1744_v54, %v1675_v60  ;;  %s17431_s7 = smov 96  }
 0x449   : > { %v1738_v47 = vpop.permute.xlu1 %1737  ;;  %v1827_v44 = vpop.permute.xlu0 %1826 }
 0x44a   : > { %v1749_v38 = vsel %vm1739_vm1, %v1736_v61, %v1738_v47  ;;  %v1839_v26 = vsel %vm1830_vm2, %v14958_v24, %v1827_v44  ;;  %v1773_v2 = vadd.f32 %v1738_v47, %v1682_v40 }
 0x44b   : > { %v1772_v25 = vadd.f32 %v1749_v38, %v1681_v63 }
 0x44d   : > { %v1817_v0 = vpop.permute.xlu1 %1816  ;;  %v1906_v42 = vpop.permute.xlu0 %1905 }
 0x44e   : > { %v1925_v32 = vsel %vm1921_vm3, %v14968_v29, %v1906_v42  ;;  %v1835_v15 = vsel %vm1830_vm2, %v1815_v1, %v1817_v0  ;;  %v1767_v29 = vadd.f32 %v1726_v13, %v1676_v59  ;;  %v1862_v59 = vadd.f32 %v1839_v26, %v1771_v7 }
 0x44f   : > { %v1947_v41 = vadd.f32 %v1925_v32, %v1856_v27  ;;  %v1857_v1 = vadd.f32 %v1835_v15, %v1766_v58 }
 0x450   : > { %v1858_v31 = vadd.f32 %v1817_v0, %v1767_v29 }
 0x451   : > { %v15290_v50 = vpop.permute.xlu1 %1828  ;;  %v1918_v4 = vpop.permute.xlu0 %1917 }
 0x452   : > { %v1840_v22 = vsel %vm1830_vm2, %v1827_v44, %v15290_v50  ;;  %v1930_v24 = vsel %vm1921_vm3, %v14990_v34, %v1918_v4 }
 0x453   : > { %v1863_v13 = vadd.f32 %v1840_v22, %v1772_v25  ;;  %v1953_v34 = vadd.f32 %v1930_v24, %v1862_v59 }
 0x455   : > { %v1908_v49 = vpop.permute.xlu1 %1907  ;;  %v1997_v52 = vpop.permute.xlu0 %1996 }
 0x456   : > { %v2016_v33 = vsel %vm2012_vm4, %v15000_v39, %v1997_v52  ;;  %v1926_v37 = vsel %vm1921_vm3, %v1906_v42, %v1908_v49  ;;  %v1949_v44 = vadd.f32 %v1908_v49, %v1858_v31 }
 0x457   : > { %v2038_v9 = vadd.f32 %v2016_v33, %v1947_v41  ;;  %v1948_v47 = vadd.f32 %v1926_v37, %v1857_v1 }
 0x459   : > { %v15292_v11 = vpop.permute.xlu1 %1919  ;;  %v15294_v55 = vpop.permute.xlu0 %2008 }
 0x45d   : > { %v1999_v8 = vpop.permute.xlu1 %1998  ;;  %v2101_v46 = vpop.permute.xlu0 %2100 }
 0x45e   : > { %v2124_v61 = vsel %vm2120_vm5, %v15032_v48, %v2101_v46  ;;  %v2017_v40 = vsel %vm2012_vm4, %v1997_v52, %v1999_v8  ;;  %v1931_v48 = vsel %vm1921_vm3, %v1918_v4, %v15292_v11  ;;  %v2040_v52 = vadd.f32 %v1999_v8, %v1949_v44 }
 0x45f   : > { %v2148_v42 = vadd.f32 %v2124_v61, %v2038_v9  ;;  %v2039_v54 = vadd.f32 %v2017_v40, %v1948_v47  ;;  %v1864_v8 = vadd.f32 %v15290_v50, %v1773_v2 }
 0x461   : > { %v15296_v51 = vpop.permute.xlu1 %2010  ;;  %v2105_v28 = vpop.permute.xlu0 %2104  ;;  %v1955_v2 = vadd.f32 %v15292_v11, %v1864_v8  ;;  %v17612_v8 = vld [vmem:[#allocation93_spill] sm:$0xff] }
 0x462   : > { %v2022_v4 = vsel %vm2012_vm4, %v15294_v55, %v15296_v51 }
 0x463   : > { %v2046_v9 = vadd.f32 %v15296_v51, %v1955_v2 }
 0x465   : > { %v2103_v3 = vpop.permute.xlu1 %2102  ;;  %v15298_v18 = vpop.permute.xlu0 %2116 }
 0x466   : > { %v2125_v0 = vsel %vm2120_vm5, %v2101_v46, %v2103_v3  ;;  %v2126_v21 = vsel %vm2120_vm5, %v2103_v3, %v2105_v28  ;;  %v1954_v28 = vadd.f32 %v1931_v48, %v1863_v13 }
 0x467   : > { %v2149_v3 = vadd.f32 %v2125_v0, %v2039_v54 }
 0x468   : > { %v2045_v15 = vadd.f32 %v2022_v4, %v1954_v28 }
 0x469   : > { %v15300_v36 = vpop.permute.xlu1 %2114  ;;  %v2202_v19 = vpop.permute.xlu0 %2201 }
 0x46a   : > { %v2225_v32 = vsel %vm2221_vm6, %v15064_v6, %v2202_v19  ;;  %v2021_v6 = vsel %vm2012_vm4, %v15022_v45, %v15294_v55  ;;  %v2130_v38 = vsel %vm2120_vm5, %v15054_v56, %v15300_v36  ;;  %v2131_v45 = vsel %vm2120_vm5, %v15300_v36, %v15298_v18 }
 0x46b   : > { %v2249_v60 = vadd.f32 %v2225_v32, %v2148_v42  ;;  %v2044_v55 = vadd.f32 %v2021_v6, %v1953_v34  ;;  %v2155_v26 = vadd.f32 %v2131_v45, %v2045_v15 }
 0x46d   : > { %v15310_v30 = vpop.permute.xlu1 %2118  ;;  %v2206_v12 = vpop.permute.xlu0 %2205  ;;  %v2154_v56 = vadd.f32 %v2130_v38, %v2044_v55  ;;  %v17615_v38 = vld [vmem:[#allocation88_spill] sm:$0xff] }
 0x46e   : > { %v2132_v37 = vsel %vm2120_vm5, %v15298_v18, %v15310_v30 }
 0x46f   : > { %v2156_v30 = vadd.f32 %v2132_v37, %v2046_v9 }
 0x471   : > { %v2204_v23 = vpop.permute.xlu1 %2203  ;;  %v15327_v14 = vpop.permute.xlu0 %2217 }
 0x472   : > { %v2226_v49 = vsel %vm2221_vm6, %v2202_v19, %v2204_v23  ;;  %v2227_v46 = vsel %vm2221_vm6, %v2204_v23, %v2206_v12 }
 0x473   : > { %v2250_v19 = vadd.f32 %v2226_v49, %v2149_v3 }
 0x475   : > { %v2216_v39 = vpop.permute.xlu1 %2215  ;;  %v2303_v57 = vpop.permute.xlu0 %2302 }
 0x476   : > { %v2326_v5 = vsel %vm2322_vm7, %v15145_v17, %v2303_v57  ;;  %v2150_v17 = vadd.f32 %v2126_v21, %v2040_v52  ;;  %v2231_v23 = vsel %vm2221_vm6, %v17588_v53, %v2216_v39  ;;  %v2232_v58 = vsel %vm2221_vm6, %v2216_v39, %v15327_v14 }
 0x477   : > { %v2350_v27 = vadd.f32 %v2326_v5, %v2249_v60  ;;  %v2255_v53 = vadd.f32 %v2231_v23, %v2154_v56  ;;  %v2256_v61 = vadd.f32 %v2232_v58, %v2155_v26  ;;  %v17617_v23 = vmov 0  }
 0x478   : > { %v2251_v33 = vadd.f32 %v2227_v46, %v2150_v17 }
 0x479   : > { %v2220_v63 = vpop.permute.xlu1 %2219  ;;  %v2307_v7 = vpop.permute.xlu0 %2306  ;;  %v2374_v41 = vadd.f32 %v17593_v10, %v2350_v27 }
 0x47a   : > { %v2233_v39 = vsel %vm2221_vm6, %v15327_v14, %v2220_v63  ;;  %v17611_v63 = vld [vmem:[#allocation80_spill] sm:$0xff] }
 0x47b   : > { %v2386_v59 = vmax.f32 %v2374_v41, 0.0  ;;  %v2257_v44 = vadd.f32 %v2233_v39, %v2156_v30 }
 0x47d   : > { %v2305_v12 = vpop.permute.xlu1 %2304  ;;  %v2319_v1 = vpop.permute.xlu0 %2318  ;;  %v2410_v42 = vmul.f32 %v15211_v20, %v2386_v59 }
 0x47e   : > { %v2327_v50 = vsel %vm2322_vm7, %v2303_v57, %v2305_v12  ;;  %v2328_v29 = vsel %vm2322_vm7, %v2305_v12, %v2307_v7 }
 0x47f   : > { %v2351_v36 = vadd.f32 %v2327_v50, %v2250_v19  ;;  %v2352_v22 = vadd.f32 %v2328_v29, %v2251_v33  ;;  %v2434_v52 = vadd.f32 %v15240_v43, %v2410_v42 }
 0x481   : > { %v2375_v25 = vadd.f32 %v17593_v10, %v2351_v36  ;;  %v2317_v31 = vpop.permute.xlu1 %2316  ;;  %v2376_v32 = vadd.f32 %v17593_v10, %v2352_v22 }
 0x482   : > { %v2332_v57 = vsel %vm2322_vm7, %v15200_v16, %v2317_v31  ;;  %v2333_v11 = vsel %vm2322_vm7, %v2317_v31, %v2319_v1 }
 0x483   : > { %v2387_v24 = vmax.f32 %v2375_v25, 0.0  ;;  %v2356_v40 = vadd.f32 %v2332_v57, %v2255_v53  ;;  %v2357_v18 = vadd.f32 %v2333_v11, %v2256_v61  ;;  %v2388_v21 = vmax.f32 %v2376_v32, 0.0 }
 0x485   : > { %v2380_v13 = vadd.f32 %v17595_v62, %v2356_v40  ;;  %v2381_v47 = vadd.f32 %v17595_v62, %v2357_v18  ;;  %v2321_v51 = vpop.permute.xlu1 %2320  ;;  %v2411_v16 = vmul.f32 %v15211_v20, %v2387_v24  ;;  %v2412_v49 = vmul.f32 %v15211_v20, %v2388_v21  ;;  %v17613_v20 = vld [vmem:[#allocation79_spill] sm:$0xff] }
 0x486   : > { %v2334_v14 = vsel %vm2322_vm7, %v2319_v1, %v2321_v51 }
 0x487   : > { %v2392_v48 = vmax.f32 %v2380_v13, 0.0  ;;  %v2393_v0 = vmax.f32 %v2381_v47, 0.0  ;;  %v2358_v5 = vadd.f32 %v2334_v14, %v2257_v44  ;;  %v2435_v60 = vadd.f32 %v15240_v43, %v2411_v16 }
 0x489   : > { %v2416_v34 = vmul.f32 %v15238_v35, %v2392_v48  ;;  %v2417_v10 = vmul.f32 %v15238_v35, %v2393_v0  ;;  %v2382_v54 = vadd.f32 %v17595_v62, %v2358_v5  ;;  %v2436_v62 = vadd.f32 %v15240_v43, %v2412_v49  ;;  %v17616_v43 = vld [vmem:[#allocation92_spill] sm:$0xff] }
 0x48b   : > { %v2440_v6 = vadd.f32 %v17611_v63, %v2416_v34  ;;  %v2441_v4 = vadd.f32 %v17611_v63, %v2417_v10  ;;  %v2394_v46 = vmax.f32 %v2382_v54, 0.0 }
 0x48d   : > { %v15398_v28 = vpack.c.bf16 %v2440_v6, %v2434_v52  ;;  %v15400_v3 = vpack.c.bf16 %v2441_v4, %v2435_v60  ;;  %v2418_v17 = vmul.f32 %v15238_v35, %v2394_v46  ;;  %v17614_v35 = vld [vmem:[#allocation91_spill] sm:$0xff] }
 0x48f   : > { %2478 = vrot.lane.b32.xlu1 %v15400_v3, %s17456_s4  ;;  %v2442_v27 = vadd.f32 %v17611_v63, %v2418_v17 }
 0x491   : > { %v15407_v7 = vpack.c.bf16 %v2442_v27, %v2436_v62 }
 0x493   : > { %2819 = vrot.lane.b32.xlu1 %v17612_v8, %s17451_s9  ;;  %2480 = vrot.lane.b32.xlu0 %v15407_v7, %s17456_s4 }
 0x497   : > { %2817 = vrot.lane.b32.xlu1 %v17613_v20, %s17451_s9  ;;  %2821 = vrot.lane.b32.xlu0 %v17614_v35, %s17451_s9 }
 0x49b   : > { %2815 = vrot.lane.b32.xlu1 %v17615_v38, %s17431_s7  ;;  %2813 = vrot.lane.b32.xlu0 %v17616_v43, %s17431_s7  ;;  %s17433_s7 = smov 64  }
 0x49f   : > { %2827 = vrot.lane.b32.xlu1 %v15407_v7, %s17451_s9  ;;  %2825 = vrot.lane.b32.xlu0 %v15400_v3, %s17451_s9 }
 0x4a3   : > { %3026 = vrot.lane.b32.xlu1 %v17614_v35, %s17435_s12  ;;  %3024 = vrot.lane.b32.xlu0 %v17612_v8, %s17435_s12 }
 0x4a7   : > { %3018 = vrot.lane.b32.xlu1 %v17616_v43, %s17449_s11  ;;  %3022 = vrot.lane.b32.xlu0 %v17613_v20, %s17435_s12 }
 0x4ab   : > { %3030 = vrot.lane.b32.xlu1 %v15400_v3, %s17435_s12  ;;  %3020 = vrot.lane.b32.xlu0 %v17615_v38, %s17449_s11  ;;  %s17623_s11 = sld [smem:[#allocation58_spill]] }
 0x4af   : > { %3229 = vrot.lane.b32.xlu1 %v17612_v8, %s17439_s1  ;;  %3032 = vrot.lane.b32.xlu0 %v15407_v7, %s17435_s12 }
 0x4b0   : > { %v15441_v45 = vpop.permute.xlu1 %2474  ;;  %v2473_v55 = vpop.permute.xlu0 %2472 }
 0x4b1   : > { %v2484_v15 = vsel %vm1648_vm0, %v2473_v55, %v15441_v45 }
 0x4b2   : > { %2501 = vmatprep.subr.bf16.mxu0 %v2484_v15 }
 0x4b3   : > { %2476 = vrot.lane.b32.xlu1 %v15398_v28, %s17456_s4  ;;  %3231 = vrot.lane.b32.xlu0 %v17614_v35, %s17439_s1 }
 0x4b4   : > { %v15452_v12 = vpop.permute.xlu1 %2460 }
 0x4b5   : > { %v2471_v19 = vpop.permute.xlu0 %2470 }
 0x4b6   : > { %v2483_v33 = vsel %vm1648_vm0, %v2471_v19, %v2473_v55 }
 0x4b7   : > { %3223 = vrot.lane.b32.xlu1 %v17616_v43, %s17433_s7  ;;  %2502 = vmatpush1.bf16.msra.mxu0 %v2483_v33 }
 0x4b8   : > { %3227 = vrot.lane.b32.xlu0 %v17613_v20, %s17439_s1 }
 0x4b9   : > { %v15465_v58 = vpop.permute.xlu0 %2462 }
 0x4ba   : > { %11633 = vmatmul.mubr.msk.bf16.vlgmr.msra.gmra.mrb[0].mxu0 %vm2494_vm8, %v15452_v12 }
 0x4bb   : > { %3235 = vrot.lane.b32.xlu1 %v15400_v3, %s17439_s1  ;;  %2543 = vmatprep.mubr.bf16.mxu0 %v17617_v23 }
 0x4bc   : > { %3225 = vrot.lane.b32.xlu0 %v17615_v38, %s17433_s7  ;;  %s17437_s7 = smov 48  }
 0x4bf   : > { %3434 = vrot.lane.b32.xlu1 %v17612_v8, %s17443_s6 }
 0x4c0   : > { %3237 = vrot.lane.b32.xlu0 %v15407_v7, %s17439_s1 }
 0x4c2   : > { %11634 = vmatmul.mubr.msk.bf16.gmra.mrb[4].mxu0 %vm2494_vm8, %v15465_v58 }
 0x4c3   : > { %2823 = vrot.lane.b32.xlu1 %v15398_v28, %s17451_s9  ;;  %2635 = vmatprep.mubr.bf16.mxu0 %v17617_v23  ;;  %s17454_s9 = smov 104  }
 0x4c4   : > { %3436 = vrot.lane.b32.xlu0 %v17614_v35, %s17443_s6 }
 0x4c7   : > { %3428 = vrot.lane.b32.xlu1 %v17616_v43, %s17437_s7 }
 0x4c8   : > { %3432 = vrot.lane.b32.xlu0 %v17613_v20, %s17443_s6 }
 0x4cb   : > { %3028 = vrot.lane.b32.xlu1 %v15398_v28, %s17435_s12  ;;  %s17441_s12 = smov 32  }
 0x4cc   : > { %3430 = vrot.lane.b32.xlu0 %v17615_v38, %s17437_s7  ;;  %s17618_s7 = smov 71  }
 0x4cf   : > { %3442 = vrot.lane.b32.xlu1 %v15407_v7, %s17443_s6 }
 0x4d0   : > { %3440 = vrot.lane.b32.xlu0 %v15400_v3, %s17443_s6 }
 0x4d3   : > { %3641 = vrot.lane.b32.xlu1 %v17614_v35, %s17445_s23 }
 0x4d4   : > { %3639 = vrot.lane.b32.xlu0 %v17612_v8, %s17445_s23 }
 0x4d7   : > { %3637 = vrot.lane.b32.xlu1 %v17613_v20, %s17445_s23 }
 0x4d8   : > { %3233 = vrot.lane.b32.xlu0 %v15398_v28, %s17439_s1  ;;  %s17619_s1 = sld [smem:[#allocation55_spill]] }
 0x4db   : > { %3635 = vrot.lane.b32.xlu1 %v17615_v38, %s17441_s12 }
 0x4dc   : > { %3633 = vrot.lane.b32.xlu0 %v17616_v43, %s17441_s12  ;;  %s17447_s12 = smov 16  }
 0x4de   : > { %v4256_v50 = vld [vmem:[%s17619_s1 + $0x8] sm:$0xff]  ;;  %v4255_v56 = vld [vmem:[%s17619_s1] sm:$0xff]  ;;  %v4257_v36 = vld [vmem:[%s17619_s1 + $0x10] sm:$0xff]  ;;  %s17460_s1 = smov 56  }
 0x4df   : > { %3645 = vrot.lane.b32.xlu1 %v15400_v3, %s17445_s23 }
 0x4e0   : > { %3438 = vrot.lane.b32.xlu0 %v15398_v28, %s17443_s6  ;;  %s17620_s6 = sld [smem:[#allocation56_spill]] }
 0x4e3   : > { %3844 = vrot.lane.b32.xlu1 %v17612_v8, %s17618_s7 }
 0x4e4   : > { %3647 = vrot.lane.b32.xlu0 %v15407_v7, %s17445_s23 }
 0x4e6   : > { %v4309_v26 = vld [vmem:[%s17620_s6] sm:$0xff]  ;;  %v4310_v61 = vld [vmem:[%s17620_s6 + $0x8] sm:$0xff]  ;;  %v4311_v1 = vld [vmem:[%s17620_s6 + $0x10] sm:$0xff]  ;;  %s17634_s6 = sld [smem:[#allocation60_spill]] }
 0x4e7   : > { %3643 = vrot.lane.b32.xlu1 %v15398_v28, %s17445_s23  ;;  %s17621_s23 = smov 70  }
 0x4e8   : > { %3846 = vrot.lane.b32.xlu0 %v17614_v35, %s17618_s7 }
 0x4eb   : > { %3838 = vrot.lane.b32.xlu1 %v17616_v43, %s17447_s12 }
 0x4ec   : > { %3842 = vrot.lane.b32.xlu0 %v17613_v20, %s17618_s7 }
 0x4ef   : > { %3848 = vrot.lane.b32.xlu1 %v15398_v28, %s17618_s7 }
 0x4f0   : > { %3840 = vrot.lane.b32.xlu0 %v17615_v38, %s17447_s12  ;;  %s17622_s12 = sld [smem:[#allocation57_spill]] }
 0x4f3   : > { %3852 = vrot.lane.b32.xlu1 %v15407_v7, %s17618_s7 }
 0x4f4   : > { %3850 = vrot.lane.b32.xlu0 %v15400_v3, %s17618_s7 }
 0x4f6   : > { %v4345_v37 = vld [vmem:[%s17622_s12] sm:$0xff]  ;;  %v4346_v9 = vld [vmem:[%s17622_s12 + $0x8] sm:$0xff]  ;;  %v4347_v11 = vld [vmem:[%s17622_s12 + $0x10] sm:$0xff]  ;;  %s17642_s12 = smov 124  }
 0x4f7   : > { %4058 = vrot.lane.b32.xlu1 %v17614_v35, %s17621_s23 }
 0x4f8   : > { %4056 = vrot.lane.b32.xlu0 %v17612_v8, %s17621_s23 }
 0x4fb   : > { %4060 = vrot.lane.b32.xlu1 %v15398_v28, %s17621_s23 }
 0x4fc   : > { %4054 = vrot.lane.b32.xlu0 %v17613_v20, %s17621_s23 }
 0x4ff   : > { %4064 = vrot.lane.b32.xlu1 %v15407_v7, %s17621_s23 }
 0x500   : > { %4062 = vrot.lane.b32.xlu0 %v15400_v3, %s17621_s23 }
 0x501   : > { %v2479_v29 = vpop.permute.xlu1 %2478 }
 0x503   : > { %4265 = vperm.xlu1 %13017, %v4256_v50  }
 0x504   : > { %4260 = vperm.xlu0 %13011, %v4255_v56  }
 0x505   : > { %v2820_v41 = vpop.permute.xlu1 %2819  ;;  %v2481_v2 = vpop.permute.xlu0 %2480 }
 0x506   : > { %2603 = vmatprep.subr.bf16.mxu0 %v2481_v2  ;;  %v2487_v22 = vsel %vm1648_vm0, %v2479_v29, %v2481_v2 }
 0x507   : > { %4314 = vperm.xlu1 %13017, %v4309_v26   ;;  %2604 = vmatpush1.bf16.msra.mxu0 %v2487_v22 }
 0x508   : > { %4270 = vperm.xlu0 %13011, %v4257_v36   ;;  %2660 = vmatprep.subr.bf16.mxu0 %v17612_v8 }
 0x509   : > { %v2818_v53 = vpop.permute.xlu1 %2817  ;;  %v15544_v25 = vpop.permute.xlu0 %2821 }
 0x50a   : > { %11637 = vmatmul.mubr.msk.bf16.vlgmr.msra.gmra.mrb[8].mxu0 %vm2494_vm8, %v15452_v12  ;;  %v2831_v32 = vsel %vm1739_vm1, %v2820_v41, %v15544_v25  ;;  %v2830_v5 = vsel %vm1739_vm1, %v2818_v53, %v2820_v41 }
 0x50b   : > { %4350 = vperm.xlu1 %13017, %v4345_v37   ;;  %2661 = vmatpush1.bf16.msra.mxu0 %v17613_v20 }
 0x50c   : > { %4319 = vperm.xlu0 %13011, %v4310_v61   ;;  %2762 = vmatprep.subr.bf16.mxu0 %v15407_v7 }
 0x50d   : > { %v15551_v31 = vpop.permute.xlu1 %2815  ;;  %2645 = vmatprep.mubr.bf16.mxu0 %v17617_v23  ;;  %v15555_v39 = vpop.permute.xlu0 %2813 }
 0x50f   : > { %4324 = vperm.xlu1 %13017, %v4311_v1  }
 0x510   : > { %4355 = vperm.xlu0 %13011, %v4346_v9  }
 0x511   : > { %v2828_v57 = vpop.permute.xlu1 %2827  ;;  %v2826_v59 = vpop.permute.xlu0 %2825 }
 0x512   : > { %11638 = vmatmul.mubr.msk.bf16.gmra.mrb[12].mxu0 %vm2494_vm8, %v15465_v58  ;;  %v2834_v46 = vsel %vm1739_vm1, %v2826_v59, %v2828_v57 }
 0x513   : > { %2692 = vmatprep.mubr.bf16.mxu0 %v17617_v23 }
 0x514   : > { %4360 = vperm.xlu0 %13011, %v4347_v11  }
 0x515   : > { %v15561_v24 = vpop.permute.xlu1 %3026  ;;  %v15563_v40 = vpop.permute.xlu0 %3024 }
 0x519   : > { %v15565_v18 = vpop.permute.xlu1 %3018  ;;  %v15567_v30 = vpop.permute.xlu0 %3022 }
 0x51a   : > { %11639 = vmatmul.mubr.msk.bf16.vlgmr.msra.gmra.mrb[0].mxu0 %vm2494_vm8, %v17616_v43 }
 0x51b   : > { %2763 = vmatpush1.bf16.msra.mxu0 %v15400_v3  ;;  %2702 = vmatprep.mubr.bf16.mxu0 %v17617_v23  ;;  %v3036_v3 = vsel %vm1830_vm2, %v15563_v40, %v15561_v24 }
 0x51c   : > { %2847 = vmatprep.subr.bf16.mxu0 %v2831_v32 }
 0x51d   : > { %v15575_v13 = vpop.permute.xlu1 %3030  ;;  %v15577_v47 = vpop.permute.xlu0 %3020 }
 0x521   : > { %v15579_v51 = vpop.permute.xlu1 %3229  ;;  %v15581_v44 = vpop.permute.xlu0 %3032 }
 0x522   : > { %11640 = vmatmul.mubr.msk.bf16.gmra.mrb[16].mxu0 %vm2494_vm8, %v17615_v38 }
 0x523   : > { %2794 = vmatprep.mubr.bf16.mxu0 %v17617_v23 }
 0x525   : > { %v2477_v14 = vpop.permute.xlu1 %2476  ;;  %v15586_v42 = vpop.permute.xlu0 %3231 }
 0x526   : > { %v2486_v16 = vsel %vm1648_vm0, %v2477_v14, %v2479_v29  ;;  %v2485_v48 = vsel %vm1648_vm0, %v15441_v45, %v2477_v14  ;;  %v3241_v29 = vsel %vm1921_vm3, %v15579_v51, %v15586_v42 }
 0x527   : > { %2552 = vmatprep.subr.bf16.mxu1 %v2486_v16 }
 0x528   : > { %2553 = vmatpush1.bf16.msra.mxu1 %v2485_v48 }
 0x529   : > { %2711 = vmatprep.subr.bf16.mxu1 %v15398_v28  ;;  %v15592_v0 = vpop.permute.xlu1 %3223 }
 0x52a   : > { %v15594_v21 = vpop.permute.xlu0 %3227  ;;  %11643 = vmatmul.mubr.msk.bf16.vlgmr.msra.gmra.mrb[8].mxu0 %vm2494_vm8, %v17616_v43 }
 0x52b   : > { %11635 = vmatmul.mubr.msk.bf16.vlgmr.msra.gmra.mrb[0].mxu1 %vm2494_vm8, %v15452_v12  ;;  %2848 = vmatpush1.bf16.msra.mxu0 %v2830_v5  ;;  %v3240_v37 = vsel %vm1921_vm3, %v15594_v21, %v15579_v51 }
 0x52c   : > { %2712 = vmatpush1.bf16.msra.mxu1 %v17614_v35  ;;  %2949 = vmatprep.subr.bf16.mxu0 %v2828_v57 }
 0x52d   : > { %v15602_v34 = vpop.permute.xlu1 %3235  ;;  %2804 = vmatprep.mubr.bf16.mxu0 %v17617_v23  ;;  %2594 = vmatprep.mubr.bf16.mxu1 %v17617_v23 }
 0x52e   : > { %v15605_v10 = vpop.permute.xlu0 %3225 }
 0x531   : > { %v15608_v54 = vpop.permute.xlu1 %3434 }
 0x532   : > { %v15610_v52 = vpop.permute.xlu0 %3237  ;;  %11644 = vmatmul.mubr.msk.bf16.gmra.mrb[20].mxu0 %vm2494_vm8, %v17615_v38 }
 0x533   : > { %11636 = vmatmul.mubr.msk.bf16.gmra.mrb[4].mxu1 %vm2494_vm8, %v15465_v58  ;;  %2879 = vmatprep.mubr.bf16.mxu0 %v17617_v23  ;;  %v3039_v58 = vsel %vm1830_vm2, %v15575_v13, %v15581_v44  ;;  %v3244_v57 = vsel %vm1921_vm3, %v15602_v34, %v15610_v52 }
 0x534   : > { %2743 = vmatprep.mubr.bf16.mxu1 %v17617_v23 }
 0x535   : > { %v2824_v60 = vpop.permute.xlu1 %2823 }
 0x536   : > { %v15618_v63 = vpop.permute.xlu0 %3436  ;;  %v2833_v6 = vsel %vm1739_vm1, %v2824_v60, %v2826_v59  ;;  %v2832_v28 = vsel %vm1739_vm1, %v15544_v25, %v2824_v60 }
 0x537   : > { %2898 = vmatprep.subr.bf16.mxu1 %v2833_v6  ;;  %v3446_v59 = vsel %vm2012_vm4, %v15608_v54, %v15618_v63 }
 0x539   : > { %v15621_v4 = vpop.permute.xlu1 %3428 }
 0x53a   : > { %v15623_v49 = vpop.permute.xlu0 %3432  ;;  %11645 = vmatmul.mubr.msk.bf16.vlgmr.msra.gmra.mrb[0].mxu0 %vm2494_vm8, %v15555_v39 }
 0x53b   : > { %11641 = vmatmul.mubr.msk.bf16.vlgmr.msra.gmra.mrb[0].mxu1 %vm2494_vm8, %v17616_v43  ;;  %2950 = vmatpush1.bf16.msra.mxu0 %v2834_v46  ;;  %v3035_v43 = vsel %vm1830_vm2, %v15567_v30, %v15563_v40 }
 0x53c   : > { %2899 = vmatpush1.bf16.msra.mxu1 %v2832_v28  ;;  %3052 = vmatprep.subr.bf16.mxu0 %v3036_v3 }
 0x53d   : > { %v3029_v17 = vpop.permute.xlu1 %3028  ;;  %2889 = vmatprep.mubr.bf16.mxu0 %v17617_v23  ;;  %2753 = vmatprep.mubr.bf16.mxu1 %v17617_v23 }
 0x53e   : > { %v15636_v62 = vpop.permute.xlu0 %3430  ;;  %v3038_v27 = vsel %vm1830_vm2, %v3029_v17, %v15575_v13 }
 0x53f   : > { %3103 = vmatprep.subr.bf16.mxu1 %v3038_v27 }
 0x541   : > { %v15649_v8 = vpop.permute.xlu1 %3442 }
 0x542   : > { %v15641_v7 = vpop.permute.xlu0 %3440  ;;  %11646 = vmatmul.mubr.msk.bf16.gmra.mrb[24].mxu0 %vm2494_vm8, %v15551_v31 }
 0x543   : > { %11642 = vmatmul.mubr.msk.bf16.gmra.mrb[8].mxu1 %vm2494_vm8, %v17615_v38  ;;  %2981 = vmatprep.mubr.bf16.mxu0 %v17617_v23  ;;  %v3037_v38 = vsel %vm1830_vm2, %v15561_v24, %v3029_v17  ;;  %v3449_v21 = vsel %vm2012_vm4, %v15641_v7, %v15649_v8 }
 0x544   : > { %2930 = vmatprep.mubr.bf16.mxu1 %v17617_v23 }
 0x545   : > { %v15656_v45 = vpop.permute.xlu1 %3641 }
 0x546   : > { %v15651_v20 = vpop.permute.xlu0 %3639 }
 0x549   : > { %v15669_v15 = vpop.permute.xlu1 %3637 }
 0x54a   : > { %v3234_v35 = vpop.permute.xlu0 %3233  ;;  %11649 = vmatmul.mubr.msk.bf16.vlgmr.msra.gmra.mrb[8].mxu0 %vm2494_vm8, %v15555_v39 }
 0x54b   : > { %11647 = vmatmul.mubr.msk.bf16.vlgmr.msra.gmra.mrb[0].mxu1 %vm2494_vm8, %v15555_v39  ;;  %v3243_v55 = vsel %vm1921_vm3, %v3234_v35, %v15602_v34  ;;  %3053 = vmatpush1.bf16.msra.mxu0 %v3035_v43  ;;  %v3242_v50 = vsel %vm1921_vm3, %v15586_v42, %v3234_v35  ;;  %v3651_v34 = vsel %vm2120_vm5, %v15651_v20, %v15656_v45 }
 0x54c   : > { %3104 = vmatpush1.bf16.msra.mxu1 %v3037_v38  ;;  %3154 = vmatprep.subr.bf16.mxu0 %v15581_v44 }
 0x54d   : > { %3308 = vmatprep.subr.bf16.mxu1 %v3243_v55  ;;  %2991 = vmatprep.mubr.bf16.mxu0 %v17617_v23  ;;  %v15679_v33 = vpop.permute.xlu1 %3635 }
 0x54e   : > { %2940 = vmatprep.mubr.bf16.mxu1 %v17617_v23  ;;  %v15671_v19 = vpop.permute.xlu0 %3633 }
 0x551   : > { %v15695_v26 = vpop.permute.xlu1 %3645 }
 0x552   : > { %11650 = vmatmul.mubr.msk.bf16.gmra.mrb[28].mxu0 %vm2494_vm8, %v15551_v31  ;;  %v3439_v12 = vpop.permute.xlu0 %3438 }
 0x553   : > { %11648 = vmatmul.mubr.msk.bf16.gmra.mrb[12].mxu1 %vm2494_vm8, %v15551_v31  ;;  %3084 = vmatprep.mubr.bf16.mxu0 %v17617_v23  ;;  %v3448_v56 = vsel %vm2012_vm4, %v3439_v12, %v15641_v7  ;;  %v3447_v61 = vsel %vm2012_vm4, %v15618_v63, %v3439_v12 }
 0x554   : > { %3135 = vmatprep.mubr.bf16.mxu1 %v17617_v23 }
 0x555   : > { %v15701_v36 = vpop.permute.xlu1 %3844 }
 0x556   : > { %v15699_v41 = vpop.permute.xlu0 %3647 }
 0x557   : > { %v3654_v60 = vsel %vm2120_vm5, %v15695_v26, %v15699_v41 }
 0x559   : > { %v3644_v22 = vpop.permute.xlu1 %3643 }
 0x55a   : > { %11651 = vmatmul.mubr.msk.bf16.vlgmr.msra.gmra.mrb[0].mxu0 %vm2494_vm8, %v15565_v18  ;;  %v15709_v2 = vpop.permute.xlu0 %3846  ;;  %v3653_v25 = vsel %vm2120_vm5, %v3644_v22, %v15695_v26  ;;  %v3652_v11 = vsel %vm2120_vm5, %v15656_v45, %v3644_v22 }
 0x55b   : > { %11653 = vmatmul.mubr.msk.bf16.vlgmr.msra.gmra.mrb[0].mxu1 %vm2494_vm8, %v15565_v18  ;;  %3155 = vmatpush1.bf16.msra.mxu0 %v3039_v58  ;;  %v3856_v63 = vsel %vm2221_vm6, %v15701_v36, %v15709_v2 }
 0x55c   : > { %3309 = vmatpush1.bf16.msra.mxu1 %v3242_v50  ;;  %3257 = vmatprep.subr.bf16.mxu0 %v3241_v29 }
 0x55d   : > { %3513 = vmatprep.subr.bf16.mxu1 %v3448_v56  ;;  %3094 = vmatprep.mubr.bf16.mxu0 %v17617_v23  ;;  %v15729_v31 = vpop.permute.xlu1 %3838 }
 0x55e   : > { %3145 = vmatprep.mubr.bf16.mxu1 %v17617_v23  ;;  %v15714_v53 = vpop.permute.xlu0 %3842 }
 0x55f   : > { %v3855_v6 = vsel %vm2221_vm6, %v15714_v53, %v15701_v36 }
 0x561   : > { %v3849_v39 = vpop.permute.xlu1 %3848 }
 0x562   : > { %11652 = vmatmul.mubr.msk.bf16.gmra.mrb[32].mxu0 %vm2494_vm8, %v15577_v47  ;;  %v15727_v1 = vpop.permute.xlu0 %3840  ;;  %v3857_v44 = vsel %vm2221_vm6, %v15709_v2, %v3849_v39 }
 0x563   : > { %11654 = vmatmul.mubr.msk.bf16.gmra.mrb[16].mxu1 %vm2494_vm8, %v15577_v47  ;;  %3186 = vmatprep.mubr.bf16.mxu0 %v17617_v23 }
 0x564   : > { %3340 = vmatprep.mubr.bf16.mxu1 %v17617_v23 }
 0x566   : > { %v15737_v9 = vpop.permute.xlu0 %3850 }
 0x567   : > { %v3858_v24 = vsel %vm2221_vm6, %v3849_v39, %v15737_v9 }
 0x56a   : > { %11655 = vmatmul.mubr.msk.bf16.vlgmr.msra.gmra.mrb[8].mxu0 %vm2494_vm8, %v15565_v18  ;;  %v15753_v40 = vpop.permute.xlu0 %4056  ;;  %v15757_v18 = vpop.permute.xlu1 %3852 }
 0x56b   : > { %11659 = vmatmul.mubr.msk.bf16.vlgmr.msra.gmra.mrb[0].mxu1 %vm2494_vm8, %v15592_v0  ;;  %3258 = vmatpush1.bf16.msra.mxu0 %v3240_v37 }
 0x56c   : > { %3514 = vmatpush1.bf16.msra.mxu1 %v3447_v61  ;;  %3359 = vmatprep.subr.bf16.mxu0 %v15610_v52  ;;  %v15829_v52 = vld [vmem:[%s17596_s10 + $0x14] ss:$0 sps:$4 sm:$0xff]  }
 0x56d   : > { %3718 = vmatprep.subr.bf16.mxu1 %v3653_v25  ;;  %3196 = vmatprep.mubr.bf16.mxu0 %v17617_v23 }
 0x56e   : > { %3350 = vmatprep.mubr.bf16.mxu1 %v17617_v23  ;;  %v15759_v30 = vpop.permute.xlu0 %4054  ;;  %v15767_v32 = vpop.permute.xlu1 %4058 }
 0x572   : > { %11656 = vmatmul.mubr.msk.bf16.gmra.mrb[36].mxu0 %vm2494_vm8, %v15577_v47  ;;  %v15769_v13 = vpop.permute.xlu0 %4062  ;;  %v3445_v47 = vsel %vm2012_vm4, %v15623_v49, %v15608_v54  ;;  %v4061_v51 = vpop.permute.xlu1 %4060  ;;  %v3650_v54 = vsel %vm2120_vm5, %v15669_v15, %v15651_v20  ;;  %v4068_v49 = vsel %vm2322_vm7, %v15753_v40, %v15767_v32 }
 0x573   : > { %11660 = vmatmul.mubr.msk.bf16.gmra.mrb[20].mxu1 %vm2494_vm8, %v15605_v10  ;;  %3289 = vmatprep.mubr.bf16.mxu0 %v17617_v23  ;;  %v4070_v14 = vsel %vm2322_vm7, %v4061_v51, %v15769_v13  ;;  %v4069_v5 = vsel %vm2322_vm7, %v15767_v32, %v4061_v51 }
 0x574   : > { %3545 = vmatprep.mubr.bf16.mxu1 %v17617_v23 }
 0x576   : > { %v4065_v27 = vpop.permute.xlu1 %4064 }
 0x577   : > { %v4071_v38 = vsel %vm2322_vm7, %v15769_v13, %v4065_v27 }
 0x57a   : > { %11657 = vmatmul.mubr.msk.bf16.vlgmr.msra.gmra.mrb[0].mxu0 %vm2494_vm8, %v15592_v0 }
 0x57b   : > { %11665 = vmatmul.mubr.msk.bf16.vlgmr.msra.gmra.mrb[0].mxu1 %vm2494_vm8, %v15621_v4  ;;  %3360 = vmatpush1.bf16.msra.mxu0 %v3244_v57 }
 0x57c   : > { %3719 = vmatpush1.bf16.msra.mxu1 %v3652_v11  ;;  %3462 = vmatprep.subr.bf16.mxu0 %v3446_v59 }
 0x57d   : > { %3923 = vmatprep.subr.bf16.mxu1 %v3858_v24  ;;  %3299 = vmatprep.mubr.bf16.mxu0 %v17617_v23 }
 0x57e   : > { %3555 = vmatprep.mubr.bf16.mxu1 %v17617_v23 }
 0x582   : > { %11658 = vmatmul.mubr.msk.bf16.gmra.mrb[40].mxu0 %vm2494_vm8, %v15605_v10 }
 0x583   : > { %11666 = vmatmul.mubr.msk.bf16.gmra.mrb[24].mxu1 %vm2494_vm8, %v15636_v62  ;;  %3391 = vmatprep.mubr.bf16.mxu0 %v17617_v23 }
 0x584   : > { %3750 = vmatprep.mubr.bf16.mxu1 %v17617_v23 }
 0x58a   : > { %11661 = vmatmul.mubr.msk.bf16.vlgmr.msra.gmra.mrb[8].mxu0 %vm2494_vm8, %v15592_v0 }
 0x58b   : > { %11671 = vmatmul.mubr.msk.bf16.vlgmr.msra.gmra.mrb[0].mxu1 %vm2494_vm8, %v15671_v19  ;;  %3463 = vmatpush1.bf16.msra.mxu0 %v3445_v47 }
 0x58c   : > { %3924 = vmatpush1.bf16.msra.mxu1 %v3857_v44  ;;  %3564 = vmatprep.subr.bf16.mxu0 %v15649_v8 }
 0x58d   : > { %4135 = vmatprep.subr.bf16.mxu1 %v4070_v14  ;;  %3401 = vmatprep.mubr.bf16.mxu0 %v17617_v23 }
 0x58e   : > { %3760 = vmatprep.mubr.bf16.mxu1 %v17617_v23 }
 0x592   : > { %11662 = vmatmul.mubr.msk.bf16.gmra.mrb[44].mxu0 %vm2494_vm8, %v15605_v10  ;;  %v15816_v10 = vld [vmem:[%s17596_s10 + $0x4] ss:$8 sps:$4 sm:$0xff]   ;;  %s17635_s10 = sld [smem:[#allocation61_spill]] }
 0x593   : > { %11672 = vmatmul.mubr.msk.bf16.gmra.mrb[28].mxu1 %vm2494_vm8, %v15679_v33  ;;  %3494 = vmatprep.mubr.bf16.mxu0 %v17617_v23 }
 0x594   : > { %3955 = vmatprep.mubr.bf16.mxu1 %v17617_v23 }
 0x595   : > { %v15791_v42 = vpop.f32.mrb[4].mxu0 }
 0x596   : > { %v15793_v16 = vpop.f32.mrb[5].mxu0 }
 0x597   : > { %v2549_v48 = vpop.f32.mrb[6].mxu0 }
 0x598   : > { %v2550_v0 = vpop.f32.mrb[7].mxu0 }
 0x59a   : > { %11663 = vmatmul.mubr.msk.bf16.vlgmr.msra.gmra.mrb[0].mxu0 %vm2494_vm8, %v15621_v4 }
 0x59b   : > { %11677 = vmatmul.mubr.msk.bf16.vlgmr.msra.gmra.mrb[0].mxu1 %vm2494_vm8, %v15729_v31  ;;  %3565 = vmatpush1.bf16.msra.mxu0 %v3449_v21 }
 0x59c   : > { %4136 = vmatpush1.bf16.msra.mxu1 %v4069_v5  ;;  %3667 = vmatprep.subr.bf16.mxu0 %v3651_v34 }
 0x59d   : > { %3504 = vmatprep.mubr.bf16.mxu0 %v17617_v23  ;;  %3965 = vmatprep.mubr.bf16.mxu1 %v17617_v23 }
 0x5a2   : > { %11664 = vmatmul.mubr.msk.bf16.gmra.mrb[48].mxu0 %vm2494_vm8, %v15636_v62 }
 0x5a3   : > { %11678 = vmatmul.mubr.msk.bf16.gmra.mrb[32].mxu1 %vm2494_vm8, %v15727_v1  ;;  %3596 = vmatprep.mubr.bf16.mxu0 %v17617_v23 }
 0x5a4   : > { %4167 = vmatprep.mubr.bf16.mxu1 %v17617_v23 }
 0x5aa   : > { %11667 = vmatmul.mubr.msk.bf16.vlgmr.msra.gmra.mrb[8].mxu0 %vm2494_vm8, %v15621_v4  ;;  %v3859_v4 = vsel %vm2221_vm6, %v15737_v9, %v15757_v18 }
 0x5ab   : > { %11685 = vmatmul.mubr.msk.bf16.vlgmr.msra.gmra.mrb[0].mxu1 %vm2494_vm8, %v15816_v10  ;;  %3668 = vmatpush1.bf16.msra.mxu0 %v3650_v54 }
 0x5ac   : > { %3606 = vmatprep.mubr.bf16.mxu0 %v17617_v23  ;;  %3769 = vmatprep.subr.bf16.mxu0 %v15699_v41 }
 0x5ad   : > { %4177 = vmatprep.mubr.bf16.mxu1 %v17617_v23 }
 0x5b2   : > { %11668 = vmatmul.mubr.msk.bf16.gmra.mrb[52].mxu0 %vm2494_vm8, %v15636_v62  ;;  %v4067_v62 = vsel %vm2322_vm7, %v15759_v30, %v15753_v40 }
 0x5b3   : > { %11686 = vmatmul.mubr.msk.bf16.gmra.mrb[36].mxu1 %vm2494_vm8, %v15829_v52  ;;  %3699 = vmatprep.mubr.bf16.mxu0 %v17617_v23 }
 0x5b4   : > { %4509 = vmatprep.mubr.bf16.mxu1 %v17617_v23 }
 0x5ba   : > { %11669 = vmatmul.mubr.msk.bf16.vlgmr.msra.gmra.mrb[0].mxu0 %vm2494_vm8, %v15671_v19 }
 0x5bb   : > { %3770 = vmatpush1.bf16.msra.mxu0 %v3654_v60  ;;  %3709 = vmatprep.mubr.bf16.mxu0 %v17617_v23 }
 0x5bc   : > { %3872 = vmatprep.subr.bf16.mxu0 %v3856_v63 }
 0x5c2   : > { %11670 = vmatmul.mubr.msk.bf16.gmra.mrb[56].mxu0 %vm2494_vm8, %v15679_v33 }
 0x5c3   : > { %3801 = vmatprep.mubr.bf16.mxu0 %v17617_v23 }
 0x5ca   : > { %11673 = vmatmul.mubr.msk.bf16.vlgmr.msra.gmra.mrb[8].mxu0 %vm2494_vm8, %v15671_v19 }
 0x5cb   : > { %3873 = vmatpush1.bf16.msra.mxu0 %v3855_v6  ;;  %3811 = vmatprep.mubr.bf16.mxu0 %v17617_v23 }
 0x5cc   : > { %3974 = vmatprep.subr.bf16.mxu0 %v15757_v18 }
 0x5d2   : > { %11674 = vmatmul.mubr.msk.bf16.gmra.mrb[60].mxu0 %vm2494_vm8, %v15679_v33 }
 0x5d3   : > { %3904 = vmatprep.mubr.bf16.mxu0 %v17617_v23 }
 0x5da   : > { %11675 = vmatmul.mubr.msk.bf16.vlgmr.msra.gmra.mrb[0].mxu0 %vm2494_vm8, %v15729_v31 }
 0x5db   : > { %3975 = vmatpush1.bf16.msra.mxu0 %v3859_v4  ;;  %3914 = vmatprep.mubr.bf16.mxu0 %v17617_v23 }
 0x5dc   : > { %4084 = vmatprep.subr.bf16.mxu0 %v4068_v49 }
 0x5e2   : > { %11676 = vmatmul.mubr.msk.bf16.gmra.mrb[64].mxu0 %vm2494_vm8, %v15727_v1 }
 0x5e3   : > { %4006 = vmatprep.mubr.bf16.mxu0 %v17617_v23 }
 0x5e5   : > { %v2647_v46 = vpop.f32.mrb[12].mxu0 }
 0x5e6   : > { %v2649_v28 = vpop.f32.mrb[13].mxu0 }
 0x5e7   : > { %v2651_v3 = vpop.f32.mrb[14].mxu0 }
 0x5e8   : > { %v2652_v17 = vpop.f32.mrb[15].mxu0 }
 0x5ea   : > { %11679 = vmatmul.mubr.msk.bf16.vlgmr.msra.gmra.mrb[8].mxu0 %vm2494_vm8, %v15729_v31 }
 0x5eb   : > { %4085 = vmatpush1.bf16.msra.mxu0 %v4067_v62  ;;  %4016 = vmatprep.mubr.bf16.mxu0 %v17617_v23 }
 0x5ec   : > { %4186 = vmatprep.subr.bf16.mxu0 %v4065_v27 }
 0x5f2   : > { %11680 = vmatmul.mubr.msk.bf16.gmra.mrb[68].mxu0 %vm2494_vm8, %v15727_v1 }
 0x5f3   : > { %4116 = vmatprep.mubr.bf16.mxu0 %v17617_v23 }
 0x5f5   : > { %v2704_v7 = vpop.f32.mrb[16].mxu0 }
 0x5f6   : > { %v2705_v8 = vadd.f32 %v2704_v7, %v15791_v42  ;;  %v2706_v20 = vpop.f32.mrb[17].mxu0 }
 0x5f7   : > { %v2707_v35 = vadd.f32 %v2706_v20, %v15793_v16  ;;  %v2708_v43 = vpop.f32.mrb[18].mxu0 }
 0x5f8   : > { %v2709_v45 = vpop.f32.mrb[19].mxu0 }
 0x5fa   : > { %11683 = vmatmul.mubr.msk.bf16.vlgmr.msra.gmra.mrb[0].mxu0 %vm2494_vm8, %v15816_v10 }
 0x5fb   : > { %4187 = vmatpush1.bf16.msra.mxu0 %v4071_v38  ;;  %4126 = vmatprep.mubr.bf16.mxu0 %v17617_v23 }
 0x602   : > { %11684 = vmatmul.mubr.msk.bf16.gmra.mrb[72].mxu0 %vm2494_vm8, %v15829_v52 }
 0x603   : > { %4218 = vmatprep.mubr.bf16.mxu0 %v17617_v23 }
 0x605   : > { %v2806_v55 = vpop.f32.mrb[20].mxu0 }
 0x606   : > { %v2596_v15 = vpop.f32.mrb[4].mxu1  ;;  %v2807_v19 = vadd.f32 %v2806_v55, %v2647_v46  ;;  %v2808_v33 = vpop.f32.mrb[21].mxu0 }
 0x607   : > { %v2598_v12 = vpop.f32.mrb[5].mxu1  ;;  %v2809_v58 = vadd.f32 %v2808_v33, %v2649_v28  ;;  %v2810_v29 = vpop.f32.mrb[22].mxu0 }
 0x608   : > { %v2600_v50 = vpop.f32.mrb[6].mxu1  ;;  %v2811_v26 = vpop.f32.mrb[23].mxu0 }
 0x609   : > { %v2601_v56 = vpop.f32.mrb[7].mxu1 }
 0x60a   : > { %11687 = vmatmul.mubr.msk.bf16.vlgmr.msra.gmra.mrb[8].mxu0 %vm2494_vm8, %v15816_v10 }
 0x60b   : > { %4228 = vmatprep.mubr.bf16.mxu0 %v17617_v23 }
 0x612   : > { %11688 = vmatmul.mubr.msk.bf16.gmra.mrb[76].mxu0 %vm2494_vm8, %v15829_v52 }
 0x613   : > { %6833 = vmatprep.mubr.bf16.mxu0 %v17617_v23 }
 0x615   : > { %v2891_v41 = vpop.f32.mrb[24].mxu0 }
 0x616   : > { %v2755_v36 = vpop.f32.mrb[8].mxu1  ;;  %v3012_v2 = vadd.f32 %v2891_v41, %v2705_v8  ;;  %v2893_v37 = vpop.f32.mrb[25].mxu0 }
 0x617   : > { %v2756_v22 = vadd.f32 %v2755_v36, %v2596_v15  ;;  %v2757_v53 = vpop.f32.mrb[9].mxu1  ;;  %v3013_v61 = vadd.f32 %v2893_v37, %v2707_v35  ;;  %v2895_v1 = vpop.f32.mrb[26].mxu0 }
 0x618   : > { %v2758_v25 = vadd.f32 %v2757_v53, %v2598_v12  ;;  %v2759_v31 = vpop.f32.mrb[10].mxu1  ;;  %v2896_v9 = vpop.f32.mrb[27].mxu0 }
 0x619   : > { %v2760_v39 = vpop.f32.mrb[11].mxu1  ;;  %v15896_v31 = vpop.permute.xlu0 %4260 }
 0x61a   : > { %v15898_v9 = vpop.permute.xlu1 %4265 }
 0x61d   : > { %v15900_v39 = vpop.permute.xlu0 %4270 }
 0x625   : > { %v2993_v57 = vpop.f32.mrb[28].mxu0 }
 0x626   : > { %v2942_v11 = vpop.f32.mrb[12].mxu1  ;;  %v3016_v59 = vadd.f32 %v2993_v57, %v2807_v19  ;;  %v2995_v40 = vpop.f32.mrb[29].mxu0 }
 0x627   : > { %v3014_v24 = vadd.f32 %v2942_v11, %v2756_v22  ;;  %v2944_v18 = vpop.f32.mrb[13].mxu1  ;;  %v3017_v30 = vadd.f32 %v2995_v40, %v2809_v58  ;;  %v2997_v13 = vpop.f32.mrb[30].mxu0 }
 0x628   : > { %v3015_v32 = vadd.f32 %v2944_v18, %v2758_v25  ;;  %v2946_v47 = vpop.f32.mrb[14].mxu1  ;;  %v2998_v51 = vpop.f32.mrb[31].mxu0 }
 0x629   : > { %v2947_v44 = vpop.f32.mrb[15].mxu1 }
 0x635   : > { %v3096_v14 = vpop.f32.mrb[32].mxu0 }
 0x636   : > { %v3147_v42 = vpop.f32.mrb[16].mxu1  ;;  %v3217_v16 = vadd.f32 %v3096_v14, %v3012_v2  ;;  %v3098_v48 = vpop.f32.mrb[33].mxu0 }
 0x637   : > { %v3219_v0 = vadd.f32 %v3147_v42, %v3014_v24  ;;  %v3149_v21 = vpop.f32.mrb[17].mxu1  ;;  %v3218_v5 = vadd.f32 %v3098_v48, %v3013_v61  ;;  %v3100_v34 = vpop.f32.mrb[34].mxu0 }
 0x638   : > { %v3220_v10 = vadd.f32 %v3149_v21, %v3015_v32  ;;  %v3151_v54 = vpop.f32.mrb[18].mxu1  ;;  %v3101_v52 = vpop.f32.mrb[35].mxu0 }
 0x639   : > { %v3152_v60 = vpop.f32.mrb[19].mxu1  ;;  %v15902_v14 = vpop.permute.xlu1 %4314 }
 0x645   : > { %v3198_v63 = vpop.f32.mrb[36].mxu0 }
 0x646   : > { %v3352_v6 = vpop.f32.mrb[20].mxu1  ;;  %v3221_v4 = vadd.f32 %v3198_v63, %v3016_v59  ;;  %v3200_v49 = vpop.f32.mrb[37].mxu0 }
 0x647   : > { %v3424_v46 = vadd.f32 %v3352_v6, %v3219_v0  ;;  %v3354_v28 = vpop.f32.mrb[21].mxu1  ;;  %v3222_v3 = vadd.f32 %v3200_v49, %v3017_v30  ;;  %v3202_v17 = vpop.f32.mrb[38].mxu0 }
 0x648   : > { %v3425_v62 = vadd.f32 %v3354_v28, %v3220_v10  ;;  %v3356_v27 = vpop.f32.mrb[22].mxu1  ;;  %v3203_v7 = vpop.f32.mrb[39].mxu0 }
 0x649   : > { %v3357_v8 = vpop.f32.mrb[23].mxu1 }
 0x655   : > { %v3301_v20 = vpop.f32.mrb[40].mxu0 }
 0x656   : > { %v3557_v35 = vpop.f32.mrb[24].mxu1  ;;  %v3422_v43 = vadd.f32 %v3301_v20, %v3217_v16  ;;  %v3303_v45 = vpop.f32.mrb[41].mxu0 }
 0x657   : > { %v3629_v38 = vadd.f32 %v3557_v35, %v3424_v46  ;;  %v3559_v55 = vpop.f32.mrb[25].mxu1  ;;  %v3423_v15 = vadd.f32 %v3303_v45, %v3218_v5  ;;  %v3305_v19 = vpop.f32.mrb[42].mxu0 }
 0x658   : > { %v3630_v33 = vadd.f32 %v3559_v55, %v3425_v62  ;;  %v3561_v12 = vpop.f32.mrb[26].mxu1  ;;  %v3306_v58 = vpop.f32.mrb[43].mxu0 }
 0x659   : > { %v3562_v50 = vpop.f32.mrb[27].mxu1  ;;  %v15904_v16 = vpop.permute.xlu0 %4319 }
 0x65a   : > { %v15912_v46 = vpop.permute.xlu1 %4350 }
 0x65d   : > { %v15914_v28 = vpop.permute.xlu0 %4355 }
 0x665   : > { %v3403_v29 = vpop.f32.mrb[44].mxu0 }
 0x666   : > { %v3762_v56 = vpop.f32.mrb[28].mxu1  ;;  %v3426_v26 = vadd.f32 %v3403_v29, %v3221_v4  ;;  %v3405_v41 = vpop.f32.mrb[45].mxu0 }
 0x667   : > { %v3834_v36 = vadd.f32 %v3762_v56, %v3629_v38  ;;  %v3764_v2 = vpop.f32.mrb[29].mxu1  ;;  %v3427_v22 = vadd.f32 %v3405_v41, %v3222_v3  ;;  %v3407_v37 = vpop.f32.mrb[46].mxu0 }
 0x668   : > { %v3835_v53 = vadd.f32 %v3764_v2, %v3630_v33  ;;  %v3766_v61 = vpop.f32.mrb[30].mxu1  ;;  %v3408_v25 = vpop.f32.mrb[47].mxu0 }
 0x669   : > { %v3767_v1 = vpop.f32.mrb[31].mxu1 }
 0x675   : > { %v3506_v57 = vpop.f32.mrb[48].mxu0 }
 0x676   : > { %v3967_v11 = vpop.f32.mrb[32].mxu1  ;;  %v3627_v59 = vadd.f32 %v3506_v57, %v3422_v43  ;;  %v3508_v24 = vpop.f32.mrb[49].mxu0 }
 0x677   : > { %v4039_v40 = vadd.f32 %v3967_v11, %v3834_v36  ;;  %v3969_v18 = vpop.f32.mrb[33].mxu1  ;;  %v3628_v30 = vadd.f32 %v3508_v24, %v3423_v15  ;;  %v3510_v32 = vpop.f32.mrb[50].mxu0 }
 0x678   : > { %v4040_v13 = vadd.f32 %v3969_v18, %v3835_v53  ;;  %v3971_v47 = vpop.f32.mrb[34].mxu1  ;;  %v3511_v51 = vpop.f32.mrb[51].mxu0 }
 0x679   : > { %v3972_v44 = vpop.f32.mrb[35].mxu1 }
 0x67e   : > { %v4169_v42 = vpop.f32.mrb[0].mxu1 }
 0x67f   : > { %v4275_v48 = vadd.f32 %v15896_v31, %v4169_v42  ;;  %v4171_v0 = vpop.f32.mrb[1].mxu1 }
 0x680   : > { %v4276_v21 = vadd.f32 %v15896_v31, %v4171_v0  ;;  %v4173_v5 = vpop.f32.mrb[2].mxu1 }
 0x681   : > { %v4293_v34 = vmax.f32 %v4275_v48, 0.0  ;;  %v4281_v10 = vadd.f32 %v15898_v9, %v4173_v5  ;;  %v4175_v54 = vpop.f32.mrb[3].mxu1 }
 0x682   : > { %v4294_v52 = vmax.f32 %v4276_v21, 0.0  ;;  %v4282_v60 = vadd.f32 %v15898_v9, %v4175_v54 }
 0x683   : > { %v4329_v63 = vmul.f32 %v15902_v14, %v4293_v34  ;;  %v4299_v6 = vmax.f32 %v4281_v10, 0.0 }
 0x684   : > { %v4330_v4 = vmul.f32 %v15902_v14, %v4294_v52  ;;  %v4300_v49 = vmax.f32 %v4282_v60, 0.0 }
 0x685   : > { %v4335_v3 = vmul.f32 %v15904_v16, %v4299_v6  ;;  %v3608_v62 = vpop.f32.mrb[52].mxu0  ;;  %v4365_v7 = vadd.f32 %v15912_v46, %v4329_v63 }
 0x686   : > { %v4336_v17 = vmul.f32 %v15904_v16, %v4300_v49  ;;  %v4179_v27 = vpop.f32.mrb[36].mxu1  ;;  %v3631_v20 = vadd.f32 %v3608_v62, %v3426_v26  ;;  %v3610_v35 = vpop.f32.mrb[53].mxu0  ;;  %v4366_v38 = vadd.f32 %v15912_v46, %v4330_v4 }
 0x687   : > { %v4371_v8 = vadd.f32 %v15914_v28, %v4335_v3  ;;  %v4251_v43 = vadd.f32 %v4179_v27, %v4039_v40  ;;  %v4181_v45 = vpop.f32.mrb[37].mxu1  ;;  %v3632_v15 = vadd.f32 %v3610_v35, %v3427_v22  ;;  %v3612_v19 = vpop.f32.mrb[54].mxu0 }
 0x688   : > { %v4372_v55 = vadd.f32 %v15914_v28, %v4336_v17  ;;  %v15922_v33 = vadd.f32 %v4181_v45, %v4040_v13  ;;  %v4183_v12 = vpop.f32.mrb[38].mxu1  ;;  %v3613_v50 = vpop.f32.mrb[55].mxu0 }
 0x689   : > { %v15924_v58 = vpack.c.bf16 %v4371_v8, %v4365_v7  ;;  %v4184_v29 = vpop.f32.mrb[39].mxu1  ;;  %v4287_v62 = vadd.f32 %v15900_v39, %v4251_v43 }
 0x68a   : > { %v15926_v56 = vpack.c.bf16 %v4372_v55, %v4366_v38 }
 0x68b   : > { %4425 = vrot.lane.b32.xlu0 %v15924_v58, %s17456_s4  ;;  %v4305_v50 = vmax.f32 %v4287_v62, 0.0 }
 0x695   : > { %v3711_v26 = vpop.f32.mrb[56].mxu0 }
 0x696   : > { %v3832_v41 = vadd.f32 %v3711_v26, %v3627_v59  ;;  %v3713_v36 = vpop.f32.mrb[57].mxu0 }
 0x697   : > { %v3833_v2 = vadd.f32 %v3713_v36, %v3628_v30  ;;  %v3715_v37 = vpop.f32.mrb[58].mxu0 }
 0x698   : > { %v3716_v53 = vpop.f32.mrb[59].mxu0  ;;  %v15955_v37 = vpop.permute.xlu1 %4324 }
 0x6a5   : > { %v3813_v22 = vpop.f32.mrb[60].mxu0 }
 0x6a6   : > { %v3836_v61 = vadd.f32 %v3813_v22, %v3631_v20  ;;  %v3815_v25 = vpop.f32.mrb[61].mxu0  ;;  %v4341_v22 = vmul.f32 %v15955_v37, %v4305_v50  ;;  %v13026_v50 = vld [vmem:[%s17623_s11 + $0x4] ss:$8 sps:$4 sm:$0xff]  }
 0x6a7   : > { %v3837_v1 = vadd.f32 %v3815_v25, %v3632_v15  ;;  %v3817_v57 = vpop.f32.mrb[62].mxu0  ;;  %v15959_v25 = vpop.permute.xlu0 %4360 }
 0x6a8   : > { %v3818_v11 = vpop.f32.mrb[63].mxu0 }
 0x6b5   : > { %v3916_v24 = vpop.f32.mrb[64].mxu0 }
 0x6b6   : > { %v4037_v40 = vadd.f32 %v3916_v24, %v3832_v41  ;;  %v3918_v18 = vpop.f32.mrb[65].mxu0 }
 0x6b7   : > { %v4038_v32 = vadd.f32 %v3918_v18, %v3833_v2  ;;  %v3920_v13 = vpop.f32.mrb[66].mxu0 }
 0x6b8   : > { %v3921_v47 = vpop.f32.mrb[67].mxu0 }
 0x6c5   : > { %v4018_v51 = vpop.f32.mrb[68].mxu0 }
 0x6c6   : > { %v15930_v44 = vadd.f32 %v4018_v51, %v3836_v61  ;;  %v4020_v59 = vpop.f32.mrb[69].mxu0  ;;  %v4377_v51 = vadd.f32 %v15959_v25, %v4341_v22 }
 0x6c7   : > { %v15932_v42 = vadd.f32 %v4020_v59, %v3837_v1  ;;  %v4022_v30 = vpop.f32.mrb[70].mxu0  ;;  %v4288_v1 = vadd.f32 %v15900_v39, %v15922_v33 }
 0x6c8   : > { %v4023_v48 = vpop.f32.mrb[71].mxu0 }
 0x6cd   : > { %v4118_v0 = vpop.f32.mrb[0].mxu0 }
 0x6ce   : > { %v4273_v21 = vadd.f32 %v15896_v31, %v4118_v0  ;;  %v4120_v5 = vpop.f32.mrb[1].mxu0  ;;  %v4306_v0 = vmax.f32 %v4288_v1, 0.0 }
 0x6cf   : > { %v4274_v34 = vadd.f32 %v15896_v31, %v4120_v5  ;;  %v4122_v10 = vpop.f32.mrb[2].mxu0 }
 0x6d0   : > { %v4291_v54 = vmax.f32 %v4273_v21, 0.0  ;;  %v4279_v52 = vadd.f32 %v15898_v9, %v4122_v10  ;;  %v4124_v60 = vpop.f32.mrb[3].mxu0 }
 0x6d1   : > { %v4292_v63 = vmax.f32 %v4274_v34, 0.0  ;;  %v4280_v6 = vadd.f32 %v15898_v9, %v4124_v60  ;;  %v15984_v60 = vld [vmem:[%s17623_s11] ss:$8 sps:$4 sm:$0xff]  }
 0x6d2   : > { %v4327_v4 = vmul.f32 %v15902_v14, %v4291_v54  ;;  %v4297_v49 = vmax.f32 %v4279_v52, 0.0 }
 0x6d3   : > { %v4328_v3 = vmul.f32 %v15902_v14, %v4292_v63  ;;  %v4298_v17 = vmax.f32 %v4280_v6, 0.0  ;;  %v15986_v63 = vpack.c.bf16 %v4377_v51, %v4377_v51 }
 0x6d4   : > { %v4333_v27 = vmul.f32 %v15904_v16, %v4297_v49  ;;  %v4363_v20 = vadd.f32 %v15912_v46, %v4327_v4 }
 0x6d5   : > { %v4334_v7 = vmul.f32 %v15904_v16, %v4298_v17  ;;  %v4128_v8 = vpop.f32.mrb[72].mxu0  ;;  %v4364_v55 = vadd.f32 %v15912_v46, %v4328_v3 }
 0x6d6   : > { %v4369_v35 = vadd.f32 %v15914_v28, %v4333_v27  ;;  %v4249_v45 = vadd.f32 %v4128_v8, %v4037_v40  ;;  %v4130_v38 = vpop.f32.mrb[73].mxu0 }
 0x6d7   : > { %v4370_v15 = vadd.f32 %v15914_v28, %v4334_v7  ;;  %v4250_v19 = vadd.f32 %v4130_v38, %v4038_v32  ;;  %v4132_v12 = vpop.f32.mrb[74].mxu0 }
 0x6d8   : > { %v15947_v29 = vpack.c.bf16 %v4369_v35, %v4363_v20  ;;  %v4285_v43 = vadd.f32 %v15900_v39, %v4249_v45  ;;  %v4133_v26 = vpop.f32.mrb[75].mxu0  ;;  %v13024_v12 = vld [vmem:[%s17623_s11] ss:$8 sps:$4 sm:$0xff]  }
 0x6d9   : > { %v15950_v41 = vpack.c.bf16 %v4370_v15, %v4364_v55  ;;  %v4286_v36 = vadd.f32 %v15900_v39, %v4250_v19  ;;  %v13029_v26 = vld [vmem:[%s17623_s11 + $0x14] ss:$8 sps:$4 sm:$0xff]  }
 0x6da   : > { %v4303_v2 = vmax.f32 %v4285_v43, 0.0  ;;  %4421 = vrot.lane.b32.xlu1 %v15947_v29, %s17456_s4  ;;  %v13027_v43 = vld [vmem:[%s17623_s11 + $0x10] ss:$8 sps:$4 sm:$0xff]  }
 0x6db   : > { %v4304_v53 = vmax.f32 %v4286_v36, 0.0 }
 0x6dc   : > { %v4339_v61 = vmul.f32 %v15955_v37, %v4303_v2 }
 0x6dd   : > { %v4340_v57 = vmul.f32 %v15955_v37, %v4304_v53  ;;  %v4220_v11 = vpop.f32.mrb[8].mxu0 }
 0x6de   : > { %v4375_v24 = vadd.f32 %v15959_v25, %v4339_v61  ;;  %v4277_v40 = vadd.f32 %v15896_v31, %v4220_v11  ;;  %v4222_v18 = vpop.f32.mrb[9].mxu0  ;;  %4423 = vrot.lane.b32.xlu1 %v15950_v41, %s17456_s4 }
 0x6df   : > { %v4376_v32 = vadd.f32 %v15959_v25, %v4340_v57  ;;  %v4278_v13 = vadd.f32 %v15896_v31, %v4222_v18  ;;  %v4224_v47 = vpop.f32.mrb[10].mxu0 }
 0x6e0   : > { %v15971_v33 = vpack.c.bf16 %v4375_v24, %v4375_v24  ;;  %v4295_v59 = vmax.f32 %v4277_v40, 0.0  ;;  %v4283_v30 = vadd.f32 %v15898_v9, %v4224_v47  ;;  %v4226_v48 = vpop.f32.mrb[11].mxu0 }
 0x6e1   : > { %v15974_v21 = vpack.c.bf16 %v4376_v32, %v4376_v32  ;;  %v4296_v5 = vmax.f32 %v4278_v13, 0.0  ;;  %v4284_v34 = vadd.f32 %v15898_v9, %v4226_v48  ;;  %v4342_v9 = vmul.f32 %v15955_v37, %v4306_v0 }
 0x6e2   : > { %v4331_v10 = vmul.f32 %v15902_v14, %v4295_v59  ;;  %v4301_v54 = vmax.f32 %v4283_v30, 0.0  ;;  %4431 = vrot.lane.b32.xlu0 %v15971_v33, %s17456_s4  ;;  %v16148_v30 = vld [vmem:[%s17623_s11 + $0x4] ss:$8 sps:$4 sm:$0xff]  }
 0x6e3   : > { %v4332_v31 = vmul.f32 %v15902_v14, %v4296_v5  ;;  %v4302_v52 = vmax.f32 %v4284_v34, 0.0  ;;  %4433 = vrot.lane.b32.xlu1 %v15974_v21, %s17456_s4  ;;  %v4378_v45 = vadd.f32 %v15959_v25, %v4342_v9 }
 0x6e4   : > { %v4337_v6 = vmul.f32 %v15904_v16, %v4301_v54  ;;  %v4367_v3 = vadd.f32 %v15912_v46, %v4331_v10 }
 0x6e5   : > { %v4338_v4 = vmul.f32 %v15904_v16, %v4302_v52  ;;  %v4230_v49 = vpop.f32.mrb[76].mxu0  ;;  %v4368_v27 = vadd.f32 %v15912_v46, %v4332_v31  ;;  %v16017_v55 = vpack.c.bf16 %v4378_v45, %v4378_v45  ;;  %v16163_v31 = vld [vmem:[%s17623_s11 + $0x14] ss:$8 sps:$4 sm:$0xff]  }
 0x6e6   : > { %v4373_v17 = vadd.f32 %v15914_v28, %v4337_v6  ;;  %v4253_v14 = vadd.f32 %v4230_v49, %v15930_v44  ;;  %v4232_v62 = vpop.f32.mrb[77].mxu0  ;;  %4435 = vrot.lane.b32.xlu0 %v15986_v63, %s17456_s4  ;;  %v4645_v49 = vsel %vm4461_vm9, %v15986_v63, 0 }
 0x6e7   : > { %v4374_v7 = vadd.f32 %v15914_v28, %v4338_v4  ;;  %v15999_v8 = vadd.f32 %v4232_v62, %v15932_v42  ;;  %4407 = vrot.lane.b32.xlu1 %v15984_v60, %s17454_s9  ;;  %v4234_v16 = vpop.f32.mrb[78].mxu0  ;;  %v16012_v28 = vld [vmem:[%s17623_s11 + $0x10] ss:$8 sps:$4 sm:$0xff]   ;;  %s17480_s11 = smov 14  }
 0x6e8   : > { %v16003_v20 = vpack.c.bf16 %v4373_v17, %v4367_v3  ;;  %v4289_v44 = vadd.f32 %v15900_v39, %v4253_v14  ;;  %v4235_v35 = vpop.f32.mrb[79].mxu0 }
 0x6e9   : > { %v16007_v38 = vpack.c.bf16 %v4374_v7, %v4368_v27  ;;  %v4290_v5 = vadd.f32 %v15900_v39, %v15999_v8 }
 0x6ea   : > { %v4307_v46 = vmax.f32 %v4289_v44, 0.0  ;;  %4427 = vrot.lane.b32.xlu0 %v15926_v56, %s17456_s4 }
 0x6eb   : > { %4429 = vrot.lane.b32.xlu1 %v16003_v20, %s17456_s4  ;;  %v4308_v39 = vmax.f32 %v4290_v5, 0.0 }
 0x6ec   : > { %v4343_v42 = vmul.f32 %v15955_v37, %v4307_v46 }
 0x6ed   : > { %v4344_v6 = vmul.f32 %v15955_v37, %v4308_v39 }
 0x6ee   : > { %v4379_v15 = vadd.f32 %v15959_v25, %v4343_v42  ;;  %4409 = vrot.lane.b32.xlu0 %v16012_v28, %s17454_s9  ;;  %s17625_s9 = smov 80  }
 0x6ef   : > { %4437 = vrot.lane.b32.xlu1 %v16017_v55, %s17456_s4  ;;  %v4380_v9 = vadd.f32 %v15959_v25, %v4344_v6  ;;  %v4639_v25 = vsel %vm4461_vm9, %v15971_v33, 0 }
 0x6f0   : > { %v16024_v19 = vpack.c.bf16 %v4379_v15, %v4379_v15 }
 0x6f1   : > { %v16189_v4 = vpack.c.bf16 %v4380_v9, %v4380_v9 }
 0x6f2   : > { %4439 = vrot.lane.b32.xlu0 %v16024_v19, %s17456_s4  ;;  %s17626_s4 = smov 100  }
 0x6f3   : > { %4814 = vrot.lane.b32.xlu1 %v15950_v41, %s17624_s0 }
 0x6f6   : > { %4816 = vrot.lane.b32.xlu0 %v15924_v58, %s17624_s0 }
 0x6f7   : > { %4812 = vrot.lane.b32.xlu1 %v15947_v29, %s17624_s0 }
 0x6fa   : > { %4822 = vrot.lane.b32.xlu0 %v15971_v33, %s17624_s0 }
 0x6fb   : > { %4824 = vrot.lane.b32.xlu1 %v15974_v21, %s17624_s0 }
 0x6fd   : > { %v4426_v2 = vpop.permute.xlu0 %4425 }
 0x6fe   : > { %4826 = vrot.lane.b32.xlu0 %v15986_v63, %s17624_s0 }
 0x6ff   : > { %4808 = vrot.lane.b32.xlu1 %v15984_v60, %s17625_s9 }
 0x702   : > { %4818 = vrot.lane.b32.xlu0 %v15926_v56, %s17624_s0 }
 0x703   : > { %4820 = vrot.lane.b32.xlu1 %v16003_v20, %s17624_s0 }
 0x706   : > { %4810 = vrot.lane.b32.xlu0 %v16012_v28, %s17625_s9 }
 0x707   : > { %4828 = vrot.lane.b32.xlu1 %v16017_v55, %s17624_s0 }
 0x70a   : > { %4830 = vrot.lane.b32.xlu0 %v16024_v19, %s17624_s0 }
 0x70b   : > { %5047 = vrot.lane.b32.xlu1 %v15950_v41, %s17626_s4 }
 0x70e   : > { %5049 = vrot.lane.b32.xlu0 %v15924_v58, %s17626_s4 }
 0x70f   : > { %5045 = vrot.lane.b32.xlu1 %v15947_v29, %s17626_s4 }
 0x712   : > { %5055 = vrot.lane.b32.xlu0 %v15971_v33, %s17626_s4 }
 0x713   : > { %5057 = vrot.lane.b32.xlu1 %v15974_v21, %s17626_s4 }
 0x716   : > { %5059 = vrot.lane.b32.xlu0 %v15986_v63, %s17626_s4 }
 0x717   : > { %5041 = vrot.lane.b32.xlu1 %v15984_v60, %s17460_s1 }
 0x71a   : > { %5051 = vrot.lane.b32.xlu0 %v15926_v56, %s17626_s4 }
 0x71b   : > { %5053 = vrot.lane.b32.xlu1 %v16003_v20, %s17626_s4 }
 0x71e   : > { %5043 = vrot.lane.b32.xlu0 %v16012_v28, %s17460_s1  ;;  %s17628_s1 = smov 32  }
 0x71f   : > { %5061 = vrot.lane.b32.xlu1 %v16017_v55, %s17626_s4 }
 0x722   : > { %5063 = vrot.lane.b32.xlu0 %v16024_v19, %s17626_s4 }
 0x723   : > { %5280 = vrot.lane.b32.xlu1 %v15950_v41, %s17627_s2 }
 0x726   : > { %5282 = vrot.lane.b32.xlu0 %v15924_v58, %s17627_s2 }
 0x727   : > { %5278 = vrot.lane.b32.xlu1 %v15947_v29, %s17627_s2 }
 0x72a   : > { %5288 = vrot.lane.b32.xlu0 %v15971_v33, %s17627_s2 }
 0x72b   : > { %5290 = vrot.lane.b32.xlu1 %v15974_v21, %s17627_s2 }
 0x72e   : > { %5292 = vrot.lane.b32.xlu0 %v15986_v63, %s17627_s2 }
 0x72f   : > { %5274 = vrot.lane.b32.xlu1 %v15984_v60, %s17628_s1 }
 0x732   : > { %5284 = vrot.lane.b32.xlu0 %v15926_v56, %s17627_s2 }
 0x733   : > { %5286 = vrot.lane.b32.xlu1 %v16003_v20, %s17627_s2 }
 0x736   : > { %5276 = vrot.lane.b32.xlu0 %v16012_v28, %s17628_s1 }
 0x737   : > { %5294 = vrot.lane.b32.xlu1 %v16017_v55, %s17627_s2 }
 0x73a   : > { %5296 = vrot.lane.b32.xlu0 %v16024_v19, %s17627_s2  ;;  %s17463_s2 = smov 8  }
 0x73b   : > { %5540 = vrot.lane.b32.xlu1 %v15950_v41, %s17629_s3 }
 0x73e   : > { %5542 = vrot.lane.b32.xlu0 %v15924_v58, %s17629_s3 }
 0x73f   : > { %5538 = vrot.lane.b32.xlu1 %v15947_v29, %s17629_s3 }
 0x742   : > { %5548 = vrot.lane.b32.xlu0 %v15971_v33, %s17629_s3 }
 0x743   : > { %5550 = vrot.lane.b32.xlu1 %v15974_v21, %s17629_s3 }
 0x746   : > { %5552 = vrot.lane.b32.xlu0 %v15986_v63, %s17629_s3 }
 0x747   : > { %5527 = vrot.lane.b32.xlu1 %v13024_v12, %s17463_s2 }
 0x74a   : > { %5529 = vrot.lane.b32.xlu0 %v13026_v50, %s17463_s2  ;;  %v6565_v50 = vld [vmem:[%s17634_s6 + $0x8] sm:$0xff] }
 0x74b   : > { %5531 = vrot.lane.b32.xlu1 %v13027_v43, %s17463_s2  ;;  %v6608_v43 = vld [vmem:[%s17635_s10] sm:$0xff] }
 0x74c   : > { %v4422_v36 = vpop.permute.xlu1 %4421 }
 0x74e   : > { %5533 = vrot.lane.b32.xlu0 %v13029_v26, %s17463_s2  ;;  %s17630_s2 = smov 72  }
 0x74f   : > { %5544 = vrot.lane.b32.xlu1 %v15926_v56, %s17629_s3 }
 0x750   : > { %v4424_v53 = vpop.permute.xlu1 %4423 }
 0x751   : > { %v4442_v22 = vsel %vm1648_vm0, %v4424_v53, %v4426_v2  ;;  %v4441_v61 = vsel %vm1648_vm0, %v4422_v36, %v4424_v53  ;;  %v6566_v53 = vld [vmem:[%s17634_s6 + $0x10] sm:$0xff] }
 0x752   : > { %5546 = vrot.lane.b32.xlu0 %v16003_v20, %s17629_s3  ;;  %4477 = vmatprep.subr.bf16.mxu1 %v4442_v22  ;;  %v6567_v22 = vld [vmem:[%s17634_s6 + $0x18] sm:$0xff] }
 0x753   : > { %5554 = vrot.lane.b32.xlu1 %v16017_v55, %s17629_s3  ;;  %4478 = vmatpush1.bf16.msra.mxu1 %v4441_v61 }
 0x754   : > { %v4432_v1 = vpop.permute.xlu0 %4431 }
 0x755   : > { %v4434_v57 = vpop.permute.xlu1 %4433 }
 0x756   : > { %5556 = vrot.lane.b32.xlu0 %v16024_v19, %s17629_s3  ;;  %v4445_v11 = vsel %vm1648_vm0, %v4432_v1, %v4434_v57  ;;  %s17631_s3 = smov 112  }
 0x757   : > { %5789 = vrot.lane.b32.xlu1 %v15950_v41, %s17630_s2  ;;  %v4463_v32 = vsel %vm4461_vm9, %v4445_v11, 0  ;;  %v6611_v11 = vld [vmem:[%s17635_s10 + $0x18] sm:$0xff] }
 0x758   : > { %v4436_v24 = vpop.permute.xlu0 %4435 }
 0x759   : > { %v4408_v40 = vpop.permute.xlu1 %4407  ;;  %v4446_v18 = vsel %vm1648_vm0, %v4434_v57, %v4436_v24  ;;  %v6610_v57 = vld [vmem:[%s17635_s10 + $0x10] sm:$0xff] }
 0x75a   : > { %5791 = vrot.lane.b32.xlu0 %v15924_v58, %s17630_s2  ;;  %11691 = vmatprep.subr.msk.bf16.mxu1 %vm4461_vm9, %v4446_v18 }
 0x75b   : > { %5787 = vrot.lane.b32.xlu1 %v15947_v29, %s17630_s2  ;;  %4480 = vmatpush1.bf16.msra.mxu1 %v4463_v32 }
 0x75c   : > { %v4428_v13 = vpop.permute.xlu0 %4427 }
 0x75d   : > { %v4430_v47 = vpop.permute.xlu1 %4429  ;;  %v4443_v59 = vsel %vm1648_vm0, %v4426_v2, %v4428_v13  ;;  %v6609_v2 = vld [vmem:[%s17635_s10 + $0x8] sm:$0xff]  ;;  %s17640_s10 = smov 16  }
 0x75e   : > { %5799 = vrot.lane.b32.xlu0 %v15971_v33, %s17630_s2  ;;  %11692 = vmatmul.mubr.msk.bf16.vlgmr.msra.gmra.mrb[40].mxu1 %vm4454_vm10, %v4408_v40  ;;  %v4444_v51 = vsel %vm1648_vm0, %v4428_v13, %v4430_v47 }
 0x75f   : > { %5801 = vrot.lane.b32.xlu1 %v15974_v21, %s17630_s2  ;;  %4530 = vmatprep.subr.bf16.mxu1 %v4444_v51 }
 0x760   : > { %4531 = vmatpush1.bf16.msra.mxu1 %v4443_v59  ;;  %v4410_v48 = vpop.permute.xlu0 %4409  ;;  %4519 = vmatprep.mubr.bf16.mxu1 %v17617_v23 }
 0x761   : > { %v4438_v0 = vpop.permute.xlu1 %4437 }
 0x762   : > { %5803 = vrot.lane.b32.xlu0 %v15986_v63, %s17630_s2  ;;  %v4447_v34 = vsel %vm1648_vm0, %v4436_v24, %v4438_v0 }
 0x763   : > { %5781 = vrot.lane.b32.xlu1 %v16148_v30, %s17631_s3  ;;  %v4469_v52 = vsel %vm4461_vm9, %v4447_v34, 0 }
 0x764   : > { %v4440_v10 = vpop.permute.xlu0 %4439 }
 0x765   : > { %v4448_v54 = vsel %vm1648_vm0, %v4438_v0, %v4440_v10  ;;  %v4475_v37 = vsel %vm4461_vm9, %v4440_v10, 0  ;;  %v4815_v3 = vpop.permute.xlu1 %4814 }
 0x766   : > { %5793 = vrot.lane.b32.xlu0 %v15926_v56, %s17630_s2  ;;  %11693 = vmatmul.mubr.msk.bf16.gmra.mrb[44].mxu1 %vm4454_vm10, %v4410_v48 }
 0x767   : > { %11694 = vmatprep.subr.msk.bf16.mxu1 %vm4461_vm9, %v4448_v54  ;;  %5795 = vrot.lane.b32.xlu1 %v16003_v20, %s17630_s2 }
 0x768   : > { %4533 = vmatpush1.bf16.msra.mxu1 %v4469_v52  ;;  %4562 = vmatprep.mubr.bf16.mxu1 %v17617_v23  ;;  %v4817_v17 = vpop.permute.xlu0 %4816 }
 0x769   : > { %12017 = vmatprep.subr.bf16.mxu1 %v4430_v47  ;;  %v4813_v14 = vpop.permute.xlu1 %4812 }
 0x76a   : > { %5783 = vrot.lane.b32.xlu0 %v16163_v31, %s17631_s3 }
 0x76b   : > { %5805 = vrot.lane.b32.xlu1 %v16017_v55, %s17630_s2 }
 0x76c   : > { %v4823_v62 = vpop.permute.xlu0 %4822 }
 0x76e   : > { %5807 = vrot.lane.b32.xlu0 %v16024_v19, %s17630_s2  ;;  %11695 = vmatmul.mubr.msk.bf16.vlgmr.msra.gmra.mrb[48].mxu1 %vm4454_vm10, %v4408_v40 }
 0x76f   : > { %12018 = vmatpush3.bf16.msra.mxu1 %v4430_v47  ;;  %5797 = vrot.lane.b32.xlu1 %v16007_v38, %s17630_s2 }
 0x770   : > { %12621 = vmatprep.subr.msk.bf16.mxu1 %vm4461_vm9, %v4440_v10  ;;  %4572 = vmatprep.mubr.bf16.mxu1 %v17617_v23 }
 0x772   : > { %6030 = vrot.lane.b32.xlu0 %v15924_v58, %s17618_s7 }
 0x773   : > { %12020 = vmatpush3.bf16.msra.mxu1 %v4475_v37  ;;  %6028 = vrot.lane.b32.xlu1 %v15950_v41, %s17618_s7 }
 0x774   : > { %4653 = vmatprep.subr.bf16.mxu1 %v15950_v41 }
 0x776   : > { %5809 = vrot.lane.b32.xlu0 %v16189_v4, %s17630_s2  ;;  %11696 = vmatmul.mubr.msk.bf16.gmra.mrb[52].mxu1 %vm4454_vm10, %v4410_v48 }
 0x777   : > { %6026 = vrot.lane.b32.xlu1 %v15947_v29, %s17618_s7  ;;  %12021 = vmatprep.mubr.msk.bf16.mxu1 %vm4454_vm10, %v4408_v40 }
 0x77a   : > { %6038 = vrot.lane.b32.xlu0 %v15971_v33, %s17618_s7 }
 0x77b   : > { %6040 = vrot.lane.b32.xlu1 %v15974_v21, %s17618_s7 }
 0x77e   : > { %6042 = vrot.lane.b32.xlu0 %v15986_v63, %s17618_s7  ;;  %12022 = vmatmul.mubr.msk.bf16.vlgmr.msra.gmra.mrb[56].mxu1 %vm4454_vm10, %v4410_v48 }
 0x77f   : > { %4654 = vmatpush1.bf16.msra.mxu1 %v15947_v29  ;;  %6022 = vrot.lane.b32.xlu1 %v16148_v30, %s17466_s5 }
 0x780   : > { %11699 = vmatprep.subr.msk.bf16.mxu1 %vm4461_vm9, %v15974_v21  ;;  %4685 = vmatprep.mubr.bf16.mxu1 %v17617_v23 }
 0x782   : > { %6032 = vrot.lane.b32.xlu0 %v15926_v56, %s17618_s7 }
 0x783   : > { %4656 = vmatpush1.bf16.msra.mxu1 %v4639_v25  ;;  %6034 = vrot.lane.b32.xlu1 %v16003_v20, %s17618_s7 }
 0x784   : > { %4706 = vmatprep.subr.bf16.mxu1 %v15926_v56 }
 0x786   : > { %6024 = vrot.lane.b32.xlu0 %v16163_v31, %s17466_s5  ;;  %11700 = vmatmul.mubr.msk.bf16.vlgmr.msra.gmra.mrb[40].mxu1 %vm4454_vm10, %v15984_v60  ;;  %s17633_s5 = sld [smem:[#allocation59_spill]] }
 0x787   : > { %4707 = vmatpush1.bf16.msra.mxu1 %v15924_v58  ;;  %6044 = vrot.lane.b32.xlu1 %v16017_v55, %s17618_s7 }
 0x788   : > { %11702 = vmatprep.subr.msk.bf16.mxu1 %vm4461_vm9, %v16017_v55  ;;  %4695 = vmatprep.mubr.bf16.mxu1 %v17617_v23 }
 0x78a   : > { %6046 = vrot.lane.b32.xlu0 %v16024_v19, %s17618_s7 }
 0x78b   : > { %4709 = vmatpush1.bf16.msra.mxu1 %v4645_v49  ;;  %6036 = vrot.lane.b32.xlu1 %v16007_v38, %s17618_s7 }
 0x78c   : > { %12025 = vmatprep.subr.bf16.mxu1 %v16003_v20  ;;  %v6500_v16 = vld [vmem:[%s17633_s5] sm:$0xff]  ;;  %v6501_v35 = vld [vmem:[%s17633_s5 + $0x8] sm:$0xff]  ;;  %v6502_v46 = vld [vmem:[%s17633_s5 + $0x10] sm:$0xff] }
 0x78d   : > { %v6503_v15 = vld [vmem:[%s17633_s5 + $0x18] sm:$0xff]  ;;  %s17636_s5 = smov 127  }
 0x78e   : > { %6269 = vrot.lane.b32.xlu0 %v15924_v58, %s17621_s23  ;;  %11701 = vmatmul.mubr.msk.bf16.gmra.mrb[44].mxu1 %vm4454_vm10, %v16012_v28  ;;  %v4825_v58 = vpop.permute.xlu1 %4824 }
 0x78f   : > { %6267 = vrot.lane.b32.xlu1 %v15950_v41, %s17621_s23  ;;  %4738 = vmatprep.mubr.bf16.mxu1 %v17617_v23  ;;  %v4651_v41 = vsel %vm4461_vm9, %v16024_v19, 0 }
 0x792   : > { %6048 = vrot.lane.b32.xlu0 %v16189_v4, %s17618_s7  ;;  %s17632_s7 = smov 64  }
 0x793   : > { %6265 = vrot.lane.b32.xlu1 %v15947_v29, %s17621_s23  ;;  %v4827_v29 = vpop.permute.xlu0 %4826 }
 0x794   : > { %v4837_v8 = vsel %vm1739_vm1, %v4825_v58, %v4827_v29 }
 0x796   : > { %6277 = vrot.lane.b32.xlu0 %v15971_v33, %s17621_s23  ;;  %11703 = vmatmul.mubr.msk.bf16.vlgmr.msra.gmra.mrb[48].mxu1 %vm4454_vm10, %v15984_v60  ;;  %v4833_v33 = vsel %vm1739_vm1, %v4815_v3, %v4817_v17 }
 0x797   : > { %12026 = vmatpush3.bf16.msra.mxu1 %v16003_v20  ;;  %6279 = vrot.lane.b32.xlu1 %v15974_v21, %s17621_s23  ;;  %v16270_v21 = vpop.permute.xlu1 %4808 }
 0x798   : > { %12622 = vmatprep.subr.msk.bf16.mxu1 %vm4461_vm9, %v16024_v19  ;;  %4748 = vmatprep.mubr.bf16.mxu1 %v17617_v23 }
 0x79a   : > { %6281 = vrot.lane.b32.xlu0 %v15986_v63, %s17621_s23  ;;  %v4819_v63 = vpop.permute.xlu0 %4818 }
 0x79b   : > { %12028 = vmatpush3.bf16.msra.mxu1 %v4651_v41  ;;  %6261 = vrot.lane.b32.xlu1 %v16148_v30, %s17632_s7  ;;  %v4821_v27 = vpop.permute.xlu1 %4820 }
 0x79c   : > { %4866 = vmatprep.subr.bf16.mxu1 %v4833_v33  ;;  %v4835_v44 = vsel %vm1739_vm1, %v4819_v63, %v4821_v27 }
 0x79e   : > { %6271 = vrot.lane.b32.xlu0 %v15926_v56, %s17621_s23  ;;  %11704 = vmatmul.mubr.msk.bf16.gmra.mrb[52].mxu1 %vm4454_vm10, %v16012_v28  ;;  %v4832_v56 = vsel %vm1739_vm1, %v4813_v14, %v4815_v3  ;;  %v16277_v7 = vpop.permute.xlu0 %4810 }
 0x79f   : > { %6273 = vrot.lane.b32.xlu1 %v16003_v20, %s17621_s23  ;;  %12029 = vmatprep.mubr.msk.bf16.mxu1 %vm4454_vm10, %v15984_v60  ;;  %v4836_v60 = vsel %vm1739_vm1, %v4823_v62, %v4825_v58  ;;  %v4829_v45 = vpop.permute.xlu1 %4828 }
 0x7a0   : > { %v4852_v20 = vsel %vm4461_vm9, %v4836_v60, 0  ;;  %v4838_v42 = vsel %vm1739_vm1, %v4827_v29, %v4829_v45 }
 0x7a1   : > { %v4858_v12 = vsel %vm4461_vm9, %v4838_v42, 0 }
 0x7a2   : > { %6263 = vrot.lane.b32.xlu0 %v16163_v31, %s17632_s7 }
 0x7a3   : > { %6283 = vrot.lane.b32.xlu1 %v16017_v55, %s17621_s23  ;;  %v5048_v26 = vpop.permute.xlu1 %5047 }
 0x7a6   : > { %6285 = vrot.lane.b32.xlu0 %v16024_v19, %s17621_s23  ;;  %12030 = vmatmul.mubr.msk.bf16.vlgmr.msra.gmra.mrb[56].mxu1 %vm4454_vm10, %v16012_v28  ;;  %v4834_v28 = vsel %vm1739_vm1, %v4817_v17, %v4819_v63  ;;  %v6564_v19 = vld [vmem:[%s17634_s6] sm:$0xff]  ;;  %s17639_s6 = smov 48  }
 0x7a7   : > { %4867 = vmatpush1.bf16.msra.mxu1 %v4832_v56  ;;  %6275 = vrot.lane.b32.xlu1 %v16007_v38, %s17621_s23  ;;  %v4831_v38 = vpop.permute.xlu0 %4830  ;;  %v5046_v61 = vpop.permute.xlu1 %5045 }
 0x7a8   : > { %11707 = vmatprep.subr.msk.bf16.mxu1 %vm4461_vm9, %v4837_v8  ;;  %4898 = vmatprep.mubr.bf16.mxu1 %v17617_v23  ;;  %v4839_v55 = vsel %vm1739_vm1, %v4829_v45, %v4831_v38  ;;  %v4864_v18 = vsel %vm4461_vm9, %v4831_v38, 0  ;;  %v5065_v51 = vsel %vm1830_vm2, %v5046_v61, %v5048_v26 }
 0x7aa   : > { %6287 = vrot.lane.b32.xlu0 %v16189_v4, %s17621_s23 }
 0x7ab   : > { %4869 = vmatpush1.bf16.msra.mxu1 %v4852_v20  ;;  %6506 = vperm.xlu1 %13017, %v6500_v16   ;;  %v5050_v36 = vpop.permute.xlu0 %5049  ;;  %v5058_v24 = vpop.permute.xlu1 %5057 }
 0x7ac   : > { %4919 = vmatprep.subr.bf16.mxu1 %v4835_v44  ;;  %v5066_v32 = vsel %vm1830_vm2, %v5048_v26, %v5050_v36 }
 0x7ae   : > { %6511 = vperm.xlu0 %13011, %v6501_v35   ;;  %11708 = vmatmul.mubr.msk.bf16.vlgmr.msra.gmra.mrb[40].mxu1 %vm4454_vm10, %v16270_v21 }
 0x7af   : > { %4920 = vmatpush1.bf16.msra.mxu1 %v4834_v28  ;;  %6516 = vperm.xlu1 %13017, %v6502_v46   ;;  %v5056_v1 = vpop.permute.xlu0 %5055  ;;  %v5042_v13 = vpop.permute.xlu1 %5041 }
 0x7b0   : > { %11710 = vmatprep.subr.msk.bf16.mxu1 %vm4461_vm9, %v4839_v55  ;;  %4908 = vmatprep.mubr.bf16.mxu1 %v17617_v23  ;;  %v5069_v48 = vsel %vm1830_vm2, %v5056_v1, %v5058_v24 }
 0x7b1   : > { %v5085_v5 = vsel %vm4461_vm9, %v5069_v48, 0 }
 0x7b2   : > { %6521 = vperm.xlu0 %13011, %v6503_v15  }
 0x7b3   : > { %4922 = vmatpush1.bf16.msra.mxu1 %v4858_v12  ;;  %6570 = vperm.xlu1 %13017, %v6564_v19   ;;  %v5060_v40 = vpop.permute.xlu0 %5059  ;;  %v5054_v59 = vpop.permute.xlu1 %5053 }
 0x7b4   : > { %12033 = vmatprep.subr.bf16.mxu1 %v4821_v27  ;;  %v5070_v0 = vsel %vm1830_vm2, %v5058_v24, %v5060_v40 }
 0x7b6   : > { %6575 = vperm.xlu0 %13011, %v6565_v50   ;;  %11709 = vmatmul.mubr.msk.bf16.gmra.mrb[44].mxu1 %vm4454_vm10, %v16277_v7 }
 0x7b7   : > { %6614 = vperm.xlu1 %13017, %v6608_v43   ;;  %4951 = vmatprep.mubr.bf16.mxu1 %v17617_v23  ;;  %v5052_v47 = vpop.permute.xlu0 %5051  ;;  %v5062_v10 = vpop.permute.xlu1 %5061 }
 0x7b8   : > { %v5068_v34 = vsel %vm1830_vm2, %v5052_v47, %v5054_v59  ;;  %v5067_v31 = vsel %vm1830_vm2, %v5050_v36, %v5052_v47  ;;  %v5071_v52 = vsel %vm1830_vm2, %v5060_v40, %v5062_v10 }
 0x7b9   : > { %v5091_v9 = vsel %vm4461_vm9, %v5071_v52, 0 }
 0x7ba   : > { %6619 = vperm.xlu0 %13011, %v6609_v2  }
 0x7bb   : > { %6580 = vperm.xlu1 %13017, %v6566_v53   ;;  %v5044_v30 = vpop.permute.xlu0 %5043  ;;  %v5281_v6 = vpop.permute.xlu1 %5280 }
 0x7be   : > { %6585 = vperm.xlu0 %13011, %v6567_v22   ;;  %11711 = vmatmul.mubr.msk.bf16.vlgmr.msra.gmra.mrb[48].mxu1 %vm4454_vm10, %v16270_v21 }
 0x7bf   : > { %12034 = vmatpush3.bf16.msra.mxu1 %v4821_v27  ;;  %6624 = vperm.xlu1 %13017, %v6610_v57   ;;  %v5064_v54 = vpop.permute.xlu0 %5063  ;;  %v5279_v4 = vpop.permute.xlu1 %5278 }
 0x7c0   : > { %12623 = vmatprep.subr.msk.bf16.mxu1 %vm4461_vm9, %v4831_v38  ;;  %4961 = vmatprep.mubr.bf16.mxu1 %v17617_v23  ;;  %v5072_v39 = vsel %vm1830_vm2, %v5062_v10, %v5064_v54  ;;  %v5097_v17 = vsel %vm4461_vm9, %v5064_v54, 0  ;;  %v5298_v33 = vsel %vm1921_vm3, %v5279_v4, %v5281_v6 }
 0x7c2   : > { %6629 = vperm.xlu0 %13011, %v6611_v11  }
 0x7c3   : > { %12036 = vmatpush3.bf16.msra.mxu1 %v4864_v18  ;;  %v5283_v37 = vpop.permute.xlu0 %5282  ;;  %v5291_v49 = vpop.permute.xlu1 %5290 }
 0x7c4   : > { %5099 = vmatprep.subr.bf16.mxu1 %v5066_v32  ;;  %v5299_v14 = vsel %vm1921_vm3, %v5281_v6, %v5283_v37 }
 0x7c6   : > { %11712 = vmatmul.mubr.msk.bf16.gmra.mrb[52].mxu1 %vm4454_vm10, %v16277_v7 }
 0x7c7   : > { %12037 = vmatprep.mubr.msk.bf16.mxu1 %vm4454_vm10, %v16270_v21  ;;  %v5289_v25 = vpop.permute.xlu0 %5288  ;;  %v5275_v62 = vpop.permute.xlu1 %5274 }
 0x7c8   : > { %v5302_v21 = vsel %vm1921_vm3, %v5289_v25, %v5291_v49 }
 0x7cb   : > { %v5293_v3 = vpop.permute.xlu0 %5292  ;;  %v5287_v29 = vpop.permute.xlu1 %5286 }
 0x7cc   : > { %v5303_v63 = vsel %vm1921_vm3, %v5291_v49, %v5293_v3 }
 0x7ce   : > { %12038 = vmatmul.mubr.msk.bf16.vlgmr.msra.gmra.mrb[56].mxu1 %vm4454_vm10, %v16277_v7  ;;  %v5318_v7 = vsel %vm4461_vm9, %v5302_v21, 0 }
 0x7cf   : > { %5100 = vmatpush1.bf16.msra.mxu1 %v5065_v51  ;;  %5131 = vmatprep.mubr.bf16.mxu1 %v17617_v23  ;;  %v5285_v58 = vpop.permute.xlu0 %5284  ;;  %v5295_v56 = vpop.permute.xlu1 %5294 }
 0x7d0   : > { %11715 = vmatprep.subr.msk.bf16.mxu1 %vm4461_vm9, %v5070_v0  ;;  %v5301_v60 = vsel %vm1921_vm3, %v5285_v58, %v5287_v29  ;;  %v5300_v16 = vsel %vm1921_vm3, %v5283_v37, %v5285_v58  ;;  %v5304_v20 = vsel %vm1921_vm3, %v5293_v3, %v5295_v56 }
 0x7d1   : > { %v5324_v45 = vsel %vm4461_vm9, %v5304_v20, 0 }
 0x7d3   : > { %5102 = vmatpush1.bf16.msra.mxu1 %v5085_v5  ;;  %v5277_v41 = vpop.permute.xlu0 %5276  ;;  %v5541_v8 = vpop.permute.xlu1 %5540 }
 0x7d4   : > { %5152 = vmatprep.subr.bf16.mxu1 %v5068_v34 }
 0x7d6   : > { %11716 = vmatmul.mubr.msk.bf16.vlgmr.msra.gmra.mrb[40].mxu1 %vm4454_vm10, %v5042_v13 }
 0x7d7   : > { %5153 = vmatpush1.bf16.msra.mxu1 %v5067_v31  ;;  %5141 = vmatprep.mubr.bf16.mxu1 %v17617_v23  ;;  %v5297_v27 = vpop.permute.xlu0 %5296  ;;  %v5539_v38 = vpop.permute.xlu1 %5538 }
 0x7d8   : > { %11718 = vmatprep.subr.msk.bf16.mxu1 %vm4461_vm9, %v5072_v39  ;;  %v5305_v44 = vsel %vm1921_vm3, %v5295_v56, %v5297_v27  ;;  %v5330_v19 = vsel %vm4461_vm9, %v5297_v27, 0  ;;  %v5558_v36 = vsel %vm2012_vm4, %v5539_v38, %v5541_v8  ;;  %vm9803_vm3 = vcmask 162816  }
 0x7db   : > { %5155 = vmatpush1.bf16.msra.mxu1 %v5091_v9  ;;  %v5543_v35 = vpop.permute.xlu0 %5542  ;;  %v5551_v28 = vpop.permute.xlu1 %5550 }
 0x7dc   : > { %12041 = vmatprep.subr.bf16.mxu1 %v5054_v59  ;;  %v5559_v12 = vsel %vm2012_vm4, %v5541_v8, %v5543_v35 }
 0x7de   : > { %11717 = vmatmul.mubr.msk.bf16.gmra.mrb[44].mxu1 %vm4454_vm10, %v5044_v30 }
 0x7df   : > { %5184 = vmatprep.mubr.bf16.mxu1 %v17617_v23  ;;  %v5549_v46 = vpop.permute.xlu0 %5548  ;;  %v5528_v55 = vpop.permute.xlu1 %5527 }
 0x7e0   : > { %v5562_v53 = vsel %vm2012_vm4, %v5549_v46, %v5551_v28 }
 0x7e1   : > { %v5578_v1 = vsel %vm4461_vm9, %v5562_v53, 0 }
 0x7e3   : > { %v5553_v42 = vpop.permute.xlu0 %5552  ;;  %v5532_v50 = vpop.permute.xlu1 %5531 }
 0x7e4   : > { %v5563_v22 = vsel %vm2012_vm4, %v5551_v28, %v5553_v42 }
 0x7e6   : > { %11719 = vmatmul.mubr.msk.bf16.vlgmr.msra.gmra.mrb[48].mxu1 %vm4454_vm10, %v5042_v13 }
 0x7e7   : > { %12042 = vmatpush3.bf16.msra.mxu1 %v5054_v59  ;;  %5194 = vmatprep.mubr.bf16.mxu1 %v17617_v23  ;;  %v5530_v15 = vpop.permute.xlu0 %5529  ;;  %v5545_v26 = vpop.permute.xlu1 %5544 }
 0x7e8   : > { %12624 = vmatprep.subr.msk.bf16.mxu1 %vm4461_vm9, %v5064_v54  ;;  %v5536_v57 = vsel %vm5535_vm11, %v5528_v55, %v5530_v15  ;;  %v5560_v40 = vsel %vm2012_vm4, %v5543_v35, %v5545_v26 }
 0x7eb   : > { %12044 = vmatpush3.bf16.msra.mxu1 %v5097_v17  ;;  %v5534_v43 = vpop.permute.xlu0 %5533  ;;  %v5555_v61 = vpop.permute.xlu1 %5554 }
 0x7ec   : > { %5332 = vmatprep.subr.bf16.mxu1 %v5299_v14  ;;  %v5564_v18 = vsel %vm2012_vm4, %v5553_v42, %v5555_v61  ;;  %v5537_v59 = vsel %vm5535_vm11, %v5532_v50, %v5534_v43 }
 0x7ed   : > { %v5584_v51 = vsel %vm4461_vm9, %v5564_v18, 0 }
 0x7ee   : > { %11720 = vmatmul.mubr.msk.bf16.gmra.mrb[52].mxu1 %vm4454_vm10, %v5044_v30 }
 0x7ef   : > { %12045 = vmatprep.mubr.msk.bf16.mxu1 %vm4454_vm10, %v5042_v13  ;;  %v5547_v2 = vpop.permute.xlu0 %5546  ;;  %v5790_v13 = vpop.permute.xlu1 %5789 }
 0x7f0   : > { %v5561_v11 = vsel %vm2012_vm4, %v5545_v26, %v5547_v2 }
 0x7f3   : > { %v5557_v24 = vpop.permute.xlu0 %5556 }
 0x7f4   : > { %v5565_v32 = vsel %vm2012_vm4, %v5555_v61, %v5557_v24  ;;  %v5590_v10 = vsel %vm4461_vm9, %v5557_v24, 0  ;;  %vm10650_vm4 = vcmask 1040384  }
 0x7f6   : > { %12046 = vmatmul.mubr.msk.bf16.vlgmr.msra.gmra.mrb[56].mxu1 %vm4454_vm10, %v5044_v30  ;;  %v5788_v30 = vpop.permute.xlu1 %5787 }
 0x7f7   : > { %5333 = vmatpush1.bf16.msra.mxu1 %v5298_v33  ;;  %5364 = vmatprep.mubr.bf16.mxu1 %v17617_v23  ;;  %v5792_v47 = vpop.permute.xlu0 %5791  ;;  %v5811_v6 = vsel %vm2120_vm5, %v5788_v30, %v5790_v13 }
 0x7f8   : > { %11723 = vmatprep.subr.msk.bf16.mxu1 %vm4461_vm9, %v5303_v63  ;;  %v5812_v54 = vsel %vm2120_vm5, %v5790_v13, %v5792_v47 }
 0x7fa   : > { %v5802_v0 = vpop.permute.xlu1 %5801 }
 0x7fb   : > { %5335 = vmatpush1.bf16.msra.mxu1 %v5318_v7  ;;  %v5800_v48 = vpop.permute.xlu0 %5799 }
 0x7fc   : > { %5385 = vmatprep.subr.bf16.mxu1 %v5301_v60  ;;  %v5816_v37 = vsel %vm2120_vm5, %v5800_v48, %v5802_v0 }
 0x7fd   : > { %v5833_v49 = vsel %vm4461_vm9, %v5816_v37, 0 }
 0x7fe   : > { %11724 = vmatmul.mubr.msk.bf16.vlgmr.msra.gmra.mrb[40].mxu1 %vm4454_vm10, %v5275_v62  ;;  %v5782_v34 = vpop.permute.xlu1 %5781 }
 0x7ff   : > { %5386 = vmatpush1.bf16.msra.mxu1 %v5300_v16  ;;  %5374 = vmatprep.mubr.bf16.mxu1 %v17617_v23  ;;  %v5804_v5 = vpop.permute.xlu0 %5803 }
 0x800   : > { %11726 = vmatprep.subr.msk.bf16.mxu1 %vm4461_vm9, %v5305_v44  ;;  %v5817_v4 = vsel %vm2120_vm5, %v5802_v0, %v5804_v5 }
 0x802   : > { %v5796_v52 = vpop.permute.xlu1 %5795 }
 0x803   : > { %5388 = vmatpush1.bf16.msra.mxu1 %v5324_v45  ;;  %v5794_v31 = vpop.permute.xlu0 %5793 }
 0x804   : > { %12049 = vmatprep.subr.bf16.mxu1 %v5287_v29  ;;  %v5814_v3 = vsel %vm2120_vm5, %v5794_v31, %v5796_v52 }
 0x806   : > { %11725 = vmatmul.mubr.msk.bf16.gmra.mrb[44].mxu1 %vm4454_vm10, %v5277_v41  ;;  %v5806_v9 = vpop.permute.xlu1 %5805 }
 0x807   : > { %5417 = vmatprep.mubr.bf16.mxu1 %v17617_v23  ;;  %v5784_v39 = vpop.permute.xlu0 %5783  ;;  %v5818_v58 = vsel %vm2120_vm5, %v5804_v5, %v5806_v9 }
 0x808   : > { %v5839_v33 = vsel %vm4461_vm9, %v5818_v58, 0 }
 0x80a   : > { %v5798_v17 = vpop.permute.xlu1 %5797 }
 0x80b   : > { %v5808_v25 = vpop.permute.xlu0 %5807  ;;  %v5815_v21 = vsel %vm2120_vm5, %v5796_v52, %v5798_v17 }
 0x80e   : > { %11727 = vmatmul.mubr.msk.bf16.vlgmr.msra.gmra.mrb[48].mxu1 %vm4454_vm10, %v5275_v62 }
 0x80f   : > { %12050 = vmatpush3.bf16.msra.mxu1 %v5287_v29  ;;  %5427 = vmatprep.mubr.bf16.mxu1 %v17617_v23  ;;  %v6031_v14 = vpop.permute.xlu0 %6030  ;;  %v5819_v29 = vsel %vm2120_vm5, %v5806_v9, %v5808_v25 }
 0x810   : > { %12625 = vmatprep.subr.msk.bf16.mxu1 %vm4461_vm9, %v5297_v27 }
 0x813   : > { %12052 = vmatpush3.bf16.msra.mxu1 %v5330_v19  ;;  %v5810_v63 = vpop.permute.xlu0 %5809 }
 0x814   : > { %5592 = vmatprep.subr.bf16.mxu1 %v5559_v12  ;;  %v5820_v60 = vsel %vm2120_vm5, %v5808_v25, %v5810_v63 }
 0x815   : > { %v5845_v16 = vsel %vm4461_vm9, %v5820_v60, 0 }
 0x816   : > { %11728 = vmatmul.mubr.msk.bf16.gmra.mrb[52].mxu1 %vm4454_vm10, %v5277_v41 }
 0x817   : > { %12053 = vmatprep.mubr.msk.bf16.mxu1 %vm4454_vm10, %v5275_v62  ;;  %v5813_v62 = vsel %vm2120_vm5, %v5792_v47, %v5794_v31  ;;  %v6039_v27 = vpop.permute.xlu0 %6038 }
 0x81b   : > { %v6043_v8 = vpop.permute.xlu0 %6042 }
 0x81e   : > { %12054 = vmatmul.mubr.msk.bf16.vlgmr.msra.gmra.mrb[56].mxu1 %vm4454_vm10, %v5277_v41  ;;  %v6029_v41 = vpop.permute.xlu1 %6028 }
 0x81f   : > { %5593 = vmatpush1.bf16.msra.mxu1 %v5558_v36  ;;  %5624 = vmatprep.mubr.bf16.mxu1 %v17617_v23  ;;  %v6051_v20 = vsel %vm2221_vm6, %v6029_v41, %v6031_v14  ;;  %v6033_v35 = vpop.permute.xlu0 %6032 }
 0x820   : > { %11735 = vmatprep.subr.msk.bf16.mxu1 %vm4461_vm9, %v5563_v22  ;;  %v6052_v43 = vsel %vm2221_vm6, %v6031_v14, %v6033_v35 }
 0x822   : > { %v6027_v56 = vpop.permute.xlu1 %6026 }
 0x823   : > { %5595 = vmatpush1.bf16.msra.mxu1 %v5578_v1  ;;  %v6025_v38 = vpop.permute.xlu0 %6024  ;;  %v6050_v46 = vsel %vm2221_vm6, %v6027_v56, %v6029_v41 }
 0x824   : > { %5645 = vmatprep.subr.bf16.mxu1 %v5561_v11 }
 0x826   : > { %11736 = vmatmul.mubr.msk.bf16.vlgmr.msra.gmra.mrb[40].mxu1 %vm4454_vm10, %v5536_v57  ;;  %v6041_v7 = vpop.permute.xlu1 %6040 }
 0x827   : > { %5646 = vmatpush1.bf16.msra.mxu1 %v5560_v40  ;;  %5634 = vmatprep.mubr.bf16.mxu1 %v17617_v23  ;;  %v6055_v28 = vsel %vm2221_vm6, %v6039_v27, %v6041_v7  ;;  %v6056_v42 = vsel %vm2221_vm6, %v6041_v7, %v6043_v8  ;;  %v6047_v15 = vpop.permute.xlu0 %6046 }
 0x828   : > { %11738 = vmatprep.subr.msk.bf16.mxu1 %vm4461_vm9, %v5565_v32  ;;  %v6072_v19 = vsel %vm4461_vm9, %v6055_v28, 0 }
 0x82a   : > { %v6023_v44 = vpop.permute.xlu1 %6022 }
 0x82b   : > { %5648 = vmatpush1.bf16.msra.mxu1 %v5584_v51 }
 0x82c   : > { %12057 = vmatprep.subr.bf16.mxu1 %v5547_v2 }
 0x82e   : > { %11737 = vmatmul.mubr.msk.bf16.gmra.mrb[44].mxu1 %vm4454_vm10, %v5537_v59  ;;  %v6035_v45 = vpop.permute.xlu1 %6034 }
 0x82f   : > { %5677 = vmatprep.mubr.bf16.mxu1 %v17617_v23  ;;  %v6053_v12 = vsel %vm2221_vm6, %v6033_v35, %v6035_v45 }
 0x832   : > { %v6045_v55 = vpop.permute.xlu1 %6044 }
 0x833   : > { %v6057_v26 = vsel %vm2221_vm6, %v6043_v8, %v6045_v55  ;;  %v6058_v36 = vsel %vm2221_vm6, %v6045_v55, %v6047_v15 }
 0x834   : > { %v6078_v53 = vsel %vm4461_vm9, %v6057_v26, 0 }
 0x836   : > { %11739 = vmatmul.mubr.msk.bf16.vlgmr.msra.gmra.mrb[48].mxu1 %vm4454_vm10, %v5536_v57  ;;  %v6037_v50 = vpop.permute.xlu1 %6036 }
 0x837   : > { %12058 = vmatpush3.bf16.msra.mxu1 %v5547_v2  ;;  %5687 = vmatprep.mubr.bf16.mxu1 %v17617_v23  ;;  %v6270_v2 = vpop.permute.xlu0 %6269  ;;  %v6054_v22 = vsel %vm2221_vm6, %v6035_v45, %v6037_v50 }
 0x838   : > { %12626 = vmatprep.subr.msk.bf16.mxu1 %vm4461_vm9, %v5557_v24 }
 0x83a   : > { %v6268_v61 = vpop.permute.xlu1 %6267 }
 0x83b   : > { %12060 = vmatpush3.bf16.msra.mxu1 %v5590_v10  ;;  %v6049_v1 = vpop.permute.xlu0 %6048  ;;  %v6290_v13 = vsel %vm2322_vm7, %v6268_v61, %v6270_v2 }
 0x83c   : > { %5847 = vmatprep.subr.bf16.mxu1 %v5812_v54  ;;  %v6059_v24 = vsel %vm2221_vm6, %v6047_v15, %v6049_v1  ;;  %vm11036_vm6 = vcmask 15360  }
 0x83d   : > { %v6084_v18 = vsel %vm4461_vm9, %v6059_v24, 0 }
 0x83e   : > { %11740 = vmatmul.mubr.msk.bf16.gmra.mrb[52].mxu1 %vm4454_vm10, %v5537_v59 }
 0x83f   : > { %12061 = vmatprep.mubr.msk.bf16.mxu1 %vm4454_vm10, %v5536_v57  ;;  %v6266_v57 = vpop.permute.xlu1 %6265  ;;  %v6278_v11 = vpop.permute.xlu0 %6277 }
 0x840   : > { %v6289_v30 = vsel %vm2322_vm7, %v6266_v57, %v6268_v61 }
 0x843   : > { %v6280_v40 = vpop.permute.xlu1 %6279  ;;  %v6282_v32 = vpop.permute.xlu0 %6281 }
 0x844   : > { %v6294_v0 = vsel %vm2322_vm7, %v6278_v11, %v6280_v40  ;;  %v6295_v5 = vsel %vm2322_vm7, %v6280_v40, %v6282_v32 }
 0x845   : > { %v6311_v10 = vsel %vm4461_vm9, %v6294_v0, 0 }
 0x846   : > { %12062 = vmatmul.mubr.msk.bf16.vlgmr.msra.gmra.mrb[56].mxu1 %vm4454_vm10, %v5537_v59 }
 0x847   : > { %5848 = vmatpush1.bf16.msra.mxu1 %v5811_v6  ;;  %5879 = vmatprep.mubr.bf16.mxu1 %v17617_v23  ;;  %v6262_v47 = vpop.permute.xlu1 %6261  ;;  %v6272_v51 = vpop.permute.xlu0 %6271 }
 0x848   : > { %11745 = vmatprep.subr.msk.bf16.mxu1 %vm4461_vm9, %v5817_v4  ;;  %v6291_v52 = vsel %vm2322_vm7, %v6270_v2, %v6272_v51 }
 0x84b   : > { %5850 = vmatpush1.bf16.msra.mxu1 %v5833_v49  ;;  %v6274_v59 = vpop.permute.xlu1 %6273  ;;  %v6264_v48 = vpop.permute.xlu0 %6263 }
 0x84c   : > { %5900 = vmatprep.subr.bf16.mxu1 %v5814_v3  ;;  %v6292_v54 = vsel %vm2322_vm7, %v6272_v51, %v6274_v59 }
 0x84e   : > { %11746 = vmatmul.mubr.msk.bf16.vlgmr.msra.gmra.mrb[40].mxu1 %vm4454_vm10, %v5782_v34 }
 0x84f   : > { %5901 = vmatpush1.bf16.msra.mxu1 %v5813_v62  ;;  %5889 = vmatprep.mubr.bf16.mxu1 %v17617_v23  ;;  %v6286_v31 = vpop.permute.xlu0 %6285 }
 0x850   : > { %11748 = vmatprep.subr.msk.bf16.mxu1 %vm4461_vm9, %v5819_v29 }
 0x853   : > { %5903 = vmatpush1.bf16.msra.mxu1 %v5839_v33  ;;  %v6288_v25 = vpop.permute.xlu0 %6287 }
 0x854   : > { %12065 = vmatprep.subr.bf16.mxu1 %v5815_v21  ;;  %v6298_v49 = vsel %vm2322_vm7, %v6286_v31, %v6288_v25 }
 0x855   : > { %v6323_v3 = vsel %vm4461_vm9, %v6298_v49, 0 }
 0x856   : > { %11747 = vmatmul.mubr.msk.bf16.gmra.mrb[44].mxu1 %vm4454_vm10, %v5784_v39 }
 0x857   : > { %5932 = vmatprep.mubr.bf16.mxu1 %v17617_v23  ;;  %v16481_v14 = vpop.permute.xlu0 %6511 }
 0x85b   : > { %v16485_v58 = vpop.permute.xlu0 %6521 }
 0x85e   : > { %11749 = vmatmul.mubr.msk.bf16.vlgmr.msra.gmra.mrb[48].mxu1 %vm4454_vm10, %v5782_v34 }
 0x85f   : > { %12066 = vmatpush3.bf16.msra.mxu1 %v5815_v21  ;;  %5942 = vmatprep.mubr.bf16.mxu1 %v17617_v23  ;;  %v16489_v41 = vpop.permute.xlu0 %6575 }
 0x860   : > { %12627 = vmatprep.subr.msk.bf16.mxu1 %vm4461_vm9, %v5820_v60 }
 0x863   : > { %12068 = vmatpush3.bf16.msra.mxu1 %v5845_v16 }
 0x864   : > { %6086 = vmatprep.subr.bf16.mxu1 %v6051_v20  ;;  %v16496_v20 = vpop.permute.xlu0 %6619 }
 0x866   : > { %11750 = vmatmul.mubr.msk.bf16.gmra.mrb[52].mxu1 %vm4454_vm10, %v5784_v39 }
 0x867   : > { %12069 = vmatprep.mubr.msk.bf16.mxu1 %vm4454_vm10, %v5782_v34  ;;  %v6284_v34 = vpop.permute.xlu1 %6283 }
 0x868   : > { %v6297_v6 = vsel %vm2322_vm7, %v6284_v34, %v6286_v31 }
 0x86b   : > { %v6276_v9 = vpop.permute.xlu1 %6275 }
 0x86c   : > { %v6293_v4 = vsel %vm2322_vm7, %v6274_v59, %v6276_v9 }
 0x86e   : > { %12070 = vmatmul.mubr.msk.bf16.vlgmr.msra.gmra.mrb[56].mxu1 %vm4454_vm10, %v5784_v39  ;;  %v6296_v39 = vsel %vm2322_vm7, %v6282_v32, %v6284_v34 }
 0x86f   : > { %6087 = vmatpush1.bf16.msra.mxu1 %v6050_v46  ;;  %6118 = vmatprep.mubr.bf16.mxu1 %v17617_v23  ;;  %v6317_v37 = vsel %vm4461_vm9, %v6296_v39, 0  ;;  %v16479_v17 = vpop.permute.xlu1 %6506 }
 0x870   : > { %11753 = vmatprep.subr.msk.bf16.mxu1 %vm4461_vm9, %v6056_v42 }
 0x873   : > { %6089 = vmatpush1.bf16.msra.mxu1 %v6072_v19  ;;  %v16483_v62 = vpop.permute.xlu1 %6516 }
 0x874   : > { %6139 = vmatprep.subr.bf16.mxu1 %v6053_v12 }
 0x876   : > { %11754 = vmatmul.mubr.msk.bf16.vlgmr.msra.gmra.mrb[40].mxu1 %vm4454_vm10, %v6023_v44 }
 0x877   : > { %6140 = vmatpush1.bf16.msra.mxu1 %v6052_v43  ;;  %6128 = vmatprep.mubr.bf16.mxu1 %v17617_v23  ;;  %v16487_v29 = vpop.permute.xlu1 %6570 }
 0x878   : > { %11756 = vmatprep.subr.msk.bf16.mxu1 %vm4461_vm9, %v6058_v36  ;;  %v16508_v36 = vpop.permute.xlu0 %6585 }
 0x87b   : > { %6142 = vmatpush1.bf16.msra.mxu1 %v6078_v53  ;;  %v16493_v7 = vpop.permute.xlu1 %6614 }
 0x87c   : > { %12073 = vmatprep.subr.bf16.mxu1 %v6054_v22  ;;  %v16528_v0 = vpop.permute.xlu0 %6629 }
 0x87e   : > { %11755 = vmatmul.mubr.msk.bf16.gmra.mrb[44].mxu1 %vm4454_vm10, %v6025_v38 }
 0x87f   : > { %6171 = vmatprep.mubr.bf16.mxu1 %v17617_v23  ;;  %v16503_v19 = vpop.permute.xlu1 %6580 }
 0x886   : > { %11757 = vmatmul.mubr.msk.bf16.vlgmr.msra.gmra.mrb[48].mxu1 %vm4454_vm10, %v6023_v44 }
 0x887   : > { %12074 = vmatpush3.bf16.msra.mxu1 %v6054_v22  ;;  %6181 = vmatprep.mubr.bf16.mxu1 %v17617_v23 }
 0x888   : > { %12628 = vmatprep.subr.msk.bf16.mxu1 %vm4461_vm9, %v6059_v24 }
 0x88b   : > { %12076 = vmatpush3.bf16.msra.mxu1 %v6084_v18 }
 0x88c   : > { %6325 = vmatprep.subr.bf16.mxu1 %v6290_v13 }
 0x88e   : > { %11758 = vmatmul.mubr.msk.bf16.gmra.mrb[52].mxu1 %vm4454_vm10, %v6025_v38 }
 0x88f   : > { %12077 = vmatprep.mubr.msk.bf16.mxu1 %vm4454_vm10, %v6023_v44 }
 0x896   : > { %12078 = vmatmul.mubr.msk.bf16.vlgmr.msra.gmra.mrb[56].mxu1 %vm4454_vm10, %v6025_v38 }
 0x897   : > { %6326 = vmatpush1.bf16.msra.mxu1 %v6289_v30  ;;  %6357 = vmatprep.mubr.bf16.mxu1 %v17617_v23  ;;  %v16525_v30 = vpop.permute.xlu1 %6624 }
 0x898   : > { %11761 = vmatprep.subr.msk.bf16.mxu1 %vm4461_vm9, %v6295_v5 }
 0x89b   : > { %6328 = vmatpush1.bf16.msra.mxu1 %v6311_v10 }
 0x89c   : > { %6378 = vmatprep.subr.bf16.mxu1 %v6292_v54 }
 0x89e   : > { %11762 = vmatmul.mubr.msk.bf16.vlgmr.msra.gmra.mrb[40].mxu1 %vm4454_vm10, %v6262_v47 }
 0x89f   : > { %6379 = vmatpush1.bf16.msra.mxu1 %v6291_v52  ;;  %6367 = vmatprep.mubr.bf16.mxu1 %v17617_v23 }
 0x8a0   : > { %11764 = vmatprep.subr.msk.bf16.mxu1 %vm4461_vm9, %v6297_v6 }
 0x8a3   : > { %6381 = vmatpush1.bf16.msra.mxu1 %v6317_v37 }
 0x8a4   : > { %12081 = vmatprep.subr.bf16.mxu1 %v6293_v4 }
 0x8a6   : > { %11763 = vmatmul.mubr.msk.bf16.gmra.mrb[44].mxu1 %vm4454_vm10, %v6264_v48 }
 0x8a7   : > { %6410 = vmatprep.mubr.bf16.mxu1 %v17617_v23 }
 0x8ae   : > { %11765 = vmatmul.mubr.msk.bf16.vlgmr.msra.gmra.mrb[48].mxu1 %vm4454_vm10, %v6262_v47 }
 0x8af   : > { %12082 = vmatpush3.bf16.msra.mxu1 %v6293_v4  ;;  %6420 = vmatprep.mubr.bf16.mxu1 %v17617_v23 }
 0x8b0   : > { %12629 = vmatprep.subr.msk.bf16.mxu1 %vm4461_vm9, %v6298_v49 }
 0x8b3   : > { %12084 = vmatpush3.bf16.msra.mxu1 %v6323_v3 }
 0x8b6   : > { %11766 = vmatmul.mubr.msk.bf16.gmra.mrb[52].mxu1 %vm4454_vm10, %v6264_v48 }
 0x8b7   : > { %12085 = vmatprep.mubr.msk.bf16.mxu1 %vm4454_vm10, %v6262_v47 }
 0x8be   : > { %12086 = vmatmul.mubr.msk.bf16.vlgmr.msra.gmra.mrb[56].mxu1 %vm4454_vm10, %v6264_v48 }
 0x971   : > { %v6359_v33 = vpop.f32.mrb[40].mxu1 }
 0x972   : > { %v6524_v21 = vadd.f32 %v16479_v17, %v6359_v33  ;;  %v6361_v63 = vpop.f32.mrb[41].mxu1 }
 0x973   : > { %v6525_v56 = vadd.f32 %v16479_v17, %v6361_v63  ;;  %v6363_v27 = vpop.f32.mrb[42].mxu1 }
 0x974   : > { %v6544_v60 = vmax.f32 %v6524_v21, 0.0  ;;  %v6529_v8 = vadd.f32 %v16481_v14, %v6363_v27  ;;  %v6365_v16 = vpop.f32.mrb[43].mxu1 }
 0x975   : > { %v6545_v44 = vmax.f32 %v6525_v56, 0.0  ;;  %v6530_v35 = vadd.f32 %v16481_v14, %v6365_v16 }
 0x976   : > { %v6588_v45 = vmul.f32 %v16487_v29, %v6544_v60  ;;  %v6549_v38 = vmax.f32 %v6529_v8, 0.0 }
 0x977   : > { %v6589_v46 = vmul.f32 %v16487_v29, %v6545_v44  ;;  %v6550_v28 = vmax.f32 %v6530_v35, 0.0 }
 0x978   : > { %v6593_v42 = vmul.f32 %v16489_v41, %v6549_v38  ;;  %v6632_v12 = vadd.f32 %v16493_v7, %v6588_v45 }
 0x979   : > { %v6594_v55 = vmul.f32 %v16489_v41, %v6550_v28  ;;  %v6369_v15 = vpop.f32.mrb[44].mxu1  ;;  %v6633_v2 = vadd.f32 %v16493_v7, %v6589_v46 }
 0x97a   : > { %v6637_v50 = vadd.f32 %v16496_v20, %v6593_v42  ;;  %v6534_v43 = vadd.f32 %v16483_v62, %v6369_v15  ;;  %v6371_v26 = vpop.f32.mrb[45].mxu1 }
 0x97b   : > { %v6638_v53 = vadd.f32 %v16496_v20, %v6594_v55  ;;  %v6535_v22 = vadd.f32 %v16483_v62, %v6371_v26  ;;  %v6373_v61 = vpop.f32.mrb[46].mxu1 }
 0x97c   : > { %v16513_v1 = vpack.c.bf16 %v6637_v50, %v6632_v12  ;;  %v6554_v57 = vmax.f32 %v6534_v43, 0.0  ;;  %v6539_v11 = vadd.f32 %v16485_v58, %v6373_v61  ;;  %v6375_v24 = vpop.f32.mrb[47].mxu1 }
 0x97d   : > { %v16516_v40 = vpack.c.bf16 %v6638_v53, %v6633_v2  ;;  %v6555_v18 = vmax.f32 %v6535_v22, 0.0  ;;  %v6540_v32 = vadd.f32 %v16485_v58, %v6375_v24 }
 0x97e   : > { %v6598_v13 = vmul.f32 %v16503_v19, %v6554_v57  ;;  %v6559_v47 = vmax.f32 %v6539_v11, 0.0  ;;  %6672 = vrot.lane.b32.xlu0 %v16513_v1, %s17636_s5 }
 0x97f   : > { %v6599_v51 = vmul.f32 %v16503_v19, %v6555_v18  ;;  %v6560_v59 = vmax.f32 %v6540_v32, 0.0  ;;  %6674 = vrot.lane.b32.xlu1 %v16516_v40, %s17636_s5 }
 0x980   : > { %v6603_v48 = vmul.f32 %v16508_v36, %v6559_v47  ;;  %v6642_v10 = vadd.f32 %v16525_v30, %v6598_v13 }
 0x981   : > { %v6604_v5 = vmul.f32 %v16508_v36, %v6560_v59  ;;  %v6412_v34 = vpop.f32.mrb[48].mxu1  ;;  %v6643_v39 = vadd.f32 %v16525_v30, %v6599_v51 }
 0x982   : > { %v6647_v54 = vadd.f32 %v16528_v0, %v6603_v48  ;;  %v6526_v31 = vadd.f32 %v16479_v17, %v6412_v34  ;;  %v6414_v52 = vpop.f32.mrb[49].mxu1 }
 0x983   : > { %v6648_v6 = vadd.f32 %v16528_v0, %v6604_v5  ;;  %v6527_v9 = vadd.f32 %v16479_v17, %v6414_v52  ;;  %v6416_v37 = vpop.f32.mrb[50].mxu1 }
 0x984   : > { %v16537_v4 = vpack.c.bf16 %v6647_v54, %v6642_v10  ;;  %v6546_v25 = vmax.f32 %v6526_v31, 0.0  ;;  %v6531_v49 = vadd.f32 %v16481_v14, %v6416_v37  ;;  %v6418_v3 = vpop.f32.mrb[51].mxu1 }
 0x985   : > { %v16540_v33 = vpack.c.bf16 %v6648_v6, %v6643_v39  ;;  %v6547_v21 = vmax.f32 %v6527_v9, 0.0  ;;  %v6532_v63 = vadd.f32 %v16481_v14, %v6418_v3 }
 0x986   : > { %v6590_v56 = vmul.f32 %v16487_v29, %v6546_v25  ;;  %v6551_v27 = vmax.f32 %v6531_v49, 0.0 }
 0x987   : > { %v6591_v60 = vmul.f32 %v16487_v29, %v6547_v21  ;;  %v6552_v8 = vmax.f32 %v6532_v63, 0.0  ;;  %6684 = vrot.lane.b32.xlu1 %v16540_v33, %s17636_s5 }
 0x988   : > { %v6595_v16 = vmul.f32 %v16489_v41, %v6551_v27  ;;  %v6634_v45 = vadd.f32 %v16493_v7, %v6590_v56 }
 0x989   : > { %v6596_v44 = vmul.f32 %v16489_v41, %v6552_v8  ;;  %v6422_v35 = vpop.f32.mrb[52].mxu1  ;;  %v6635_v42 = vadd.f32 %v16493_v7, %v6591_v60 }
 0x98a   : > { %v6639_v38 = vadd.f32 %v16496_v20, %v6595_v16  ;;  %v6536_v46 = vadd.f32 %v16483_v62, %v6422_v35  ;;  %v6424_v28 = vpop.f32.mrb[53].mxu1 }
 0x98b   : > { %v6640_v55 = vadd.f32 %v16496_v20, %v6596_v44  ;;  %v6537_v15 = vadd.f32 %v16483_v62, %v6424_v28  ;;  %v6426_v12 = vpop.f32.mrb[54].mxu1 }
 0x98c   : > { %v16555_v50 = vpack.c.bf16 %v6639_v38, %v6634_v45  ;;  %v6556_v43 = vmax.f32 %v6536_v46, 0.0  ;;  %v6541_v26 = vadd.f32 %v16485_v58, %v6426_v12  ;;  %v6428_v2 = vpop.f32.mrb[55].mxu1 }
 0x98d   : > { %v16558_v53 = vpack.c.bf16 %v6640_v55, %v6635_v42  ;;  %v6557_v22 = vmax.f32 %v6537_v15, 0.0  ;;  %v6542_v61 = vadd.f32 %v16485_v58, %v6428_v2 }
 0x98e   : > { %v6600_v57 = vmul.f32 %v16503_v19, %v6556_v43  ;;  %v6561_v11 = vmax.f32 %v6541_v26, 0.0  ;;  %6676 = vrot.lane.b32.xlu0 %v16555_v50, %s17636_s5 }
 0x98f   : > { %v6601_v24 = vmul.f32 %v16503_v19, %v6557_v22  ;;  %v6562_v18 = vmax.f32 %v6542_v61, 0.0  ;;  %6678 = vrot.lane.b32.xlu1 %v16558_v53, %s17636_s5 }
 0x990   : > { %v6605_v32 = vmul.f32 %v16508_v36, %v6561_v11  ;;  %v6644_v51 = vadd.f32 %v16525_v30, %v6600_v57  ;;  %v6780_v57 = vld [vmem:[#allocation2] sm:$0xff]  ;;  %v13856_v11 = vmov 0.0  }
 0x991   : > { %v6606_v13 = vmul.f32 %v16508_v36, %v6562_v18  ;;  %v12087_v47 = vpop.f32.mrb[56].mxu1  ;;  %v6645_v34 = vadd.f32 %v16525_v30, %v6601_v24  ;;  %12115 = vmatprep.subr.bf16.mxu1 %v13856_v11  ;;  %12117 = vmatprep.mubr.msk.bf16.mxu1 %vm13857_vm12, %v13856_v11 }
 0x992   : > { %v6649_v59 = vadd.f32 %v16528_v0, %v6605_v32  ;;  %v6538_v48 = vadd.f32 %v12087_v47, %v16483_v62  ;;  %v6465_v5 = vpop.f32.mrb[57].mxu1 }
 0x993   : > { %v6650_v10 = vadd.f32 %v16528_v0, %v6606_v13  ;;  %v6528_v54 = vadd.f32 %v16479_v17, %v6465_v5  ;;  %v12088_v31 = vpop.f32.mrb[58].mxu1 }
 0x994   : > { %v6659_v52 = vpack.c.bf16 %v6649_v59, %v6644_v51  ;;  %v6558_v39 = vmax.f32 %v6538_v48, 0.0  ;;  %v6543_v6 = vadd.f32 %v12088_v31, %v16485_v58  ;;  %v6468_v9 = vpop.f32.mrb[59].mxu1 }
 0x995   : > { %v6660_v37 = vpack.c.bf16 %v6650_v10, %v6645_v34  ;;  %v6548_v25 = vmax.f32 %v6528_v54, 0.0  ;;  %v6533_v49 = vadd.f32 %v16481_v14, %v6468_v9 }
 0x996   : > { %v6602_v3 = vmul.f32 %v16503_v19, %v6558_v39  ;;  %v6563_v62 = vmax.f32 %v6543_v6, 0.0  ;;  %6686 = vrot.lane.b32.xlu0 %v6659_v52, %s17636_s5 }
 0x997   : > { %v6592_v21 = vmul.f32 %v16487_v29, %v6548_v25  ;;  %v6553_v63 = vmax.f32 %v6533_v49, 0.0  ;;  %6688 = vrot.lane.b32.xlu1 %v6660_v37, %s17636_s5 }
 0x998   : > { %v6607_v17 = vmul.f32 %v16508_v36, %v6563_v62  ;;  %v6646_v58 = vadd.f32 %v16525_v30, %v6602_v3 }
 0x999   : > { %v6597_v56 = vmul.f32 %v16489_v41, %v6553_v63  ;;  %v6636_v14 = vadd.f32 %v16493_v7, %v6592_v21 }
 0x99a   : > { %v6651_v27 = vadd.f32 %v16528_v0, %v6607_v17  ;;  %6682 = vrot.lane.b32.xlu0 %v16537_v4, %s17636_s5 }
 0x99b   : > { %v6641_v19 = vadd.f32 %v16496_v20, %v6597_v56 }
 0x99c   : > { %v6661_v60 = vpack.c.bf16 %v6651_v27, %v6646_v58 }
 0x99d   : > { %v6656_v29 = vpack.c.bf16 %v6641_v19, %v6636_v14 }
 0x99e   : > { %6690 = vrot.lane.b32.xlu0 %v6661_v60, %s17636_s5 }
 0x99f   : > { %6680 = vrot.lane.b32.xlu1 %v6656_v29, %s17636_s5  ;;  %s17637_s5 = sld [smem:[#allocation62_spill]] }
 0x9f0   : > { %v6673_v36 = vpop.permute.xlu0 %6672 }
 0x9f1   : > { %v6675_v8 = vpop.permute.xlu1 %6674 }
 0x9f2   : > { %v6692_v41 = vsel %vm1648_vm0, %v6673_v36, %v6675_v8 }
 0x9f3   : > { %v6710_v30 = vmax.bf16 %v6692_v41, %v16513_v1 }
 0x9f5   : > { %6730 = vrot.lane.b32.xlu1 %v6710_v30, %s17626_s4 }
 0x9f9   : > { %v6685_v16 = vpop.permute.xlu1 %6684 }
 0xa00   : > { %v6677_v0 = vpop.permute.xlu0 %6676 }
 0xa01   : > { %v6693_v7 = vsel %vm1648_vm0, %v6675_v8, %v6677_v0  ;;  %v6679_v44 = vpop.permute.xlu1 %6678 }
 0xa02   : > { %v6711_v20 = vmax.bf16 %v6693_v7, %v16516_v40  ;;  %v6694_v55 = vsel %vm1648_vm0, %v6677_v0, %v6679_v44 }
 0xa03   : > { %v6712_v12 = vmax.bf16 %v6694_v55, %v16555_v50 }
 0xa04   : > { %6732 = vrot.lane.b32.xlu1 %v6711_v20, %s17626_s4 }
 0xa08   : > { %v6687_v35 = vpop.permute.xlu0 %6686 }
 0xa09   : > { %v6689_v45 = vpop.permute.xlu1 %6688  ;;  %v6697_v26 = vsel %vm1648_vm0, %v6685_v16, %v6687_v35 }
 0xa0a   : > { %v6698_v38 = vsel %vm1648_vm0, %v6687_v35, %v6689_v45 }
 0xa0b   : > { %v16598_v46 = vmax.bf16 %v6698_v38, %v6659_v52 }
 0xa0c   : > { %v6683_v28 = vpop.permute.xlu0 %6682 }
 0xa0d   : > { %v6696_v1 = vsel %vm1648_vm0, %v6683_v28, %v6685_v16  ;;  %6744 = vrot.lane.b32.xlu1 %v16598_v46, %s17626_s4 }
 0xa0e   : > { %v6715_v42 = vmax.bf16 %v6696_v1, %v16537_v4  ;;  %v6716_v4 = vmax.bf16 %v6697_v26, %v16540_v33  ;;  %v6781_v33 = vld [vmem:[#allocation2 + $0x8] sm:$0xff] }
 0xa10   : > { %6740 = vrot.lane.b32.xlu0 %v6715_v42, %s17626_s4  ;;  %v6691_v40 = vpop.permute.xlu0 %6690 }
 0xa11   : > { %v6681_v15 = vpop.permute.xlu1 %6680  ;;  %v6699_v22 = vsel %vm1648_vm0, %v6689_v45, %v6691_v40 }
 0xa12   : > { %v6695_v43 = vsel %vm1648_vm0, %v6679_v44, %v6681_v15  ;;  %v6718_v61 = vmax.bf16 %v6699_v22, %v6660_v37  ;;  %v6714_v50 = vmax.bf16 %v6681_v15, %v6656_v29  ;;  %v13032_v37 = vld [vmem:[%s17637_s5] sm:$0xff]   ;;  %s17638_s5 = smov 96   ;;  %vm7686_vm0 = vcmask 113664  }
 0xa13   : > { %v6713_v2 = vmax.bf16 %v6695_v43, %v16558_v53  ;;  %v6719_v53 = vmax.bf16 %v6691_v40, %v6661_v60  ;;  %v16648_v40 = vld [vmem:[#allocation4] sm:$0xf] }
 0xa14   : > { %6734 = vrot.lane.b32.xlu0 %v6712_v12, %s17626_s4  ;;  %v11773_v43 = vcombine.low %v16648_v40, %v16648_v40 }
 0xa15   : > { %6736 = vrot.lane.b32.xlu1 %v6713_v2, %s17626_s4 }
 0xa18   : > { %6742 = vrot.lane.b32.xlu0 %v6716_v4, %s17626_s4 }
 0xa19   : > { %6746 = vrot.lane.b32.xlu1 %v6718_v61, %s17626_s4 }
 0xa1c   : > { %6738 = vrot.lane.b32.xlu0 %v6714_v50, %s17626_s4 }
 0xa1d   : > { %6784 = vperm.xlu1 %13017, %v6780_v57  }
 0xa20   : > { %6748 = vrot.lane.b32.xlu0 %v6719_v53, %s17626_s4  ;;  %s17471_s4 = smov 124  }
 0xa24   : > { %6789 = vperm.xlu0 %13011, %v6781_v33   ;;  %v7893_v33 = vld [vmem:[#allocation6] sm:$0xff] }
 0xa67   : > { %v6731_v24 = vpop.permute.xlu1 %6730 }
 0xa76   : > { %v6733_v18 = vpop.permute.xlu1 %6732 }
 0xa77   : > { %v6750_v47 = vsel %vm1830_vm2, %v6731_v24, %v6733_v18  ;;  %v7917_v24 = vld [vmem:[#allocation9] sm:$0xff] }
 0xa78   : > { %v6768_v5 = vmax.bf16 %v6750_v47, %v6710_v30 }
 0xa7f   : > { %v6745_v13 = vpop.permute.xlu1 %6744 }
 0xa82   : > { %v6741_v32 = vpop.permute.xlu0 %6740 }
 0xa86   : > { %v6735_v51 = vpop.permute.xlu0 %6734 }
 0xa87   : > { %v6751_v59 = vsel %vm1830_vm2, %v6733_v18, %v6735_v51  ;;  %v6737_v34 = vpop.permute.xlu1 %6736 }
 0xa88   : > { %v6769_v48 = vmax.bf16 %v6751_v59, %v6711_v20  ;;  %v6752_v6 = vsel %vm1830_vm2, %v6735_v51, %v6737_v34 }
 0xa89   : > { %v6770_v62 = vmax.bf16 %v6752_v6, %v6712_v12 }
 0xa8a   : > { %6801 = vmatprep.subr.bf16.mxu0 %v6769_v48  ;;  %v6743_v10 = vpop.permute.xlu0 %6742 }
 0xa8b   : > { %v6754_v54 = vsel %vm1830_vm2, %v6741_v32, %v6743_v10  ;;  %v6755_v31 = vsel %vm1830_vm2, %v6743_v10, %v6745_v13  ;;  %6802 = vmatpush1.bf16.msra.mxu0 %v6768_v5  ;;  %v6747_v25 = vpop.permute.xlu1 %6746 }
 0xa8c   : > { %v6773_v52 = vmax.bf16 %v6754_v54, %v6715_v42  ;;  %v6774_v39 = vmax.bf16 %v6755_v31, %v6716_v4  ;;  %v6756_v21 = vsel %vm1830_vm2, %v6745_v13, %v6747_v25 }
 0xa8d   : > { %v6775_v58 = vmax.bf16 %v6756_v21, %v16598_v46 }
 0xa8e   : > { %6803 = vmatprep.subr.bf16.mxu0 %v6774_v39  ;;  %v6739_v9 = vpop.permute.xlu0 %6738 }
 0xa8f   : > { %v6753_v49 = vsel %vm1830_vm2, %v6737_v34, %v6739_v9  ;;  %6804 = vmatpush1.bf16.msra.mxu0 %v6773_v52  ;;  %v6772_v27 = vmax.bf16 %v6739_v9, %v6714_v50 }
 0xa90   : > { %v6771_v3 = vmax.bf16 %v6753_v49, %v6713_v2 }
 0xa92   : > { %11770 = vmatmul.mubr.msk.bf16.vlgmr.msra.gmra.mrb[80].mxu0 %vm6797_vm13, %v13032_v37  ;;  %6844 = vmatprep.subr.bf16.mxu0 %v6771_v3  ;;  %v6749_v63 = vpop.permute.xlu0 %6748 }
 0xa93   : > { %v6757_v17 = vsel %vm1830_vm2, %v6747_v25, %v6749_v63  ;;  %6845 = vmatpush1.bf16.msra.mxu0 %v6770_v62  ;;  %6876 = vmatprep.mubr.bf16.mxu0 %v17617_v23  ;;  %v6777_v14 = vmax.bf16 %v6749_v63, %v6719_v53  ;;  %v7907_v53 = vld [vmem:[#allocation7] sm:$0xff]  ;;  %vm7795_vm2 = vcmask 97280  }
 0xa94   : > { %v6776_v56 = vmax.bf16 %v6757_v17, %v6718_v61 }
 0xa96   : > { %6846 = vmatprep.subr.bf16.mxu0 %v6776_v56 }
 0xa97   : > { %6847 = vmatpush1.bf16.msra.mxu0 %v6775_v58 }
 0xa98   : > { %12089 = vmatprep.subr.bf16.mxu0 %v13856_v11 }
 0xa9a   : > { %11771 = vmatmul.mubr.msk.bf16.vlgmr.msra.gmra.mrb[84].mxu0 %vm6797_vm13, %v13032_v37 }
 0xa9b   : > { %12090 = vmatpush3.bf16.msra.mxu0 %v6772_v27  ;;  %12093 = vmatprep.mubr.msk.bf16.mxu0 %vm13857_vm12, %v13856_v11 }
 0xa9c   : > { %12091 = vmatprep.subr.bf16.mxu0 %v13856_v11  ;;  %v6785_v60 = vpop.permute.xlu1 %6784 }
 0xa9f   : > { %12092 = vmatpush3.bf16.msra.mxu0 %v6777_v14 }
 0xaa2   : > { %12094 = vmatmul.mubr.msk.bf16.vlgmr.msra.gmra.mrb[88].mxu0 %vm6797_vm13, %v13032_v37 }
 0xaa3   : > { %6993 = vmatprep.mubr.bf16.mxu0 %v17617_v23  ;;  %v6790_v36 = vpop.permute.xlu0 %6789 }
 0xb65   : > { %v6835_v19 = vpop.f32.mrb[80].mxu0 }
 0xb66   : > { %v6837_v29 = vpop.f32.mrb[81].mxu0  ;;  %v6836_v41 = vadd.f32 %v6835_v19, %v6785_v60 }
 0xb67   : > { %v6839_v8 = vpop.f32.mrb[82].mxu0  ;;  %v6838_v16 = vadd.f32 %v6837_v29, %v6785_v60 }
 0xb68   : > { %v6840_v30 = vadd.f32 %v6839_v8, %v6790_v36  ;;  %v6841_v0 = vpop.f32.mrb[83].mxu0 }
 0xb69   : > { %v6842_v7 = vadd.f32 %v6841_v0, %v6790_v36 }
 0xb6a   : > { %v16640_v20 = vpack.c.bf16 %v6840_v30, %v6836_v41 }
 0xb6b   : > { %v16642_v44 = vpack.c.bf16 %v6842_v7, %v6838_v16 }
 0xb6d   : > { %v6878_v35 = vpop.f32.mrb[84].mxu0  ;;  %6945 = vrot.lane.b32.xlu1 %v16642_v44, %s17624_s0 }
 0xb6e   : > { %v6880_v45 = vpop.f32.mrb[85].mxu0  ;;  %v6879_v46 = vadd.f32 %v6878_v35, %v6785_v60 }
 0xb6f   : > { %v6882_v38 = vpop.f32.mrb[86].mxu0  ;;  %v6881_v42 = vadd.f32 %v6880_v45, %v6785_v60 }
 0xb70   : > { %v6883_v28 = vadd.f32 %v6882_v38, %v6790_v36  ;;  %v6884_v1 = vpop.f32.mrb[87].mxu0 }
 0xb71   : > { %v6885_v55 = vadd.f32 %v6884_v1, %v6790_v36  ;;  %6943 = vrot.lane.b32.xlu1 %v16640_v20, %s17624_s0 }
 0xb72   : > { %v16650_v15 = vpack.c.bf16 %v6883_v28, %v6879_v46 }
 0xb73   : > { %v16652_v12 = vpack.c.bf16 %v6885_v55, %v6881_v42 }
 0xb74   : > { %6947 = vrot.lane.b32.xlu0 %v16650_v15, %s17624_s0 }
 0xb75   : > { %v6921_v26 = vpop.f32.mrb[88].mxu0  ;;  %6949 = vrot.lane.b32.xlu1 %v16652_v12, %s17624_s0 }
 0xb76   : > { %v12095_v2 = vpop.f32.mrb[89].mxu0  ;;  %v6922_v4 = vadd.f32 %v6921_v26, %v6785_v60 }
 0xb77   : > { %v6924_v22 = vpop.f32.mrb[90].mxu0 }
 0xb78   : > { %v6925_v61 = vadd.f32 %v6924_v22, %v6790_v36  ;;  %6937 = vrot.lane.b32.xlu0 %v11773_v43, %s17631_s3  ;;  %v12096_v50 = vpop.f32.mrb[91].mxu0 }
 0xb79   : > { %7134 = vrot.lane.b32.xlu1 %v16650_v15, %s17471_s4 }
 0xb7a   : > { %v6932_v57 = vpack.c.bf16 %v6925_v61, %v6922_v4 }
 0xb7c   : > { %7132 = vrot.lane.b32.xlu0 %v16642_v44, %s17471_s4 }
 0xb7d   : > { %7128 = vrot.lane.b32.xlu1 %v11773_v43, %s17638_s5 }
 0xb80   : > { %7130 = vrot.lane.b32.xlu0 %v16640_v20, %s17471_s4 }
 0xb81   : > { %7240 = vrot.lane.b32.xlu1 %v16642_v44, %s17630_s2 }
 0xb84   : > { %7136 = vrot.lane.b32.xlu0 %v16652_v12, %s17471_s4  ;;  %s17476_s4 = smov 68  }
 0xb85   : > { %7238 = vrot.lane.b32.xlu1 %v16640_v20, %s17630_s2 }
 0xb88   : > { %7242 = vrot.lane.b32.xlu0 %v16650_v15, %s17630_s2 }
 0xb89   : > { %7244 = vrot.lane.b32.xlu1 %v16652_v12, %s17630_s2 }
 0xb8c   : > { %7235 = vrot.lane.b32.xlu0 %v11773_v43, %s17625_s9 }
 0xb8d   : > { %7349 = vrot.lane.b32.xlu1 %v16642_v44, %s17621_s23 }
 0xb90   : > { %7246 = vrot.lane.b32.xlu0 %v6932_v57, %s17630_s2 }
 0xb91   : > { %7347 = vrot.lane.b32.xlu1 %v16640_v20, %s17621_s23 }
 0xb94   : > { %7351 = vrot.lane.b32.xlu0 %v16650_v15, %s17621_s23 }
 0xb95   : > { %7353 = vrot.lane.b32.xlu1 %v16652_v12, %s17621_s23 }
 0xb98   : > { %7345 = vrot.lane.b32.xlu0 %v11773_v43, %s17632_s7 }
 0xb99   : > { %7458 = vrot.lane.b32.xlu1 %v16642_v44, %s17476_s4 }
 0xb9c   : > { %7355 = vrot.lane.b32.xlu0 %v6932_v57, %s17621_s23 }
 0xb9d   : > { %7456 = vrot.lane.b32.xlu1 %v16640_v20, %s17476_s4 }
 0xba0   : > { %7460 = vrot.lane.b32.xlu0 %v16650_v15, %s17476_s4 }
 0xba1   : > { %7462 = vrot.lane.b32.xlu1 %v16652_v12, %s17476_s4 }
 0xba4   : > { %7454 = vrot.lane.b32.xlu0 %v11773_v43, %s17639_s6 }
 0xba5   : > { %7568 = vrot.lane.b32.xlu1 %v16642_v44, %s17640_s10 }
 0xba8   : > { %7464 = vrot.lane.b32.xlu0 %v6932_v57, %s17476_s4  ;;  %s17478_s4 = smov 12  }
 0xba9   : > { %7566 = vrot.lane.b32.xlu1 %v16640_v20, %s17640_s10 }
 0xbac   : > { %7570 = vrot.lane.b32.xlu0 %v16650_v15, %s17640_s10 }
 0xbad   : > { %7572 = vrot.lane.b32.xlu1 %v16652_v12, %s17640_s10 }
 0xbb0   : > { %7564 = vrot.lane.b32.xlu0 %v11773_v43, %s17628_s1 }
 0xbb1   : > { %7678 = vrot.lane.b32.xlu1 %v16642_v44, %s17480_s11 }
 0xbb4   : > { %7574 = vrot.lane.b32.xlu0 %v6932_v57, %s17640_s10 }
 0xbb5   : > { %7676 = vrot.lane.b32.xlu1 %v16640_v20, %s17480_s11 }
 0xbb8   : > { %7680 = vrot.lane.b32.xlu0 %v16650_v15, %s17480_s11 }
 0xbb9   : > { %7682 = vrot.lane.b32.xlu1 %v16652_v12, %s17480_s11 }
 0xbbc   : > { %7674 = vrot.lane.b32.xlu0 %v11773_v43, %s17640_s10 }
 0xbbd   : > { %7787 = vrot.lane.b32.xlu1 %v16642_v44, %s17478_s4 }
 0xbc0   : > { %7684 = vrot.lane.b32.xlu0 %v6932_v57, %s17480_s11  ;;  %s13862_s11 = smov 120  }
 0xbc1   : > { %7785 = vrot.lane.b32.xlu1 %v16640_v20, %s17478_s4 }
 0xbc4   : > { %7789 = vrot.lane.b32.xlu0 %v16650_v15, %s17478_s4 }
 0xbc5   : > { %7793 = vrot.lane.b32.xlu1 %v6932_v57, %s17478_s4 }
 0xbc8   : > { %7791 = vrot.lane.b32.xlu0 %v16652_v12, %s17478_s4  ;;  %s17641_s4 = sld [smem:[#allocation66_spill]] }
 0xbc9   : > { %7910 = vperm.xlu1 %13017, %v7907_v53  }
 0xbcc   : > { %7896 = vperm.xlu0 %13011, %v7893_v33  }
 0xbd0   : > { %7920 = vperm.xlu0 %13011, %v7917_v24  }
 0xbdf   : > { %v6946_v18 = vpop.permute.xlu1 %6945 }
 0xbe3   : > { %v6944_v32 = vpop.permute.xlu1 %6943 }
 0xbe4   : > { %v6951_v51 = vsel %vm1739_vm1, %v6944_v32, %v6946_v18 }
 0xbe6   : > { %v6948_v13 = vpop.permute.xlu0 %6947 }
 0xbe7   : > { %v6952_v47 = vsel %vm1739_vm1, %v6946_v18, %v6948_v13  ;;  %v6950_v59 = vpop.permute.xlu1 %6949 }
 0xbe8   : > { %6961 = vmatprep.subr.bf16.mxu0 %v6952_v47  ;;  %v6953_v5 = vsel %vm1739_vm1, %v6948_v13, %v6950_v59 }
 0xbe9   : > { %6962 = vmatpush1.bf16.msra.mxu0 %v6951_v51 }
 0xbea   : > { %v6938_v48 = vpop.permute.xlu0 %6937  ;;  %7002 = vmatprep.subr.bf16.mxu0 %v6950_v59 }
 0xbeb   : > { %v7135_v10 = vpop.permute.xlu1 %7134 }
 0xbec   : > { %11774 = vmatmul.mubr.msk.bf16.vlgmr.msra.gmra.mrb[92].mxu0 %vm2494_vm8, %v6938_v48 }
 0xbed   : > { %7003 = vmatpush1.bf16.msra.mxu0 %v6953_v5  ;;  %7034 = vmatprep.mubr.bf16.mxu0 %v17617_v23 }
 0xbee   : > { %v7133_v34 = vpop.permute.xlu0 %7132  ;;  %7046 = vmatprep.subr.bf16.mxu0 %v16642_v44 }
 0xbef   : > { %v7129_v31 = vpop.permute.xlu1 %7128  ;;  %v7140_v39 = vsel %vm7138_vm14, %v7133_v34, %v7135_v10 }
 0xbf2   : > { %v7131_v54 = vpop.permute.xlu0 %7130 }
 0xbf3   : > { %v7241_v6 = vpop.permute.xlu1 %7240  ;;  %v7139_v37 = vsel %vm7138_vm14, %v7131_v54, %v7133_v34 }
 0xbf4   : > { %11775 = vmatmul.mubr.msk.bf16.vlgmr.msra.gmra.mrb[96].mxu0 %vm2494_vm8, %v6938_v48 }
 0xbf5   : > { %7047 = vmatpush1.bf16.msra.mxu0 %v16640_v20  ;;  %7078 = vmatprep.mubr.bf16.mxu0 %v17617_v23 }
 0xbf6   : > { %7087 = vmatprep.subr.bf16.mxu0 %v16652_v12  ;;  %v7137_v52 = vpop.permute.xlu0 %7136 }
 0xbf7   : > { %v7239_v25 = vpop.permute.xlu1 %7238  ;;  %v7141_v21 = vsel %vm7138_vm14, %v7135_v10, %v7137_v52 }
 0xbf8   : > { %v7248_v58 = vsel %vm2120_vm5, %v7239_v25, %v7241_v6 }
 0xbfa   : > { %v7243_v9 = vpop.permute.xlu0 %7242 }
 0xbfb   : > { %v7245_v3 = vpop.permute.xlu1 %7244  ;;  %v7249_v63 = vsel %vm2120_vm5, %v7241_v6, %v7243_v9 }
 0xbfc   : > { %11776 = vmatmul.mubr.msk.bf16.vlgmr.msra.gmra.mrb[100].mxu0 %vm2494_vm8, %v16648_v40  ;;  %v7250_v36 = vsel %vm2120_vm5, %v7243_v9, %v7245_v3 }
 0xbfd   : > { %7088 = vmatpush1.bf16.msra.mxu0 %v16650_v15  ;;  %7119 = vmatprep.mubr.bf16.mxu0 %v17617_v23 }
 0xbfe   : > { %7149 = vmatprep.subr.bf16.mxu0 %v7140_v39  ;;  %v7236_v49 = vpop.permute.xlu0 %7235 }
 0xbff   : > { %v7350_v17 = vpop.permute.xlu1 %7349 }
 0xc02   : > { %v7247_v62 = vpop.permute.xlu0 %7246 }
 0xc03   : > { %v7251_v27 = vsel %vm2120_vm5, %v7245_v3, %v7247_v62  ;;  %v7348_v14 = vpop.permute.xlu1 %7347 }
 0xc04   : > { %11777 = vmatmul.mubr.msk.bf16.vlgmr.msra.gmra.mrb[104].mxu0 %vm2494_vm8, %v16648_v40  ;;  %v7357_v0 = vsel %vm2322_vm7, %v7348_v14, %v7350_v17 }
 0xc05   : > { %7150 = vmatpush1.bf16.msra.mxu0 %v7139_v37  ;;  %7181 = vmatprep.mubr.bf16.mxu0 %v17617_v23 }
 0xc06   : > { %7190 = vmatprep.subr.bf16.mxu0 %v7137_v52  ;;  %v7352_v56 = vpop.permute.xlu0 %7351  ;;  %v7784_v52 = vld [vmem:[#allocation4 + $0x4] sm:$0xf] }
 0xc07   : > { %v7354_v60 = vpop.permute.xlu1 %7353  ;;  %v7358_v8 = vsel %vm2322_vm7, %v7350_v17, %v7352_v56 }
 0xc08   : > { %v7359_v44 = vsel %vm2322_vm7, %v7352_v56, %v7354_v60 }
 0xc0a   : > { %v7346_v19 = vpop.permute.xlu0 %7345 }
 0xc0b   : > { %v7459_v41 = vpop.permute.xlu1 %7458 }
 0xc0c   : > { %11778 = vmatmul.mubr.msk.bf16.vlgmr.msra.gmra.mrb[108].mxu0 %vm2494_vm8, %v7129_v31 }
 0xc0d   : > { %7191 = vmatpush1.bf16.msra.mxu0 %v7141_v21  ;;  %7222 = vmatprep.mubr.bf16.mxu0 %v17617_v23 }
 0xc0e   : > { %7259 = vmatprep.subr.bf16.mxu0 %v7249_v63  ;;  %v7356_v29 = vpop.permute.xlu0 %7355 }
 0xc0f   : > { %v7360_v16 = vsel %vm2322_vm7, %v7354_v60, %v7356_v29  ;;  %v7457_v7 = vpop.permute.xlu1 %7456 }
 0xc10   : > { %v7467_v46 = vsel %vm7466_vm15, %v7457_v7, %v7459_v41 }
 0xc12   : > { %v7461_v30 = vpop.permute.xlu0 %7460 }
 0xc13   : > { %v7468_v35 = vsel %vm7466_vm15, %v7459_v41, %v7461_v30  ;;  %v7463_v45 = vpop.permute.xlu1 %7462 }
 0xc14   : > { %11779 = vmatmul.mubr.msk.bf16.vlgmr.msra.gmra.mrb[112].mxu0 %vm2494_vm8, %v7129_v31  ;;  %v7469_v15 = vsel %vm7466_vm15, %v7461_v30, %v7463_v45 }
 0xc15   : > { %7260 = vmatpush1.bf16.msra.mxu0 %v7248_v58  ;;  %7291 = vmatprep.mubr.bf16.mxu0 %v17617_v23 }
 0xc16   : > { %7300 = vmatprep.subr.bf16.mxu0 %v7251_v27  ;;  %v7455_v20 = vpop.permute.xlu0 %7454 }
 0xc17   : > { %v7569_v28 = vpop.permute.xlu1 %7568 }
 0xc1a   : > { %v7465_v38 = vpop.permute.xlu0 %7464 }
 0xc1b   : > { %v7470_v42 = vsel %vm7466_vm15, %v7463_v45, %v7465_v38  ;;  %v7567_v55 = vpop.permute.xlu1 %7566 }
 0xc1c   : > { %11780 = vmatmul.mubr.msk.bf16.vlgmr.msra.gmra.mrb[116].mxu0 %vm2494_vm8, %v7236_v49  ;;  %v7577_v2 = vsel %vm2494_vm8, %v7567_v55, %v7569_v28 }
 0xc1d   : > { %7301 = vmatpush1.bf16.msra.mxu0 %v7250_v36  ;;  %7332 = vmatprep.mubr.bf16.mxu0 %v17617_v23 }
 0xc1e   : > { %7368 = vmatprep.subr.bf16.mxu0 %v7358_v8  ;;  %v7571_v1 = vpop.permute.xlu0 %7570 }
 0xc1f   : > { %v7578_v12 = vsel %vm2494_vm8, %v7569_v28, %v7571_v1  ;;  %v7573_v43 = vpop.permute.xlu1 %7572 }
 0xc20   : > { %v7579_v53 = vsel %vm2494_vm8, %v7571_v1, %v7573_v43 }
 0xc22   : > { %v7565_v40 = vpop.permute.xlu0 %7564 }
 0xc23   : > { %v7679_v4 = vpop.permute.xlu1 %7678 }
 0xc24   : > { %11781 = vmatmul.mubr.msk.bf16.vlgmr.msra.gmra.mrb[120].mxu0 %vm2494_vm8, %v7236_v49 }
 0xc25   : > { %7369 = vmatpush1.bf16.msra.mxu0 %v7357_v0  ;;  %7400 = vmatprep.mubr.bf16.mxu0 %v17617_v23 }
 0xc26   : > { %7409 = vmatprep.subr.bf16.mxu0 %v7360_v16  ;;  %v7575_v26 = vpop.permute.xlu0 %7574 }
 0xc27   : > { %v7580_v22 = vsel %vm2494_vm8, %v7573_v43, %v7575_v26  ;;  %v7677_v50 = vpop.permute.xlu1 %7676 }
 0xc28   : > { %v7687_v32 = vsel %vm7686_vm0, %v7677_v50, %v7679_v4 }
 0xc2a   : > { %v7681_v61 = vpop.permute.xlu0 %7680 }
 0xc2b   : > { %v7688_v33 = vsel %vm7686_vm0, %v7679_v4, %v7681_v61  ;;  %v7683_v24 = vpop.permute.xlu1 %7682 }
 0xc2c   : > { %11782 = vmatmul.mubr.msk.bf16.vlgmr.msra.gmra.mrb[124].mxu0 %vm2494_vm8, %v7346_v19  ;;  %v7689_v59 = vsel %vm7686_vm0, %v7681_v61, %v7683_v24 }
 0xc2d   : > { %7410 = vmatpush1.bf16.msra.mxu0 %v7359_v44  ;;  %7441 = vmatprep.mubr.bf16.mxu0 %v17617_v23 }
 0xc2e   : > { %7478 = vmatprep.subr.bf16.mxu0 %v7468_v35  ;;  %v7675_v57 = vpop.permute.xlu0 %7674 }
 0xc2f   : > { %v7788_v47 = vpop.permute.xlu1 %7787 }
 0xc32   : > { %v7685_v18 = vpop.permute.xlu0 %7684 }
 0xc33   : > { %v7690_v13 = vsel %vm7686_vm0, %v7683_v24, %v7685_v18  ;;  %v7786_v5 = vpop.permute.xlu1 %7785 }
 0xc34   : > { %11783 = vmatmul.mubr.msk.bf16.vlgmr.msra.gmra.mrb[128].mxu0 %vm2494_vm8, %v7346_v19  ;;  %v7796_v10 = vsel %vm7795_vm2, %v7786_v5, %v7788_v47 }
 0xc35   : > { %7479 = vmatpush1.bf16.msra.mxu0 %v7467_v46  ;;  %7510 = vmatprep.mubr.bf16.mxu0 %v17617_v23 }
 0xc36   : > { %7519 = vmatprep.subr.bf16.mxu0 %v7470_v42  ;;  %v7790_v51 = vpop.permute.xlu0 %7789 }
 0xc37   : > { %v7797_v48 = vsel %vm7795_vm2, %v7788_v47, %v7790_v51  ;;  %v7794_v54 = vpop.permute.xlu1 %7793 }
 0xc3a   : > { %v7792_v34 = vpop.permute.xlu0 %7791 }
 0xc3b   : > { %v7799_v31 = vsel %vm7795_vm2, %v7792_v34, %v7794_v54  ;;  %v7798_v39 = vsel %vm7795_vm2, %v7790_v51, %v7792_v34 }
 0xc3c   : > { %11784 = vmatmul.mubr.msk.bf16.vlgmr.msra.gmra.mrb[132].mxu0 %vm2494_vm8, %v7455_v20 }
 0xc3d   : > { %7520 = vmatpush1.bf16.msra.mxu0 %v7469_v15  ;;  %7551 = vmatprep.mubr.bf16.mxu0 %v17617_v23 }
 0xc3e   : > { %7588 = vmatprep.subr.bf16.mxu0 %v7578_v12 }
 0xc44   : > { %11785 = vmatmul.mubr.msk.bf16.vlgmr.msra.gmra.mrb[136].mxu0 %vm2494_vm8, %v7455_v20 }
 0xc45   : > { %7589 = vmatpush1.bf16.msra.mxu0 %v7577_v2  ;;  %7620 = vmatprep.mubr.bf16.mxu0 %v17617_v23 }
 0xc46   : > { %7629 = vmatprep.subr.bf16.mxu0 %v7580_v22 }
 0xc4c   : > { %11786 = vmatmul.mubr.msk.bf16.vlgmr.msra.gmra.mrb[140].mxu0 %vm2494_vm8, %v7565_v40 }
 0xc4d   : > { %7630 = vmatpush1.bf16.msra.mxu0 %v7579_v53  ;;  %7661 = vmatprep.mubr.bf16.mxu0 %v17617_v23 }
 0xc4e   : > { %7698 = vmatprep.subr.bf16.mxu0 %v7688_v33 }
 0xc54   : > { %11787 = vmatmul.mubr.msk.bf16.vlgmr.msra.gmra.mrb[144].mxu0 %vm2494_vm8, %v7565_v40 }
 0xc55   : > { %7699 = vmatpush1.bf16.msra.mxu0 %v7687_v32  ;;  %7730 = vmatprep.mubr.bf16.mxu0 %v17617_v23 }
 0xc56   : > { %7739 = vmatprep.subr.bf16.mxu0 %v7690_v13 }
 0xc5c   : > { %11788 = vmatmul.mubr.msk.bf16.vlgmr.msra.gmra.mrb[148].mxu0 %vm2494_vm8, %v7675_v57 }
 0xc5d   : > { %7740 = vmatpush1.bf16.msra.mxu0 %v7689_v59  ;;  %7771 = vmatprep.mubr.bf16.mxu0 %v17617_v23 }
 0xc5e   : > { %7807 = vmatprep.subr.bf16.mxu0 %v7797_v48 }
 0xc64   : > { %11789 = vmatmul.mubr.msk.bf16.vlgmr.msra.gmra.mrb[152].mxu0 %vm2494_vm8, %v7675_v57 }
 0xc65   : > { %7808 = vmatpush1.bf16.msra.mxu0 %v7796_v10  ;;  %7839 = vmatprep.mubr.bf16.mxu0 %v17617_v23 }
 0xc66   : > { %7848 = vmatprep.subr.bf16.mxu0 %v7799_v31 }
 0xc6c   : > { %11790 = vmatmul.mubr.msk.bf16.vlgmr.msra.gmra.mrb[156].mxu0 %vm2494_vm8, %v7784_v52 }
 0xc6d   : > { %7849 = vmatpush1.bf16.msra.mxu0 %v7798_v39  ;;  %7880 = vmatprep.mubr.bf16.mxu0 %v17617_v23 }
 0xc74   : > { %11791 = vmatmul.mubr.msk.bf16.vlgmr.msra.gmra.mrb[160].mxu0 %vm2494_vm8, %v7784_v52 }
 0xc75   : > { %7996 = vmatprep.mubr.bf16.mxu0 %v17617_v23 }
 0xcbf   : > { %v6995_v6 = vpop.f32.mrb[92].mxu0 }
 0xcc0   : > { %v6997_v9 = vpop.f32.mrb[93].mxu0 }
 0xcc1   : > { %v6999_v37 = vpop.f32.mrb[94].mxu0 }
 0xcc2   : > { %v7000_v25 = vpop.f32.mrb[95].mxu0 }
 0xcc7   : > { %v7036_v49 = vpop.f32.mrb[96].mxu0 }
 0xcc8   : > { %v7038_v3 = vpop.f32.mrb[97].mxu0 }
 0xcc9   : > { %v7040_v62 = vpop.f32.mrb[98].mxu0 }
 0xcca   : > { %v7041_v21 = vpop.f32.mrb[99].mxu0 }
 0xccf   : > { %v7080_v63 = vpop.f32.mrb[100].mxu0 }
 0xcd0   : > { %v7081_v17 = vadd.f32 %v7080_v63, %v6995_v6  ;;  %v7082_v56 = vpop.f32.mrb[101].mxu0 }
 0xcd1   : > { %v7083_v58 = vadd.f32 %v7082_v56, %v6997_v9  ;;  %v7084_v27 = vpop.f32.mrb[102].mxu0 }
 0xcd2   : > { %v7085_v14 = vpop.f32.mrb[103].mxu0 }
 0xcd7   : > { %v7121_v19 = vpop.f32.mrb[104].mxu0 }
 0xcd8   : > { %v7122_v60 = vadd.f32 %v7121_v19, %v7036_v49  ;;  %v7123_v29 = vpop.f32.mrb[105].mxu0 }
 0xcd9   : > { %v7124_v36 = vadd.f32 %v7123_v29, %v7038_v3  ;;  %v7125_v8 = vpop.f32.mrb[106].mxu0 }
 0xcda   : > { %v7126_v41 = vpop.f32.mrb[107].mxu0 }
 0xcdf   : > { %v7183_v30 = vpop.f32.mrb[108].mxu0 }
 0xce0   : > { %v7231_v0 = vadd.f32 %v7183_v30, %v7081_v17  ;;  %v7185_v16 = vpop.f32.mrb[109].mxu0 }
 0xce1   : > { %v7232_v7 = vadd.f32 %v7185_v16, %v7083_v58  ;;  %v7187_v20 = vpop.f32.mrb[110].mxu0 }
 0xce2   : > { %v7188_v44 = vpop.f32.mrb[111].mxu0 }
 0xce7   : > { %v7224_v35 = vpop.f32.mrb[112].mxu0 }
 0xce8   : > { %v7233_v45 = vadd.f32 %v7224_v35, %v7122_v60  ;;  %v7226_v38 = vpop.f32.mrb[113].mxu0 }
 0xce9   : > { %v7234_v46 = vadd.f32 %v7226_v38, %v7124_v36  ;;  %v7228_v28 = vpop.f32.mrb[114].mxu0 }
 0xcea   : > { %v7229_v1 = vpop.f32.mrb[115].mxu0 }
 0xcef   : > { %v7293_v42 = vpop.f32.mrb[116].mxu0 }
 0xcf0   : > { %v7341_v55 = vadd.f32 %v7293_v42, %v7231_v0  ;;  %v7295_v40 = vpop.f32.mrb[117].mxu0 }
 0xcf1   : > { %v7342_v15 = vadd.f32 %v7295_v40, %v7232_v7  ;;  %v7297_v12 = vpop.f32.mrb[118].mxu0 }
 0xcf2   : > { %v7298_v43 = vpop.f32.mrb[119].mxu0 }
 0xcf7   : > { %v7334_v26 = vpop.f32.mrb[120].mxu0 }
 0xcf8   : > { %v7343_v2 = vadd.f32 %v7334_v26, %v7233_v45  ;;  %v7336_v22 = vpop.f32.mrb[121].mxu0 }
 0xcf9   : > { %v7344_v4 = vadd.f32 %v7336_v22, %v7234_v46  ;;  %v7338_v61 = vpop.f32.mrb[122].mxu0  ;;  %v7911_v22 = vpop.permute.xlu1 %7910 }
 0xcfa   : > { %v7339_v50 = vpop.f32.mrb[123].mxu0 }
 0xcff   : > { %v7402_v57 = vpop.f32.mrb[124].mxu0 }
 0xd00   : > { %v7450_v53 = vadd.f32 %v7402_v57, %v7341_v55  ;;  %v7404_v33 = vpop.f32.mrb[125].mxu0  ;;  %v7897_v55 = vpop.permute.xlu0 %7896 }
 0xd01   : > { %v7451_v24 = vadd.f32 %v7404_v33, %v7342_v15  ;;  %v7406_v18 = vpop.f32.mrb[126].mxu0 }
 0xd02   : > { %v7407_v32 = vpop.f32.mrb[127].mxu0 }
 0xd04   : > { %v7921_v50 = vpop.permute.xlu0 %7920 }
 0xd07   : > { %v7443_v13 = vpop.f32.mrb[128].mxu0 }
 0xd08   : > { %v7452_v47 = vadd.f32 %v7443_v13, %v7343_v2  ;;  %v7445_v51 = vpop.f32.mrb[129].mxu0 }
 0xd09   : > { %v7453_v59 = vadd.f32 %v7445_v51, %v7344_v4  ;;  %v7447_v48 = vpop.f32.mrb[130].mxu0 }
 0xd0a   : > { %v7448_v5 = vpop.f32.mrb[131].mxu0 }
 0xd0f   : > { %v7512_v34 = vpop.f32.mrb[132].mxu0 }
 0xd10   : > { %v7560_v10 = vadd.f32 %v7512_v34, %v7450_v53  ;;  %v7514_v54 = vpop.f32.mrb[133].mxu0 }
 0xd11   : > { %v7561_v31 = vadd.f32 %v7514_v54, %v7451_v24  ;;  %v7516_v52 = vpop.f32.mrb[134].mxu0 }
 0xd12   : > { %v7517_v39 = vpop.f32.mrb[135].mxu0 }
 0xd17   : > { %v7553_v6 = vpop.f32.mrb[136].mxu0 }
 0xd18   : > { %v7562_v9 = vadd.f32 %v7553_v6, %v7452_v47  ;;  %v7555_v37 = vpop.f32.mrb[137].mxu0 }
 0xd19   : > { %v7563_v25 = vadd.f32 %v7555_v37, %v7453_v59  ;;  %v7557_v49 = vpop.f32.mrb[138].mxu0 }
 0xd1a   : > { %v7558_v3 = vpop.f32.mrb[139].mxu0  ;;  %v8948_v49 = vld [vmem:[#allocation10 + $0x8] sm:$0xff] }
 0xd1b   : > { %v8947_v3 = vld [vmem:[#allocation10] sm:$0xff] }
 0xd1f   : > { %v7622_v62 = vpop.f32.mrb[140].mxu0 }
 0xd20   : > { %v7670_v21 = vadd.f32 %v7622_v62, %v7560_v10  ;;  %v7624_v63 = vpop.f32.mrb[141].mxu0  ;;  %v16810_v10 = vld [vmem:[%s17641_s4] sm:$0xff]   ;;  %s17644_s4 = smov 68   ;;  %v8972_v62 = vld [vmem:[#allocation12 + $0x8] sm:$0xff] }
 0xd21   : > { %v7671_v17 = vadd.f32 %v7624_v63, %v7561_v31  ;;  %v7626_v56 = vpop.f32.mrb[142].mxu0  ;;  %v8990_v63 = vld [vmem:[#allocation13 + $0x8] sm:$0xff] }
 0xd22   : > { %v7627_v58 = vpop.f32.mrb[143].mxu0 }
 0xd27   : > { %v7663_v27 = vpop.f32.mrb[144].mxu0 }
 0xd28   : > { %v7672_v14 = vadd.f32 %v7663_v27, %v7562_v9  ;;  %v7665_v19 = vpop.f32.mrb[145].mxu0 }
 0xd29   : > { %v7673_v60 = vadd.f32 %v7665_v19, %v7563_v25  ;;  %v7667_v29 = vpop.f32.mrb[146].mxu0 }
 0xd2a   : > { %v7668_v36 = vpop.f32.mrb[147].mxu0 }
 0xd2f   : > { %v7732_v8 = vpop.f32.mrb[148].mxu0 }
 0xd30   : > { %v7780_v41 = vadd.f32 %v7732_v8, %v7670_v21  ;;  %v7734_v30 = vpop.f32.mrb[149].mxu0  ;;  %v8971_v21 = vld [vmem:[#allocation12] sm:$0xff] }
 0xd31   : > { %v7781_v0 = vadd.f32 %v7734_v30, %v7671_v17  ;;  %v7736_v16 = vpop.f32.mrb[150].mxu0  ;;  %v8989_v17 = vld [vmem:[#allocation13] sm:$0xff] }
 0xd32   : > { %v7737_v7 = vpop.f32.mrb[151].mxu0 }
 0xd37   : > { %v7773_v20 = vpop.f32.mrb[152].mxu0 }
 0xd38   : > { %v7782_v44 = vadd.f32 %v7773_v20, %v7672_v14  ;;  %v7775_v35 = vpop.f32.mrb[153].mxu0 }
 0xd39   : > { %v7783_v45 = vadd.f32 %v7775_v35, %v7673_v60  ;;  %v7777_v38 = vpop.f32.mrb[154].mxu0 }
 0xd3a   : > { %v7778_v46 = vpop.f32.mrb[155].mxu0 }
 0xd3f   : > { %v7841_v28 = vpop.f32.mrb[156].mxu0 }
 0xd40   : > { %v7889_v1 = vadd.f32 %v7841_v28, %v7780_v41  ;;  %v7843_v42 = vpop.f32.mrb[157].mxu0 }
 0xd41   : > { %v7890_v40 = vadd.f32 %v7843_v42, %v7781_v0  ;;  %v7845_v15 = vpop.f32.mrb[158].mxu0 }
 0xd42   : > { %v7899_v12 = vadd.f32 %v7897_v55, %v7889_v1  ;;  %v7846_v43 = vpop.f32.mrb[159].mxu0 }
 0xd43   : > { %v7900_v26 = vadd.f32 %v7897_v55, %v7890_v40 }
 0xd44   : > { %v7903_v2 = vmax.f32 %v7899_v12, 0.0 }
 0xd45   : > { %v7904_v4 = vmax.f32 %v7900_v26, 0.0 }
 0xd46   : > { %v7913_v61 = vmul.f32 %v7911_v22, %v7903_v2 }
 0xd47   : > { %v7914_v57 = vmul.f32 %v7911_v22, %v7904_v4  ;;  %v7882_v53 = vpop.f32.mrb[160].mxu0 }
 0xd48   : > { %v7923_v33 = vadd.f32 %v7921_v50, %v7913_v61  ;;  %v7891_v24 = vadd.f32 %v7882_v53, %v7782_v44  ;;  %v7884_v18 = vpop.f32.mrb[161].mxu0 }
 0xd49   : > { %v7924_v32 = vadd.f32 %v7921_v50, %v7914_v57  ;;  %v7892_v13 = vadd.f32 %v7884_v18, %v7783_v45  ;;  %v7886_v47 = vpop.f32.mrb[162].mxu0 }
 0xd4a   : > { %v16801_v51 = vpack.c.bf16 %v7923_v33, %v7923_v33  ;;  %v7901_v59 = vadd.f32 %v7897_v55, %v7891_v24  ;;  %v7887_v48 = vpop.f32.mrb[163].mxu0 }
 0xd4b   : > { %v16803_v5 = vpack.c.bf16 %v7924_v32, %v7924_v32  ;;  %v7902_v39 = vadd.f32 %v7897_v55, %v7892_v13 }
 0xd4c   : > { %v7905_v34 = vmax.f32 %v7901_v59, 0.0  ;;  %7943 = vrot.lane.b32.xlu1 %v16801_v51, %s17624_s0  ;;  %v8052_v44 = vsel %vm4461_vm9, %v16801_v51, 0 }
 0xd4d   : > { %7945 = vrot.lane.b32.xlu0 %v16803_v5, %s17624_s0  ;;  %v7906_v6 = vmax.f32 %v7902_v39, 0.0 }
 0xd4e   : > { %v7915_v54 = vmul.f32 %v7911_v22, %v7905_v34 }
 0xd4f   : > { %v7916_v9 = vmul.f32 %v7911_v22, %v7906_v6 }
 0xd50   : > { %v7925_v31 = vadd.f32 %v7921_v50, %v7915_v54 }
 0xd51   : > { %7938 = vrot.lane.b32.xlu0 %v16810_v10, %s13862_s11  ;;  %s17643_s11 = smov 104   ;;  %v7926_v37 = vadd.f32 %v7921_v50, %v7916_v9 }
 0xd52   : > { %v16813_v52 = vpack.c.bf16 %v7925_v31, %v7925_v31 }
 0xd53   : > { %v7930_v25 = vpack.c.bf16 %v7926_v37, %v7926_v37 }
 0xd54   : > { %7947 = vrot.lane.b32.xlu1 %v16813_v52, %s17624_s0  ;;  %v8058_v28 = vsel %vm4461_vm9, %v16813_v52, 0 }
 0xd55   : > { %8148 = vrot.lane.b32.xlu0 %v16803_v5, %s17642_s12 }
 0xd58   : > { %8146 = vrot.lane.b32.xlu1 %v16801_v51, %s17642_s12 }
 0xd59   : > { %8144 = vrot.lane.b32.xlu0 %v16810_v10, %s17631_s3 }
 0xd5c   : > { %8150 = vrot.lane.b32.xlu1 %v16813_v52, %s17642_s12 }
 0xd5d   : > { %8261 = vrot.lane.b32.xlu0 %v16803_v5, %s17630_s2 }
 0xd60   : > { %8259 = vrot.lane.b32.xlu1 %v16801_v51, %s17630_s2 }
 0xd61   : > { %8256 = vrot.lane.b32.xlu0 %v16810_v10, %s17643_s11 }
 0xd64   : > { %8263 = vrot.lane.b32.xlu1 %v16813_v52, %s17630_s2 }
 0xd65   : > { %8376 = vrot.lane.b32.xlu0 %v16803_v5, %s17621_s23 }
 0xd68   : > { %8374 = vrot.lane.b32.xlu1 %v16801_v51, %s17621_s23 }
 0xd69   : > { %8372 = vrot.lane.b32.xlu0 %v16810_v10, %s17638_s5 }
 0xd6c   : > { %8378 = vrot.lane.b32.xlu1 %v16813_v52, %s17621_s23 }
 0xd6d   : > { %8491 = vrot.lane.b32.xlu0 %v16803_v5, %s17644_s4 }
 0xd70   : > { %8489 = vrot.lane.b32.xlu1 %v16801_v51, %s17644_s4 }
 0xd71   : > { %8487 = vrot.lane.b32.xlu0 %v16810_v10, %s17645_s13 }
 0xd74   : > { %8493 = vrot.lane.b32.xlu1 %v16813_v52, %s17644_s4 }
 0xd75   : > { %8606 = vrot.lane.b32.xlu0 %v16803_v5, %s17640_s10 }
 0xd78   : > { %8604 = vrot.lane.b32.xlu1 %v16801_v51, %s17640_s10 }
 0xd79   : > { %8602 = vrot.lane.b32.xlu0 %v16810_v10, %s17625_s9 }
 0xd7c   : > { %8608 = vrot.lane.b32.xlu1 %v16813_v52, %s17640_s10 }
 0xd7d   : > { %8721 = vrot.lane.b32.xlu0 %v16803_v5, %s17646_s14 }
 0xd80   : > { %8719 = vrot.lane.b32.xlu1 %v16801_v51, %s17646_s14 }
 0xd81   : > { %8717 = vrot.lane.b32.xlu0 %v16810_v10, %s17630_s2 }
 0xd84   : > { %8723 = vrot.lane.b32.xlu1 %v16813_v52, %s17646_s14 }
 0xd85   : > { %8836 = vrot.lane.b32.xlu0 %v16803_v5, %s17647_s15 }
 0xd88   : > { %8834 = vrot.lane.b32.xlu1 %v16801_v51, %s17647_s15 }
 0xd89   : > { %8832 = vrot.lane.b32.xlu0 %v16810_v10, %s17632_s7 }
 0xd8c   : > { %8838 = vrot.lane.b32.xlu1 %v16813_v52, %s17647_s15 }
 0xd8d   : > { %8380 = vrot.lane.b32.xlu0 %v7930_v25, %s17621_s23 }
 0xd90   : > { %8265 = vrot.lane.b32.xlu1 %v7930_v25, %s17630_s2 }
 0xd91   : > { %8610 = vrot.lane.b32.xlu0 %v7930_v25, %s17640_s10 }
 0xd94   : > { %8495 = vrot.lane.b32.xlu1 %v7930_v25, %s17644_s4 }
 0xd95   : > { %8840 = vrot.lane.b32.xlu0 %v7930_v25, %s17647_s15 }
 0xd98   : > { %8725 = vrot.lane.b32.xlu1 %v7930_v25, %s17646_s14 }
 0xd99   : > { %8956 = vperm.xlu0 %13011, %v8948_v49  }
 0xd9c   : > { %8951 = vperm.xlu1 %13017, %v8947_v3  }
 0xd9d   : > { %8980 = vperm.xlu0 %13011, %v8972_v62  }
 0xda0   : > { %8975 = vperm.xlu1 %13017, %v8971_v21  }
 0xda1   : > { %8998 = vperm.xlu0 %13011, %v8990_v63  }
 0xda4   : > { %8993 = vperm.xlu1 %13017, %v8989_v17  }
 0xdbe   : > { %v7944_v58 = vpop.permute.xlu1 %7943 }
 0xdbf   : > { %v7946_v56 = vpop.permute.xlu0 %7945 }
 0xdc0   : > { %v7949_v14 = vsel %vm1739_vm1, %v7944_v58, %v7946_v56 }
 0xdc1   : > { %v7956_v36 = vsel %vm4461_vm9, %v7949_v14, 0 }
 0xdc3   : > { %v7939_v27 = vpop.permute.xlu0 %7938 }
 0xdc6   : > { %v7948_v19 = vpop.permute.xlu1 %7947 }
 0xdc7   : > { %v8149_v60 = vpop.permute.xlu0 %8148  ;;  %v7950_v29 = vsel %vm1739_vm1, %v7946_v56, %v7948_v19  ;;  %v7962_v30 = vsel %vm4461_vm9, %v7948_v19, 0 }
 0xdc8   : > { %11793 = vmatprep.subr.msk.bf16.mxu0 %vm4461_vm9, %v7950_v29 }
 0xdc9   : > { %7965 = vmatpush1.bf16.msra.mxu0 %v7956_v36 }
 0xdca   : > { %v8147_v8 = vpop.permute.xlu1 %8146  ;;  %12097 = vmatprep.subr.bf16.mxu0 %v13856_v11 }
 0xdcb   : > { %v8145_v41 = vpop.permute.xlu0 %8144  ;;  %v8152_v40 = vsel %vm7138_vm14, %v8147_v8, %v8149_v60 }
 0xdcc   : > { %11794 = vmatmul.mubr.msk.bf16.vlgmr.msra.gmra.mrb[164].mxu0 %vm5535_vm11, %v7939_v27  ;;  %v8158_v43 = vsel %vm4461_vm9, %v8152_v40, 0 }
 0xdcd   : > { %12098 = vmatpush3.bf16.msra.mxu0 %v7962_v30  ;;  %12099 = vmatprep.mubr.msk.bf16.mxu0 %vm13857_vm12, %v13856_v11 }
 0xdce   : > { %11796 = vmatprep.subr.msk.bf16.mxu0 %vm4461_vm9, %v16803_v5  ;;  %v8151_v0 = vpop.permute.xlu1 %8150 }
 0xdcf   : > { %v8262_v16 = vpop.permute.xlu0 %8261  ;;  %v8153_v1 = vsel %vm7138_vm14, %v8149_v60, %v8151_v0  ;;  %v8164_v61 = vsel %vm4461_vm9, %v8151_v0, 0 }
 0xdd2   : > { %v8260_v7 = vpop.permute.xlu1 %8259 }
 0xdd3   : > { %v16890_v20 = vpop.permute.xlu0 %8256  ;;  %v8267_v33 = vsel %vm2120_vm5, %v8260_v7, %v8262_v16 }
 0xdd4   : > { %12100 = vmatmul.mubr.msk.bf16.vlgmr.msra.gmra.mrb[168].mxu0 %vm5535_vm11, %v7939_v27  ;;  %v8274_v32 = vsel %vm4461_vm9, %v8267_v33, 0 }
 0xdd5   : > { %8061 = vmatpush1.bf16.msra.mxu0 %v8052_v44  ;;  %8092 = vmatprep.mubr.bf16.mxu0 %v17617_v23 }
 0xdd6   : > { %v8264_v35 = vpop.permute.xlu1 %8263  ;;  %12103 = vmatprep.subr.bf16.mxu0 %v13856_v11 }
 0xdd7   : > { %v8377_v45 = vpop.permute.xlu0 %8376  ;;  %v8268_v50 = vsel %vm2120_vm5, %v8262_v16, %v8264_v35 }
 0xdda   : > { %v8375_v38 = vpop.permute.xlu1 %8374 }
 0xddb   : > { %v16897_v46 = vpop.permute.xlu0 %8372  ;;  %v8382_v59 = vsel %vm2322_vm7, %v8375_v38, %v8377_v45 }
 0xddc   : > { %11797 = vmatmul.mubr.msk.bf16.vlgmr.msra.gmra.mrb[164].mxu0 %vm5535_vm11, %v16810_v10  ;;  %v8389_v5 = vsel %vm4461_vm9, %v8382_v59, 0 }
 0xddd   : > { %12104 = vmatpush3.bf16.msra.mxu0 %v8058_v28  ;;  %12105 = vmatprep.mubr.msk.bf16.mxu0 %vm13857_vm12, %v13856_v11 }
 0xdde   : > { %11799 = vmatprep.subr.msk.bf16.mxu0 %vm4461_vm9, %v8153_v1  ;;  %v8379_v42 = vpop.permute.xlu1 %8378 }
 0xddf   : > { %v8492_v55 = vpop.permute.xlu0 %8491  ;;  %v8383_v13 = vsel %vm2322_vm7, %v8377_v45, %v8379_v42 }
 0xde2   : > { %v8490_v15 = vpop.permute.xlu1 %8489 }
 0xde3   : > { %v16908_v12 = vpop.permute.xlu0 %8487  ;;  %v8497_v9 = vsel %vm7466_vm15, %v8490_v15, %v8492_v55 }
 0xde4   : > { %12106 = vmatmul.mubr.msk.bf16.vlgmr.msra.gmra.mrb[172].mxu0 %vm5535_vm11, %v16810_v10  ;;  %v8504_v25 = vsel %vm4461_vm9, %v8497_v9, 0 }
 0xde5   : > { %8167 = vmatpush1.bf16.msra.mxu0 %v8158_v43  ;;  %8198 = vmatprep.mubr.bf16.mxu0 %v17617_v23 }
 0xde6   : > { %v8494_v26 = vpop.permute.xlu1 %8493  ;;  %12109 = vmatprep.subr.bf16.mxu0 %v13856_v11 }
 0xde7   : > { %v8607_v2 = vpop.permute.xlu0 %8606  ;;  %v8498_v10 = vsel %vm7466_vm15, %v8492_v55, %v8494_v26 }
 0xdea   : > { %v8605_v22 = vpop.permute.xlu1 %8604 }
 0xdeb   : > { %v16915_v4 = vpop.permute.xlu0 %8602  ;;  %v8612_v17 = vsel %vm2494_vm8, %v8605_v22, %v8607_v2 }
 0xdec   : > { %11800 = vmatmul.mubr.msk.bf16.vlgmr.msra.gmra.mrb[164].mxu0 %vm5535_vm11, %v8145_v41  ;;  %v8619_v58 = vsel %vm4461_vm9, %v8612_v17, 0 }
 0xded   : > { %12110 = vmatpush3.bf16.msra.mxu0 %v8164_v61  ;;  %12111 = vmatprep.mubr.msk.bf16.mxu0 %vm13857_vm12, %v13856_v11 }
 0xdee   : > { %11802 = vmatprep.subr.msk.bf16.mxu0 %vm4461_vm9, %v8268_v50  ;;  %v8609_v57 = vpop.permute.xlu1 %8608 }
 0xdef   : > { %v16923_v53 = vpop.permute.xlu0 %8721  ;;  %v8613_v3 = vsel %vm2494_vm8, %v8607_v2, %v8609_v57 }
 0xdf2   : > { %v8720_v24 = vpop.permute.xlu1 %8719 }
 0xdf3   : > { %v16926_v18 = vpop.permute.xlu0 %8717  ;;  %v8727_v29 = vsel %vm7686_vm0, %v8720_v24, %v16923_v53 }
 0xdf4   : > { %12112 = vmatmul.mubr.msk.bf16.vlgmr.msra.gmra.mrb[176].mxu0 %vm5535_vm11, %v8145_v41  ;;  %v8734_v8 = vsel %vm4461_vm9, %v8727_v29, 0 }
 0xdf5   : > { %8283 = vmatpush1.bf16.msra.mxu0 %v8274_v32  ;;  %8314 = vmatprep.mubr.bf16.mxu0 %v17617_v23 }
 0xdf6   : > { %11805 = vmatprep.subr.msk.bf16.mxu0 %vm4461_vm9, %v8383_v13  ;;  %v8724_v47 = vpop.permute.xlu1 %8723 }
 0xdf7   : > { %v16933_v51 = vpop.permute.xlu0 %8836  ;;  %v8728_v14 = vsel %vm7686_vm0, %v16923_v53, %v8724_v47 }
 0xdfa   : > { %v16936_v48 = vpop.permute.xlu1 %8834 }
 0xdfb   : > { %v16939_v34 = vpop.permute.xlu0 %8832 }
 0xdfc   : > { %11803 = vmatmul.mubr.msk.bf16.vlgmr.msra.gmra.mrb[164].mxu0 %vm5535_vm11, %v16890_v20 }
 0xdfd   : > { %8398 = vmatpush1.bf16.msra.mxu0 %v8389_v5  ;;  %8429 = vmatprep.mubr.bf16.mxu0 %v17617_v23 }
 0xdfe   : > { %11808 = vmatprep.subr.msk.bf16.mxu0 %vm4461_vm9, %v8498_v10  ;;  %v8839_v54 = vpop.permute.xlu1 %8838 }
 0xdff   : > { %v8381_v31 = vpop.permute.xlu0 %8380  ;;  %v8843_v30 = vsel %vm7795_vm2, %v16933_v51, %v8839_v54 }
 0xe00   : > { %v8384_v37 = vsel %vm2322_vm7, %v8379_v42, %v8381_v31 }
 0xe01   : > { %v8395_v49 = vsel %vm4461_vm9, %v8384_v37, 0 }
 0xe02   : > { %v8266_v52 = vpop.permute.xlu1 %8265 }
 0xe03   : > { %v8269_v39 = vsel %vm2120_vm5, %v8264_v35, %v8266_v52  ;;  %v8611_v56 = vpop.permute.xlu0 %8610 }
 0xe04   : > { %v8280_v6 = vsel %vm4461_vm9, %v8269_v39, 0  ;;  %v8614_v27 = vsel %vm2494_vm8, %v8609_v57, %v8611_v56 }
 0xe05   : > { %12116 = vmatpush3.bf16.msra.mxu1 %v8280_v6  ;;  %v8625_v19 = vsel %vm4461_vm9, %v8614_v27, 0 }
 0xe06   : > { %12121 = vmatprep.subr.bf16.mxu1 %v13856_v11  ;;  %v8496_v62 = vpop.permute.xlu1 %8495 }
 0xe07   : > { %v8499_v21 = vsel %vm7466_vm15, %v8494_v26, %v8496_v62  ;;  %v8841_v0 = vpop.permute.xlu0 %8840 }
 0xe08   : > { %12118 = vmatmul.mubr.msk.bf16.vlgmr.msra.gmra.mrb[60].mxu1 %vm5535_vm11, %v16890_v20  ;;  %11806 = vmatmul.mubr.msk.bf16.vlgmr.msra.gmra.mrb[164].mxu0 %vm5535_vm11, %v16897_v46  ;;  %v8510_v63 = vsel %vm4461_vm9, %v8499_v21, 0  ;;  %v8844_v16 = vsel %vm7795_vm2, %v8839_v54, %v8841_v0  ;;  %v8842_v20 = vsel %vm7795_vm2, %v16936_v48, %v16933_v51 }
 0xe09   : > { %8513 = vmatpush1.bf16.msra.mxu0 %v8504_v25  ;;  %12122 = vmatpush3.bf16.msra.mxu1 %v8395_v49  ;;  %v8855_v7 = vsel %vm4461_vm9, %v8844_v16, 0  ;;  %v8849_v44 = vsel %vm4461_vm9, %v8842_v20, 0 }
 0xe0a   : > { %11811 = vmatprep.subr.msk.bf16.mxu0 %vm4461_vm9, %v8613_v3  ;;  %12123 = vmatprep.mubr.msk.bf16.mxu1 %vm13857_vm12, %v13856_v11  ;;  %v8726_v60 = vpop.permute.xlu1 %8725 }
 0xe0b   : > { %12127 = vmatprep.subr.bf16.mxu1 %v13856_v11  ;;  %8544 = vmatprep.mubr.bf16.mxu0 %v17617_v23  ;;  %v8729_v36 = vsel %vm7686_vm0, %v8724_v47, %v8726_v60 }
 0xe0c   : > { %v8740_v41 = vsel %vm4461_vm9, %v8729_v36, 0 }
 0xe10   : > { %12124 = vmatmul.mubr.msk.bf16.vlgmr.msra.gmra.mrb[64].mxu1 %vm5535_vm11, %v16897_v46 }
 0xe11   : > { %12128 = vmatpush3.bf16.msra.mxu1 %v8510_v63  ;;  %12129 = vmatprep.mubr.msk.bf16.mxu1 %vm13857_vm12, %v13856_v11 }
 0xe12   : > { %12133 = vmatprep.subr.bf16.mxu1 %v13856_v11 }
 0xe14   : > { %11809 = vmatmul.mubr.msk.bf16.vlgmr.msra.gmra.mrb[164].mxu0 %vm5535_vm11, %v16908_v12 }
 0xe15   : > { %8628 = vmatpush1.bf16.msra.mxu0 %v8619_v58  ;;  %8659 = vmatprep.mubr.bf16.mxu0 %v17617_v23 }
 0xe16   : > { %11814 = vmatprep.subr.msk.bf16.mxu0 %vm4461_vm9, %v8728_v14 }
 0xe18   : > { %12130 = vmatmul.mubr.msk.bf16.vlgmr.msra.gmra.mrb[68].mxu1 %vm5535_vm11, %v16908_v12  ;;  %v8957_v56 = vpop.permute.xlu0 %8956 }
 0xe19   : > { %12134 = vmatpush3.bf16.msra.mxu1 %v8625_v19  ;;  %12135 = vmatprep.mubr.msk.bf16.mxu1 %vm13857_vm12, %v13856_v11 }
 0xe1a   : > { %12139 = vmatprep.subr.bf16.mxu1 %v13856_v11 }
 0xe1b   : > { %v8952_v58 = vpop.permute.xlu1 %8951 }
 0xe1c   : > { %v8981_v29 = vpop.permute.xlu0 %8980 }
 0xe20   : > { %11812 = vmatmul.mubr.msk.bf16.vlgmr.msra.gmra.mrb[164].mxu0 %vm5535_vm11, %v16915_v4  ;;  %12136 = vmatmul.mubr.msk.bf16.vlgmr.msra.gmra.mrb[72].mxu1 %vm5535_vm11, %v16915_v4 }
 0xe21   : > { %8743 = vmatpush1.bf16.msra.mxu0 %v8734_v8  ;;  %12140 = vmatpush3.bf16.msra.mxu1 %v8740_v41 }
 0xe22   : > { %11817 = vmatprep.subr.msk.bf16.mxu0 %vm4461_vm9, %v8843_v30  ;;  %12141 = vmatprep.mubr.msk.bf16.mxu1 %vm13857_vm12, %v13856_v11  ;;  %v8976_v30 = vpop.permute.xlu1 %8975 }
 0xe23   : > { %12145 = vmatprep.subr.bf16.mxu1 %v13856_v11  ;;  %8774 = vmatprep.mubr.bf16.mxu0 %v17617_v23 }
 0xe28   : > { %12142 = vmatmul.mubr.msk.bf16.vlgmr.msra.gmra.mrb[76].mxu1 %vm5535_vm11, %v16926_v18 }
 0xe29   : > { %12146 = vmatpush3.bf16.msra.mxu1 %v8855_v7  ;;  %12147 = vmatprep.mubr.msk.bf16.mxu1 %vm13857_vm12, %v13856_v11 }
 0xe2c   : > { %11815 = vmatmul.mubr.msk.bf16.vlgmr.msra.gmra.mrb[164].mxu0 %vm5535_vm11, %v16926_v18 }
 0xe2d   : > { %8858 = vmatpush1.bf16.msra.mxu0 %v8849_v44  ;;  %8889 = vmatprep.mubr.bf16.mxu0 %v17617_v23 }
 0xe30   : > { %12148 = vmatmul.mubr.msk.bf16.vlgmr.msra.gmra.mrb[80].mxu1 %vm5535_vm11, %v16939_v34 }
 0xe31   : > { %9849 = vmatprep.mubr.bf16.mxu1 %v17617_v23 }
 0xe38   : > { %11818 = vmatmul.mubr.msk.bf16.vlgmr.msra.gmra.mrb[164].mxu0 %vm5535_vm11, %v16939_v34 }
 0xe39   : > { %9072 = vmatprep.mubr.bf16.mxu0 %v17617_v23 }
 0xea7   : > { %v8041_v35 = vpop.f32.mrb[168].mxu0 }
 0xea8   : > { %v12101_v45 = vpop.f32.mrb[169].mxu0 }
 0xea9   : > { %v8044_v38 = vpop.f32.mrb[170].mxu0 }
 0xeaa   : > { %v12102_v46 = vpop.f32.mrb[171].mxu0 }
 0xeb7   : > { %v8137_v28 = vpop.f32.mrb[172].mxu0 }
 0xeb8   : > { %v8138_v1 = vadd.f32 %v8137_v28, %v8041_v35  ;;  %v12107_v42 = vpop.f32.mrb[173].mxu0  ;;  %v8999_v35 = vpop.permute.xlu0 %8998 }
 0xeb9   : > { %v8140_v55 = vpop.f32.mrb[174].mxu0  ;;  %v8994_v28 = vpop.permute.xlu1 %8993 }
 0xeba   : > { %v8141_v40 = vadd.f32 %v8140_v55, %v8044_v38  ;;  %v12108_v15 = vpop.f32.mrb[175].mxu0 }
 0xec7   : > { %v8243_v12 = vpop.f32.mrb[176].mxu0 }
 0xec8   : > { %v8252_v43 = vadd.f32 %v8243_v12, %v8138_v1  ;;  %v12113_v26 = vpop.f32.mrb[177].mxu0 }
 0xec9   : > { %v8246_v2 = vpop.f32.mrb[178].mxu0 }
 0xeca   : > { %v8255_v22 = vadd.f32 %v8246_v2, %v8141_v40  ;;  %v12114_v4 = vpop.f32.mrb[179].mxu0 }
 0xedb   : > { %v8359_v61 = vpop.f32.mrb[60].mxu1 }
 0xedc   : > { %v8368_v50 = vadd.f32 %v8359_v61, %v8252_v43  ;;  %v12119_v57 = vpop.f32.mrb[61].mxu1 }
 0xedd   : > { %v8362_v53 = vpop.f32.mrb[62].mxu1 }
 0xede   : > { %v8371_v33 = vadd.f32 %v8362_v53, %v8255_v22  ;;  %v12120_v24 = vpop.f32.mrb[63].mxu1 }
 0xee3   : > { %v8474_v18 = vpop.f32.mrb[64].mxu1 }
 0xee4   : > { %v8483_v32 = vadd.f32 %v8474_v18, %v8368_v50  ;;  %v12125_v13 = vpop.f32.mrb[65].mxu1 }
 0xee5   : > { %v8477_v47 = vpop.f32.mrb[66].mxu1 }
 0xee6   : > { %v8486_v51 = vadd.f32 %v8477_v47, %v8371_v33  ;;  %v12126_v59 = vpop.f32.mrb[67].mxu1 }
 0xee7   : > { %v17027_v59 = vld [vmem:[%s17648_s16] ss:$8 sps:$4 sm:$0xff]  }
 0xeeb   : > { %v8589_v48 = vpop.f32.mrb[68].mxu1 }
 0xeec   : > { %v8598_v5 = vadd.f32 %v8589_v48, %v8483_v32  ;;  %v12131_v34 = vpop.f32.mrb[69].mxu1  ;;  %v17032_v48 = vld [vmem:[%s17648_s16 + $0x10] ss:$0 sps:$4 sm:$0x33]  }
 0xeed   : > { %v8592_v10 = vpop.f32.mrb[70].mxu1  ;;  %v9693_v34 = vld [vmem:[#allocation15 + $0x8] sm:$0xff] }
 0xeee   : > { %v8601_v54 = vadd.f32 %v8592_v10, %v8486_v51  ;;  %v12132_v31 = vpop.f32.mrb[71].mxu1  ;;  %v9694_v10 = vld [vmem:[#allocation15 + $0x10] sm:$0xf] }
 0xeef   : > { %v9723_v31 = vld [vmem:[#allocation16 + $0x8] sm:$0xff] }
 0xef3   : > { %v8704_v52 = vpop.f32.mrb[72].mxu1 }
 0xef4   : > { %v8713_v39 = vadd.f32 %v8704_v52, %v8598_v5  ;;  %v12137_v6 = vpop.f32.mrb[73].mxu1  ;;  %v9692_v5 = vld [vmem:[#allocation15] sm:$0xff]  ;;  %v9746_v52 = vld [vmem:[#allocation18] sm:$0xff] }
 0xef5   : > { %v8707_v9 = vpop.f32.mrb[74].mxu1  ;;  %v9724_v6 = vld [vmem:[#allocation16 + $0x10] sm:$0xf] }
 0xef6   : > { %v8716_v37 = vadd.f32 %v8707_v9, %v8601_v54  ;;  %v12138_v25 = vpop.f32.mrb[75].mxu1  ;;  %v9722_v54 = vld [vmem:[#allocation16] sm:$0xff]  ;;  %v9748_v9 = vld [vmem:[#allocation18 + $0x10] sm:$0xf] }
 0xef7   : > { %v9778_v25 = vld [vmem:[#allocation21 + $0x8] sm:$0xff] }
 0xefb   : > { %v8819_v49 = vpop.f32.mrb[76].mxu1 }
 0xefc   : > { %v8828_v3 = vadd.f32 %v8819_v49, %v8713_v39  ;;  %v12143_v62 = vpop.f32.mrb[77].mxu1  ;;  %v9747_v39 = vld [vmem:[#allocation18 + $0x8] sm:$0xff]  ;;  %v9779_v49 = vld [vmem:[#allocation21 + $0x10] sm:$0xff] }
 0xefd   : > { %v8822_v21 = vpop.f32.mrb[78].mxu1 }
 0xefe   : > { %v8831_v63 = vadd.f32 %v8822_v21, %v8716_v37  ;;  %v12144_v17 = vpop.f32.mrb[79].mxu1  ;;  %v9777_v37 = vld [vmem:[#allocation21] sm:$0xff] }
 0xf03   : > { %v8934_v27 = vpop.f32.mrb[80].mxu1 }
 0xf04   : > { %v8943_v14 = vadd.f32 %v8934_v27, %v8828_v3  ;;  %v12149_v19 = vpop.f32.mrb[81].mxu1 }
 0xf05   : > { %v8937_v60 = vpop.f32.mrb[82].mxu1 }
 0xf06   : > { %v8961_v36 = vadd.f32 %v8952_v58, %v8943_v14  ;;  %v8946_v8 = vadd.f32 %v8937_v60, %v8831_v63  ;;  %v12150_v41 = vpop.f32.mrb[83].mxu1 }
 0xf08   : > { %v8967_v0 = vmax.f32 %v8961_v36, 0.0  ;;  %v8964_v16 = vadd.f32 %v8957_v56, %v8946_v8 }
 0xf0a   : > { %v8985_v7 = vmul.f32 %v8976_v30, %v8967_v0  ;;  %v8970_v20 = vmax.f32 %v8964_v16, 0.0 }
 0xf0b   : > { %v8891_v44 = vpop.f32.mrb[164].mxu0 }
 0xf0c   : > { %v8988_v45 = vmul.f32 %v8981_v29, %v8970_v20  ;;  %v8959_v38 = vadd.f32 %v8952_v58, %v8891_v44  ;;  %v8893_v46 = vpop.f32.mrb[165].mxu0  ;;  %v9003_v55 = vadd.f32 %v8994_v28, %v8985_v7 }
 0xf0d   : > { %v8960_v1 = vadd.f32 %v8952_v58, %v8893_v46  ;;  %v8895_v42 = vpop.f32.mrb[166].mxu0 }
 0xf0e   : > { %v9006_v40 = vadd.f32 %v8999_v35, %v8988_v45  ;;  %v8965_v15 = vmax.f32 %v8959_v38, 0.0  ;;  %v8962_v12 = vadd.f32 %v8957_v56, %v8895_v42  ;;  %v8897_v43 = vpop.f32.mrb[167].mxu0 }
 0xf0f   : > { %v8966_v26 = vmax.f32 %v8960_v1, 0.0  ;;  %v8963_v2 = vadd.f32 %v8957_v56, %v8897_v43 }
 0xf10   : > { %v9009_v22 = vpack.c.bf16 %v9006_v40, %v9003_v55  ;;  %v8983_v4 = vmul.f32 %v8976_v30, %v8965_v15  ;;  %v8968_v61 = vmax.f32 %v8962_v12, 0.0 }
 0xf11   : > { %v8984_v50 = vmul.f32 %v8976_v30, %v8966_v26  ;;  %v8969_v57 = vmax.f32 %v8963_v2, 0.0 }
 0xf12   : > { %v8986_v53 = vmul.f32 %v8981_v29, %v8968_v61  ;;  %v9001_v24 = vadd.f32 %v8994_v28, %v8983_v4 }
 0xf13   : > { %v8987_v33 = vmul.f32 %v8981_v29, %v8969_v57  ;;  %v9002_v32 = vadd.f32 %v8994_v28, %v8984_v50 }
 0xf14   : > { %v9004_v18 = vadd.f32 %v8999_v35, %v8986_v53 }
 0xf15   : > { %v9005_v13 = vadd.f32 %v8999_v35, %v8987_v33 }
 0xf16   : > { %v17020_v47 = vpack.c.bf16 %v9004_v18, %v9001_v24 }
 0xf17   : > { %v17022_v51 = vpack.c.bf16 %v9005_v13, %v9002_v32 }
 0xf18   : > { %9027 = vrot.lane.b32.xlu1 %v17020_v47, %s17624_s0 }
 0xf19   : > { %9029 = vrot.lane.b32.xlu0 %v17022_v51, %s17624_s0 }
 0xf1c   : > { %9021 = vrot.lane.b32.xlu1 %v17027_v59, %s17631_s3 }
 0xf1d   : > { %9023 = vrot.lane.b32.xlu0 %v17032_v48, %s17631_s3 }
 0xf20   : > { %9152 = vrot.lane.b32.xlu1 %v17020_v47, %s17642_s12 }
 0xf21   : > { %9154 = vrot.lane.b32.xlu0 %v17022_v51, %s17642_s12 }
 0xf24   : > { %9148 = vrot.lane.b32.xlu1 %v17027_v59, %s17638_s5 }
 0xf25   : > { %9150 = vrot.lane.b32.xlu0 %v17032_v48, %s17638_s5 }
 0xf28   : > { %9229 = vrot.lane.b32.xlu1 %v17022_v51, %s17630_s2 }
 0xf29   : > { %9231 = vrot.lane.b32.xlu0 %v9009_v22, %s17630_s2 }
 0xf2c   : > { %9227 = vrot.lane.b32.xlu1 %v17020_v47, %s17630_s2 }
 0xf2d   : > { %9222 = vrot.lane.b32.xlu0 %v17027_v59, %s17625_s9 }
 0xf30   : > { %9224 = vrot.lane.b32.xlu1 %v17032_v48, %s17625_s9 }
 0xf31   : > { %9306 = vrot.lane.b32.xlu0 %v17022_v51, %s17621_s23 }
 0xf34   : > { %9308 = vrot.lane.b32.xlu1 %v9009_v22, %s17621_s23 }
 0xf35   : > { %9304 = vrot.lane.b32.xlu0 %v17020_v47, %s17621_s23 }
 0xf38   : > { %9300 = vrot.lane.b32.xlu1 %v17027_v59, %s17632_s7 }
 0xf39   : > { %9302 = vrot.lane.b32.xlu0 %v17032_v48, %s17632_s7 }
 0xf3c   : > { %9383 = vrot.lane.b32.xlu1 %v17022_v51, %s17644_s4 }
 0xf3d   : > { %9385 = vrot.lane.b32.xlu0 %v9009_v22, %s17644_s4 }
 0xf40   : > { %9381 = vrot.lane.b32.xlu1 %v17020_v47, %s17644_s4 }
 0xf41   : > { %9377 = vrot.lane.b32.xlu0 %v17027_v59, %s17639_s6 }
 0xf44   : > { %9379 = vrot.lane.b32.xlu1 %v17032_v48, %s17639_s6  ;;  %s17649_s6 = smov 56  }
 0xf45   : > { %9460 = vrot.lane.b32.xlu0 %v17022_v51, %s17640_s10 }
 0xf48   : > { %9462 = vrot.lane.b32.xlu1 %v9009_v22, %s17640_s10 }
 0xf49   : > { %9458 = vrot.lane.b32.xlu0 %v17020_v47, %s17640_s10 }
 0xf4c   : > { %9454 = vrot.lane.b32.xlu1 %v17027_v59, %s17628_s1 }
 0xf4d   : > { %9456 = vrot.lane.b32.xlu0 %v17032_v48, %s17628_s1 }
 0xf50   : > { %9537 = vrot.lane.b32.xlu1 %v17022_v51, %s17646_s14 }
 0xf51   : > { %9539 = vrot.lane.b32.xlu0 %v9009_v22, %s17646_s14 }
 0xf54   : > { %9535 = vrot.lane.b32.xlu1 %v17020_v47, %s17646_s14 }
 0xf55   : > { %9531 = vrot.lane.b32.xlu0 %v17027_v59, %s17640_s10 }
 0xf58   : > { %9533 = vrot.lane.b32.xlu1 %v17032_v48, %s17640_s10 }
 0xf59   : > { %9621 = vrot.lane.b32.xlu0 %v17022_v51, %s17647_s15 }
 0xf5c   : > { %9623 = vrot.lane.b32.xlu1 %v9009_v22, %s17647_s15 }
 0xf5d   : > { %9619 = vrot.lane.b32.xlu0 %v17020_v47, %s17647_s15 }
 0xf60   : > { %9697 = vperm.xlu1 %13017, %v9692_v5   ;;  %v13037_v5 = vld [vmem:[%s17648_s16 + $0x4] ss:$8 sps:$4 sm:$0xff]  }
 0xf61   : > { %9702 = vperm.xlu0 %13011, %v9693_v34   ;;  %v13038_v34 = vld [vmem:[%s17648_s16 + $0x14] ss:$0 sps:$4 sm:$0x33]  }
 0xf64   : > { %9707 = vperm.xlu1 %13017, %v9694_v10  }
 0xf65   : > { %9727 = vperm.xlu0 %13011, %v9722_v54  }
 0xf68   : > { %9732 = vperm.xlu1 %13017, %v9723_v31  }
 0xf69   : > { %9751 = vperm.xlu0 %13011, %v9746_v52  }
 0xf6c   : > { %9756 = vperm.xlu1 %13017, %v9747_v39  }
 0xf6d   : > { %9737 = vperm.xlu0 %13011, %v9724_v6  }
 0xf70   : > { %9761 = vperm.xlu1 %13017, %v9748_v9  }
 0xf71   : > { %9782 = vperm.xlu0 %13011, %v9777_v37  }
 0xf74   : > { %9787 = vperm.xlu1 %13017, %v9778_v25  }
 0xf75   : > { %9792 = vperm.xlu0 %13011, %v9779_v49  }
 0xf8a   : > { %v9028_v3 = vpop.permute.xlu1 %9027 }
 0xf8b   : > { %v9030_v62 = vpop.permute.xlu0 %9029 }
 0xf8c   : > { %9040 = vmatprep.subr.bf16.mxu0 %v9030_v62  ;;  %v9031_v21 = vsel %vm1739_vm1, %v9028_v3, %v9030_v62  ;;  %v17154_v3 = vld [vmem:[#allocation22] ss:$8 sps:$4 sm:$0xff]   ;;  %v17156_v62 = vld [vmem:[#allocation22 + $0x10] ss:$0 sps:$4 sm:$0x11]   ;;  %vm9810_vm1 = vcmask 1041408  }
 0xf8d   : > { %9041 = vmatpush1.bf16.msra.mxu0 %v9031_v21  ;;  %9883 = vrot.lane.b32.xlu1 %v17154_v3, %s17643_s11 }
 0xf8e   : > { %v9022_v63 = vpop.permute.xlu1 %9021  ;;  %9097 = vmatprep.subr.bf16.mxu0 %v17022_v51  ;;  %9885 = vrot.lane.b32.xlu0 %v17156_v62, %s17643_s11 }
 0xf8f   : > { %v9024_v17 = vpop.permute.xlu0 %9023 }
 0xf90   : > { %11822 = vmatmul.mubr.msk.bf16.vlgmr.msra.gmra.mrb[180].mxu0 %vm2494_vm8, %v9022_v63 }
 0xf91   : > { %9098 = vmatpush1.bf16.msra.mxu0 %v17020_v47  ;;  %9082 = vmatprep.mubr.bf16.mxu0 %v17617_v23 }
 0xf92   : > { %v9153_v56 = vpop.permute.xlu1 %9152  ;;  %10008 = vrot.lane.b32.xlu1 %v17154_v3, %s17625_s9  ;;  %10010 = vrot.lane.b32.xlu0 %v17156_v62, %s17625_s9  ;;  %s17650_s9 = smov 8  }
 0xf93   : > { %v9155_v58 = vpop.permute.xlu0 %9154 }
 0xf94   : > { %9165 = vmatprep.subr.bf16.mxu0 %v9155_v58  ;;  %v9156_v29 = vsel %vm7138_vm14, %v9153_v56, %v9155_v58 }
 0xf96   : > { %v9149_v27 = vpop.permute.xlu1 %9148  ;;  %10077 = vrot.lane.b32.xlu1 %v17154_v3, %s17649_s6  ;;  %10079 = vrot.lane.b32.xlu0 %v17156_v62, %s17649_s6 }
 0xf97   : > { %v9151_v14 = vpop.permute.xlu0 %9150 }
 0xf98   : > { %11823 = vmatmul.mubr.msk.bf16.gmra.mrb[184].mxu0 %vm2494_vm8, %v9024_v17 }
 0xf99   : > { %9129 = vmatprep.mubr.bf16.mxu0 %v17617_v23 }
 0xf9a   : > { %v9230_v19 = vpop.permute.xlu1 %9229  ;;  %10154 = vrot.lane.b32.xlu1 %v17154_v3, %s17628_s1 }
 0xf9b   : > { %v9232_v60 = vpop.permute.xlu0 %9231 }
 0xf9c   : > { %v9234_v36 = vsel %vm2120_vm5, %v9230_v19, %v9232_v60 }
 0xf9e   : > { %v9228_v8 = vpop.permute.xlu1 %9227 }
 0xf9f   : > { %v9223_v41 = vpop.permute.xlu0 %9222  ;;  %v9233_v7 = vsel %vm2120_vm5, %v9228_v8, %v9230_v19 }
 0xfa0   : > { %11824 = vmatmul.mubr.msk.bf16.vlgmr.msra.gmra.mrb[180].mxu0 %vm2494_vm8, %v17027_v59 }
 0xfa1   : > { %9166 = vmatpush1.bf16.msra.mxu0 %v9156_v29  ;;  %9139 = vmatprep.mubr.bf16.mxu0 %v17617_v23 }
 0xfa2   : > { %9243 = vmatprep.subr.bf16.mxu0 %v9234_v36  ;;  %v9225_v30 = vpop.permute.xlu1 %9224 }
 0xfa3   : > { %v9307_v0 = vpop.permute.xlu0 %9306 }
 0xfa6   : > { %v9309_v16 = vpop.permute.xlu1 %9308 }
 0xfa7   : > { %v9311_v20 = vsel %vm2322_vm7, %v9307_v0, %v9309_v16  ;;  %v9305_v44 = vpop.permute.xlu0 %9304 }
 0xfa8   : > { %11825 = vmatmul.mubr.msk.bf16.gmra.mrb[188].mxu0 %vm2494_vm8, %v17032_v48  ;;  %v9310_v28 = vsel %vm2322_vm7, %v9305_v44, %v9307_v0 }
 0xfa9   : > { %9197 = vmatprep.mubr.bf16.mxu0 %v17617_v23 }
 0xfaa   : > { %v9301_v35 = vpop.permute.xlu1 %9300 }
 0xfab   : > { %v9303_v45 = vpop.permute.xlu0 %9302 }
 0xfae   : > { %v9384_v38 = vpop.permute.xlu1 %9383 }
 0xfaf   : > { %v9386_v46 = vpop.permute.xlu0 %9385 }
 0xfb0   : > { %11826 = vmatmul.mubr.msk.bf16.vlgmr.msra.gmra.mrb[180].mxu0 %vm2494_vm8, %v9149_v27  ;;  %v9388_v1 = vsel %vm7466_vm15, %v9384_v38, %v9386_v46 }
 0xfb1   : > { %9244 = vmatpush1.bf16.msra.mxu0 %v9233_v7  ;;  %9207 = vmatprep.mubr.bf16.mxu0 %v17617_v23 }
 0xfb2   : > { %9320 = vmatprep.subr.bf16.mxu0 %v9311_v20  ;;  %v9382_v42 = vpop.permute.xlu1 %9381 }
 0xfb3   : > { %v9378_v55 = vpop.permute.xlu0 %9377  ;;  %v9387_v43 = vsel %vm7466_vm15, %v9382_v42, %v9384_v38 }
 0xfb6   : > { %v9380_v40 = vpop.permute.xlu1 %9379 }
 0xfb7   : > { %v9461_v15 = vpop.permute.xlu0 %9460 }
 0xfb8   : > { %11827 = vmatmul.mubr.msk.bf16.gmra.mrb[192].mxu0 %vm2494_vm8, %v9151_v14 }
 0xfb9   : > { %9275 = vmatprep.mubr.bf16.mxu0 %v17617_v23 }
 0xfba   : > { %v9463_v12 = vpop.permute.xlu1 %9462 }
 0xfbb   : > { %v9465_v26 = vsel %vm2494_vm8, %v9461_v15, %v9463_v12  ;;  %v9459_v2 = vpop.permute.xlu0 %9458 }
 0xfbc   : > { %v9464_v57 = vsel %vm2494_vm8, %v9459_v2, %v9461_v15 }
 0xfbe   : > { %v9455_v22 = vpop.permute.xlu1 %9454 }
 0xfbf   : > { %v9457_v4 = vpop.permute.xlu0 %9456 }
 0xfc0   : > { %11828 = vmatmul.mubr.msk.bf16.vlgmr.msra.gmra.mrb[180].mxu0 %vm2494_vm8, %v9223_v41 }
 0xfc1   : > { %9321 = vmatpush1.bf16.msra.mxu0 %v9310_v28  ;;  %9285 = vmatprep.mubr.bf16.mxu0 %v17617_v23 }
 0xfc2   : > { %9397 = vmatprep.subr.bf16.mxu0 %v9388_v1  ;;  %v9538_v61 = vpop.permute.xlu1 %9537 }
 0xfc3   : > { %v9540_v50 = vpop.permute.xlu0 %9539 }
 0xfc4   : > { %v9542_v53 = vsel %vm7686_vm0, %v9538_v61, %v9540_v50 }
 0xfc6   : > { %v9536_v33 = vpop.permute.xlu1 %9535 }
 0xfc7   : > { %v9532_v18 = vpop.permute.xlu0 %9531  ;;  %v9541_v13 = vsel %vm7686_vm0, %v9536_v33, %v9538_v61 }
 0xfc8   : > { %11829 = vmatmul.mubr.msk.bf16.gmra.mrb[196].mxu0 %vm2494_vm8, %v9225_v30 }
 0xfc9   : > { %9352 = vmatprep.mubr.bf16.mxu0 %v17617_v23 }
 0xfca   : > { %v9534_v24 = vpop.permute.xlu1 %9533 }
 0xfcb   : > { %v9622_v47 = vpop.permute.xlu0 %9621 }
 0xfce   : > { %v9624_v32 = vpop.permute.xlu1 %9623 }
 0xfcf   : > { %v9626_v51 = vsel %vm7795_vm2, %v9622_v47, %v9624_v32  ;;  %v9620_v59 = vpop.permute.xlu0 %9619 }
 0xfd0   : > { %11830 = vmatmul.mubr.msk.bf16.vlgmr.msra.gmra.mrb[180].mxu0 %vm2494_vm8, %v9301_v35  ;;  %v9625_v48 = vsel %vm7795_vm2, %v9620_v59, %v9622_v47 }
 0xfd1   : > { %9398 = vmatpush1.bf16.msra.mxu0 %v9387_v43  ;;  %9362 = vmatprep.mubr.bf16.mxu0 %v17617_v23 }
 0xfd2   : > { %9474 = vmatprep.subr.bf16.mxu0 %v9465_v26 }
 0xfd8   : > { %11831 = vmatmul.mubr.msk.bf16.gmra.mrb[200].mxu0 %vm2494_vm8, %v9303_v45 }
 0xfd9   : > { %9429 = vmatprep.mubr.bf16.mxu0 %v17617_v23 }
 0xfdf   : > { %v9698_v43 = vpop.permute.xlu1 %9697 }
 0xfe0   : > { %11832 = vmatmul.mubr.msk.bf16.vlgmr.msra.gmra.mrb[180].mxu0 %vm2494_vm8, %v9378_v55  ;;  %v9703_v50 = vpop.permute.xlu0 %9702 }
 0xfe1   : > { %9475 = vmatpush1.bf16.msra.mxu0 %v9464_v57  ;;  %9439 = vmatprep.mubr.bf16.mxu0 %v17617_v23 }
 0xfe2   : > { %9551 = vmatprep.subr.bf16.mxu0 %v9542_v53 }
 0xfe3   : > { %v9708_v53 = vpop.permute.xlu1 %9707 }
 0xfe8   : > { %11833 = vmatmul.mubr.msk.bf16.gmra.mrb[204].mxu0 %vm2494_vm8, %v9380_v40 }
 0xfe9   : > { %9506 = vmatprep.mubr.bf16.mxu0 %v17617_v23 }
 0xff0   : > { %11834 = vmatmul.mubr.msk.bf16.vlgmr.msra.gmra.mrb[180].mxu0 %vm2494_vm8, %v9455_v22 }
 0xff1   : > { %9552 = vmatpush1.bf16.msra.mxu0 %v9541_v13  ;;  %9516 = vmatprep.mubr.bf16.mxu0 %v17617_v23  ;;  %v9733_v13 = vpop.permute.xlu1 %9732 }
 0xff2   : > { %9635 = vmatprep.subr.bf16.mxu0 %v9626_v51 }
 0xff8   : > { %11835 = vmatmul.mubr.msk.bf16.gmra.mrb[208].mxu0 %vm2494_vm8, %v9457_v4 }
 0xff9   : > { %9583 = vmatprep.mubr.bf16.mxu0 %v17617_v23 }
0x1000   : > { %11836 = vmatmul.mubr.msk.bf16.vlgmr.msra.gmra.mrb[180].mxu0 %vm2494_vm8, %v9532_v18 }
0x1001   : > { %9636 = vmatpush1.bf16.msra.mxu0 %v9625_v48  ;;  %9593 = vmatprep.mubr.bf16.mxu0 %v17617_v23 }
0x1002   : > { %12279 = vmatprep.subr.bf16.mxu0 %v13856_v11 }
0x1008   : > { %11837 = vmatmul.mubr.msk.bf16.gmra.mrb[212].mxu0 %vm2494_vm8, %v9534_v24  ;;  %v9728_v24 = vpop.permute.xlu0 %9727 }
0x1009   : > { %9667 = vmatprep.mubr.bf16.mxu0 %v17617_v23 }
0x1010   : > { %11840 = vmatmul.mubr.msk.bf16.vlgmr.msra.gmra.mrb[180].mxu0 %vm2494_vm8, %v13037_v5 }
0x1011   : > { %9677 = vmatprep.mubr.bf16.mxu0 %v17617_v23 }
0x1018   : > { %11841 = vmatmul.mubr.msk.bf16.gmra.mrb[216].mxu0 %vm2494_vm8, %v13038_v34 }
0x1019   : > { %12283 = vmatprep.mubr.msk.bf16.mxu0 %vm13857_vm12, %v13856_v11 }
0x106b   : > { %v9084_v10 = vpop.f32.mrb[184].mxu0 }
0x106c   : > { %v9086_v54 = vpop.f32.mrb[185].mxu0 }
0x106d   : > { %v9088_v31 = vpop.f32.mrb[186].mxu0 }
0x106e   : > { %v9089_v52 = vpop.f32.mrb[187].mxu0 }
0x107b   : > { %v9141_v39 = vpop.f32.mrb[188].mxu0 }
0x107c   : > { %v9142_v6 = vadd.f32 %v9141_v39, %v9084_v10  ;;  %v9143_v9 = vpop.f32.mrb[189].mxu0 }
0x107d   : > { %v9144_v37 = vadd.f32 %v9143_v9, %v9086_v54  ;;  %v9145_v25 = vpop.f32.mrb[190].mxu0 }
0x107e   : > { %v9146_v49 = vpop.f32.mrb[191].mxu0 }
0x108b   : > { %v9209_v21 = vpop.f32.mrb[192].mxu0 }
0x108c   : > { %v9220_v63 = vadd.f32 %v9209_v21, %v9142_v6  ;;  %v9211_v17 = vpop.f32.mrb[193].mxu0  ;;  %v9752_v6 = vpop.permute.xlu0 %9751 }
0x108d   : > { %v9221_v56 = vadd.f32 %v9211_v17, %v9144_v37  ;;  %v9213_v58 = vpop.f32.mrb[194].mxu0  ;;  %v9757_v37 = vpop.permute.xlu1 %9756 }
0x108e   : > { %v9214_v27 = vpop.f32.mrb[195].mxu0 }
0x109b   : > { %v9287_v14 = vpop.f32.mrb[196].mxu0 }
0x109c   : > { %v9298_v19 = vadd.f32 %v9287_v14, %v9220_v63  ;;  %v9289_v60 = vpop.f32.mrb[197].mxu0 }
0x109d   : > { %v9299_v29 = vadd.f32 %v9289_v60, %v9221_v56  ;;  %v9291_v36 = vpop.f32.mrb[198].mxu0 }
0x109e   : > { %v9292_v8 = vpop.f32.mrb[199].mxu0 }
0x10ab   : > { %v9364_v41 = vpop.f32.mrb[200].mxu0 }
0x10ac   : > { %v9375_v30 = vadd.f32 %v9364_v41, %v9298_v19  ;;  %v9366_v0 = vpop.f32.mrb[201].mxu0 }
0x10ad   : > { %v9376_v16 = vadd.f32 %v9366_v0, %v9299_v29  ;;  %v9368_v7 = vpop.f32.mrb[202].mxu0  ;;  %v9738_v0 = vpop.permute.xlu0 %9737 }
0x10ae   : > { %v9369_v20 = vpop.f32.mrb[203].mxu0 }
0x10af   : > { %v9762_v20 = vpop.permute.xlu1 %9761 }
0x10bb   : > { %v9441_v44 = vpop.f32.mrb[204].mxu0 }
0x10bc   : > { %v9452_v35 = vadd.f32 %v9441_v44, %v9375_v30  ;;  %v9443_v45 = vpop.f32.mrb[205].mxu0 }
0x10bd   : > { %v9453_v38 = vadd.f32 %v9443_v45, %v9376_v16  ;;  %v9445_v46 = vpop.f32.mrb[206].mxu0 }
0x10be   : > { %v9446_v28 = vpop.f32.mrb[207].mxu0 }
0x10cb   : > { %v9518_v1 = vpop.f32.mrb[208].mxu0 }
0x10cc   : > { %v9529_v42 = vadd.f32 %v9518_v1, %v9452_v35  ;;  %v9520_v55 = vpop.f32.mrb[209].mxu0  ;;  %v13039_v1 = vld [vmem:[#allocation19] sm:$0xff]  }
0x10cd   : > { %v9530_v40 = vadd.f32 %v9520_v55, %v9453_v38  ;;  %v9522_v15 = vpop.f32.mrb[210].mxu0  ;;  %v9788_v55 = vpop.permute.xlu1 %9787 }
0x10ce   : > { %v9523_v12 = vpop.f32.mrb[211].mxu0 }
0x10db   : > { %v9595_v26 = vpop.f32.mrb[212].mxu0 }
0x10dc   : > { %v9606_v2 = vadd.f32 %v9595_v26, %v9529_v42  ;;  %v9597_v22 = vpop.f32.mrb[213].mxu0  ;;  %v13040_v42 = vld [vmem:[#allocation19 + $0x8] ss:$0 sps:$4 sm:$0xff]  }
0x10dd   : > { %v9607_v4 = vadd.f32 %v9597_v22, %v9530_v40  ;;  %v9599_v61 = vpop.f32.mrb[214].mxu0  ;;  %v9884_v40 = vpop.permute.xlu1 %9883 }
0x10de   : > { %v9600_v57 = vpop.f32.mrb[215].mxu0 }
0x10e3   : > { %v9669_v33 = vpop.f32.mrb[180].mxu0 }
0x10e4   : > { %v9710_v18 = vadd.f32 %v9698_v43, %v9669_v33  ;;  %v9671_v32 = vpop.f32.mrb[181].mxu0 }
0x10e5   : > { %v9711_v47 = vadd.f32 %v9698_v43, %v9671_v32  ;;  %v9673_v51 = vpop.f32.mrb[182].mxu0  ;;  %v9783_v43 = vpop.permute.xlu0 %9782 }
0x10e6   : > { %v9716_v59 = vmax.f32 %v9710_v18, 0.0  ;;  %v9712_v48 = vadd.f32 %v9703_v50, %v9673_v51  ;;  %v9675_v5 = vpop.f32.mrb[183].mxu0  ;;  %v13043_v51 = vld [vmem:[#allocation22] ss:$8 sps:$4 sm:$0xff]  }
0x10e7   : > { %v9717_v34 = vmax.f32 %v9711_v47, 0.0  ;;  %v9713_v10 = vadd.f32 %v9703_v50, %v9675_v5 }
0x10e8   : > { %v9740_v54 = vmul.f32 %v9728_v24, %v9716_v59  ;;  %v9718_v31 = vmax.f32 %v9712_v48, 0.0  ;;  %v13045_v59 = vld [vmem:[#allocation22 + $0x4] ss:$8 sps:$4 sm:$0xff]   ;;  %v10231_v48 = vld [vmem:[#allocation22 + $0x10] sm:$0x11] }
0x10e9   : > { %v9741_v52 = vmul.f32 %v9728_v24, %v9717_v34  ;;  %v9719_v39 = vmax.f32 %v9713_v10, 0.0  ;;  %v11861_v5 = vcombine.low %v10231_v48, %v10231_v48  ;;  %v11862_v34 = vcombine.high %v10231_v48, %v10231_v48 }
0x10ea   : > { %v9742_v9 = vmul.f32 %v9733_v13, %v9718_v31  ;;  %v9764_v21 = vadd.f32 %v9752_v6, %v9740_v54  ;;  %v13048_v31 = vld [vmem:[#allocation22 + $0x4] ss:$8 sps:$4 sm:$0xff]  }
0x10eb   : > { %v9743_v25 = vmul.f32 %v9733_v13, %v9719_v39  ;;  %v9679_v49 = vpop.f32.mrb[216].mxu0  ;;  %v9765_v58 = vadd.f32 %v9752_v6, %v9741_v52  ;;  %v13049_v52 = vld [vmem:[#allocation22 + $0x14] ss:$0 sps:$4 sm:$0x11]   ;;  %v10562_v39 = vld [vmem:[#allocation24] sm:$0xff] }
0x10ec   : > { %v9766_v63 = vadd.f32 %v9757_v37, %v9742_v9  ;;  %v9690_v17 = vadd.f32 %v9679_v49, %v9606_v2  ;;  %v9681_v56 = vpop.f32.mrb[217].mxu0  ;;  %v10564_v6 = vld [vmem:[#allocation24 + $0x10] sm:$0x3]  ;;  %v10563_v9 = vld [vmem:[#allocation24 + $0x8] sm:$0xff]  ;;  %v10608_v49 = vld [vmem:[#allocation27 + $0x8] sm:$0xff] }
0x10ed   : > { %v9767_v27 = vadd.f32 %v9757_v37, %v9743_v25  ;;  %v9691_v14 = vadd.f32 %v9681_v56, %v9607_v4  ;;  %v9683_v19 = vpop.f32.mrb[218].mxu0  ;;  %v10587_v37 = vld [vmem:[#allocation25 + $0x8] sm:$0xff]  ;;  %v10586_v25 = vld [vmem:[#allocation25] sm:$0xff]  ;;  %v10009_v56 = vpop.permute.xlu1 %10008 }
0x10ee   : > { %v9770_v60 = vpack.c.bf16 %v9766_v63, %v9764_v21  ;;  %v9714_v29 = vadd.f32 %v9708_v53, %v9690_v17  ;;  %v9684_v36 = vpop.f32.mrb[219].mxu0  ;;  %v10607_v21 = vld [vmem:[#allocation27] sm:$0xff]  ;;  %v10609_v63 = vld [vmem:[#allocation27 + $0x10] sm:$0x3]  ;;  %v10588_v17 = vld [vmem:[#allocation25 + $0x10] sm:$0x3] }
0x10ef   : > { %v9715_v8 = vadd.f32 %v9708_v53, %v9691_v14  ;;  %v9771_v41 = vpack.c.bf16 %v9767_v27, %v9765_v58 }
0x10f0   : > { %v9720_v30 = vmax.f32 %v9714_v29, 0.0 }
0x10f1   : > { %v9721_v16 = vmax.f32 %v9715_v8, 0.0  ;;  %9817 = vmatprep.subr.bf16.mxu1 %v9771_v41  ;;  %v10078_v27 = vpop.permute.xlu1 %10077 }
0x10f2   : > { %v9744_v7 = vmul.f32 %v9738_v0, %v9720_v30  ;;  %9818 = vmatpush1.bf16.msra.mxu1 %v9770_v60 }
0x10f3   : > { %v9745_v44 = vmul.f32 %v9738_v0, %v9721_v16 }
0x10f4   : > { %v9768_v35 = vadd.f32 %v9762_v20, %v9744_v7 }
0x10f5   : > { %v9769_v45 = vadd.f32 %v9762_v20, %v9745_v44  ;;  %v10155_v19 = vpop.permute.xlu1 %10154 }
0x10f6   : > { %v9772_v38 = vpack.c.bf16 %v9768_v35, %v9768_v35 }
0x10f7   : > { %v9773_v46 = vpack.c.bf16 %v9769_v45, %v9769_v45 }
0x10f8   : > { %v9812_v28 = vsel %vm9810_vm1, %v9772_v38, 0 }
0x10f9   : > { %11844 = vmatprep.subr.msk.bf16.mxu1 %vm9810_vm1, %v9773_v46 }
0x10fa   : > { %9820 = vmatpush1.bf16.msra.mxu1 %v9812_v28 }
0x10fd   : > { %11845 = vmatmul.mubr.msk.bf16.vlgmr.msra.gmra.mrb[84].mxu1 %vm9803_vm3, %v13039_v1 }
0x10fe   : > { %9859 = vmatprep.mubr.bf16.mxu1 %v17617_v23  ;;  %v9793_v23 = vpop.permute.xlu0 %9792 }
0x1102   : > { %v9886_v58 = vpop.permute.xlu0 %9885 }
0x1105   : > { %11846 = vmatmul.mubr.msk.bf16.gmra.mrb[88].mxu1 %vm9803_vm3, %v13040_v42 }
0x1106   : > { %12155 = vmatprep.mubr.msk.bf16.mxu1 %vm4454_vm10, %v9884_v40  ;;  %v10011_v14 = vpop.permute.xlu0 %10010 }
0x110a   : > { %v10080_v60 = vpop.permute.xlu0 %10079 }
0x11d0   : > { %v9851_v15 = vpop.f32.mrb[84].mxu1 }
0x11d1   : > { %v9853_v12 = vpop.f32.mrb[85].mxu1  ;;  %v9852_v2 = vadd.f32 %v9851_v15, %v9783_v43 }
0x11d2   : > { %v9855_v26 = vpop.f32.mrb[86].mxu1  ;;  %v9854_v61 = vadd.f32 %v9853_v12, %v9783_v43 }
0x11d3   : > { %v9856_v22 = vadd.f32 %v9855_v26, %v9788_v55  ;;  %v9857_v4 = vpop.f32.mrb[87].mxu1 }
0x11d4   : > { %v9858_v50 = vadd.f32 %v9857_v4, %v9788_v55 }
0x11d5   : > { %v17174_v57 = vpack.c.bf16 %v9856_v22, %v9852_v2 }
0x11d6   : > { %v9869_v53 = vpack.c.bf16 %v9858_v50, %v9854_v61 }
0x11d7   : > { %10083 = vrot.lane.b32.xlu0 %v17174_v57, %s17630_s2  ;;  %9889 = vrot.lane.b32.xlu1 %v17174_v57, %s17624_s0 }
0x11d8   : > { %v9861_v33 = vpop.f32.mrb[88].mxu1 }
0x11d9   : > { %v9862_v24 = vadd.f32 %v9861_v33, %v9793_v23  ;;  %v9863_v18 = vpop.f32.mrb[89].mxu1 }
0x11da   : > { %v9865_v32 = vpop.f32.mrb[90].mxu1  ;;  %v9864_v10 = vadd.f32 %v9863_v18, %v9793_v23 }
0x11db   : > { %10158 = vrot.lane.b32.xlu0 %v17174_v57, %s17621_s23  ;;  %10012 = vrot.lane.b32.xlu1 %v17174_v57, %s17642_s12  ;;  %v9866_v13 = vpop.f32.mrb[91].mxu1  ;;  %v17184_v47 = vpack.c.bf16 %v9862_v24, %v9862_v24 }
0x11dc   : > { %v9871_v54 = vpack.c.bf16 %v9864_v10, %v9864_v10 }
0x11dd   : > { %v9958_v45 = vsel %vm4461_vm9, %v17184_v47, 0 }
0x11df   : > { %10085 = vrot.lane.b32.xlu1 %v9869_v53, %s17630_s2  ;;  %9891 = vrot.lane.b32.xlu0 %v17184_v47, %s17624_s0 }
0x11e3   : > { %10160 = vrot.lane.b32.xlu1 %v9869_v53, %s17621_s23  ;;  %10255 = vrot.lane.b32.xlu0 %v17174_v57, %s17644_s4 }
0x11e7   : > { %10257 = vrot.lane.b32.xlu1 %v9869_v53, %s17644_s4  ;;  %10156 = vrot.lane.b32.xlu0 %v17156_v62, %s17628_s1  ;;  %s13864_s1 = smov 92  }
0x11eb   : > { %10245 = vrot.lane.b32.xlu1 %v13043_v51, %s17650_s9  ;;  %10247 = vrot.lane.b32.xlu0 %v13045_v59, %s17650_s9 }
0x11ef   : > { %10249 = vrot.lane.b32.xlu1 %v11861_v5, %s17650_s9  ;;  %10014 = vrot.lane.b32.xlu0 %v17184_v47, %s17642_s12 }
0x11f3   : > { %10087 = vrot.lane.b32.xlu1 %v17184_v47, %s17630_s2  ;;  %10251 = vrot.lane.b32.xlu0 %v11862_v34, %s17650_s9 }
0x11f7   : > { %10341 = vrot.lane.b32.xlu1 %v17174_v57, %s17640_s10  ;;  %10089 = vrot.lane.b32.xlu0 %v9871_v54, %s17630_s2 }
0x11fb   : > { %10162 = vrot.lane.b32.xlu1 %v17184_v47, %s17621_s23  ;;  %10343 = vrot.lane.b32.xlu0 %v9869_v53, %s17640_s10 }
0x11ff   : > { %10259 = vrot.lane.b32.xlu1 %v17184_v47, %s17644_s4  ;;  %10164 = vrot.lane.b32.xlu0 %v9871_v54, %s17621_s23 }
0x1203   : > { %10345 = vrot.lane.b32.xlu1 %v17184_v47, %s17640_s10  ;;  %10416 = vrot.lane.b32.xlu0 %v17174_v57, %s17646_s14 }
0x1207   : > { %10337 = vrot.lane.b32.xlu1 %v13048_v31, %s17631_s3  ;;  %10261 = vrot.lane.b32.xlu0 %v9871_v54, %s17644_s4 }
0x120b   : > { %10418 = vrot.lane.b32.xlu1 %v9869_v53, %s17646_s14  ;;  %10339 = vrot.lane.b32.xlu0 %v13049_v52, %s17631_s3 }
0x120f   : > { %10420 = vrot.lane.b32.xlu1 %v17184_v47, %s17646_s14  ;;  %10347 = vrot.lane.b32.xlu0 %v9871_v54, %s17640_s10 }
0x1213   : > { %10412 = vrot.lane.b32.xlu1 %v13048_v31, %s17645_s13  ;;  %10491 = vrot.lane.b32.xlu0 %v17174_v57, %s17647_s15 }
0x1217   : > { %10493 = vrot.lane.b32.xlu1 %v9869_v53, %s17647_s15  ;;  %10422 = vrot.lane.b32.xlu0 %v9871_v54, %s17646_s14 }
0x121b   : > { %10495 = vrot.lane.b32.xlu1 %v17184_v47, %s17647_s15  ;;  %10414 = vrot.lane.b32.xlu0 %v13049_v52, %s17645_s13  ;;  %s13863_s13 = smov 110  }
0x121f   : > { %10487 = vrot.lane.b32.xlu1 %v13048_v31, %s17632_s7  ;;  %10497 = vrot.lane.b32.xlu0 %v9871_v54, %s17647_s15 }
0x1223   : > { %10567 = vperm.xlu1 %13017, %v10562_v39   ;;  %10489 = vrot.lane.b32.xlu0 %v13049_v52, %s17632_s7  ;;  %s13865_s7 = smov 74  }
0x1227   : > { %10577 = vperm.xlu1 %13017, %v10564_v6   ;;  %10572 = vperm.xlu0 %13011, %v10563_v9  }
0x122b   : > { %10596 = vperm.xlu1 %13017, %v10587_v37   ;;  %10591 = vperm.xlu0 %13011, %v10586_v25  }
0x122f   : > { %10617 = vperm.xlu1 %13017, %v10608_v49   ;;  %10612 = vperm.xlu0 %13011, %v10607_v21  }
0x1233   : > { %10622 = vperm.xlu1 %13017, %v10609_v63   ;;  %10601 = vperm.xlu0 %13011, %v10588_v17  }
0x1249   : > { %v9890_v29 = vpop.permute.xlu1 %9889  ;;  %v10084_v36 = vpop.permute.xlu0 %10083 }
0x124a   : > { %12151 = vmatprep.subr.bf16.mxu1 %v9890_v29 }
0x124b   : > { %12152 = vmatpush3.bf16.msra.mxu1 %v9890_v29 }
0x124d   : > { %v10013_v8 = vpop.permute.xlu1 %10012  ;;  %v10159_v41 = vpop.permute.xlu0 %10158 }
0x1251   : > { %v10086_v30 = vpop.permute.xlu1 %10085  ;;  %v9892_v0 = vpop.permute.xlu0 %9891 }
0x1252   : > { %v9901_v16 = vsel %vm4461_vm9, %v9892_v0, 0  ;;  %12630 = vmatprep.subr.msk.bf16.mxu1 %vm4461_vm9, %v9892_v0  ;;  %v10091_v42 = vsel %vm2120_vm5, %v10084_v36, %v10086_v30 }
0x1253   : > { %12154 = vmatpush3.bf16.msra.mxu1 %v9901_v16 }
0x1254   : > { %12159 = vmatprep.subr.bf16.mxu1 %v17174_v57 }
0x1255   : > { %v10161_v7 = vpop.permute.xlu1 %10160  ;;  %v10256_v20 = vpop.permute.xlu0 %10255 }
0x1256   : > { %12156 = vmatmul.mubr.msk.bf16.vlgmr.msra.gmra.mrb[92].mxu1 %vm4454_vm10, %v9886_v58  ;;  %v10166_v26 = vsel %vm2322_vm7, %v10159_v41, %v10161_v7 }
0x1257   : > { %12160 = vmatpush3.bf16.msra.mxu1 %v17174_v57  ;;  %12163 = vmatprep.mubr.msk.bf16.mxu1 %vm4454_vm10, %v17154_v3 }
0x1258   : > { %12631 = vmatprep.subr.msk.bf16.mxu1 %vm4461_vm9, %v17184_v47 }
0x1259   : > { %v10258_v44 = vpop.permute.xlu1 %10257  ;;  %v10157_v35 = vpop.permute.xlu0 %10156 }
0x125a   : > { %v10263_v53 = vsel %vm7466_vm15, %v10256_v20, %v10258_v44 }
0x125b   : > { %12162 = vmatpush3.bf16.msra.mxu1 %v9958_v45 }
0x125c   : > { %12167 = vmatprep.subr.bf16.mxu1 %v10013_v8 }
0x125d   : > { %v10246_v38 = vpop.permute.xlu1 %10245  ;;  %v10248_v46 = vpop.permute.xlu0 %10247 }
0x125e   : > { %12164 = vmatmul.mubr.msk.bf16.vlgmr.msra.gmra.mrb[96].mxu1 %vm4454_vm10, %v17156_v62  ;;  %v10253_v24 = vsel %vm5535_vm11, %v10246_v38, %v10248_v46 }
0x125f   : > { %12168 = vmatpush3.bf16.msra.mxu1 %v10013_v8  ;;  %12171 = vmatprep.mubr.msk.bf16.mxu1 %vm4454_vm10, %v10009_v56 }
0x1261   : > { %v10250_v28 = vpop.permute.xlu1 %10249  ;;  %v10015_v3 = vpop.permute.xlu0 %10014 }
0x1262   : > { %v10024_v1 = vsel %vm4461_vm9, %v10015_v3, 0  ;;  %12632 = vmatprep.subr.msk.bf16.mxu1 %vm4461_vm9, %v10015_v3 }
0x1263   : > { %12170 = vmatpush3.bf16.msra.mxu1 %v10024_v1 }
0x1264   : > { %12175 = vmatprep.subr.bf16.mxu1 %v10091_v42 }
0x1265   : > { %v10088_v55 = vpop.permute.xlu1 %10087  ;;  %v10252_v40 = vpop.permute.xlu0 %10251 }
0x1266   : > { %12172 = vmatmul.mubr.msk.bf16.vlgmr.msra.gmra.mrb[100].mxu1 %vm4454_vm10, %v10011_v14  ;;  %v10254_v5 = vsel %vm5535_vm11, %v10250_v28, %v10252_v40 }
0x1267   : > { %12176 = vmatpush3.bf16.msra.mxu1 %v10091_v42  ;;  %12179 = vmatprep.mubr.msk.bf16.mxu1 %vm4454_vm10, %v10078_v27 }
0x1269   : > { %v10342_v62 = vpop.permute.xlu1 %10341  ;;  %v10090_v15 = vpop.permute.xlu0 %10089 }
0x126a   : > { %v10092_v12 = vsel %vm2120_vm5, %v10088_v55, %v10090_v15  ;;  %vm10646_vm5 = vcmask 146432  }
0x126b   : > { %v10101_v43 = vsel %vm4461_vm9, %v10092_v12, 0  ;;  %12633 = vmatprep.subr.msk.bf16.mxu1 %vm4461_vm9, %v10092_v12 }
0x126c   : > { %12178 = vmatpush3.bf16.msra.mxu1 %v10101_v43 }
0x126d   : > { %v10163_v2 = vpop.permute.xlu1 %10162  ;;  %12183 = vmatprep.subr.bf16.mxu1 %v10166_v26  ;;  %v10344_v22 = vpop.permute.xlu0 %10343 }
0x126e   : > { %v10349_v51 = vsel %vm2494_vm8, %v10342_v62, %v10344_v22 }
0x126f   : > { %12180 = vmatmul.mubr.msk.bf16.vlgmr.msra.gmra.mrb[104].mxu1 %vm4454_vm10, %v10080_v60 }
0x1270   : > { %12184 = vmatpush3.bf16.msra.mxu1 %v10166_v26  ;;  %12187 = vmatprep.mubr.msk.bf16.mxu1 %vm4454_vm10, %v10155_v19 }
0x1271   : > { %v10260_v4 = vpop.permute.xlu1 %10259  ;;  %v10165_v61 = vpop.permute.xlu0 %10164 }
0x1272   : > { %v10167_v50 = vsel %vm2322_vm7, %v10163_v2, %v10165_v61  ;;  %vm11183_vm7 = vcmask 1044480  }
0x1273   : > { %v10176_v57 = vsel %vm4461_vm9, %v10167_v50, 0  ;;  %12634 = vmatprep.subr.msk.bf16.mxu1 %vm4461_vm9, %v10167_v50 }
0x1274   : > { %12186 = vmatpush3.bf16.msra.mxu1 %v10176_v57 }
0x1275   : > { %v10346_v23 = vpop.permute.xlu1 %10345  ;;  %12191 = vmatprep.subr.bf16.mxu1 %v10263_v53  ;;  %v10417_v33 = vpop.permute.xlu0 %10416 }
0x1277   : > { %12188 = vmatmul.mubr.msk.bf16.vlgmr.msra.gmra.mrb[108].mxu1 %vm4454_vm10, %v10157_v35 }
0x1278   : > { %12192 = vmatpush3.bf16.msra.mxu1 %v10263_v53  ;;  %12195 = vmatprep.mubr.msk.bf16.mxu1 %vm4454_vm10, %v10253_v24 }
0x1279   : > { %v10338_v18 = vpop.permute.xlu1 %10337  ;;  %v10262_v32 = vpop.permute.xlu0 %10261 }
0x127a   : > { %v10264_v13 = vsel %vm7466_vm15, %v10260_v4, %v10262_v32 }
0x127b   : > { %v10273_v47 = vsel %vm4461_vm9, %v10264_v13, 0  ;;  %12635 = vmatprep.subr.msk.bf16.mxu1 %vm4461_vm9, %v10264_v13 }
0x127c   : > { %12194 = vmatpush3.bf16.msra.mxu1 %v10273_v47 }
0x127d   : > { %v10419_v59 = vpop.permute.xlu1 %10418  ;;  %12199 = vmatprep.subr.bf16.mxu1 %v10349_v51  ;;  %v10340_v48 = vpop.permute.xlu0 %10339 }
0x127e   : > { %v10424_v52 = vsel %vm7686_vm0, %v10417_v33, %v10419_v59 }
0x127f   : > { %12196 = vmatmul.mubr.msk.bf16.vlgmr.msra.gmra.mrb[112].mxu1 %vm4454_vm10, %v10254_v5 }
0x1280   : > { %12200 = vmatpush3.bf16.msra.mxu1 %v10349_v51  ;;  %12203 = vmatprep.mubr.msk.bf16.mxu1 %vm4454_vm10, %v10338_v18 }
0x1281   : > { %v10421_v34 = vpop.permute.xlu1 %10420  ;;  %v10348_v10 = vpop.permute.xlu0 %10347 }
0x1282   : > { %v10350_v54 = vsel %vm2494_vm8, %v10346_v23, %v10348_v10  ;;  %vm11179_vm8 = vcmask 80896  }
0x1283   : > { %v10359_v31 = vsel %vm4461_vm9, %v10350_v54, 0  ;;  %12636 = vmatprep.subr.msk.bf16.mxu1 %vm4461_vm9, %v10350_v54 }
0x1284   : > { %12202 = vmatpush3.bf16.msra.mxu1 %v10359_v31 }
0x1285   : > { %v10413_v39 = vpop.permute.xlu1 %10412  ;;  %12207 = vmatprep.subr.bf16.mxu1 %v10424_v52  ;;  %v10492_v6 = vpop.permute.xlu0 %10491 }
0x1287   : > { %12204 = vmatmul.mubr.msk.bf16.vlgmr.msra.gmra.mrb[116].mxu1 %vm4454_vm10, %v10340_v48 }
0x1288   : > { %12208 = vmatpush3.bf16.msra.mxu1 %v10424_v52  ;;  %12211 = vmatprep.mubr.msk.bf16.mxu1 %vm4454_vm10, %v10413_v39 }
0x1289   : > { %v10494_v9 = vpop.permute.xlu1 %10493  ;;  %v10423_v37 = vpop.permute.xlu0 %10422 }
0x128a   : > { %v10425_v25 = vsel %vm7686_vm0, %v10421_v34, %v10423_v37  ;;  %v10499_v21 = vsel %vm7795_vm2, %v10492_v6, %v10494_v9 }
0x128b   : > { %v10434_v49 = vsel %vm4461_vm9, %v10425_v25, 0  ;;  %12637 = vmatprep.subr.msk.bf16.mxu1 %vm4461_vm9, %v10425_v25 }
0x128c   : > { %12210 = vmatpush3.bf16.msra.mxu1 %v10434_v49 }
0x128d   : > { %v10496_v63 = vpop.permute.xlu1 %10495  ;;  %12215 = vmatprep.subr.bf16.mxu1 %v10499_v21  ;;  %v10415_v17 = vpop.permute.xlu0 %10414 }
0x128f   : > { %12212 = vmatmul.mubr.msk.bf16.vlgmr.msra.gmra.mrb[120].mxu1 %vm4454_vm10, %v10415_v17 }
0x1290   : > { %12216 = vmatpush3.bf16.msra.mxu1 %v10499_v21 }
0x1291   : > { %v10498_v56 = vpop.permute.xlu0 %10497  ;;  %v10488_v58 = vpop.permute.xlu1 %10487 }
0x1292   : > { %v10500_v27 = vsel %vm7795_vm2, %v10496_v63, %v10498_v56  ;;  %12219 = vmatprep.mubr.msk.bf16.mxu1 %vm4454_vm10, %v10488_v58 }
0x1293   : > { %v10509_v14 = vsel %vm4461_vm9, %v10500_v27, 0  ;;  %12638 = vmatprep.subr.msk.bf16.mxu1 %vm4461_vm9, %v10500_v27  ;;  %vm11231_vm9 = vcmask 7168  }
0x1294   : > { %12218 = vmatpush3.bf16.msra.mxu1 %v10509_v14 }
0x1295   : > { %v10490_v19 = vpop.permute.xlu0 %10489  ;;  %12223 = vmatprep.subr.bf16.mxu1 %v13856_v11 }
0x1297   : > { %12220 = vmatmul.mubr.msk.bf16.vlgmr.msra.gmra.mrb[124].mxu1 %vm4454_vm10, %v10490_v19  ;;  %vm11233_vm10 = vcmask 1024  }
0x1298   : > { %12227 = vmatprep.mubr.msk.bf16.mxu1 %vm13857_vm12, %v13856_v11 }
0x12a2   : > { %v10568_v47 = vpop.permute.xlu1 %10567 }
0x12a6   : > { %v10573_v54 = vpop.permute.xlu0 %10572  ;;  %v10578_v52 = vpop.permute.xlu1 %10577 }
0x12aa   : > { %v10592_v37 = vpop.permute.xlu0 %10591  ;;  %v10597_v63 = vpop.permute.xlu1 %10596 }
0x12ae   : > { %v10613_v56 = vpop.permute.xlu0 %10612  ;;  %v10618_v19 = vpop.permute.xlu1 %10617 }
0x1329   : > { %v12157_v60 = vpop.f32.mrb[92].mxu1 }
0x132a   : > { %v9937_v29 = vpop.f32.mrb[93].mxu1 }
0x132b   : > { %v12158_v36 = vpop.f32.mrb[94].mxu1 }
0x132c   : > { %v9940_v8 = vpop.f32.mrb[95].mxu1 }
0x1331   : > { %v12165_v41 = vpop.f32.mrb[96].mxu1 }
0x1332   : > { %v10003_v30 = vadd.f32 %v12165_v41, %v12157_v60  ;;  %v9994_v0 = vpop.f32.mrb[97].mxu1 }
0x1333   : > { %v9995_v16 = vadd.f32 %v9994_v0, %v9937_v29  ;;  %v12166_v7 = vpop.f32.mrb[98].mxu1 }
0x1334   : > { %v9997_v20 = vpop.f32.mrb[99].mxu1 }
0x1335   : > { %v9998_v44 = vadd.f32 %v9997_v20, %v9940_v8 }
0x1339   : > { %v12173_v35 = vpop.f32.mrb[100].mxu1 }
0x133a   : > { %v10076_v45 = vadd.f32 %v12173_v35, %v10003_v30  ;;  %v10060_v38 = vpop.f32.mrb[101].mxu1  ;;  %v10623_v35 = vpop.permute.xlu1 %10622 }
0x133b   : > { %v10074_v46 = vadd.f32 %v10060_v38, %v9995_v16  ;;  %v12174_v28 = vpop.f32.mrb[102].mxu1  ;;  %v10602_v16 = vpop.permute.xlu0 %10601 }
0x133c   : > { %v10063_v3 = vpop.f32.mrb[103].mxu1 }
0x133d   : > { %v10075_v1 = vadd.f32 %v10063_v3, %v9998_v44 }
0x1342   : > { %v12181_v42 = vpop.f32.mrb[104].mxu1 }
0x1343   : > { %v10153_v55 = vadd.f32 %v12181_v42, %v10076_v45  ;;  %v10137_v40 = vpop.f32.mrb[105].mxu1 }
0x1344   : > { %v10151_v62 = vadd.f32 %v10137_v40, %v10074_v46  ;;  %v12182_v15 = vpop.f32.mrb[106].mxu1  ;;  %v13050_v40 = vld [vmem:[#allocation28] ss:$8 sps:$4 sm:$0x1f]  }
0x1345   : > { %v10140_v12 = vpop.f32.mrb[107].mxu1  ;;  %v13051_v15 = vld [vmem:[#allocation28] ss:$8 sps:$4 sm:$0x1f]  }
0x1346   : > { %v10152_v43 = vadd.f32 %v10140_v12, %v10075_v1  ;;  %v13054_v12 = vld [vmem:[#allocation28 + $0x4] ss:$8 sps:$4 sm:$0x1f]  }
0x134a   : > { %v12189_v26 = vpop.f32.mrb[108].mxu1 }
0x134b   : > { %v10228_v2 = vadd.f32 %v12189_v26, %v10153_v55  ;;  %v10212_v22 = vpop.f32.mrb[109].mxu1 }
0x134c   : > { %v10226_v4 = vadd.f32 %v10212_v22, %v10151_v62  ;;  %v12190_v61 = vpop.f32.mrb[110].mxu1  ;;  %v13053_v62 = vld [vmem:[#allocation28 + $0x4] ss:$8 sps:$4 sm:$0x1f]  }
0x134d   : > { %v10215_v50 = vpop.f32.mrb[111].mxu1 }
0x134e   : > { %v10227_v57 = vadd.f32 %v10215_v50, %v10152_v43 }
0x1352   : > { %v12197_v53 = vpop.f32.mrb[112].mxu1 }
0x1353   : > { %v10325_v23 = vadd.f32 %v12197_v53, %v10228_v2  ;;  %v10309_v33 = vpop.f32.mrb[113].mxu1 }
0x1354   : > { %v10323_v24 = vadd.f32 %v10309_v33, %v10226_v4  ;;  %v12198_v18 = vpop.f32.mrb[114].mxu1 }
0x1355   : > { %v10312_v32 = vpop.f32.mrb[115].mxu1 }
0x1356   : > { %v10324_v13 = vadd.f32 %v10312_v32, %v10227_v57 }
0x135a   : > { %v12205_v51 = vpop.f32.mrb[116].mxu1 }
0x135b   : > { %v10411_v59 = vadd.f32 %v12205_v51, %v10325_v23  ;;  %v10395_v48 = vpop.f32.mrb[117].mxu1 }
0x135c   : > { %v10409_v5 = vadd.f32 %v10395_v48, %v10323_v24  ;;  %v12206_v34 = vpop.f32.mrb[118].mxu1 }
0x135d   : > { %v10398_v10 = vpop.f32.mrb[119].mxu1 }
0x135e   : > { %v10410_v31 = vadd.f32 %v10398_v10, %v10324_v13 }
0x1362   : > { %v12213_v39 = vpop.f32.mrb[120].mxu1 }
0x1363   : > { %v10486_v6 = vadd.f32 %v12213_v39, %v10411_v59  ;;  %v10470_v9 = vpop.f32.mrb[121].mxu1 }
0x1364   : > { %v10484_v25 = vadd.f32 %v10470_v9, %v10409_v5  ;;  %v12214_v49 = vpop.f32.mrb[122].mxu1 }
0x1365   : > { %v10473_v21 = vpop.f32.mrb[123].mxu1 }
0x1366   : > { %v10485_v17 = vadd.f32 %v10473_v21, %v10410_v31 }
0x136a   : > { %v12221_v58 = vpop.f32.mrb[124].mxu1 }
0x136b   : > { %v10561_v27 = vadd.f32 %v12221_v58, %v10486_v6  ;;  %v10545_v14 = vpop.f32.mrb[125].mxu1 }
0x136c   : > { %v10559_v60 = vadd.f32 %v10545_v14, %v10484_v25  ;;  %v12222_v29 = vpop.f32.mrb[126].mxu1 }
0x136d   : > { %v10582_v36 = vadd.f32 %v10578_v52, %v10561_v27  ;;  %v10548_v8 = vpop.f32.mrb[127].mxu1 }
0x136e   : > { %v10580_v41 = vadd.f32 %v10568_v47, %v10559_v60  ;;  %v10560_v30 = vadd.f32 %v10548_v8, %v10485_v17 }
0x136f   : > { %v10585_v0 = vmax.f32 %v10582_v36, 0.0 }
0x1370   : > { %v10583_v7 = vmax.f32 %v10580_v41, 0.0  ;;  %v10581_v20 = vadd.f32 %v10573_v54, %v10560_v30 }
0x1371   : > { %v10606_v44 = vmul.f32 %v10602_v16, %v10585_v0 }
0x1372   : > { %v10604_v45 = vmul.f32 %v10592_v37, %v10583_v7  ;;  %v10584_v38 = vmax.f32 %v10581_v20, 0.0 }
0x1373   : > { %v10627_v46 = vadd.f32 %v10623_v35, %v10606_v44 }
0x1374   : > { %v10605_v28 = vmul.f32 %v10597_v63, %v10584_v38  ;;  %v10625_v1 = vadd.f32 %v10613_v56, %v10604_v45 }
0x1375   : > { %v10629_v3 = vpack.c.bf16 %v10627_v46, %v10627_v46 }
0x1376   : > { %v10626_v42 = vadd.f32 %v10618_v19, %v10605_v28 }
0x1377   : > { %10643 = vrot.lane.b32.xlu1 %v10629_v3, %s17624_s0  ;;  %v10699_v23 = vsel %vm10650_vm4, %v10629_v3, 0 }
0x1378   : > { %v10628_v55 = vpack.c.bf16 %v10626_v42, %v10625_v1 }
0x137a   : > { %10641 = vrot.lane.b32.xlu0 %v10628_v55, %s17624_s0  ;;  %s13866_s0 = smov 38  }
0x137b   : > { %10744 = vrot.lane.b32.xlu1 %v10628_v55, %s17642_s12 }
0x137e   : > { %10637 = vrot.lane.b32.xlu0 %v13050_v40, %s13863_s13 }
0x137f   : > { %10742 = vrot.lane.b32.xlu1 %v13050_v40, %s13864_s1 }
0x1382   : > { %10746 = vrot.lane.b32.xlu0 %v10629_v3, %s17642_s12  ;;  %s13867_s12 = smov 20  }
0x1383   : > { %10802 = vrot.lane.b32.xlu1 %v10629_v3, %s17630_s2 }
0x1386   : > { %10800 = vrot.lane.b32.xlu0 %v10628_v55, %s17630_s2 }
0x1387   : > { %10856 = vrot.lane.b32.xlu1 %v10628_v55, %s17621_s23 }
0x138a   : > { %10798 = vrot.lane.b32.xlu0 %v13050_v40, %s13865_s7 }
0x138b   : > { %10854 = vrot.lane.b32.xlu1 %v13050_v40, %s17649_s6 }
0x138e   : > { %10858 = vrot.lane.b32.xlu0 %v10629_v3, %s17621_s23  ;;  %s13868_s23 = smov 2  }
0x138f   : > { %10914 = vrot.lane.b32.xlu1 %v10629_v3, %s17644_s4 }
0x1392   : > { %10912 = vrot.lane.b32.xlu0 %v10628_v55, %s17644_s4 }
0x1393   : > { %11103 = vrot.lane.b32.xlu1 %v10629_v3, %s17647_s15 }
0x1396   : > { %10910 = vrot.lane.b32.xlu0 %v13050_v40, %s13866_s0 }
0x1397   : > { %10968 = vrot.lane.b32.xlu1 %v10628_v55, %s17640_s10 }
0x139a   : > { %10970 = vrot.lane.b32.xlu0 %v10629_v3, %s17640_s10 }
0x139b   : > { %11038 = vrot.lane.b32.xlu1 %v10628_v55, %s17646_s14 }
0x139e   : > { %10966 = vrot.lane.b32.xlu0 %v13050_v40, %s13867_s12 }
0x139f   : > { %11101 = vrot.lane.b32.xlu1 %v10628_v55, %s17647_s15 }
0x13a2   : > { %11040 = vrot.lane.b32.xlu0 %v10629_v3, %s17646_s14  ;;  %s11890_s14 = sshll.u32 %s17652_s26, 4 }
0x13a3   : > { %11034 = vrot.lane.b32.xlu1 %v13053_v62, %s13868_s23  ;;  %s1505_s15 = scalar_lea.vmem %s14072_s8, %s11890_s14 }
0x13a6   : > { %11032 = vrot.lane.b32.xlu0 %v13051_v15, %s13868_s23 }
0x13aa   : > { %11099 = vrot.lane.b32.xlu0 %v13054_v12, %s17631_s3 }
0x13e9   : > { %v10644_v43 = vpop.permute.xlu1 %10643 }
0x13ea   : > { %v10652_v22 = vsel %vm10650_vm4, %v10644_v43, 0 }
0x13ec   : > { %v10642_v26 = vpop.permute.xlu0 %10641 }
0x13ed   : > { %v10745_v2 = vpop.permute.xlu1 %10744  ;;  %12224 = vmatpush3.bf16.msra.mxu1 %v10642_v26 }
0x13ee   : > { %12225 = vmatprep.subr.bf16.mxu1 %v13856_v11 }
0x13f0   : > { %v10638_v4 = vpop.permute.xlu0 %10637 }
0x13f1   : > { %v10743_v61 = vpop.permute.xlu1 %10742  ;;  %12226 = vmatpush3.bf16.msra.mxu1 %v10652_v22 }
0x13f2   : > { %12231 = vmatprep.subr.bf16.mxu1 %v13856_v11 }
0x13f4   : > { %12228 = vmatmul.mubr.msk.bf16.vlgmr.msra.gmra.mrb[128].mxu1 %vm10646_vm5, %v10638_v4  ;;  %v10747_v50 = vpop.permute.xlu0 %10746 }
0x13f5   : > { %v10803_v57 = vpop.permute.xlu1 %10802  ;;  %12232 = vmatpush3.bf16.msra.mxu1 %v10628_v55  ;;  %12235 = vmatprep.mubr.msk.bf16.mxu1 %vm13857_vm12, %v13856_v11  ;;  %v10753_v32 = vsel %vm10650_vm4, %v10747_v50, 0 }
0x13f6   : > { %12233 = vmatprep.subr.bf16.mxu1 %v13856_v11  ;;  %v10809_v48 = vsel %vm10650_vm4, %v10803_v57, 0 }
0x13f8   : > { %v10801_v53 = vpop.permute.xlu0 %10800 }
0x13f9   : > { %v10857_v33 = vpop.permute.xlu1 %10856  ;;  %12234 = vmatpush3.bf16.msra.mxu1 %v10699_v23 }
0x13fa   : > { %12239 = vmatprep.subr.bf16.mxu1 %v13856_v11 }
0x13fc   : > { %12236 = vmatmul.mubr.msk.bf16.vlgmr.msra.gmra.mrb[132].mxu1 %vm10646_vm5, %v13050_v40  ;;  %v10799_v24 = vpop.permute.xlu0 %10798 }
0x13fd   : > { %v10855_v18 = vpop.permute.xlu1 %10854  ;;  %12240 = vmatpush3.bf16.msra.mxu1 %v10745_v2  ;;  %12243 = vmatprep.mubr.msk.bf16.mxu1 %vm13857_vm12, %v13856_v11 }
0x13fe   : > { %12241 = vmatprep.subr.bf16.mxu1 %v13856_v11 }
0x1400   : > { %v10859_v13 = vpop.permute.xlu0 %10858 }
0x1401   : > { %v10915_v47 = vpop.permute.xlu1 %10914  ;;  %12242 = vmatpush3.bf16.msra.mxu1 %v10753_v32  ;;  %v10865_v31 = vsel %vm10650_vm4, %v10859_v13, 0 }
0x1402   : > { %12247 = vmatprep.subr.bf16.mxu1 %v13856_v11  ;;  %v10921_v25 = vsel %vm10650_vm4, %v10915_v47, 0 }
0x1404   : > { %12244 = vmatmul.mubr.msk.bf16.vlgmr.msra.gmra.mrb[136].mxu1 %vm10646_vm5, %v10743_v61  ;;  %v10913_v51 = vpop.permute.xlu0 %10912 }
0x1405   : > { %v11104_v59 = vpop.permute.xlu1 %11103  ;;  %12248 = vmatpush3.bf16.msra.mxu1 %v10801_v53  ;;  %12251 = vmatprep.mubr.msk.bf16.mxu1 %vm13857_vm12, %v13856_v11 }
0x1406   : > { %12249 = vmatprep.subr.bf16.mxu1 %v13856_v11  ;;  %v11110_v17 = vsel %vm10650_vm4, %v11104_v59, 0 }
0x1408   : > { %v10911_v5 = vpop.permute.xlu0 %10910 }
0x1409   : > { %v10969_v34 = vpop.permute.xlu1 %10968  ;;  %12250 = vmatpush3.bf16.msra.mxu1 %v10809_v48  ;;  %v11155_v48 = vld [vmem:[#allocation30] sm:$0xff] }
0x140a   : > { %12255 = vmatprep.subr.bf16.mxu1 %v13856_v11 }
0x140c   : > { %12252 = vmatmul.mubr.msk.bf16.vlgmr.msra.gmra.mrb[140].mxu1 %vm10646_vm5, %v10799_v24  ;;  %v10971_v10 = vpop.permute.xlu0 %10970 }
0x140d   : > { %v11039_v54 = vpop.permute.xlu1 %11038  ;;  %12256 = vmatpush3.bf16.msra.mxu1 %v10857_v33  ;;  %12259 = vmatprep.mubr.msk.bf16.mxu1 %vm13857_vm12, %v13856_v11  ;;  %v10977_v63 = vsel %vm10650_vm4, %v10971_v10, 0 }
0x140e   : > { %12280 = vmatpush3.bf16.msra.mxu0 %v11039_v54  ;;  %12257 = vmatprep.subr.bf16.mxu1 %v13856_v11  ;;  %v11156_v54 = vld [vmem:[#allocation30 + $0x8] sm:$0x3] }
0x140f   : > { %12281 = vmatprep.subr.bf16.mxu0 %v13856_v11 }
0x1410   : > { %v10967_v52 = vpop.permute.xlu0 %10966 }
0x1411   : > { %12258 = vmatpush3.bf16.msra.mxu1 %v10865_v31  ;;  %v11102_v39 = vpop.permute.xlu1 %11101 }
0x1412   : > { %12263 = vmatprep.subr.bf16.mxu1 %v13856_v11 }
0x1414   : > { %12260 = vmatmul.mubr.msk.bf16.vlgmr.msra.gmra.mrb[144].mxu1 %vm10646_vm5, %v10855_v18  ;;  %v11041_v6 = vpop.permute.xlu0 %11040 }
0x1415   : > { %v11047_v9 = vsel %vm10650_vm4, %v11041_v6, 0  ;;  %12264 = vmatpush3.bf16.msra.mxu1 %v10913_v51  ;;  %12267 = vmatprep.mubr.msk.bf16.mxu1 %vm13857_vm12, %v13856_v11  ;;  %v11035_v37 = vpop.permute.xlu1 %11034  ;;  %v11161_v6 = vld [vmem:[#allocation31] sm:$0xff] }
0x1416   : > { %12282 = vmatpush3.bf16.msra.mxu0 %v11047_v9  ;;  %12265 = vmatprep.subr.bf16.mxu1 %v13856_v11 }
0x1417   : > { %12295 = vmatprep.subr.bf16.mxu0 %v13856_v11 }
0x1418   : > { %v11033_v49 = vpop.permute.xlu0 %11032 }
0x1419   : > { %12266 = vmatpush3.bf16.msra.mxu1 %v10921_v25  ;;  %v11037_v21 = vsel %vm11036_vm6, %v11033_v49, %v11035_v37  ;;  %v11162_v25 = vld [vmem:[#allocation31 + $0x8] sm:$0x3] }
0x141a   : > { %12271 = vmatprep.subr.bf16.mxu1 %v13856_v11  ;;  %12284 = vmatmul.mubr.msk.bf16.vlgmr.msra.gmra.mrb[220].mxu0 %vm10646_vm5, %v11037_v21 }
0x141b   : > { %12297 = vmatprep.mubr.msk.bf16.mxu0 %vm13857_vm12, %v13856_v11 }
0x141c   : > { %12268 = vmatmul.mubr.msk.bf16.vlgmr.msra.gmra.mrb[148].mxu1 %vm10646_vm5, %v10911_v5  ;;  %v11100_v56 = vpop.permute.xlu0 %11099 }
0x141d   : > { %12272 = vmatpush3.bf16.msra.mxu1 %v10969_v34  ;;  %12275 = vmatprep.mubr.msk.bf16.mxu1 %vm13857_vm12, %v13856_v11 }
0x141e   : > { %12273 = vmatprep.subr.bf16.mxu1 %v13856_v11 }
0x1421   : > { %12274 = vmatpush3.bf16.msra.mxu1 %v10977_v63  ;;  %v11165_v63 = vld [vmem:[#allocation33] sm:$0xff] }
0x1422   : > { %12287 = vmatprep.subr.bf16.mxu1 %v13856_v11 }
0x1424   : > { %12276 = vmatmul.mubr.msk.bf16.vlgmr.msra.gmra.mrb[152].mxu1 %vm10646_vm5, %v10967_v52 }
0x1425   : > { %12288 = vmatpush3.bf16.msra.mxu1 %v11102_v39  ;;  %12291 = vmatprep.mubr.msk.bf16.mxu1 %vm13857_vm12, %v13856_v11 }
0x1426   : > { %12289 = vmatprep.subr.bf16.mxu1 %v13856_v11 }
0x1429   : > { %12290 = vmatpush3.bf16.msra.mxu1 %v11110_v17  ;;  %v11166_v17 = vld [vmem:[#allocation33 + $0x8] sm:$0x3] }
0x142c   : > { %12292 = vmatmul.mubr.msk.bf16.vlgmr.msra.gmra.mrb[156].mxu1 %vm10646_vm5, %v11100_v56 }
0x14c7   : > { %v10688_v58 = vpop.f32.mrb[128].mxu1 }
0x14c8   : > { %v12229_v27 = vpop.f32.mrb[129].mxu1 }
0x14c9   : > { %v10691_v14 = vpop.f32.mrb[130].mxu1 }
0x14ca   : > { %v12230_v19 = vpop.f32.mrb[131].mxu1 }
0x14cf   : > { %v10735_v60 = vpop.f32.mrb[132].mxu1 }
0x14d0   : > { %v10736_v29 = vadd.f32 %v10735_v60, %v10688_v58  ;;  %v12237_v36 = vpop.f32.mrb[133].mxu1  ;;  %v13055_v60 = vld [vmem:[#allocation34] sm:$0x1f]  }
0x14d1   : > { %v10738_v8 = vpop.f32.mrb[134].mxu1 }
0x14d2   : > { %v10739_v41 = vadd.f32 %v10738_v8, %v10691_v14  ;;  %v12238_v30 = vpop.f32.mrb[135].mxu1  ;;  %v11173_v8 = vld [vmem:[#allocation36 + $0x8] sm:$0x3] }
0x14d7   : > { %v10789_v0 = vpop.f32.mrb[136].mxu1 }
0x14d8   : > { %v10796_v16 = vadd.f32 %v10789_v0, %v10736_v29  ;;  %v12245_v7 = vpop.f32.mrb[137].mxu1  ;;  %v11172_v29 = vld [vmem:[#allocation36] sm:$0xff] }
0x14d9   : > { %v10792_v11 = vpop.f32.mrb[138].mxu1 }
0x14da   : > { %v10797_v20 = vadd.f32 %v10792_v11, %v10739_v41  ;;  %v12246_v44 = vpop.f32.mrb[139].mxu1 }
0x14df   : > { %v10845_v35 = vpop.f32.mrb[140].mxu1 }
0x14e0   : > { %v10852_v45 = vadd.f32 %v10845_v35, %v10796_v16  ;;  %v12253_v38 = vpop.f32.mrb[141].mxu1 }
0x14e1   : > { %v10848_v46 = vpop.f32.mrb[142].mxu1 }
0x14e2   : > { %v10853_v28 = vadd.f32 %v10848_v46, %v10797_v20  ;;  %v12254_v3 = vpop.f32.mrb[143].mxu1 }
0x14e7   : > { %v10901_v1 = vpop.f32.mrb[144].mxu1 }
0x14e8   : > { %v10908_v42 = vadd.f32 %v10901_v1, %v10852_v45  ;;  %v12261_v55 = vpop.f32.mrb[145].mxu1 }
0x14e9   : > { %v10904_v40 = vpop.f32.mrb[146].mxu1 }
0x14ea   : > { %v10909_v62 = vadd.f32 %v10904_v40, %v10853_v28  ;;  %v12262_v15 = vpop.f32.mrb[147].mxu1 }
0x14ed   : > { %v11083_v12 = vpop.f32.mrb[220].mxu0 }
0x14ee   : > { %v12285_v43 = vpop.f32.mrb[221].mxu0 }
0x14ef   : > { %v10957_v26 = vpop.f32.mrb[148].mxu1  ;;  %v11086_v2 = vpop.f32.mrb[222].mxu0 }
0x14f0   : > { %v10964_v22 = vadd.f32 %v10957_v26, %v10908_v42  ;;  %v12269_v4 = vpop.f32.mrb[149].mxu1  ;;  %v12286_v61 = vpop.f32.mrb[223].mxu0 }
0x14f1   : > { %v10960_v50 = vpop.f32.mrb[150].mxu1 }
0x14f2   : > { %v10965_v57 = vadd.f32 %v10960_v50, %v10909_v62  ;;  %v12270_v53 = vpop.f32.mrb[151].mxu1 }
0x14f7   : > { %v11013_v23 = vpop.f32.mrb[152].mxu1 }
0x14f8   : > { %v11020_v33 = vadd.f32 %v11013_v23, %v10964_v22  ;;  %v12277_v24 = vpop.f32.mrb[153].mxu1 }
0x14f9   : > { %v11016_v18 = vpop.f32.mrb[154].mxu1 }
0x14fa   : > { %v11021_v32 = vadd.f32 %v11016_v18, %v10965_v57  ;;  %v11090_v13 = vadd.f32 %v11083_v12, %v11020_v33  ;;  %v12278_v47 = vpop.f32.mrb[155].mxu1 }
0x14fc   : > { %v11091_v51 = vadd.f32 %v11086_v2, %v11021_v32 }
0x14ff   : > { %v11146_v59 = vpop.f32.mrb[156].mxu1 }
0x1500   : > { %v11153_v5 = vadd.f32 %v11146_v59, %v11090_v13  ;;  %v12293_v34 = vpop.f32.mrb[157].mxu1 }
0x1501   : > { %v11149_v10 = vpop.f32.mrb[158].mxu1 }
0x1502   : > { %v11157_v31 = vadd.f32 %v11155_v48, %v11153_v5  ;;  %v11154_v52 = vadd.f32 %v11149_v10, %v11091_v51  ;;  %v12294_v39 = vpop.f32.mrb[159].mxu1 }
0x1504   : > { %v11159_v9 = vmax.f32 %v11157_v31, 0.0  ;;  %v11158_v37 = vadd.f32 %v11156_v54, %v11154_v52 }
0x1506   : > { %v11163_v49 = vmul.f32 %v11161_v6, %v11159_v9  ;;  %v11160_v21 = vmax.f32 %v11158_v37, 0.0 }
0x1508   : > { %v11164_v56 = vmul.f32 %v11162_v25, %v11160_v21  ;;  %v11167_v58 = vadd.f32 %v11165_v63, %v11163_v49 }
0x150a   : > { %v11168_v27 = vadd.f32 %v11166_v17, %v11164_v56 }
0x150c   : > { %v11169_v14 = vpack.c.bf16 %v11168_v27, %v11167_v58 }
0x150e   : > { %v11185_v19 = vsel %vm11183_vm7, %v11169_v14, 0 }
0x150f   : > { %12296 = vmatpush3.bf16.msra.mxu0 %v11185_v19 }
0x1512   : > { %12298 = vmatmul.mubr.msk.bf16.vlgmr.msra.gmra.mrb[224].mxu0 %vm11179_vm8, %v13055_v60 }
0x15e5   : > { %v11221_v36 = vpop.f32.mrb[224].mxu0 }
0x15e6   : > { %v12299_v41 = vpop.f32.mrb[225].mxu0  ;;  %v11222_v0 = vadd.f32 %v11221_v36, %v11172_v29 }
0x15e7   : > { %v11224_v30 = vpop.f32.mrb[226].mxu0 }
0x15e8   : > { %v11225_v16 = vadd.f32 %v11224_v30, %v11173_v8  ;;  %v12300_v7 = vpop.f32.mrb[227].mxu0 }
0x15ea   : > { %v11228_v11 = vpack.c.bf16 %v11225_v16, %v11222_v0 }
0x15ec   : > { %v11229_v20 = vunpack.c.l.bf16 %v11228_v11  ;;  %v11230_v44 = vunpack.c.h.bf16 %v11228_v11 }
0x15ee   : > { %v11232_v35 = vsel %vm11231_vm9, %v11229_v20, -inf  ;;  %v11234_v45 = vsel %vm11233_vm10, %v11230_v44, -inf }
0x15ef   : > { %v11235_v38 = vmax.f32 %v11232_v35, %v11234_v45 }
0x15f1   : > { %v11236_v46 = vrot.slane %v11235_v38, 4 }
0x15f3   : > { %v11237_v28 = vmax.f32 %v11235_v38, %v11236_v46 }
0x15f5   : > { %v11238_v3 = vrot.slane %v11237_v28, 2 }
0x15f7   : > { %v11239_v1 = vmax.f32 %v11237_v28, %v11238_v3 }
0x15f9   : > { %v11240_v42 = vrot.slane %v11239_v1, 1 }
0x15fb   : > { %v11241_v55 = vmax.f32 %v11239_v1, %v11240_v42 }
0x15fd   : > { %v11242_v40 = vsub.f32 %v11229_v20, %v11241_v55  ;;  %v11243_v62 = vsub.f32 %v11230_v44, %v11241_v55 }
0x15ff   : > { %v11244_v15 = vmul.f32 1.442695, %v11242_v40  ;;  %v11246_v12 = vmul.f32 1.442695, %v11243_v62 }
0x1601   : > { %13056 = vpow2.f32 %v11244_v15 }
0x1602   : > { %13058 = vpow2.f32 %v11246_v12 }
0x160b   : > { %v13057_v43 = vpop.eup %13056 }
0x160c   : > { %v13059_v26 = vpop.eup %13058  ;;  %v11248_v2 = vsel %vm11231_vm9, %v13057_v43, 0.0 }
0x160d   : > { %v11249_v22 = vsel %vm11233_vm10, %v13059_v26, 0.0 }
0x160e   : > { %v11250_v4 = vadd.f32 %v11249_v22, %v11248_v2 }
0x1610   : > { %v11251_v61 = vrot.slane %v11250_v4, 4 }
0x1612   : > { %v11252_v50 = vadd.f32 %v11251_v61, %v11250_v4 }
0x1614   : > { %v11253_v57 = vrot.slane %v11252_v50, 2 }
0x1616   : > { %v11254_v53 = vadd.f32 %v11253_v57, %v11252_v50 }
0x1618   : > { %v11255_v23 = vrot.slane %v11254_v53, 1 }
0x161a   : > { %v11256_v33 = vadd.f32 %v11255_v23, %v11254_v53 }
0x161c   : > { %13060 = vlog2.f32 %v11256_v33 }
0x1626   : > { %v13061_v24 = vpop.eup %13060 }
0x1627   : > { %v11258_v18 = vmul.f32 0.6931472, %v13061_v24 }
0x1629   : > { %v11259_v32 = vsub.f32 %v11242_v40, %v11258_v18  ;;  %v11260_v13 = vsub.f32 %v11243_v62, %v11258_v18 }
0x162b   : > { %11261 = vst.msk [vmem:[%s1505_s15] sm:$0xff] %vm11231_vm9, %v11259_v32 }
0x162c   : > { %11262 = vst.msk [vmem:[%s1505_s15 + $0x8] sm:$0x3] %vm11233_vm10, %v11260_v13 }
0x162d PF: > { %s101_s22 = sadd.s32 1, %s13760_s22  }
0x162e   : > { %p98_p1 = scmp.ge.s32.totalorder %s101_s22, 4  }
0x1630   :  { %100 = sbr.rel (!%p98_p1) target bundleno = 86 (0x56), region = 338 }
0x1637   :  { %11284 = vsyncpa [#allocation3], 1 }
0x1638   :  { %11286 = vsyncpa [#allocation3 + $0x1], 1 }
0x1639   :  { %11287 = vsyncpa [#allocation5], 1 }
0x163a   :  { %11288 = vsyncpa [#allocation8], 1 }
0x163b   :  { %11289 = vsyncpa [#allocation11], 1 }
0x163c   :  { %11290 = vsyncpa [#allocation14], 1 }
0x163d   :  { %11291 = vsyncpa [#allocation17], 1 }
0x163e   :  { %11292 = vsyncpa [#allocation20], 1 }
0x163f   :  { %11293 = vsyncpa [#allocation23], 1 }
0x1640   :  { %11294 = vsyncpa [#allocation26], 1 }
0x1641   :  { %11295 = vsyncpa [#allocation29], 1 }
0x1642   :  { %11296 = vsyncpa [#allocation32], 1 }
0x1643   :  { %11297 = vsyncpa [#allocation35], 1 }

</bundles_post_ra>
